<compile_context>
chip_gen: v6e
topology: v6e:2x2x1
jax: 0.10.0
libtpu: 0.0.40
codegen_flags: <defaults>
</compile_context>

<pallas_src>
import math
from functools import partial

import jax
import jax.numpy as jnp
from jax.experimental import pallas as pl
from jax.experimental.pallas import tpu as pltpu

NEG_INF = -1e30            # large-negative stand-in for PyTorch's -inf mask fill
LN_EPS = 1e-5              # torch LayerNorm default
ACT_DTYPE = jnp.float32    # set to jnp.bfloat16 to halve inter-layer HBM traffic


# --------------------------------------------------------------------------
# feature probe / compiler-parameter helpers
# --------------------------------------------------------------------------

def _probe_buffered_support():
    """Check that BlockSpec(pipeline_mode=pl.Buffered(1)) lowers and runs.

    Single-buffering constant operands (weights/biases) halves their VMEM
    footprint at zero perf cost; fall back to default double-buffering if the
    running JAX/Mosaic build rejects it, so the script always runs.
    """
    try:
        def k(a_ref, w_ref, o_ref):
            o_ref[...] = a_ref[...] + w_ref[...]

        a = jnp.zeros((16, 128), jnp.float32)
        w = jnp.ones((8, 128), jnp.float32)
        out = pl.pallas_call(
            k,
            out_shape=jax.ShapeDtypeStruct((16, 128), jnp.float32),
            grid=(2,),
            in_specs=[pl.BlockSpec((8, 128), lambda i: (i, 0)),
                      pl.BlockSpec((8, 128), lambda i: (0, 0),
                                   pipeline_mode=pl.Buffered(1))],
            out_specs=pl.BlockSpec((8, 128), lambda i: (i, 0)),
        )(a, w)
        out = jax.block_until_ready(out)
        return bool(jnp.all(out == 1.0))
    except Exception:
        return False


_SINGLE_BUFFER_CONSTS = _probe_buffered_support()


def _vmem_limit_bytes():
    """Scoped-VMEM ceiling: ~80% of physical, capped at 100 MiB (v5e/v6e);
    on v7x (64 MiB physical) this lands at ~51 MiB, per the review guidance."""
    try:
        cap = pltpu.get_tpu_info().vmem_capacity_bytes
    except Exception:
        cap = 64 * 1024 * 1024
    return int(min(cap * 0.8, 100 * 1024 * 1024))


VMEM_LIMIT_BYTES = _vmem_limit_bytes()


def _const_spec(shape):
    """BlockSpec for an operand identical at every grid step (weights, biases,
    shared masks).  Single-buffered when supported — double-buffering a
    constant-index block is pure VMEM waste (it is only DMA'd once anyway)."""
    idx = lambda *_: (0,) * len(shape)
    if _SINGLE_BUFFER_CONSTS:
        return pl.BlockSpec(shape, idx, pipeline_mode=pl.Buffered(1))
    return pl.BlockSpec(shape, idx)


def _compiler_params(dim_sem):
    return pltpu.CompilerParams(dimension_semantics=dim_sem,
                                vmem_limit_bytes=VMEM_LIMIT_BYTES)


# --------------------------------------------------------------------------
# in-kernel helpers (operate on values already loaded from refs)
# --------------------------------------------------------------------------

def _mm(a, w_bf16):
    """a @ w with bf16 MXU operands (w pre-cast bf16) and f32 accumulation."""
    return jnp.dot(a.astype(jnp.bfloat16), w_bf16,
                   preferred_element_type=jnp.float32)


def _layernorm(x, g, b, eps=LN_EPS):
    x = x.astype(jnp.float32)
    mu = jnp.mean(x, axis=-1, keepdims=True)
    xc = x - mu
    var = jnp.mean(xc * xc, axis=-1, keepdims=True)
    return xc * jax.lax.rsqrt(var + eps) * g + b


def _erf(x):
    # Abramowitz & Stegun 7.1.26 (max abs err ~1.5e-7): exact-GELU to f32 noise.
    # (A tanh-GELU would trim VALU ops on v5e but deviates from torch's erf GELU.)
    a1, a2, a3, a4, a5 = (0.254829592, -0.284496736, 1.421413741,
                          -1.453152027, 1.061405429)
    p = 0.3275911
    sgn = jnp.where(x >= 0.0, 1.0, -1.0)
    ax = jnp.abs(x)
    t = 1.0 / (1.0 + p * ax)
    poly = ((((a5 * t + a4) * t + a3) * t + a2) * t + a1) * t
    return sgn * (1.0 - poly * jnp.exp(-ax * ax))


def _gelu(x):
    return 0.5 * x * (1.0 + _erf(x * (1.0 / math.sqrt(2.0))))


def _attention_core(q, k, v, mask, nhead):
    """Head-batched scaled-dot-product attention.

    q: (L, E) f32, k/v: (S, E) f32, mask: additive f32 broadcastable to (L, S).
    Heads are batched into single batched dot_generals (one MXU stream each)
    instead of a per-head loop with sub-128-lane slices + concat.
    """
    L, E = q.shape
    S = k.shape[0]
    D = E // nhead
    scale = 1.0 / math.sqrt(D)
    qh = q.reshape(L, nhead, D).transpose(1, 0, 2).astype(jnp.bfloat16)  # (H,L,D)
    kh = k.reshape(S, nhead, D).transpose(1, 0, 2).astype(jnp.bfloat16)  # (H,S,D)
    vh = v.reshape(S, nhead, D).transpose(1, 0, 2).astype(jnp.bfloat16)  # (H,S,D)
    s = jnp.einsum('hld,hsd->hls', qh, kh,
                   preferred_element_type=jnp.float32)                   # (H,L,S)
    s = s * scale + mask[None]
    s = s - jnp.max(s, axis=-1, keepdims=True)
    p = jnp.exp(s)
    # EUP reciprocal frees VALU slots vs an exact divide
    p = p * pl.reciprocal(jnp.sum(p, axis=-1, keepdims=True), approx=True)
    o = jnp.einsum('hls,hsd->hld', p.astype(jnp.bfloat16), vh,
                   preferred_element_type=jnp.float32)                   # (H,L,D)
    return o.transpose(1, 0, 2).reshape(L, E)


def _self_mha(h, mask, wqkv, bqkv, wo, bo, nhead):
    E = h.shape[-1]
    qkv = _mm(h, wqkv) + bqkv                     # fused (E,3E) projection
    q, k, v = qkv[:, :E], qkv[:, E:2 * E], qkv[:, 2 * E:]
    o = _attention_core(q, k, v, mask, nhead)
    return _mm(o, wo) + bo


def _cross_mha(h_q, h_kv, mask, wq, bq, wkv, bkv, wo, bo, nhead):
    E = h_q.shape[-1]
    q = _mm(h_q, wq) + bq
    kv = _mm(h_kv, wkv) + bkv                     # fused (E,2E) K/V projection
    k, v = kv[:, :E], kv[:, E:]
    o = _attention_core(q, k, v, mask, nhead)
    return _mm(o, wo) + bo


def _ffn(h, w1, b1, w2, b2):
    return _mm(_gelu(_mm(h, w1) + b1), w2) + b2


# --------------------------------------------------------------------------
# fused layer kernels
# --------------------------------------------------------------------------

def _encoder_layer_kernel(nhead, x_ref, amask_ref, pad_ref,
                          g1, be1, wqkv, bqkv, wo, bo,
                          g2, be2, w1, b1, w2, b2, o_ref):
    x = x_ref[0].astype(jnp.float32)                   # (S, E)
    mask = amask_ref[...] + pad_ref[0]                 # (S,S) + (1,S) built in VMEM
    h = _layernorm(x, g1[...], be1[...])
    x = x + _self_mha(h, mask, wqkv[...], bqkv[...], wo[...], bo[...], nhead)
    h = _layernorm(x, g2[...], be2[...])
    x = x + _ffn(h, w1[...], b1[...], w2[...], b2[...])
    o_ref[0] = x.astype(o_ref.dtype)


def _decoder_layer_kernel(nhead, y_ref, mem_ref, tmask_ref, tpad_ref, mpad_ref,
                          g1, be1, swqkv, sbqkv, swo, sbo,
                          g2, be2, cwq, cbq, cwkv, cbkv, cwo, cbo,
                          g3, be3, w1, b1, w2, b2, o_ref):
    y = y_ref[0].astype(jnp.float32)                   # (L, E)
    mem = mem_ref[0].astype(jnp.float32)               # (S, E)
    smask = tmask_ref[...] + tpad_ref[0]               # (L,L)
    cmask = mpad_ref[0]                                # (1,S) -> broadcasts to (L,S)
    h = _layernorm(y, g1[...], be1[...])
    y = y + _self_mha(h, smask, swqkv[...], sbqkv[...], swo[...], sbo[...], nhead)
    h = _layernorm(y, g2[...], be2[...])
    y = y + _cross_mha(h, mem, cmask, cwq[...], cbq[...], cwkv[...], cbkv[...],
                       cwo[...], cbo[...], nhead)
    h = _layernorm(y, g3[...], be3[...])
    y = y + _ffn(h, w1[...], b1[...], w2[...], b2[...])
    o_ref[0] = y.astype(o_ref.dtype)


def _layernorm_kernel(x_ref, g_ref, b_ref, o_ref):
    o_ref[...] = _layernorm(x_ref[...].astype(jnp.float32),
                            g_ref[...], b_ref[...]).astype(o_ref.dtype)


def _norm_linear_kernel(x_ref, g_ref, b_ref, w_ref, wb_ref, o_ref):
    # LN is recomputed per vocab tile; negligible next to the (bm,E)@(E,bv) matmul.
    h = _layernorm(x_ref[...].astype(jnp.float32), g_ref[...], b_ref[...])
    o_ref[...] = (_mm(h, w_ref[...]) + wb_ref[...]).astype(o_ref.dtype)


# --------------------------------------------------------------------------
# pallas_call wrappers
# --------------------------------------------------------------------------

def _ln_args(ln):
    return [ln[0], ln[1]]


def _ln_specs(E):
    return [_const_spec((1, E)), _const_spec((1, E))]


def _sa_args(p):
    return [p["wqkv"], p["bqkv"], p["wo"], p["bo"]]


def _sa_specs(E):
    return [_const_spec((E, 3 * E)), _const_spec((1, 3 * E)),
            _const_spec((E, E)), _const_spec((1, E))]


def _ca_args(p):
    return [p["wq"], p["bq"], p["wkv"], p["bkv"], p["wo"], p["bo"]]


def _ca_specs(E):
    return [_const_spec((E, E)), _const_spec((1, E)),
            _const_spec((E, 2 * E)), _const_spec((1, 2 * E)),
            _const_spec((E, E)), _const_spec((1, E))]


def _ffn_args(lp):
    return [lp["w1"], lp["b1"], lp["w2"], lp["b2"]]


def _ffn_specs(E, F):
    return [_const_spec((E, F)), _const_spec((1, F)),
            _const_spec((F, E)), _const_spec((1, E))]


# TODO(synk): at production S/L, add a query-tile grid axis (flash-style online
# softmax over KV) so v7x's second TensorCore has work at small N and (L,S)
# score tiles stay bounded; at toy shapes the per-batch grid is sufficient.
def encoder_layer_pallas(x, attn_mask2d, pad_add, lp, nhead):
    N, S, E = x.shape
    F = lp["w1"].shape[-1]
    in_specs = ([pl.BlockSpec((1, S, E), lambda i: (i, 0, 0)),
                 _const_spec((S, S)),
                 pl.BlockSpec((1, 1, S), lambda i: (i, 0, 0))]
                + _ln_specs(E) + _sa_specs(E) + _ln_specs(E) + _ffn_specs(E, F))
    args = ([x, attn_mask2d, pad_add] + _ln_args(lp["n1"]) + _sa_args(lp["sa"])
            + _ln_args(lp["n2"]) + _ffn_args(lp))
    return pl.pallas_call(
        partial(_encoder_layer_kernel, nhead),
        out_shape=jax.ShapeDtypeStruct((N, S, E), ACT_DTYPE),
        grid=(N,),
        in_specs=in_specs,
        out_specs=pl.BlockSpec((1, S, E), lambda i: (i, 0, 0)),
        compiler_params=_compiler_params(("parallel",)),
    )(*args)


def decoder_layer_pallas(y, memory, tgt_attn2d, tgt_pad, mem_pad, lp, nhead):
    N, L, E = y.shape
    S = memory.shape[1]
    F = lp["w1"].shape[-1]
    in_specs = ([pl.BlockSpec((1, L, E), lambda i: (i, 0, 0)),
                 pl.BlockSpec((1, S, E), lambda i: (i, 0, 0)),
                 _const_spec((L, L)),
                 pl.BlockSpec((1, 1, L), lambda i: (i, 0, 0)),
                 pl.BlockSpec((1, 1, S), lambda i: (i, 0, 0))]
                + _ln_specs(E) + _sa_specs(E)
                + _ln_specs(E) + _ca_specs(E)
                + _ln_specs(E) + _ffn_specs(E, F))
    args = ([y, memory, tgt_attn2d, tgt_pad, mem_pad]
            + _ln_args(lp["n1"]) + _sa_args(lp["sa"])
            + _ln_args(lp["n2"]) + _ca_args(lp["ca"])
            + _ln_args(lp["n3"]) + _ffn_args(lp))
    return pl.pallas_call(
        partial(_decoder_layer_kernel, nhead),
        out_shape=jax.ShapeDtypeStruct((N, L, E), ACT_DTYPE),
        grid=(N,),
        in_specs=in_specs,
        out_specs=pl.BlockSpec((1, L, E), lambda i: (i, 0, 0)),
        compiler_params=_compiler_params(("parallel",)),
    )(*args)


def _pick_row_block(M, cap=1024):
    for t in (1024, 512, 256, 128, 64, 32, 16, 8):
        if t <= cap and M % t == 0 and M >= t:
            return t
    return M


def _pick_vocab_block(V):
    for t in (512, 256, 128):
        if V % t == 0:
            return t
    return V


def layernorm_pallas(x, gamma, beta, out_dtype=None):
    lead = x.shape[:-1]
    E = x.shape[-1]
    x2 = x.reshape(-1, E)
    M = x2.shape[0]
    bm = _pick_row_block(M)                 # large row tiles: HBM-BW-bound kernel
    out_dtype = out_dtype or x.dtype
    out = pl.pallas_call(
        _layernorm_kernel,
        out_shape=jax.ShapeDtypeStruct((M, E), out_dtype),
        grid=(M // bm,),
        in_specs=[pl.BlockSpec((bm, E), lambda i: (i, 0)),
                  _const_spec((1, E)), _const_spec((1, E))],
        out_specs=pl.BlockSpec((bm, E), lambda i: (i, 0)),
        compiler_params=_compiler_params(("parallel",)),
    )(x2, gamma, beta)
    return out.reshape(*lead, E)


def norm_linear_pallas(x, gamma, beta, w, b):
    """Fused final LayerNorm + generator linear: LN(x) @ w + b, 2-D grid
    (row tiles x vocab tiles) so the whole (E,V) generator is never staged."""
    lead = x.shape[:-1]
    E = x.shape[-1]
    V = w.shape[-1]
    x2 = x.reshape(-1, E)
    M = x2.shape[0]
    bm = _pick_row_block(M, cap=256)
    bv = _pick_vocab_block(V)
    out = pl.pallas_call(
        _norm_linear_kernel,
        out_shape=jax.ShapeDtypeStruct((M, V), jnp.float32),
        grid=(M // bm, V // bv),
        in_specs=[pl.BlockSpec((bm, E), lambda i, j: (i, 0)),
                  _const_spec((1, E)), _const_spec((1, E)),
                  pl.BlockSpec((E, bv), lambda i, j: (0, j)),
                  pl.BlockSpec((1, bv), lambda i, j: (0, j))],
        out_specs=pl.BlockSpec((bm, bv), lambda i, j: (i, j)),
        compiler_params=_compiler_params(("parallel", "parallel")),
    )(x2, gamma, beta, w, b)
    return out.reshape(*lead, V)


# --------------------------------------------------------------------------
# model glue (embeddings, positional encoding, thin mask construction)
# --------------------------------------------------------------------------

def token_embed(tokens, table):
    emb_size = table.shape[1]
    return jnp.take(table, tokens, axis=0) * math.sqrt(emb_size)


def make_pos_embedding(emb_size, maxlen=5000):
    den = jnp.exp(
        -jnp.arange(0, emb_size, 2, dtype=jnp.float32) * (math.log(10000.0) / emb_size))
    pos = jnp.arange(maxlen, dtype=jnp.float32)[:, None]
    pe = jnp.zeros((maxlen, emb_size), jnp.float32)
    pe = pe.at[:, 0::2].set(jnp.sin(pos * den))
    pe = pe.at[:, 1::2].set(jnp.cos(pos * den))
    return pe[:, None, :]  # (maxlen, 1, emb_size)


def positional_encoding(tok_emb, pos_emb):
    # NOTE: faithfully reproduces PositionalEncoding.forward, which indexes
    # pos_embedding by token_embedding.size(0) -- the BATCH dim for batch_first
    # inputs -- and broadcasts the (N, 1, E) slice over the sequence axis.
    N = tok_emb.shape[0]
    return tok_emb + pos_emb[:N]


def _attn_mask_2d(attn_mask, L, S):
    if attn_mask is None:
        return jnp.zeros((L, S), jnp.float32)
    return attn_mask.astype(jnp.float32)


def _padding_additive(pad_mask, N, S):
    """Additive (N,1,S) f32 rows from a (N,S) bool key_padding_mask."""
    if pad_mask is None:
        return jnp.zeros((N, 1, S), jnp.float32)
    return jnp.where(pad_mask, NEG_INF, 0.0).astype(jnp.float32).reshape(N, 1, S)


def seq2seq_forward(params, src, trg, src_mask, tgt_mask,
                    src_padding_mask, tgt_padding_mask,
                    memory_key_padding_mask, *, nhead):
    src_emb = positional_encoding(token_embed(src, params["src_emb"]), params["pos"])
    tgt_emb = positional_encoding(token_embed(trg, params["tgt_emb"]), params["pos"])
    N, S, _ = src_emb.shape
    L = tgt_emb.shape[1]

    # Thin masks only (no (N,L,S) additive masks materialized in HBM):
    src_attn = _attn_mask_2d(src_mask, S, S)
    tgt_attn = _attn_mask_2d(tgt_mask, L, L)
    src_pad = _padding_additive(src_padding_mask, N, S)
    tgt_pad = _padding_additive(tgt_padding_mask, N, L)
    mem_pad = _padding_additive(memory_key_padding_mask, N, S)

    # ---- encoder (norm_first), one fused kernel per layer ----
    x = src_emb
    for lp in params["enc_layers"]:
        x = encoder_layer_pallas(x, src_attn, src_pad, lp, nhead)
    memory = layernorm_pallas(x, *params["enc_norm"], out_dtype=ACT_DTYPE)

    # ---- decoder (norm_first), one fused kernel per layer ----
    y = tgt_emb
    for lp in params["dec_layers"]:
        y = decoder_layer_pallas(y, memory, tgt_attn, tgt_pad, mem_pad, lp, nhead)

    # ---- final decoder LayerNorm fused with the generator projection ----
    return norm_linear_pallas(y, params["dec_norm"][0], params["dec_norm"][1],
                              params["gen_w"], params["gen_b"])


# --------------------------------------------------------------------------
# parameter init (weights pre-fused & pre-cast to bf16; biases/LN stay f32)
# --------------------------------------------------------------------------

def init_params(key, num_enc, num_dec, emb_size, nhead, dim_ff,
                src_vocab, tgt_vocab):
    keys = iter(jax.random.split(key, 512))

    def lin(in_f, out_f):
        w = jax.random.normal(next(keys), (in_f, out_f), jnp.float32) / math.sqrt(in_f)
        b = 0.01 * jax.random.normal(next(keys), (out_f,), jnp.float32)
        return w, b

    def self_attn_p():
        wq, bq = lin(emb_size, emb_size)
        wk, bk = lin(emb_size, emb_size)
        wv, bv = lin(emb_size, emb_size)
        wo, bo = lin(emb_size, emb_size)
        return dict(
            wqkv=jnp.concatenate([wq, wk, wv], axis=1).astype(jnp.bfloat16),
            bqkv=jnp.concatenate([bq, bk, bv]).reshape(1, -1),
            wo=wo.astype(jnp.bfloat16), bo=bo.reshape(1, -1))

    def cross_attn_p():
        wq, bq = lin(emb_size, emb_size)
        wk, bk = lin(emb_size, emb_size)
        wv, bv = lin(emb_size, emb_size)
        wo, bo = lin(emb_size, emb_size)
        return dict(
            wq=wq.astype(jnp.bfloat16), bq=bq.reshape(1, -1),
            wkv=jnp.concatenate([wk, wv], axis=1).astype(jnp.bfloat16),
            bkv=jnp.concatenate([bk, bv]).reshape(1, -1),
            wo=wo.astype(jnp.bfloat16), bo=bo.reshape(1, -1))

    def ln_p():
        return (jnp.ones((1, emb_size), jnp.float32),
                jnp.zeros((1, emb_size), jnp.float32))

    enc_layers = []
    for _ in range(num_enc):
        w1, b1 = lin(emb_size, dim_ff)
        w2, b2 = lin(dim_ff, emb_size)
        enc_layers.append(dict(
            sa=self_attn_p(),
            w1=w1.astype(jnp.bfloat16), b1=b1.reshape(1, -1),
            w2=w2.astype(jnp.bfloat16), b2=b2.reshape(1, -1),
            n1=ln_p(), n2=ln_p()))

    dec_layers = []
    for _ in range(num_dec):
        w1, b1 = lin(emb_size, dim_ff)
        w2, b2 = lin(dim_ff, emb_size)
        dec_layers.append(dict(
            sa=self_attn_p(), ca=cross_attn_p(),
            w1=w1.astype(jnp.bfloat16), b1=b1.reshape(1, -1),
            w2=w2.astype(jnp.bfloat16), b2=b2.reshape(1, -1),
            n1=ln_p(), n2=ln_p(), n3=ln_p()))

    gen_w, gen_b = lin(emb_size, tgt_vocab)

    return dict(
        src_emb=jax.random.normal(next(keys), (src_vocab, emb_size), jnp.float32),
        tgt_emb=jax.random.normal(next(keys), (tgt_vocab, emb_size), jnp.float32),
        pos=make_pos_embedding(emb_size),
        enc_layers=enc_layers,
        dec_layers=dec_layers,
        enc_norm=ln_p(),
        dec_norm=ln_p(),
        gen_w=gen_w.astype(jnp.bfloat16),
        gen_b=gen_b.reshape(1, -1),
    )


# --------------------------------------------------------------------------
# main
# --------------------------------------------------------------------------

if __name__ == "__main__":
    num_encoder_layers = 2
    num_decoder_layers = 2
    emb_size = 32
    nhead = 4
    dim_feedforward = 64
    src_vocab_size = 50
    tgt_vocab_size = 60
    N, S, L = 2, 8, 8  # batch, source seq len, target seq len

    key = jax.random.PRNGKey(0)
    pkey, k_src, k_trg = jax.random.split(key, 3)
    params = init_params(pkey, num_encoder_layers, num_decoder_layers,
                         emb_size, nhead, dim_feedforward,
                         src_vocab_size, tgt_vocab_size)

    src = jax.random.randint(k_src, (N, S), 0, src_vocab_size, dtype=jnp.int32)
    trg = jax.random.randint(k_trg, (N, L), 0, tgt_vocab_size, dtype=jnp.int32)

    src_mask = jnp.zeros((S, S), jnp.float32)
    tgt_mask = jnp.where(jnp.triu(jnp.ones((L, L), bool), k=1), NEG_INF, 0.0
                         ).astype(jnp.float32)  # causal float mask
    src_padding_mask = jnp.zeros((N, S), bool).at[1, -1].set(True)
    tgt_padding_mask = jnp.zeros((N, L), bool)
    memory_key_padding_mask = src_padding_mask

    # TODO(synk): dropout layers are treated as identity (eval-mode forward).
    fwd = jax.jit(seq2seq_forward, static_argnames=("nhead",))
    out = fwd(params, src, trg, src_mask, tgt_mask,
              src_padding_mask, tgt_padding_mask, memory_key_padding_mask,
              nhead=nhead)
    out = jax.block_until_ready(out)
    assert out.shape == (N, L, tgt_vocab_size), out.shape
    assert bool(jnp.all(jnp.isfinite(out)))
    print("KERNEL_OK")
</pallas_src>

<mosaic_0001>
module attributes {stable_mosaic.version = 11 : i64} {
  func.func @k(%arg0: i32, %arg1: memref<8x128xf32, #tpu.memory_space<vmem>>, %arg2: memref<8x128xf32, #tpu.memory_space<vmem>>, %arg3: memref<8x128xf32, #tpu.memory_space<vmem>>) attributes {dimension_semantics = [#tpu.dimension_semantics<arbitrary>], iteration_bounds = array<i64: 2>, scalar_prefetch = 0 : i64, scratch_operands = 0 : i64, tpu.core_type = #tpu.core_type<tc>, window_params = [{transform_indices = @transform_0, window_bounds = array<i64: 8, 128>}, {pipeline_mode = #tpu.pipeline_mode<synchronous>, transform_indices = @transform_1, window_bounds = array<i64: 8, 128>}, {transform_indices = @transform_2, window_bounds = array<i64: 8, 128>}]} {
    %c0 = arith.constant 0 : index
    %c0_0 = arith.constant 0 : index
    %0 = vector.load %arg1[%c0, %c0_0] : memref<8x128xf32, #tpu.memory_space<vmem>>, vector<8x128xf32>
    %c0_1 = arith.constant 0 : index
    %c0_2 = arith.constant 0 : index
    %1 = vector.load %arg2[%c0_1, %c0_2] : memref<8x128xf32, #tpu.memory_space<vmem>>, vector<8x128xf32>
    %2 = arith.addf %0, %1 : vector<8x128xf32>
    %c0_3 = arith.constant 0 : index
    %c0_4 = arith.constant 0 : index
    %3 = vector.load %arg3[%c0_3, %c0_4] : memref<8x128xf32, #tpu.memory_space<vmem>>, vector<8x128xf32>
    tpu.vector_store %arg3[%c0_3, %c0_4], %2 {strides = array<i32>} : memref<8x128xf32, #tpu.memory_space<vmem>>, vector<8x128xf32>,
    return
  }
  func.func @transform_0(%arg0: i32) -> (i32, i32) {
    %c0_i32 = arith.constant 0 : i32
    %c0_i32_0 = arith.constant 0 : i32
    return %arg0, %c0_i32 : i32, i32
  }
  func.func @transform_1(%arg0: i32) -> (i32, i32) {
    %c0_i32 = arith.constant 0 : i32
    %c0_i32_0 = arith.constant 0 : i32
    %c0_i32_1 = arith.constant 0 : i32
    return %c0_i32, %c0_i32_0 : i32, i32
  }
  func.func @transform_2(%arg0: i32) -> (i32, i32) {
    %c0_i32 = arith.constant 0 : i32
    %c0_i32_0 = arith.constant 0 : i32
    return %arg0, %c0_i32 : i32, i32
  }
}

module attributes {stable_mosaic.version = 11 : i64} {
  func.func @_layernorm_kernel(%arg0: i32, %arg1: memref<16x32xf32, #tpu.memory_space<vmem>>, %arg2: memref<1x32xf32, #tpu.memory_space<vmem>>, %arg3: memref<1x32xf32, #tpu.memory_space<vmem>>, %arg4: memref<16x32xf32, #tpu.memory_space<vmem>>) attributes {dimension_semantics = [#tpu.dimension_semantics<parallel>], iteration_bounds = array<i64: 1>, scalar_prefetch = 0 : i64, scratch_operands = 0 : i64, tpu.core_type = #tpu.core_type<tc>, window_params = [{transform_indices = @transform_0, window_bounds = array<i64: 16, 32>}, {pipeline_mode = #tpu.pipeline_mode<synchronous>, transform_indices = @transform_1, window_bounds = array<i64: 1, 32>}, {pipeline_mode = #tpu.pipeline_mode<synchronous>, transform_indices = @transform_2, window_bounds = array<i64: 1, 32>}, {transform_indices = @transform_3, window_bounds = array<i64: 16, 32>}]} {
    %c0 = arith.constant 0 : index
    %c0_0 = arith.constant 0 : index
    %0 = vector.load %arg1[%c0, %c0_0] : memref<16x32xf32, #tpu.memory_space<vmem>>, vector<16x32xf32>
    %c0_1 = arith.constant 0 : index
    %c0_2 = arith.constant 0 : index
    %1 = vector.load %arg2[%c0_1, %c0_2] : memref<1x32xf32, #tpu.memory_space<vmem>>, vector<1x32xf32>
    %c0_3 = arith.constant 0 : index
    %c0_4 = arith.constant 0 : index
    %2 = vector.load %arg3[%c0_3, %c0_4] : memref<1x32xf32, #tpu.memory_space<vmem>>, vector<1x32xf32>
    %cst = arith.constant dense<0.000000e+00> : vector<16xf32>
    %3 = vector.multi_reduction <add>, %0, %cst [1] : vector<16x32xf32> to vector<16xf32>
    %4 = vector.shape_cast %3 : vector<16xf32> to vector<16x1xf32>
    %cst_5 = arith.constant 3.200000e+01 : f32
    %5 = vector.broadcast %cst_5 : f32 to vector<16x1xf32>
    %6 = arith.divf %4, %5 : vector<16x1xf32>
    %7 = vector.broadcast %6 : vector<16x1xf32> to vector<16x32xf32>
    %8 = arith.subf %0, %7 : vector<16x32xf32>
    %9 = arith.mulf %8, %8 : vector<16x32xf32>
    %cst_6 = arith.constant dense<0.000000e+00> : vector<16xf32>
    %10 = vector.multi_reduction <add>, %9, %cst_6 [1] : vector<16x32xf32> to vector<16xf32>
    %11 = vector.shape_cast %10 : vector<16xf32> to vector<16x1xf32>
    %cst_7 = arith.constant 3.200000e+01 : f32
    %12 = vector.broadcast %cst_7 : f32 to vector<16x1xf32>
    %13 = arith.divf %11, %12 : vector<16x1xf32>
    %cst_8 = arith.constant 9.99999974E-6 : f32
    %14 = vector.broadcast %cst_8 : f32 to vector<16x1xf32>
    %15 = arith.addf %13, %14 : vector<16x1xf32>
    %16 = math.rsqrt %15 : vector<16x1xf32>
    %17 = vector.broadcast %16 : vector<16x1xf32> to vector<16x32xf32>
    %18 = arith.mulf %8, %17 : vector<16x32xf32>
    %19 = vector.broadcast %1 : vector<1x32xf32> to vector<16x32xf32>
    %20 = arith.mulf %18, %19 : vector<16x32xf32>
    %21 = vector.broadcast %2 : vector<1x32xf32> to vector<16x32xf32>
    %22 = arith.addf %20, %21 : vector<16x32xf32>
    %c0_9 = arith.constant 0 : index
    %c0_10 = arith.constant 0 : index
    %23 = vector.load %arg4[%c0_9, %c0_10] : memref<16x32xf32, #tpu.memory_space<vmem>>, vector<16x32xf32>
    tpu.vector_store %arg4[%c0_9, %c0_10], %22 {strides = array<i32>} : memref<16x32xf32, #tpu.memory_space<vmem>>, vector<16x32xf32>,
    return
  }
  func.func @transform_0(%arg0: i32) -> (i32, i32) {
    %c0_i32 = arith.constant 0 : i32
    %c0_i32_0 = arith.constant 0 : i32
    return %arg0, %c0_i32 : i32, i32
  }
  func.func @transform_1(%arg0: i32) -> (i32, i32) {
    %c0_i32 = arith.constant 0 : i32
    %c0_i32_0 = arith.constant 0 : i32
    %c0_i32_1 = arith.constant 0 : i32
    return %c0_i32, %c0_i32_0 : i32, i32
  }
  func.func @transform_2(%arg0: i32) -> (i32, i32) {
    %c0_i32 = arith.constant 0 : i32
    %c0_i32_0 = arith.constant 0 : i32
    %c0_i32_1 = arith.constant 0 : i32
    return %c0_i32, %c0_i32_0 : i32, i32
  }
  func.func @transform_3(%arg0: i32) -> (i32, i32) {
    %c0_i32 = arith.constant 0 : i32
    %c0_i32_0 = arith.constant 0 : i32
    return %arg0, %c0_i32 : i32, i32
  }
}

module attributes {stable_mosaic.version = 11 : i64} {
  func.func @_encoder_layer_kernel(%arg0: i32, %arg1: memref<1x8x32xf32, #tpu.memory_space<vmem>>, %arg2: memref<8x8xf32, #tpu.memory_space<vmem>>, %arg3: memref<1x1x8xf32, #tpu.memory_space<vmem>>, %arg4: memref<1x32xf32, #tpu.memory_space<vmem>>, %arg5: memref<1x32xf32, #tpu.memory_space<vmem>>, %arg6: memref<32x96xbf16, #tpu.memory_space<vmem>>, %arg7: memref<1x96xf32, #tpu.memory_space<vmem>>, %arg8: memref<32x32xbf16, #tpu.memory_space<vmem>>, %arg9: memref<1x32xf32, #tpu.memory_space<vmem>>, %arg10: memref<1x32xf32, #tpu.memory_space<vmem>>, %arg11: memref<1x32xf32, #tpu.memory_space<vmem>>, %arg12: memref<32x64xbf16, #tpu.memory_space<vmem>>, %arg13: memref<1x64xf32, #tpu.memory_space<vmem>>, %arg14: memref<64x32xbf16, #tpu.memory_space<vmem>>, %arg15: memref<1x32xf32, #tpu.memory_space<vmem>>, %arg16: memref<1x8x32xf32, #tpu.memory_space<vmem>>) attributes {dimension_semantics = [#tpu.dimension_semantics<parallel>], iteration_bounds = array<i64: 2>, scalar_prefetch = 0 : i64, scratch_operands = 0 : i64, tpu.core_type = #tpu.core_type<tc>, window_params = [{transform_indices = @transform_0, window_bounds = array<i64: 1, 8, 32>}, {pipeline_mode = #tpu.pipeline_mode<synchronous>, transform_indices = @transform_1, window_bounds = array<i64: 8, 8>}, {transform_indices = @transform_2, window_bounds = array<i64: 1, 1, 8>}, {pipeline_mode = #tpu.pipeline_mode<synchronous>, transform_indices = @transform_3, window_bounds = array<i64: 1, 32>}, {pipeline_mode = #tpu.pipeline_mode<synchronous>, transform_indices = @transform_4, window_bounds = array<i64: 1, 32>}, {pipeline_mode = #tpu.pipeline_mode<synchronous>, transform_indices = @transform_5, window_bounds = array<i64: 32, 96>}, {pipeline_mode = #tpu.pipeline_mode<synchronous>, transform_indices = @transform_6, window_bounds = array<i64: 1, 96>}, {pipeline_mode = #tpu.pipeline_mode<synchronous>, transform_indices = @transform_7, window_bounds = array<i64: 32, 32>}, {pipeline_mode = #tpu.pipeline_mode<synchronous>, transform_indices = @transform_8, window_bounds = array<i64: 1, 32>}, {pipeline_mode = #tpu.pipeline_mode<synchronous>, transform_indices = @transform_9, window_bounds = array<i64: 1, 32>}, {pipeline_mode = #tpu.pipeline_mode<synchronous>, transform_indices = @transform_10, window_bounds = array<i64: 1, 32>}, {pipeline_mode = #tpu.pipeline_mode<synchronous>, transform_indices = @transform_11, window_bounds = array<i64: 32, 64>}, {pipeline_mode = #tpu.pipeline_mode<synchronous>, transform_indices = @transform_12, window_bounds = array<i64: 1, 64>}, {pipeline_mode = #tpu.pipeline_mode<synchronous>, transform_indices = @transform_13, window_bounds = array<i64: 64, 32>}, {pipeline_mode = #tpu.pipeline_mode<synchronous>, transform_indices = @transform_14, window_bounds = array<i64: 1, 32>}, {transform_indices = @transform_15, window_bounds = array<i64: 1, 8, 32>}]} {
    %c0 = arith.constant 0 : index
    %c0_0 = arith.constant 0 : index
    %c0_1 = arith.constant 0 : index
    %0 = vector.load %arg1[%c0, %c0_0, %c0_1] : memref<1x8x32xf32, #tpu.memory_space<vmem>>, vector<1x8x32xf32>
    %1 = vector.shape_cast %0 : vector<1x8x32xf32> to vector<8x32xf32>
    %c0_2 = arith.constant 0 : index
    %c0_3 = arith.constant 0 : index
    %2 = vector.load %arg2[%c0_2, %c0_3] : memref<8x8xf32, #tpu.memory_space<vmem>>, vector<8x8xf32>
    %c0_4 = arith.constant 0 : index
    %c0_5 = arith.constant 0 : index
    %c0_6 = arith.constant 0 : index
    %3 = vector.load %arg3[%c0_4, %c0_5, %c0_6] : memref<1x1x8xf32, #tpu.memory_space<vmem>>, vector<1x1x8xf32>
    %4 = vector.shape_cast %3 : vector<1x1x8xf32> to vector<1x8xf32>
    %5 = vector.broadcast %4 : vector<1x8xf32> to vector<8x8xf32>
    %6 = arith.addf %2, %5 : vector<8x8xf32>
    %c0_7 = arith.constant 0 : index
    %c0_8 = arith.constant 0 : index
    %7 = vector.load %arg4[%c0_7, %c0_8] : memref<1x32xf32, #tpu.memory_space<vmem>>, vector<1x32xf32>
    %c0_9 = arith.constant 0 : index
    %c0_10 = arith.constant 0 : index
    %8 = vector.load %arg5[%c0_9, %c0_10] : memref<1x32xf32, #tpu.memory_space<vmem>>, vector<1x32xf32>
    %cst = arith.constant dense<0.000000e+00> : vector<8xf32>
    %9 = vector.multi_reduction <add>, %1, %cst [1] : vector<8x32xf32> to vector<8xf32>
    %10 = vector.shape_cast %9 : vector<8xf32> to vector<8x1xf32>
    %cst_11 = arith.constant 3.200000e+01 : f32
    %11 = vector.broadcast %cst_11 : f32 to vector<8x1xf32>
    %12 = arith.divf %10, %11 : vector<8x1xf32>
    %13 = vector.broadcast %12 : vector<8x1xf32> to vector<8x32xf32>
    %14 = arith.subf %1, %13 : vector<8x32xf32>
    %15 = arith.mulf %14, %14 : vector<8x32xf32>
    %cst_12 = arith.constant dense<0.000000e+00> : vector<8xf32>
    %16 = vector.multi_reduction <add>, %15, %cst_12 [1] : vector<8x32xf32> to vector<8xf32>
    %17 = vector.shape_cast %16 : vector<8xf32> to vector<8x1xf32>
    %cst_13 = arith.constant 3.200000e+01 : f32
    %18 = vector.broadcast %cst_13 : f32 to vector<8x1xf32>
    %19 = arith.divf %17, %18 : vector<8x1xf32>
    %cst_14 = arith.constant 9.99999974E-6 : f32
    %20 = vector.broadcast %cst_14 : f32 to vector<8x1xf32>
    %21 = arith.addf %19, %20 : vector<8x1xf32>
    %22 = math.rsqrt %21 : vector<8x1xf32>
    %23 = vector.broadcast %22 : vector<8x1xf32> to vector<8x32xf32>
    %24 = arith.mulf %14, %23 : vector<8x32xf32>
    %25 = vector.broadcast %7 : vector<1x32xf32> to vector<8x32xf32>
    %26 = arith.mulf %24, %25 : vector<8x32xf32>
    %27 = vector.broadcast %8 : vector<1x32xf32> to vector<8x32xf32>
    %28 = arith.addf %26, %27 : vector<8x32xf32>
    %c0_15 = arith.constant 0 : index
    %c0_16 = arith.constant 0 : index
    %29 = vector.load %arg6[%c0_15, %c0_16] : memref<32x96xbf16, #tpu.memory_space<vmem>>, vector<32x96xbf16>
    %c0_17 = arith.constant 0 : index
    %c0_18 = arith.constant 0 : index
    %30 = vector.load %arg7[%c0_17, %c0_18] : memref<1x96xf32, #tpu.memory_space<vmem>>, vector<1x96xf32>
    %c0_19 = arith.constant 0 : index
    %c0_20 = arith.constant 0 : index
    %31 = vector.load %arg8[%c0_19, %c0_20] : memref<32x32xbf16, #tpu.memory_space<vmem>>, vector<32x32xbf16>
    %c0_21 = arith.constant 0 : index
    %c0_22 = arith.constant 0 : index
    %32 = vector.load %arg9[%c0_21, %c0_22] : memref<1x32xf32, #tpu.memory_space<vmem>>, vector<1x32xf32>
    %33 = arith.truncf %28 : vector<8x32xf32> to vector<8x32xbf16>
    %cst_23 = arith.constant dense<0.000000e+00> : vector<8x96xf32>
    %34 = tpu.matmul %33, %29, %cst_23 {dimension_numbers = #tpu.dot_dimension_numbers<[1], [0], [0], [1], [0, 0, 1, 1], [], []>} : vector<8x32xbf16>, vector<32x96xbf16>, vector<8x96xf32> -> vector<8x96xf32>
    %35 = vector.broadcast %30 : vector<1x96xf32> to vector<8x96xf32>
    %36 = arith.addf %34, %35 : vector<8x96xf32>
    %37 = vector.extract_strided_slice %36 {offsets = [0, 0], sizes = [8, 32], strides = [1, 1]} : vector<8x96xf32> to vector<8x32xf32>
    %38 = vector.extract_strided_slice %36 {offsets = [0, 32], sizes = [8, 32], strides = [1, 1]} : vector<8x96xf32> to vector<8x32xf32>
    %39 = vector.extract_strided_slice %36 {offsets = [0, 64], sizes = [8, 32], strides = [1, 1]} : vector<8x96xf32> to vector<8x32xf32>
    %40 = vector.shape_cast %37 : vector<8x32xf32> to vector<8x4x8xf32>
    %41 = tpu.transpose %40, [1, 0, 2] : vector<8x4x8xf32> -> vector<4x8x8xf32>
    %42 = arith.truncf %41 : vector<4x8x8xf32> to vector<4x8x8xbf16>
    %43 = vector.shape_cast %38 : vector<8x32xf32> to vector<8x4x8xf32>
    %44 = tpu.transpose %43, [1, 0, 2] : vector<8x4x8xf32> -> vector<4x8x8xf32>
    %45 = arith.truncf %44 : vector<4x8x8xf32> to vector<4x8x8xbf16>
    %46 = vector.shape_cast %39 : vector<8x32xf32> to vector<8x4x8xf32>
    %47 = tpu.transpose %46, [1, 0, 2] : vector<8x4x8xf32> -> vector<4x8x8xf32>
    %48 = arith.truncf %47 : vector<4x8x8xf32> to vector<4x8x8xbf16>
    "tpu.trace_start"() <{level = 10 : i32, message = "hld,hsd->hls"}> : () -> ()
    %cst_24 = arith.constant dense<0.000000e+00> : vector<4x8x8xf32>
    %49 = tpu.matmul %42, %45, %cst_24 {dimension_numbers = #tpu.dot_dimension_numbers<[2], [2], [1], [1], [0, 0, 0, 1, 1, 1], [0], [0]>} : vector<4x8x8xbf16>, vector<4x8x8xbf16>, vector<4x8x8xf32> -> vector<4x8x8xf32>
    "tpu.trace_stop"() : () -> ()
    %cst_25 = arith.constant 0.353553385 : f32
    %50 = vector.broadcast %cst_25 : f32 to vector<4x8x8xf32>
    %51 = arith.mulf %49, %50 : vector<4x8x8xf32>
    %52 = vector.shape_cast %6 : vector<8x8xf32> to vector<1x8x8xf32>
    %53 = vector.broadcast %52 : vector<1x8x8xf32> to vector<4x8x8xf32>
    %54 = arith.addf %51, %53 : vector<4x8x8xf32>
    %cst_26 = arith.constant dense<0xFF800000> : vector<4x8xf32>
    %55 = vector.multi_reduction <maximumf>, %54, %cst_26 [2] : vector<4x8x8xf32> to vector<4x8xf32>
    %56 = vector.shape_cast %55 : vector<4x8xf32> to vector<4x8x1xf32>
    %57 = vector.broadcast %56 : vector<4x8x1xf32> to vector<4x8x8xf32>
    %58 = arith.subf %54, %57 : vector<4x8x8xf32>
    %59 = math.exp %58 : vector<4x8x8xf32>
    %cst_27 = arith.constant dense<0.000000e+00> : vector<4x8xf32>
    %60 = vector.multi_reduction <add>, %59, %cst_27 [2] : vector<4x8x8xf32> to vector<4x8xf32>
    %61 = vector.shape_cast %60 : vector<4x8xf32> to vector<4x8x1xf32>
    %62 = tpu.reciprocal %61 {approx = true} : vector<4x8x1xf32> -> vector<4x8x1xf32>
    %63 = vector.broadcast %62 : vector<4x8x1xf32> to vector<4x8x8xf32>
    %64 = arith.mulf %59, %63 : vector<4x8x8xf32>
    %65 = arith.truncf %64 : vector<4x8x8xf32> to vector<4x8x8xbf16>
    "tpu.trace_start"() <{level = 10 : i32, message = "hls,hsd->hld"}> : () -> ()
    %cst_28 = arith.constant dense<0.000000e+00> : vector<4x8x8xf32>
    %66 = tpu.matmul %65, %48, %cst_28 {dimension_numbers = #tpu.dot_dimension_numbers<[2], [1], [1], [2], [0, 0, 0, 1, 1, 2], [0], [0]>} : vector<4x8x8xbf16>, vector<4x8x8xbf16>, vector<4x8x8xf32> -> vector<4x8x8xf32>
    "tpu.trace_stop"() : () -> ()
    %67 = tpu.transpose %66, [1, 0, 2] : vector<4x8x8xf32> -> vector<8x4x8xf32>
    %68 = vector.shape_cast %67 : vector<8x4x8xf32> to vector<8x32xf32>
    %69 = arith.truncf %68 : vector<8x32xf32> to vector<8x32xbf16>
    %cst_29 = arith.constant dense<0.000000e+00> : vector<8x32xf32>
    %70 = tpu.matmul %69, %31, %cst_29 {dimension_numbers = #tpu.dot_dimension_numbers<[1], [0], [0], [1], [0, 0, 1, 1], [], []>} : vector<8x32xbf16>, vector<32x32xbf16>, vector<8x32xf32> -> vector<8x32xf32>
    %71 = vector.broadcast %32 : vector<1x32xf32> to vector<8x32xf32>
    %72 = arith.addf %70, %71 : vector<8x32xf32>
    %73 = arith.addf %1, %72 : vector<8x32xf32>
    %c0_30 = arith.constant 0 : index
    %c0_31 = arith.constant 0 : index
    %74 = vector.load %arg10[%c0_30, %c0_31] : memref<1x32xf32, #tpu.memory_space<vmem>>, vector<1x32xf32>
    %c0_32 = arith.constant 0 : index
    %c0_33 = arith.constant 0 : index
    %75 = vector.load %arg11[%c0_32, %c0_33] : memref<1x32xf32, #tpu.memory_space<vmem>>, vector<1x32xf32>
    %cst_34 = arith.constant dense<0.000000e+00> : vector<8xf32>
    %76 = vector.multi_reduction <add>, %73, %cst_34 [1] : vector<8x32xf32> to vector<8xf32>
    %77 = vector.shape_cast %76 : vector<8xf32> to vector<8x1xf32>
    %cst_35 = arith.constant 3.200000e+01 : f32
    %78 = vector.broadcast %cst_35 : f32 to vector<8x1xf32>
    %79 = arith.divf %77, %78 : vector<8x1xf32>
    %80 = vector.broadcast %79 : vector<8x1xf32> to vector<8x32xf32>
    %81 = arith.subf %73, %80 : vector<8x32xf32>
    %82 = arith.mulf %81, %81 : vector<8x32xf32>
    %cst_36 = arith.constant dense<0.000000e+00> : vector<8xf32>
    %83 = vector.multi_reduction <add>, %82, %cst_36 [1] : vector<8x32xf32> to vector<8xf32>
    %84 = vector.shape_cast %83 : vector<8xf32> to vector<8x1xf32>
    %cst_37 = arith.constant 3.200000e+01 : f32
    %85 = vector.broadcast %cst_37 : f32 to vector<8x1xf32>
    %86 = arith.divf %84, %85 : vector<8x1xf32>
    %cst_38 = arith.constant 9.99999974E-6 : f32
    %87 = vector.broadcast %cst_38 : f32 to vector<8x1xf32>
    %88 = arith.addf %86, %87 : vector<8x1xf32>
    %89 = math.rsqrt %88 : vector<8x1xf32>
    %90 = vector.broadcast %89 : vector<8x1xf32> to vector<8x32xf32>
    %91 = arith.mulf %81, %90 : vector<8x32xf32>
    %92 = vector.broadcast %74 : vector<1x32xf32> to vector<8x32xf32>
    %93 = arith.mulf %91, %92 : vector<8x32xf32>
    %94 = vector.broadcast %75 : vector<1x32xf32> to vector<8x32xf32>
    %95 = arith.addf %93, %94 : vector<8x32xf32>
    %c0_39 = arith.constant 0 : index
    %c0_40 = arith.constant 0 : index
    %96 = vector.load %arg12[%c0_39, %c0_40] : memref<32x64xbf16, #tpu.memory_space<vmem>>, vector<32x64xbf16>
    %c0_41 = arith.constant 0 : index
    %c0_42 = arith.constant 0 : index
    %97 = vector.load %arg13[%c0_41, %c0_42] : memref<1x64xf32, #tpu.memory_space<vmem>>, vector<1x64xf32>
    %c0_43 = arith.constant 0 : index
    %c0_44 = arith.constant 0 : index
    %98 = vector.load %arg14[%c0_43, %c0_44] : memref<64x32xbf16, #tpu.memory_space<vmem>>, vector<64x32xbf16>
    %c0_45 = arith.constant 0 : index
    %c0_46 = arith.constant 0 : index
    %99 = vector.load %arg15[%c0_45, %c0_46] : memref<1x32xf32, #tpu.memory_space<vmem>>, vector<1x32xf32>
    %100 = arith.truncf %95 : vector<8x32xf32> to vector<8x32xbf16>
    %cst_47 = arith.constant dense<0.000000e+00> : vector<8x64xf32>
    %101 = tpu.matmul %100, %96, %cst_47 {dimension_numbers = #tpu.dot_dimension_numbers<[1], [0], [0], [1], [0, 0, 1, 1], [], []>} : vector<8x32xbf16>, vector<32x64xbf16>, vector<8x64xf32> -> vector<8x64xf32>
    %102 = vector.broadcast %97 : vector<1x64xf32> to vector<8x64xf32>
    %103 = arith.addf %101, %102 : vector<8x64xf32>
    %cst_48 = arith.constant 5.000000e-01 : f32
    %104 = vector.broadcast %cst_48 : f32 to vector<8x64xf32>
    %105 = arith.mulf %104, %103 : vector<8x64xf32>
    %cst_49 = arith.constant 0.707106769 : f32
    %106 = vector.broadcast %cst_49 : f32 to vector<8x64xf32>
    %107 = arith.mulf %103, %106 : vector<8x64xf32>
    %cst_50 = arith.constant 0.000000e+00 : f32
    %108 = vector.broadcast %cst_50 : f32 to vector<8x64xf32>
    %109 = arith.cmpf oge, %107, %108 : vector<8x64xf32>
    %cst_51 = arith.constant 1.000000e+00 : f32
    %cst_52 = arith.constant -1.000000e+00 : f32
    %110 = vector.broadcast %cst_51 : f32 to vector<8x64xf32>
    %111 = vector.broadcast %cst_52 : f32 to vector<8x64xf32>
    %112 = arith.select %109, %110, %111 : vector<8x64xi1>, vector<8x64xf32>
    %113 = math.absf %107 : vector<8x64xf32>
    %cst_53 = arith.constant 0.327591091 : f32
    %114 = vector.broadcast %cst_53 : f32 to vector<8x64xf32>
    %115 = arith.mulf %114, %113 : vector<8x64xf32>
    %cst_54 = arith.constant 1.000000e+00 : f32
    %116 = vector.broadcast %cst_54 : f32 to vector<8x64xf32>
    %117 = arith.addf %116, %115 : vector<8x64xf32>
    %cst_55 = arith.constant 1.000000e+00 : f32
    %118 = vector.broadcast %cst_55 : f32 to vector<8x64xf32>
    %119 = arith.divf %118, %117 : vector<8x64xf32>
    %cst_56 = arith.constant 1.06140542 : f32
    %120 = vector.broadcast %cst_56 : f32 to vector<8x64xf32>
    %121 = arith.mulf %120, %119 : vector<8x64xf32>
    %cst_57 = arith.constant -1.45315206 : f32
    %122 = vector.broadcast %cst_57 : f32 to vector<8x64xf32>
    %123 = arith.addf %121, %122 : vector<8x64xf32>
    %124 = arith.mulf %123, %119 : vector<8x64xf32>
    %cst_58 = arith.constant 1.42141378 : f32
    %125 = vector.broadcast %cst_58 : f32 to vector<8x64xf32>
    %126 = arith.addf %124, %125 : vector<8x64xf32>
    %127 = arith.mulf %126, %119 : vector<8x64xf32>
    %cst_59 = arith.constant -0.284496725 : f32
    %128 = vector.broadcast %cst_59 : f32 to vector<8x64xf32>
    %129 = arith.addf %127, %128 : vector<8x64xf32>
    %130 = arith.mulf %129, %119 : vector<8x64xf32>
    %cst_60 = arith.constant 0.254829586 : f32
    %131 = vector.broadcast %cst_60 : f32 to vector<8x64xf32>
    %132 = arith.addf %130, %131 : vector<8x64xf32>
    %133 = arith.mulf %132, %119 : vector<8x64xf32>
    %cst_61 = arith.constant 0.000000e+00 : f32
    %134 = vector.broadcast %cst_61 : f32 to vector<8x64xf32>
    %135 = arith.subf %134, %113 : vector<8x64xf32>
    %136 = arith.mulf %135, %113 : vector<8x64xf32>
    %137 = math.exp %136 : vector<8x64xf32>
    %138 = arith.mulf %133, %137 : vector<8x64xf32>
    %cst_62 = arith.constant 1.000000e+00 : f32
    %139 = vector.broadcast %cst_62 : f32 to vector<8x64xf32>
    %140 = arith.subf %139, %138 : vector<8x64xf32>
    %141 = arith.mulf %112, %140 : vector<8x64xf32>
    %cst_63 = arith.constant 1.000000e+00 : f32
    %142 = vector.broadcast %cst_63 : f32 to vector<8x64xf32>
    %143 = arith.addf %142, %141 : vector<8x64xf32>
    %144 = arith.mulf %105, %143 : vector<8x64xf32>
    %145 = arith.truncf %144 : vector<8x64xf32> to vector<8x64xbf16>
    %cst_64 = arith.constant dense<0.000000e+00> : vector<8x32xf32>
    %146 = tpu.matmul %145, %98, %cst_64 {dimension_numbers = #tpu.dot_dimension_numbers<[1], [0], [0], [1], [0, 0, 1, 1], [], []>} : vector<8x64xbf16>, vector<64x32xbf16>, vector<8x32xf32> -> vector<8x32xf32>
    %147 = vector.broadcast %99 : vector<1x32xf32> to vector<8x32xf32>
    %148 = arith.addf %146, %147 : vector<8x32xf32>
    %149 = arith.addf %73, %148 : vector<8x32xf32>
    %c0_65 = arith.constant 0 : index
    %c0_66 = arith.constant 0 : index
    %c0_67 = arith.constant 0 : index
    %150 = vector.load %arg16[%c0_65, %c0_66, %c0_67] : memref<1x8x32xf32, #tpu.memory_space<vmem>>, vector<1x8x32xf32>
    %151 = vector.shape_cast %150 : vector<1x8x32xf32> to vector<8x32xf32>
    %152 = vector.shape_cast %149 : vector<8x32xf32> to vector<1x8x32xf32>
    tpu.vector_store %arg16[%c0_65, %c0_66, %c0_67], %152 {strides = array<i32>} : memref<1x8x32xf32, #tpu.memory_space<vmem>>, vector<1x8x32xf32>,
    return
  }
  func.func @transform_0(%arg0: i32) -> (i32, i32, i32) {
    %c0_i32 = arith.constant 0 : i32
    %c0_i32_0 = arith.constant 0 : i32
    %c0_i32_1 = arith.constant 0 : i32
    return %arg0, %c0_i32, %c0_i32_0 : i32, i32, i32
  }
  func.func @transform_1(%arg0: i32) -> (i32, i32) {
    %c0_i32 = arith.constant 0 : i32
    %c0_i32_0 = arith.constant 0 : i32
    %c0_i32_1 = arith.constant 0 : i32
    return %c0_i32, %c0_i32_0 : i32, i32
  }
  func.func @transform_2(%arg0: i32) -> (i32, i32, i32) {
    %c0_i32 = arith.constant 0 : i32
    %c0_i32_0 = arith.constant 0 : i32
    %c0_i32_1 = arith.constant 0 : i32
    return %arg0, %c0_i32, %c0_i32_0 : i32, i32, i32
  }
  func.func @transform_3(%arg0: i32) -> (i32, i32) {
    %c0_i32 = arith.constant 0 : i32
    %c0_i32_0 = arith.constant 0 : i32
    %c0_i32_1 = arith.constant 0 : i32
    return %c0_i32, %c0_i32_0 : i32, i32
  }
  func.func @transform_4(%arg0: i32) -> (i32, i32) {
    %c0_i32 = arith.constant 0 : i32
    %c0_i32_0 = arith.constant 0 : i32
    %c0_i32_1 = arith.constant 0 : i32
    return %c0_i32, %c0_i32_0 : i32, i32
  }
  func.func @transform_5(%arg0: i32) -> (i32, i32) {
    %c0_i32 = arith.constant 0 : i32
    %c0_i32_0 = arith.constant 0 : i32
    %c0_i32_1 = arith.constant 0 : i32
    return %c0_i32, %c0_i32_0 : i32, i32
  }
  func.func @transform_6(%arg0: i32) -> (i32, i32) {
    %c0_i32 = arith.constant 0 : i32
    %c0_i32_0 = arith.constant 0 : i32
    %c0_i32_1 = arith.constant 0 : i32
    return %c0_i32, %c0_i32_0 : i32, i32
  }
  func.func @transform_7(%arg0: i32) -> (i32, i32) {
    %c0_i32 = arith.constant 0 : i32
    %c0_i32_0 = arith.constant 0 : i32
    %c0_i32_1 = arith.constant 0 : i32
    return %c0_i32, %c0_i32_0 : i32, i32
  }
  func.func @transform_8(%arg0: i32) -> (i32, i32) {
    %c0_i32 = arith.constant 0 : i32
    %c0_i32_0 = arith.constant 0 : i32
    %c0_i32_1 = arith.constant 0 : i32
    return %c0_i32, %c0_i32_0 : i32, i32
  }
  func.func @transform_9(%arg0: i32) -> (i32, i32) {
    %c0_i32 = arith.constant 0 : i32
    %c0_i32_0 = arith.constant 0 : i32
    %c0_i32_1 = arith.constant 0 : i32
    return %c0_i32, %c0_i32_0 : i32, i32
  }
  func.func @transform_10(%arg0: i32) -> (i32, i32) {
    %c0_i32 = arith.constant 0 : i32
    %c0_i32_0 = arith.constant 0 : i32
    %c0_i32_1 = arith.constant 0 : i32
    return %c0_i32, %c0_i32_0 : i32, i32
  }
  func.func @transform_11(%arg0: i32) -> (i32, i32) {
    %c0_i32 = arith.constant 0 : i32
    %c0_i32_0 = arith.constant 0 : i32
    %c0_i32_1 = arith.constant 0 : i32
    return %c0_i32, %c0_i32_0 : i32, i32
  }
  func.func @transform_12(%arg0: i32) -> (i32, i32) {
    %c0_i32 = arith.constant 0 : i32
    %c0_i32_0 = arith.constant 0 : i32
    %c0_i32_1 = arith.constant 0 : i32
    return %c0_i32, %c0_i32_0 : i32, i32
  }
  func.func @transform_13(%arg0: i32) -> (i32, i32) {
    %c0_i32 = arith.constant 0 : i32
    %c0_i32_0 = arith.constant 0 : i32
    %c0_i32_1 = arith.constant 0 : i32
    return %c0_i32, %c0_i32_0 : i32, i32
  }
  func.func @transform_14(%arg0: i32) -> (i32, i32) {
    %c0_i32 = arith.constant 0 : i32
    %c0_i32_0 = arith.constant 0 : i32
    %c0_i32_1 = arith.constant 0 : i32
    return %c0_i32, %c0_i32_0 : i32, i32
  }
  func.func @transform_15(%arg0: i32) -> (i32, i32, i32) {
    %c0_i32 = arith.constant 0 : i32
    %c0_i32_0 = arith.constant 0 : i32
    %c0_i32_1 = arith.constant 0 : i32
    return %arg0, %c0_i32, %c0_i32_0 : i32, i32, i32
  }
}

module attributes {stable_mosaic.version = 11 : i64} {
  func.func @_decoder_layer_kernel(%arg0: i32, %arg1: memref<1x8x32xf32, #tpu.memory_space<vmem>>, %arg2: memref<1x8x32xf32, #tpu.memory_space<vmem>>, %arg3: memref<8x8xf32, #tpu.memory_space<vmem>>, %arg4: memref<1x1x8xf32, #tpu.memory_space<vmem>>, %arg5: memref<1x1x8xf32, #tpu.memory_space<vmem>>, %arg6: memref<1x32xf32, #tpu.memory_space<vmem>>, %arg7: memref<1x32xf32, #tpu.memory_space<vmem>>, %arg8: memref<32x96xbf16, #tpu.memory_space<vmem>>, %arg9: memref<1x96xf32, #tpu.memory_space<vmem>>, %arg10: memref<32x32xbf16, #tpu.memory_space<vmem>>, %arg11: memref<1x32xf32, #tpu.memory_space<vmem>>, %arg12: memref<1x32xf32, #tpu.memory_space<vmem>>, %arg13: memref<1x32xf32, #tpu.memory_space<vmem>>, %arg14: memref<32x32xbf16, #tpu.memory_space<vmem>>, %arg15: memref<1x32xf32, #tpu.memory_space<vmem>>, %arg16: memref<32x64xbf16, #tpu.memory_space<vmem>>, %arg17: memref<1x64xf32, #tpu.memory_space<vmem>>, %arg18: memref<32x32xbf16, #tpu.memory_space<vmem>>, %arg19: memref<1x32xf32, #tpu.memory_space<vmem>>, %arg20: memref<1x32xf32, #tpu.memory_space<vmem>>, %arg21: memref<1x32xf32, #tpu.memory_space<vmem>>, %arg22: memref<32x64xbf16, #tpu.memory_space<vmem>>, %arg23: memref<1x64xf32, #tpu.memory_space<vmem>>, %arg24: memref<64x32xbf16, #tpu.memory_space<vmem>>, %arg25: memref<1x32xf32, #tpu.memory_space<vmem>>, %arg26: memref<1x8x32xf32, #tpu.memory_space<vmem>>) attributes {dimension_semantics = [#tpu.dimension_semantics<parallel>], iteration_bounds = array<i64: 2>, scalar_prefetch = 0 : i64, scratch_operands = 0 : i64, tpu.core_type = #tpu.core_type<tc>, window_params = [{transform_indices = @transform_0, window_bounds = array<i64: 1, 8, 32>}, {transform_indices = @transform_1, window_bounds = array<i64: 1, 8, 32>}, {pipeline_mode = #tpu.pipeline_mode<synchronous>, transform_indices = @transform_2, window_bounds = array<i64: 8, 8>}, {transform_indices = @transform_3, window_bounds = array<i64: 1, 1, 8>}, {transform_indices = @transform_4, window_bounds = array<i64: 1, 1, 8>}, {pipeline_mode = #tpu.pipeline_mode<synchronous>, transform_indices = @transform_5, window_bounds = array<i64: 1, 32>}, {pipeline_mode = #tpu.pipeline_mode<synchronous>, transform_indices = @transform_6, window_bounds = array<i64: 1, 32>}, {pipeline_mode = #tpu.pipeline_mode<synchronous>, transform_indices = @transform_7, window_bounds = array<i64: 32, 96>}, {pipeline_mode = #tpu.pipeline_mode<synchronous>, transform_indices = @transform_8, window_bounds = array<i64: 1, 96>}, {pipeline_mode = #tpu.pipeline_mode<synchronous>, transform_indices = @transform_9, window_bounds = array<i64: 32, 32>}, {pipeline_mode = #tpu.pipeline_mode<synchronous>, transform_indices = @transform_10, window_bounds = array<i64: 1, 32>}, {pipeline_mode = #tpu.pipeline_mode<synchronous>, transform_indices = @transform_11, window_bounds = array<i64: 1, 32>}, {pipeline_mode = #tpu.pipeline_mode<synchronous>, transform_indices = @transform_12, window_bounds = array<i64: 1, 32>}, {pipeline_mode = #tpu.pipeline_mode<synchronous>, transform_indices = @transform_13, window_bounds = array<i64: 32, 32>}, {pipeline_mode = #tpu.pipeline_mode<synchronous>, transform_indices = @transform_14, window_bounds = array<i64: 1, 32>}, {pipeline_mode = #tpu.pipeline_mode<synchronous>, transform_indices = @transform_15, window_bounds = array<i64: 32, 64>}, {pipeline_mode = #tpu.pipeline_mode<synchronous>, transform_indices = @transform_16, window_bounds = array<i64: 1, 64>}, {pipeline_mode = #tpu.pipeline_mode<synchronous>, transform_indices = @transform_17, window_bounds = array<i64: 32, 32>}, {pipeline_mode = #tpu.pipeline_mode<synchronous>, transform_indices = @transform_18, window_bounds = array<i64: 1, 32>}, {pipeline_mode = #tpu.pipeline_mode<synchronous>, transform_indices = @transform_19, window_bounds = array<i64: 1, 32>}, {pipeline_mode = #tpu.pipeline_mode<synchronous>, transform_indices = @transform_20, window_bounds = array<i64: 1, 32>}, {pipeline_mode = #tpu.pipeline_mode<synchronous>, transform_indices = @transform_21, window_bounds = array<i64: 32, 64>}, {pipeline_mode = #tpu.pipeline_mode<synchronous>, transform_indices = @transform_22, window_bounds = array<i64: 1, 64>}, {pipeline_mode = #tpu.pipeline_mode<synchronous>, transform_indices = @transform_23, window_bounds = array<i64: 64, 32>}, {pipeline_mode = #tpu.pipeline_mode<synchronous>, transform_indices = @transform_24, window_bounds = array<i64: 1, 32>}, {transform_indices = @transform_25, window_bounds = array<i64: 1, 8, 32>}]} {
    %c0 = arith.constant 0 : index
    %c0_0 = arith.constant 0 : index
    %c0_1 = arith.constant 0 : index
    %0 = vector.load %arg1[%c0, %c0_0, %c0_1] : memref<1x8x32xf32, #tpu.memory_space<vmem>>, vector<1x8x32xf32>
    %1 = vector.shape_cast %0 : vector<1x8x32xf32> to vector<8x32xf32>
    %c0_2 = arith.constant 0 : index
    %c0_3 = arith.constant 0 : index
    %c0_4 = arith.constant 0 : index
    %2 = vector.load %arg2[%c0_2, %c0_3, %c0_4] : memref<1x8x32xf32, #tpu.memory_space<vmem>>, vector<1x8x32xf32>
    %3 = vector.shape_cast %2 : vector<1x8x32xf32> to vector<8x32xf32>
    %c0_5 = arith.constant 0 : index
    %c0_6 = arith.constant 0 : index
    %4 = vector.load %arg3[%c0_5, %c0_6] : memref<8x8xf32, #tpu.memory_space<vmem>>, vector<8x8xf32>
    %c0_7 = arith.constant 0 : index
    %c0_8 = arith.constant 0 : index
    %c0_9 = arith.constant 0 : index
    %5 = vector.load %arg4[%c0_7, %c0_8, %c0_9] : memref<1x1x8xf32, #tpu.memory_space<vmem>>, vector<1x1x8xf32>
    %6 = vector.shape_cast %5 : vector<1x1x8xf32> to vector<1x8xf32>
    %7 = vector.broadcast %6 : vector<1x8xf32> to vector<8x8xf32>
    %8 = arith.addf %4, %7 : vector<8x8xf32>
    %c0_10 = arith.constant 0 : index
    %c0_11 = arith.constant 0 : index
    %c0_12 = arith.constant 0 : index
    %9 = vector.load %arg5[%c0_10, %c0_11, %c0_12] : memref<1x1x8xf32, #tpu.memory_space<vmem>>, vector<1x1x8xf32>
    %10 = vector.shape_cast %9 : vector<1x1x8xf32> to vector<1x8xf32>
    %c0_13 = arith.constant 0 : index
    %c0_14 = arith.constant 0 : index
    %11 = vector.load %arg6[%c0_13, %c0_14] : memref<1x32xf32, #tpu.memory_space<vmem>>, vector<1x32xf32>
    %c0_15 = arith.constant 0 : index
    %c0_16 = arith.constant 0 : index
    %12 = vector.load %arg7[%c0_15, %c0_16] : memref<1x32xf32, #tpu.memory_space<vmem>>, vector<1x32xf32>
    %cst = arith.constant dense<0.000000e+00> : vector<8xf32>
    %13 = vector.multi_reduction <add>, %1, %cst [1] : vector<8x32xf32> to vector<8xf32>
    %14 = vector.shape_cast %13 : vector<8xf32> to vector<8x1xf32>
    %cst_17 = arith.constant 3.200000e+01 : f32
    %15 = vector.broadcast %cst_17 : f32 to vector<8x1xf32>
    %16 = arith.divf %14, %15 : vector<8x1xf32>
    %17 = vector.broadcast %16 : vector<8x1xf32> to vector<8x32xf32>
    %18 = arith.subf %1, %17 : vector<8x32xf32>
    %19 = arith.mulf %18, %18 : vector<8x32xf32>
    %cst_18 = arith.constant dense<0.000000e+00> : vector<8xf32>
    %20 = vector.multi_reduction <add>, %19, %cst_18 [1] : vector<8x32xf32> to vector<8xf32>
    %21 = vector.shape_cast %20 : vector<8xf32> to vector<8x1xf32>
    %cst_19 = arith.constant 3.200000e+01 : f32
    %22 = vector.broadcast %cst_19 : f32 to vector<8x1xf32>
    %23 = arith.divf %21, %22 : vector<8x1xf32>
    %cst_20 = arith.constant 9.99999974E-6 : f32
    %24 = vector.broadcast %cst_20 : f32 to vector<8x1xf32>
    %25 = arith.addf %23, %24 : vector<8x1xf32>
    %26 = math.rsqrt %25 : vector<8x1xf32>
    %27 = vector.broadcast %26 : vector<8x1xf32> to vector<8x32xf32>
    %28 = arith.mulf %18, %27 : vector<8x32xf32>
    %29 = vector.broadcast %11 : vector<1x32xf32> to vector<8x32xf32>
    %30 = arith.mulf %28, %29 : vector<8x32xf32>
    %31 = vector.broadcast %12 : vector<1x32xf32> to vector<8x32xf32>
    %32 = arith.addf %30, %31 : vector<8x32xf32>
    %c0_21 = arith.constant 0 : index
    %c0_22 = arith.constant 0 : index
    %33 = vector.load %arg8[%c0_21, %c0_22] : memref<32x96xbf16, #tpu.memory_space<vmem>>, vector<32x96xbf16>
    %c0_23 = arith.constant 0 : index
    %c0_24 = arith.constant 0 : index
    %34 = vector.load %arg9[%c0_23, %c0_24] : memref<1x96xf32, #tpu.memory_space<vmem>>, vector<1x96xf32>
    %c0_25 = arith.constant 0 : index
    %c0_26 = arith.constant 0 : index
    %35 = vector.load %arg10[%c0_25, %c0_26] : memref<32x32xbf16, #tpu.memory_space<vmem>>, vector<32x32xbf16>
    %c0_27 = arith.constant 0 : index
    %c0_28 = arith.constant 0 : index
    %36 = vector.load %arg11[%c0_27, %c0_28] : memref<1x32xf32, #tpu.memory_space<vmem>>, vector<1x32xf32>
    %37 = arith.truncf %32 : vector<8x32xf32> to vector<8x32xbf16>
    %cst_29 = arith.constant dense<0.000000e+00> : vector<8x96xf32>
    %38 = tpu.matmul %37, %33, %cst_29 {dimension_numbers = #tpu.dot_dimension_numbers<[1], [0], [0], [1], [0, 0, 1, 1], [], []>} : vector<8x32xbf16>, vector<32x96xbf16>, vector<8x96xf32> -> vector<8x96xf32>
    %39 = vector.broadcast %34 : vector<1x96xf32> to vector<8x96xf32>
    %40 = arith.addf %38, %39 : vector<8x96xf32>
    %41 = vector.extract_strided_slice %40 {offsets = [0, 0], sizes = [8, 32], strides = [1, 1]} : vector<8x96xf32> to vector<8x32xf32>
    %42 = vector.extract_strided_slice %40 {offsets = [0, 32], sizes = [8, 32], strides = [1, 1]} : vector<8x96xf32> to vector<8x32xf32>
    %43 = vector.extract_strided_slice %40 {offsets = [0, 64], sizes = [8, 32], strides = [1, 1]} : vector<8x96xf32> to vector<8x32xf32>
    %44 = vector.shape_cast %41 : vector<8x32xf32> to vector<8x4x8xf32>
    %45 = tpu.transpose %44, [1, 0, 2] : vector<8x4x8xf32> -> vector<4x8x8xf32>
    %46 = arith.truncf %45 : vector<4x8x8xf32> to vector<4x8x8xbf16>
    %47 = vector.shape_cast %42 : vector<8x32xf32> to vector<8x4x8xf32>
    %48 = tpu.transpose %47, [1, 0, 2] : vector<8x4x8xf32> -> vector<4x8x8xf32>
    %49 = arith.truncf %48 : vector<4x8x8xf32> to vector<4x8x8xbf16>
    %50 = vector.shape_cast %43 : vector<8x32xf32> to vector<8x4x8xf32>
    %51 = tpu.transpose %50, [1, 0, 2] : vector<8x4x8xf32> -> vector<4x8x8xf32>
    %52 = arith.truncf %51 : vector<4x8x8xf32> to vector<4x8x8xbf16>
    "tpu.trace_start"() <{level = 10 : i32, message = "hld,hsd->hls"}> : () -> ()
    %cst_30 = arith.constant dense<0.000000e+00> : vector<4x8x8xf32>
    %53 = tpu.matmul %46, %49, %cst_30 {dimension_numbers = #tpu.dot_dimension_numbers<[2], [2], [1], [1], [0, 0, 0, 1, 1, 1], [0], [0]>} : vector<4x8x8xbf16>, vector<4x8x8xbf16>, vector<4x8x8xf32> -> vector<4x8x8xf32>
    "tpu.trace_stop"() : () -> ()
    %cst_31 = arith.constant 0.353553385 : f32
    %54 = vector.broadcast %cst_31 : f32 to vector<4x8x8xf32>
    %55 = arith.mulf %53, %54 : vector<4x8x8xf32>
    %56 = vector.shape_cast %8 : vector<8x8xf32> to vector<1x8x8xf32>
    %57 = vector.broadcast %56 : vector<1x8x8xf32> to vector<4x8x8xf32>
    %58 = arith.addf %55, %57 : vector<4x8x8xf32>
    %cst_32 = arith.constant dense<0xFF800000> : vector<4x8xf32>
    %59 = vector.multi_reduction <maximumf>, %58, %cst_32 [2] : vector<4x8x8xf32> to vector<4x8xf32>
    %60 = vector.shape_cast %59 : vector<4x8xf32> to vector<4x8x1xf32>
    %61 = vector.broadcast %60 : vector<4x8x1xf32> to vector<4x8x8xf32>
    %62 = arith.subf %58, %61 : vector<4x8x8xf32>
    %63 = math.exp %62 : vector<4x8x8xf32>
    %cst_33 = arith.constant dense<0.000000e+00> : vector<4x8xf32>
    %64 = vector.multi_reduction <add>, %63, %cst_33 [2] : vector<4x8x8xf32> to vector<4x8xf32>
    %65 = vector.shape_cast %64 : vector<4x8xf32> to vector<4x8x1xf32>
    %66 = tpu.reciprocal %65 {approx = true} : vector<4x8x1xf32> -> vector<4x8x1xf32>
    %67 = vector.broadcast %66 : vector<4x8x1xf32> to vector<4x8x8xf32>
    %68 = arith.mulf %63, %67 : vector<4x8x8xf32>
    %69 = arith.truncf %68 : vector<4x8x8xf32> to vector<4x8x8xbf16>
    "tpu.trace_start"() <{level = 10 : i32, message = "hls,hsd->hld"}> : () -> ()
    %cst_34 = arith.constant dense<0.000000e+00> : vector<4x8x8xf32>
    %70 = tpu.matmul %69, %52, %cst_34 {dimension_numbers = #tpu.dot_dimension_numbers<[2], [1], [1], [2], [0, 0, 0, 1, 1, 2], [0], [0]>} : vector<4x8x8xbf16>, vector<4x8x8xbf16>, vector<4x8x8xf32> -> vector<4x8x8xf32>
    "tpu.trace_stop"() : () -> ()
    %71 = tpu.transpose %70, [1, 0, 2] : vector<4x8x8xf32> -> vector<8x4x8xf32>
    %72 = vector.shape_cast %71 : vector<8x4x8xf32> to vector<8x32xf32>
    %73 = arith.truncf %72 : vector<8x32xf32> to vector<8x32xbf16>
    %cst_35 = arith.constant dense<0.000000e+00> : vector<8x32xf32>
    %74 = tpu.matmul %73, %35, %cst_35 {dimension_numbers = #tpu.dot_dimension_numbers<[1], [0], [0], [1], [0, 0, 1, 1], [], []>} : vector<8x32xbf16>, vector<32x32xbf16>, vector<8x32xf32> -> vector<8x32xf32>
    %75 = vector.broadcast %36 : vector<1x32xf32> to vector<8x32xf32>
    %76 = arith.addf %74, %75 : vector<8x32xf32>
    %77 = arith.addf %1, %76 : vector<8x32xf32>
    %c0_36 = arith.constant 0 : index
    %c0_37 = arith.constant 0 : index
    %78 = vector.load %arg12[%c0_36, %c0_37] : memref<1x32xf32, #tpu.memory_space<vmem>>, vector<1x32xf32>
    %c0_38 = arith.constant 0 : index
    %c0_39 = arith.constant 0 : index
    %79 = vector.load %arg13[%c0_38, %c0_39] : memref<1x32xf32, #tpu.memory_space<vmem>>, vector<1x32xf32>
    %cst_40 = arith.constant dense<0.000000e+00> : vector<8xf32>
    %80 = vector.multi_reduction <add>, %77, %cst_40 [1] : vector<8x32xf32> to vector<8xf32>
    %81 = vector.shape_cast %80 : vector<8xf32> to vector<8x1xf32>
    %cst_41 = arith.constant 3.200000e+01 : f32
    %82 = vector.broadcast %cst_41 : f32 to vector<8x1xf32>
    %83 = arith.divf %81, %82 : vector<8x1xf32>
    %84 = vector.broadcast %83 : vector<8x1xf32> to vector<8x32xf32>
    %85 = arith.subf %77, %84 : vector<8x32xf32>
    %86 = arith.mulf %85, %85 : vector<8x32xf32>
    %cst_42 = arith.constant dense<0.000000e+00> : vector<8xf32>
    %87 = vector.multi_reduction <add>, %86, %cst_42 [1] : vector<8x32xf32> to vector<8xf32>
    %88 = vector.shape_cast %87 : vector<8xf32> to vector<8x1xf32>
    %cst_43 = arith.constant 3.200000e+01 : f32
    %89 = vector.broadcast %cst_43 : f32 to vector<8x1xf32>
    %90 = arith.divf %88, %89 : vector<8x1xf32>
    %cst_44 = arith.constant 9.99999974E-6 : f32
    %91 = vector.broadcast %cst_44 : f32 to vector<8x1xf32>
    %92 = arith.addf %90, %91 : vector<8x1xf32>
    %93 = math.rsqrt %92 : vector<8x1xf32>
    %94 = vector.broadcast %93 : vector<8x1xf32> to vector<8x32xf32>
    %95 = arith.mulf %85, %94 : vector<8x32xf32>
    %96 = vector.broadcast %78 : vector<1x32xf32> to vector<8x32xf32>
    %97 = arith.mulf %95, %96 : vector<8x32xf32>
    %98 = vector.broadcast %79 : vector<1x32xf32> to vector<8x32xf32>
    %99 = arith.addf %97, %98 : vector<8x32xf32>
    %c0_45 = arith.constant 0 : index
    %c0_46 = arith.constant 0 : index
    %100 = vector.load %arg14[%c0_45, %c0_46] : memref<32x32xbf16, #tpu.memory_space<vmem>>, vector<32x32xbf16>
    %c0_47 = arith.constant 0 : index
    %c0_48 = arith.constant 0 : index
    %101 = vector.load %arg15[%c0_47, %c0_48] : memref<1x32xf32, #tpu.memory_space<vmem>>, vector<1x32xf32>
    %c0_49 = arith.constant 0 : index
    %c0_50 = arith.constant 0 : index
    %102 = vector.load %arg16[%c0_49, %c0_50] : memref<32x64xbf16, #tpu.memory_space<vmem>>, vector<32x64xbf16>
    %c0_51 = arith.constant 0 : index
    %c0_52 = arith.constant 0 : index
    %103 = vector.load %arg17[%c0_51, %c0_52] : memref<1x64xf32, #tpu.memory_space<vmem>>, vector<1x64xf32>
    %c0_53 = arith.constant 0 : index
    %c0_54 = arith.constant 0 : index
    %104 = vector.load %arg18[%c0_53, %c0_54] : memref<32x32xbf16, #tpu.memory_space<vmem>>, vector<32x32xbf16>
    %c0_55 = arith.constant 0 : index
    %c0_56 = arith.constant 0 : index
    %105 = vector.load %arg19[%c0_55, %c0_56] : memref<1x32xf32, #tpu.memory_space<vmem>>, vector<1x32xf32>
    %106 = arith.truncf %99 : vector<8x32xf32> to vector<8x32xbf16>
    %cst_57 = arith.constant dense<0.000000e+00> : vector<8x32xf32>
    %107 = tpu.matmul %106, %100, %cst_57 {dimension_numbers = #tpu.dot_dimension_numbers<[1], [0], [0], [1], [0, 0, 1, 1], [], []>} : vector<8x32xbf16>, vector<32x32xbf16>, vector<8x32xf32> -> vector<8x32xf32>
    %108 = vector.broadcast %101 : vector<1x32xf32> to vector<8x32xf32>
    %109 = arith.addf %107, %108 : vector<8x32xf32>
    %110 = arith.truncf %3 : vector<8x32xf32> to vector<8x32xbf16>
    %cst_58 = arith.constant dense<0.000000e+00> : vector<8x64xf32>
    %111 = tpu.matmul %110, %102, %cst_58 {dimension_numbers = #tpu.dot_dimension_numbers<[1], [0], [0], [1], [0, 0, 1, 1], [], []>} : vector<8x32xbf16>, vector<32x64xbf16>, vector<8x64xf32> -> vector<8x64xf32>
    %112 = vector.broadcast %103 : vector<1x64xf32> to vector<8x64xf32>
    %113 = arith.addf %111, %112 : vector<8x64xf32>
    %114 = vector.extract_strided_slice %113 {offsets = [0, 0], sizes = [8, 32], strides = [1, 1]} : vector<8x64xf32> to vector<8x32xf32>
    %115 = vector.extract_strided_slice %113 {offsets = [0, 32], sizes = [8, 32], strides = [1, 1]} : vector<8x64xf32> to vector<8x32xf32>
    %116 = vector.shape_cast %109 : vector<8x32xf32> to vector<8x4x8xf32>
    %117 = tpu.transpose %116, [1, 0, 2] : vector<8x4x8xf32> -> vector<4x8x8xf32>
    %118 = arith.truncf %117 : vector<4x8x8xf32> to vector<4x8x8xbf16>
    %119 = vector.shape_cast %114 : vector<8x32xf32> to vector<8x4x8xf32>
    %120 = tpu.transpose %119, [1, 0, 2] : vector<8x4x8xf32> -> vector<4x8x8xf32>
    %121 = arith.truncf %120 : vector<4x8x8xf32> to vector<4x8x8xbf16>
    %122 = vector.shape_cast %115 : vector<8x32xf32> to vector<8x4x8xf32>
    %123 = tpu.transpose %122, [1, 0, 2] : vector<8x4x8xf32> -> vector<4x8x8xf32>
    %124 = arith.truncf %123 : vector<4x8x8xf32> to vector<4x8x8xbf16>
    "tpu.trace_start"() <{level = 10 : i32, message = "hld,hsd->hls"}> : () -> ()
    %cst_59 = arith.constant dense<0.000000e+00> : vector<4x8x8xf32>
    %125 = tpu.matmul %118, %121, %cst_59 {dimension_numbers = #tpu.dot_dimension_numbers<[2], [2], [1], [1], [0, 0, 0, 1, 1, 1], [0], [0]>} : vector<4x8x8xbf16>, vector<4x8x8xbf16>, vector<4x8x8xf32> -> vector<4x8x8xf32>
    "tpu.trace_stop"() : () -> ()
    %cst_60 = arith.constant 0.353553385 : f32
    %126 = vector.broadcast %cst_60 : f32 to vector<4x8x8xf32>
    %127 = arith.mulf %125, %126 : vector<4x8x8xf32>
    %128 = vector.shape_cast %10 : vector<1x8xf32> to vector<1x1x8xf32>
    %129 = vector.broadcast %128 : vector<1x1x8xf32> to vector<4x8x8xf32>
    %130 = arith.addf %127, %129 : vector<4x8x8xf32>
    %cst_61 = arith.constant dense<0xFF800000> : vector<4x8xf32>
    %131 = vector.multi_reduction <maximumf>, %130, %cst_61 [2] : vector<4x8x8xf32> to vector<4x8xf32>
    %132 = vector.shape_cast %131 : vector<4x8xf32> to vector<4x8x1xf32>
    %133 = vector.broadcast %132 : vector<4x8x1xf32> to vector<4x8x8xf32>
    %134 = arith.subf %130, %133 : vector<4x8x8xf32>
    %135 = math.exp %134 : vector<4x8x8xf32>
    %cst_62 = arith.constant dense<0.000000e+00> : vector<4x8xf32>
    %136 = vector.multi_reduction <add>, %135, %cst_62 [2] : vector<4x8x8xf32> to vector<4x8xf32>
    %137 = vector.shape_cast %136 : vector<4x8xf32> to vector<4x8x1xf32>
    %138 = tpu.reciprocal %137 {approx = true} : vector<4x8x1xf32> -> vector<4x8x1xf32>
    %139 = vector.broadcast %138 : vector<4x8x1xf32> to vector<4x8x8xf32>
    %140 = arith.mulf %135, %139 : vector<4x8x8xf32>
    %141 = arith.truncf %140 : vector<4x8x8xf32> to vector<4x8x8xbf16>
    "tpu.trace_start"() <{level = 10 : i32, message = "hls,hsd->hld"}> : () -> ()
    %cst_63 = arith.constant dense<0.000000e+00> : vector<4x8x8xf32>
    %142 = tpu.matmul %141, %124, %cst_63 {dimension_numbers = #tpu.dot_dimension_numbers<[2], [1], [1], [2], [0, 0, 0, 1, 1, 2], [0], [0]>} : vector<4x8x8xbf16>, vector<4x8x8xbf16>, vector<4x8x8xf32> -> vector<4x8x8xf32>
    "tpu.trace_stop"() : () -> ()
    %143 = tpu.transpose %142, [1, 0, 2] : vector<4x8x8xf32> -> vector<8x4x8xf32>
    %144 = vector.shape_cast %143 : vector<8x4x8xf32> to vector<8x32xf32>
    %145 = arith.truncf %144 : vector<8x32xf32> to vector<8x32xbf16>
    %cst_64 = arith.constant dense<0.000000e+00> : vector<8x32xf32>
    %146 = tpu.matmul %145, %104, %cst_64 {dimension_numbers = #tpu.dot_dimension_numbers<[1], [0], [0], [1], [0, 0, 1, 1], [], []>} : vector<8x32xbf16>, vector<32x32xbf16>, vector<8x32xf32> -> vector<8x32xf32>
    %147 = vector.broadcast %105 : vector<1x32xf32> to vector<8x32xf32>
    %148 = arith.addf %146, %147 : vector<8x32xf32>
    %149 = arith.addf %77, %148 : vector<8x32xf32>
    %c0_65 = arith.constant 0 : index
    %c0_66 = arith.constant 0 : index
    %150 = vector.load %arg20[%c0_65, %c0_66] : memref<1x32xf32, #tpu.memory_space<vmem>>, vector<1x32xf32>
    %c0_67 = arith.constant 0 : index
    %c0_68 = arith.constant 0 : index
    %151 = vector.load %arg21[%c0_67, %c0_68] : memref<1x32xf32, #tpu.memory_space<vmem>>, vector<1x32xf32>
    %cst_69 = arith.constant dense<0.000000e+00> : vector<8xf32>
    %152 = vector.multi_reduction <add>, %149, %cst_69 [1] : vector<8x32xf32> to vector<8xf32>
    %153 = vector.shape_cast %152 : vector<8xf32> to vector<8x1xf32>
    %cst_70 = arith.constant 3.200000e+01 : f32
    %154 = vector.broadcast %cst_70 : f32 to vector<8x1xf32>
    %155 = arith.divf %153, %154 : vector<8x1xf32>
    %156 = vector.broadcast %155 : vector<8x1xf32> to vector<8x32xf32>
    %157 = arith.subf %149, %156 : vector<8x32xf32>
    %158 = arith.mulf %157, %157 : vector<8x32xf32>
    %cst_71 = arith.constant dense<0.000000e+00> : vector<8xf32>
    %159 = vector.multi_reduction <add>, %158, %cst_71 [1] : vector<8x32xf32> to vector<8xf32>
    %160 = vector.shape_cast %159 : vector<8xf32> to vector<8x1xf32>
    %cst_72 = arith.constant 3.200000e+01 : f32
    %161 = vector.broadcast %cst_72 : f32 to vector<8x1xf32>
    %162 = arith.divf %160, %161 : vector<8x1xf32>
    %cst_73 = arith.constant 9.99999974E-6 : f32
    %163 = vector.broadcast %cst_73 : f32 to vector<8x1xf32>
    %164 = arith.addf %162, %163 : vector<8x1xf32>
    %165 = math.rsqrt %164 : vector<8x1xf32>
    %166 = vector.broadcast %165 : vector<8x1xf32> to vector<8x32xf32>
    %167 = arith.mulf %157, %166 : vector<8x32xf32>
    %168 = vector.broadcast %150 : vector<1x32xf32> to vector<8x32xf32>
    %169 = arith.mulf %167, %168 : vector<8x32xf32>
    %170 = vector.broadcast %151 : vector<1x32xf32> to vector<8x32xf32>
    %171 = arith.addf %169, %170 : vector<8x32xf32>
    %c0_74 = arith.constant 0 : index
    %c0_75 = arith.constant 0 : index
    %172 = vector.load %arg22[%c0_74, %c0_75] : memref<32x64xbf16, #tpu.memory_space<vmem>>, vector<32x64xbf16>
    %c0_76 = arith.constant 0 : index
    %c0_77 = arith.constant 0 : index
    %173 = vector.load %arg23[%c0_76, %c0_77] : memref<1x64xf32, #tpu.memory_space<vmem>>, vector<1x64xf32>
    %c0_78 = arith.constant 0 : index
    %c0_79 = arith.constant 0 : index
    %174 = vector.load %arg24[%c0_78, %c0_79] : memref<64x32xbf16, #tpu.memory_space<vmem>>, vector<64x32xbf16>
    %c0_80 = arith.constant 0 : index
    %c0_81 = arith.constant 0 : index
    %175 = vector.load %arg25[%c0_80, %c0_81] : memref<1x32xf32, #tpu.memory_space<vmem>>, vector<1x32xf32>
    %176 = arith.truncf %171 : vector<8x32xf32> to vector<8x32xbf16>
    %cst_82 = arith.constant dense<0.000000e+00> : vector<8x64xf32>
    %177 = tpu.matmul %176, %172, %cst_82 {dimension_numbers = #tpu.dot_dimension_numbers<[1], [0], [0], [1], [0, 0, 1, 1], [], []>} : vector<8x32xbf16>, vector<32x64xbf16>, vector<8x64xf32> -> vector<8x64xf32>
    %178 = vector.broadcast %173 : vector<1x64xf32> to vector<8x64xf32>
    %179 = arith.addf %177, %178 : vector<8x64xf32>
    %cst_83 = arith.constant 5.000000e-01 : f32
    %180 = vector.broadcast %cst_83 : f32 to vector<8x64xf32>
    %181 = arith.mulf %180, %179 : vector<8x64xf32>
    %cst_84 = arith.constant 0.707106769 : f32
    %182 = vector.broadcast %cst_84 : f32 to vector<8x64xf32>
    %183 = arith.mulf %179, %182 : vector<8x64xf32>
    %cst_85 = arith.constant 0.000000e+00 : f32
    %184 = vector.broadcast %cst_85 : f32 to vector<8x64xf32>
    %185 = arith.cmpf oge, %183, %184 : vector<8x64xf32>
    %cst_86 = arith.constant 1.000000e+00 : f32
    %cst_87 = arith.constant -1.000000e+00 : f32
    %186 = vector.broadcast %cst_86 : f32 to vector<8x64xf32>
    %187 = vector.broadcast %cst_87 : f32 to vector<8x64xf32>
    %188 = arith.select %185, %186, %187 : vector<8x64xi1>, vector<8x64xf32>
    %189 = math.absf %183 : vector<8x64xf32>
    %cst_88 = arith.constant 0.327591091 : f32
    %190 = vector.broadcast %cst_88 : f32 to vector<8x64xf32>
    %191 = arith.mulf %190, %189 : vector<8x64xf32>
    %cst_89 = arith.constant 1.000000e+00 : f32
    %192 = vector.broadcast %cst_89 : f32 to vector<8x64xf32>
    %193 = arith.addf %192, %191 : vector<8x64xf32>
    %cst_90 = arith.constant 1.000000e+00 : f32
    %194 = vector.broadcast %cst_90 : f32 to vector<8x64xf32>
    %195 = arith.divf %194, %193 : vector<8x64xf32>
    %cst_91 = arith.constant 1.06140542 : f32
    %196 = vector.broadcast %cst_91 : f32 to vector<8x64xf32>
    %197 = arith.mulf %196, %195 : vector<8x64xf32>
    %cst_92 = arith.constant -1.45315206 : f32
    %198 = vector.broadcast %cst_92 : f32 to vector<8x64xf32>
    %199 = arith.addf %197, %198 : vector<8x64xf32>
    %200 = arith.mulf %199, %195 : vector<8x64xf32>
    %cst_93 = arith.constant 1.42141378 : f32
    %201 = vector.broadcast %cst_93 : f32 to vector<8x64xf32>
    %202 = arith.addf %200, %201 : vector<8x64xf32>
    %203 = arith.mulf %202, %195 : vector<8x64xf32>
    %cst_94 = arith.constant -0.284496725 : f32
    %204 = vector.broadcast %cst_94 : f32 to vector<8x64xf32>
    %205 = arith.addf %203, %204 : vector<8x64xf32>
    %206 = arith.mulf %205, %195 : vector<8x64xf32>
    %cst_95 = arith.constant 0.254829586 : f32
    %207 = vector.broadcast %cst_95 : f32 to vector<8x64xf32>
    %208 = arith.addf %206, %207 : vector<8x64xf32>
    %209 = arith.mulf %208, %195 : vector<8x64xf32>
    %cst_96 = arith.constant 0.000000e+00 : f32
    %210 = vector.broadcast %cst_96 : f32 to vector<8x64xf32>
    %211 = arith.subf %210, %189 : vector<8x64xf32>
    %212 = arith.mulf %211, %189 : vector<8x64xf32>
    %213 = math.exp %212 : vector<8x64xf32>
    %214 = arith.mulf %209, %213 : vector<8x64xf32>
    %cst_97 = arith.constant 1.000000e+00 : f32
    %215 = vector.broadcast %cst_97 : f32 to vector<8x64xf32>
    %216 = arith.subf %215, %214 : vector<8x64xf32>
    %217 = arith.mulf %188, %216 : vector<8x64xf32>
    %cst_98 = arith.constant 1.000000e+00 : f32
    %218 = vector.broadcast %cst_98 : f32 to vector<8x64xf32>
    %219 = arith.addf %218, %217 : vector<8x64xf32>
    %220 = arith.mulf %181, %219 : vector<8x64xf32>
    %221 = arith.truncf %220 : vector<8x64xf32> to vector<8x64xbf16>
    %cst_99 = arith.constant dense<0.000000e+00> : vector<8x32xf32>
    %222 = tpu.matmul %221, %174, %cst_99 {dimension_numbers = #tpu.dot_dimension_numbers<[1], [0], [0], [1], [0, 0, 1, 1], [], []>} : vector<8x64xbf16>, vector<64x32xbf16>, vector<8x32xf32> -> vector<8x32xf32>
    %223 = vector.broadcast %175 : vector<1x32xf32> to vector<8x32xf32>
    %224 = arith.addf %222, %223 : vector<8x32xf32>
    %225 = arith.addf %149, %224 : vector<8x32xf32>
    %c0_100 = arith.constant 0 : index
    %c0_101 = arith.constant 0 : index
    %c0_102 = arith.constant 0 : index
    %226 = vector.load %arg26[%c0_100, %c0_101, %c0_102] : memref<1x8x32xf32, #tpu.memory_space<vmem>>, vector<1x8x32xf32>
    %227 = vector.shape_cast %226 : vector<1x8x32xf32> to vector<8x32xf32>
    %228 = vector.shape_cast %225 : vector<8x32xf32> to vector<1x8x32xf32>
    tpu.vector_store %arg26[%c0_100, %c0_101, %c0_102], %228 {strides = array<i32>} : memref<1x8x32xf32, #tpu.memory_space<vmem>>, vector<1x8x32xf32>,
    return
  }
  func.func @transform_0(%arg0: i32) -> (i32, i32, i32) {
    %c0_i32 = arith.constant 0 : i32
    %c0_i32_0 = arith.constant 0 : i32
    %c0_i32_1 = arith.constant 0 : i32
    return %arg0, %c0_i32, %c0_i32_0 : i32, i32, i32
  }
  func.func @transform_1(%arg0: i32) -> (i32, i32, i32) {
    %c0_i32 = arith.constant 0 : i32
    %c0_i32_0 = arith.constant 0 : i32
    %c0_i32_1 = arith.constant 0 : i32
    return %arg0, %c0_i32, %c0_i32_0 : i32, i32, i32
  }
  func.func @transform_2(%arg0: i32) -> (i32, i32) {
    %c0_i32 = arith.constant 0 : i32
    %c0_i32_0 = arith.constant 0 : i32
    %c0_i32_1 = arith.constant 0 : i32
    return %c0_i32, %c0_i32_0 : i32, i32
  }
  func.func @transform_3(%arg0: i32) -> (i32, i32, i32) {
    %c0_i32 = arith.constant 0 : i32
    %c0_i32_0 = arith.constant 0 : i32
    %c0_i32_1 = arith.constant 0 : i32
    return %arg0, %c0_i32, %c0_i32_0 : i32, i32, i32
  }
  func.func @transform_4(%arg0: i32) -> (i32, i32, i32) {
    %c0_i32 = arith.constant 0 : i32
    %c0_i32_0 = arith.constant 0 : i32
    %c0_i32_1 = arith.constant 0 : i32
    return %arg0, %c0_i32, %c0_i32_0 : i32, i32, i32
  }
  func.func @transform_5(%arg0: i32) -> (i32, i32) {
    %c0_i32 = arith.constant 0 : i32
    %c0_i32_0 = arith.constant 0 : i32
    %c0_i32_1 = arith.constant 0 : i32
    return %c0_i32, %c0_i32_0 : i32, i32
  }
  func.func @transform_6(%arg0: i32) -> (i32, i32) {
    %c0_i32 = arith.constant 0 : i32
    %c0_i32_0 = arith.constant 0 : i32
    %c0_i32_1 = arith.constant 0 : i32
    return %c0_i32, %c0_i32_0 : i32, i32
  }
  func.func @transform_7(%arg0: i32) -> (i32, i32) {
    %c0_i32 = arith.constant 0 : i32
    %c0_i32_0 = arith.constant 0 : i32
    %c0_i32_1 = arith.constant 0 : i32
    return %c0_i32, %c0_i32_0 : i32, i32
  }
  func.func @transform_8(%arg0: i32) -> (i32, i32) {
    %c0_i32 = arith.constant 0 : i32
    %c0_i32_0 = arith.constant 0 : i32
    %c0_i32_1 = arith.constant 0 : i32
    return %c0_i32, %c0_i32_0 : i32, i32
  }
  func.func @transform_9(%arg0: i32) -> (i32, i32) {
    %c0_i32 = arith.constant 0 : i32
    %c0_i32_0 = arith.constant 0 : i32
    %c0_i32_1 = arith.constant 0 : i32
    return %c0_i32, %c0_i32_0 : i32, i32
  }
  func.func @transform_10(%arg0: i32) -> (i32, i32) {
    %c0_i32 = arith.constant 0 : i32
    %c0_i32_0 = arith.constant 0 : i32
    %c0_i32_1 = arith.constant 0 : i32
    return %c0_i32, %c0_i32_0 : i32, i32
  }
  func.func @transform_11(%arg0: i32) -> (i32, i32) {
    %c0_i32 = arith.constant 0 : i32
    %c0_i32_0 = arith.constant 0 : i32
    %c0_i32_1 = arith.constant 0 : i32
    return %c0_i32, %c0_i32_0 : i32, i32
  }
  func.func @transform_12(%arg0: i32) -> (i32, i32) {
    %c0_i32 = arith.constant 0 : i32
    %c0_i32_0 = arith.constant 0 : i32
    %c0_i32_1 = arith.constant 0 : i32
    return %c0_i32, %c0_i32_0 : i32, i32
  }
  func.func @transform_13(%arg0: i32) -> (i32, i32) {
    %c0_i32 = arith.constant 0 : i32
    %c0_i32_0 = arith.constant 0 : i32
    %c0_i32_1 = arith.constant 0 : i32
    return %c0_i32, %c0_i32_0 : i32, i32
  }
  func.func @transform_14(%arg0: i32) -> (i32, i32) {
    %c0_i32 = arith.constant 0 : i32
    %c0_i32_0 = arith.constant 0 : i32
    %c0_i32_1 = arith.constant 0 : i32
    return %c0_i32, %c0_i32_0 : i32, i32
  }
  func.func @transform_15(%arg0: i32) -> (i32, i32) {
    %c0_i32 = arith.constant 0 : i32
    %c0_i32_0 = arith.constant 0 : i32
    %c0_i32_1 = arith.constant 0 : i32
    return %c0_i32, %c0_i32_0 : i32, i32
  }
  func.func @transform_16(%arg0: i32) -> (i32, i32) {
    %c0_i32 = arith.constant 0 : i32
    %c0_i32_0 = arith.constant 0 : i32
    %c0_i32_1 = arith.constant 0 : i32
    return %c0_i32, %c0_i32_0 : i32, i32
  }
  func.func @transform_17(%arg0: i32) -> (i32, i32) {
    %c0_i32 = arith.constant 0 : i32
    %c0_i32_0 = arith.constant 0 : i32
    %c0_i32_1 = arith.constant 0 : i32
    return %c0_i32, %c0_i32_0 : i32, i32
  }
  func.func @transform_18(%arg0: i32) -> (i32, i32) {
    %c0_i32 = arith.constant 0 : i32
    %c0_i32_0 = arith.constant 0 : i32
    %c0_i32_1 = arith.constant 0 : i32
    return %c0_i32, %c0_i32_0 : i32, i32
  }
  func.func @transform_19(%arg0: i32) -> (i32, i32) {
    %c0_i32 = arith.constant 0 : i32
    %c0_i32_0 = arith.constant 0 : i32
    %c0_i32_1 = arith.constant 0 : i32
    return %c0_i32, %c0_i32_0 : i32, i32
  }
  func.func @transform_20(%arg0: i32) -> (i32, i32) {
    %c0_i32 = arith.constant 0 : i32
    %c0_i32_0 = arith.constant 0 : i32
    %c0_i32_1 = arith.constant 0 : i32
    return %c0_i32, %c0_i32_0 : i32, i32
  }
  func.func @transform_21(%arg0: i32) -> (i32, i32) {
    %c0_i32 = arith.constant 0 : i32
    %c0_i32_0 = arith.constant 0 : i32
    %c0_i32_1 = arith.constant 0 : i32
    return %c0_i32, %c0_i32_0 : i32, i32
  }
  func.func @transform_22(%arg0: i32) -> (i32, i32) {
    %c0_i32 = arith.constant 0 : i32
    %c0_i32_0 = arith.constant 0 : i32
    %c0_i32_1 = arith.constant 0 : i32
    return %c0_i32, %c0_i32_0 : i32, i32
  }
  func.func @transform_23(%arg0: i32) -> (i32, i32) {
    %c0_i32 = arith.constant 0 : i32
    %c0_i32_0 = arith.constant 0 : i32
    %c0_i32_1 = arith.constant 0 : i32
    return %c0_i32, %c0_i32_0 : i32, i32
  }
  func.func @transform_24(%arg0: i32) -> (i32, i32) {
    %c0_i32 = arith.constant 0 : i32
    %c0_i32_0 = arith.constant 0 : i32
    %c0_i32_1 = arith.constant 0 : i32
    return %c0_i32, %c0_i32_0 : i32, i32
  }
  func.func @transform_25(%arg0: i32) -> (i32, i32, i32) {
    %c0_i32 = arith.constant 0 : i32
    %c0_i32_0 = arith.constant 0 : i32
    %c0_i32_1 = arith.constant 0 : i32
    return %arg0, %c0_i32, %c0_i32_0 : i32, i32, i32
  }
}

module attributes {stable_mosaic.version = 11 : i64} {
  func.func @_decoder_layer_kernel(%arg0: i32, %arg1: memref<1x8x32xf32, #tpu.memory_space<vmem>>, %arg2: memref<1x8x32xf32, #tpu.memory_space<vmem>>, %arg3: memref<8x8xf32, #tpu.memory_space<vmem>>, %arg4: memref<1x1x8xf32, #tpu.memory_space<vmem>>, %arg5: memref<1x1x8xf32, #tpu.memory_space<vmem>>, %arg6: memref<1x32xf32, #tpu.memory_space<vmem>>, %arg7: memref<1x32xf32, #tpu.memory_space<vmem>>, %arg8: memref<32x96xbf16, #tpu.memory_space<vmem>>, %arg9: memref<1x96xf32, #tpu.memory_space<vmem>>, %arg10: memref<32x32xbf16, #tpu.memory_space<vmem>>, %arg11: memref<1x32xf32, #tpu.memory_space<vmem>>, %arg12: memref<1x32xf32, #tpu.memory_space<vmem>>, %arg13: memref<1x32xf32, #tpu.memory_space<vmem>>, %arg14: memref<32x32xbf16, #tpu.memory_space<vmem>>, %arg15: memref<1x32xf32, #tpu.memory_space<vmem>>, %arg16: memref<32x64xbf16, #tpu.memory_space<vmem>>, %arg17: memref<1x64xf32, #tpu.memory_space<vmem>>, %arg18: memref<32x32xbf16, #tpu.memory_space<vmem>>, %arg19: memref<1x32xf32, #tpu.memory_space<vmem>>, %arg20: memref<1x32xf32, #tpu.memory_space<vmem>>, %arg21: memref<1x32xf32, #tpu.memory_space<vmem>>, %arg22: memref<32x64xbf16, #tpu.memory_space<vmem>>, %arg23: memref<1x64xf32, #tpu.memory_space<vmem>>, %arg24: memref<64x32xbf16, #tpu.memory_space<vmem>>, %arg25: memref<1x32xf32, #tpu.memory_space<vmem>>, %arg26: memref<1x8x32xf32, #tpu.memory_space<vmem>>) attributes {dimension_semantics = [#tpu.dimension_semantics<parallel>], iteration_bounds = array<i64: 2>, scalar_prefetch = 0 : i64, scratch_operands = 0 : i64, tpu.core_type = #tpu.core_type<tc>, window_params = [{transform_indices = @transform_0, window_bounds = array<i64: 1, 8, 32>}, {transform_indices = @transform_1, window_bounds = array<i64: 1, 8, 32>}, {pipeline_mode = #tpu.pipeline_mode<synchronous>, transform_indices = @transform_2, window_bounds = array<i64: 8, 8>}, {transform_indices = @transform_3, window_bounds = array<i64: 1, 1, 8>}, {transform_indices = @transform_4, window_bounds = array<i64: 1, 1, 8>}, {pipeline_mode = #tpu.pipeline_mode<synchronous>, transform_indices = @transform_5, window_bounds = array<i64: 1, 32>}, {pipeline_mode = #tpu.pipeline_mode<synchronous>, transform_indices = @transform_6, window_bounds = array<i64: 1, 32>}, {pipeline_mode = #tpu.pipeline_mode<synchronous>, transform_indices = @transform_7, window_bounds = array<i64: 32, 96>}, {pipeline_mode = #tpu.pipeline_mode<synchronous>, transform_indices = @transform_8, window_bounds = array<i64: 1, 96>}, {pipeline_mode = #tpu.pipeline_mode<synchronous>, transform_indices = @transform_9, window_bounds = array<i64: 32, 32>}, {pipeline_mode = #tpu.pipeline_mode<synchronous>, transform_indices = @transform_10, window_bounds = array<i64: 1, 32>}, {pipeline_mode = #tpu.pipeline_mode<synchronous>, transform_indices = @transform_11, window_bounds = array<i64: 1, 32>}, {pipeline_mode = #tpu.pipeline_mode<synchronous>, transform_indices = @transform_12, window_bounds = array<i64: 1, 32>}, {pipeline_mode = #tpu.pipeline_mode<synchronous>, transform_indices = @transform_13, window_bounds = array<i64: 32, 32>}, {pipeline_mode = #tpu.pipeline_mode<synchronous>, transform_indices = @transform_14, window_bounds = array<i64: 1, 32>}, {pipeline_mode = #tpu.pipeline_mode<synchronous>, transform_indices = @transform_15, window_bounds = array<i64: 32, 64>}, {pipeline_mode = #tpu.pipeline_mode<synchronous>, transform_indices = @transform_16, window_bounds = array<i64: 1, 64>}, {pipeline_mode = #tpu.pipeline_mode<synchronous>, transform_indices = @transform_17, window_bounds = array<i64: 32, 32>}, {pipeline_mode = #tpu.pipeline_mode<synchronous>, transform_indices = @transform_18, window_bounds = array<i64: 1, 32>}, {pipeline_mode = #tpu.pipeline_mode<synchronous>, transform_indices = @transform_19, window_bounds = array<i64: 1, 32>}, {pipeline_mode = #tpu.pipeline_mode<synchronous>, transform_indices = @transform_20, window_bounds = array<i64: 1, 32>}, {pipeline_mode = #tpu.pipeline_mode<synchronous>, transform_indices = @transform_21, window_bounds = array<i64: 32, 64>}, {pipeline_mode = #tpu.pipeline_mode<synchronous>, transform_indices = @transform_22, window_bounds = array<i64: 1, 64>}, {pipeline_mode = #tpu.pipeline_mode<synchronous>, transform_indices = @transform_23, window_bounds = array<i64: 64, 32>}, {pipeline_mode = #tpu.pipeline_mode<synchronous>, transform_indices = @transform_24, window_bounds = array<i64: 1, 32>}, {transform_indices = @transform_25, window_bounds = array<i64: 1, 8, 32>}]} {
    %c0 = arith.constant 0 : index
    %c0_0 = arith.constant 0 : index
    %c0_1 = arith.constant 0 : index
    %0 = vector.load %arg1[%c0, %c0_0, %c0_1] : memref<1x8x32xf32, #tpu.memory_space<vmem>>, vector<1x8x32xf32>
    %1 = vector.shape_cast %0 : vector<1x8x32xf32> to vector<8x32xf32>
    %c0_2 = arith.constant 0 : index
    %c0_3 = arith.constant 0 : index
    %c0_4 = arith.constant 0 : index
    %2 = vector.load %arg2[%c0_2, %c0_3, %c0_4] : memref<1x8x32xf32, #tpu.memory_space<vmem>>, vector<1x8x32xf32>
    %3 = vector.shape_cast %2 : vector<1x8x32xf32> to vector<8x32xf32>
    %c0_5 = arith.constant 0 : index
    %c0_6 = arith.constant 0 : index
    %4 = vector.load %arg3[%c0_5, %c0_6] : memref<8x8xf32, #tpu.memory_space<vmem>>, vector<8x8xf32>
    %c0_7 = arith.constant 0 : index
    %c0_8 = arith.constant 0 : index
    %c0_9 = arith.constant 0 : index
    %5 = vector.load %arg4[%c0_7, %c0_8, %c0_9] : memref<1x1x8xf32, #tpu.memory_space<vmem>>, vector<1x1x8xf32>
    %6 = vector.shape_cast %5 : vector<1x1x8xf32> to vector<1x8xf32>
    %7 = vector.broadcast %6 : vector<1x8xf32> to vector<8x8xf32>
    %8 = arith.addf %4, %7 : vector<8x8xf32>
    %c0_10 = arith.constant 0 : index
    %c0_11 = arith.constant 0 : index
    %c0_12 = arith.constant 0 : index
    %9 = vector.load %arg5[%c0_10, %c0_11, %c0_12] : memref<1x1x8xf32, #tpu.memory_space<vmem>>, vector<1x1x8xf32>
    %10 = vector.shape_cast %9 : vector<1x1x8xf32> to vector<1x8xf32>
    %c0_13 = arith.constant 0 : index
    %c0_14 = arith.constant 0 : index
    %11 = vector.load %arg6[%c0_13, %c0_14] : memref<1x32xf32, #tpu.memory_space<vmem>>, vector<1x32xf32>
    %c0_15 = arith.constant 0 : index
    %c0_16 = arith.constant 0 : index
    %12 = vector.load %arg7[%c0_15, %c0_16] : memref<1x32xf32, #tpu.memory_space<vmem>>, vector<1x32xf32>
    %cst = arith.constant dense<0.000000e+00> : vector<8xf32>
    %13 = vector.multi_reduction <add>, %1, %cst [1] : vector<8x32xf32> to vector<8xf32>
    %14 = vector.shape_cast %13 : vector<8xf32> to vector<8x1xf32>
    %cst_17 = arith.constant 3.200000e+01 : f32
    %15 = vector.broadcast %cst_17 : f32 to vector<8x1xf32>
    %16 = arith.divf %14, %15 : vector<8x1xf32>
    %17 = vector.broadcast %16 : vector<8x1xf32> to vector<8x32xf32>
    %18 = arith.subf %1, %17 : vector<8x32xf32>
    %19 = arith.mulf %18, %18 : vector<8x32xf32>
    %cst_18 = arith.constant dense<0.000000e+00> : vector<8xf32>
    %20 = vector.multi_reduction <add>, %19, %cst_18 [1] : vector<8x32xf32> to vector<8xf32>
    %21 = vector.shape_cast %20 : vector<8xf32> to vector<8x1xf32>
    %cst_19 = arith.constant 3.200000e+01 : f32
    %22 = vector.broadcast %cst_19 : f32 to vector<8x1xf32>
    %23 = arith.divf %21, %22 : vector<8x1xf32>
    %cst_20 = arith.constant 9.99999974E-6 : f32
    %24 = vector.broadcast %cst_20 : f32 to vector<8x1xf32>
    %25 = arith.addf %23, %24 : vector<8x1xf32>
    %26 = math.rsqrt %25 : vector<8x1xf32>
    %27 = vector.broadcast %26 : vector<8x1xf32> to vector<8x32xf32>
    %28 = arith.mulf %18, %27 : vector<8x32xf32>
    %29 = vector.broadcast %11 : vector<1x32xf32> to vector<8x32xf32>
    %30 = arith.mulf %28, %29 : vector<8x32xf32>
    %31 = vector.broadcast %12 : vector<1x32xf32> to vector<8x32xf32>
    %32 = arith.addf %30, %31 : vector<8x32xf32>
    %c0_21 = arith.constant 0 : index
    %c0_22 = arith.constant 0 : index
    %33 = vector.load %arg8[%c0_21, %c0_22] : memref<32x96xbf16, #tpu.memory_space<vmem>>, vector<32x96xbf16>
    %c0_23 = arith.constant 0 : index
    %c0_24 = arith.constant 0 : index
    %34 = vector.load %arg9[%c0_23, %c0_24] : memref<1x96xf32, #tpu.memory_space<vmem>>, vector<1x96xf32>
    %c0_25 = arith.constant 0 : index
    %c0_26 = arith.constant 0 : index
    %35 = vector.load %arg10[%c0_25, %c0_26] : memref<32x32xbf16, #tpu.memory_space<vmem>>, vector<32x32xbf16>
    %c0_27 = arith.constant 0 : index
    %c0_28 = arith.constant 0 : index
    %36 = vector.load %arg11[%c0_27, %c0_28] : memref<1x32xf32, #tpu.memory_space<vmem>>, vector<1x32xf32>
    %37 = arith.truncf %32 : vector<8x32xf32> to vector<8x32xbf16>
    %cst_29 = arith.constant dense<0.000000e+00> : vector<8x96xf32>
    %38 = tpu.matmul %37, %33, %cst_29 {dimension_numbers = #tpu.dot_dimension_numbers<[1], [0], [0], [1], [0, 0, 1, 1], [], []>} : vector<8x32xbf16>, vector<32x96xbf16>, vector<8x96xf32> -> vector<8x96xf32>
    %39 = vector.broadcast %34 : vector<1x96xf32> to vector<8x96xf32>
    %40 = arith.addf %38, %39 : vector<8x96xf32>
    %41 = vector.extract_strided_slice %40 {offsets = [0, 0], sizes = [8, 32], strides = [1, 1]} : vector<8x96xf32> to vector<8x32xf32>
    %42 = vector.extract_strided_slice %40 {offsets = [0, 32], sizes = [8, 32], strides = [1, 1]} : vector<8x96xf32> to vector<8x32xf32>
    %43 = vector.extract_strided_slice %40 {offsets = [0, 64], sizes = [8, 32], strides = [1, 1]} : vector<8x96xf32> to vector<8x32xf32>
    %44 = vector.shape_cast %41 : vector<8x32xf32> to vector<8x4x8xf32>
    %45 = tpu.transpose %44, [1, 0, 2] : vector<8x4x8xf32> -> vector<4x8x8xf32>
    %46 = arith.truncf %45 : vector<4x8x8xf32> to vector<4x8x8xbf16>
    %47 = vector.shape_cast %42 : vector<8x32xf32> to vector<8x4x8xf32>
    %48 = tpu.transpose %47, [1, 0, 2] : vector<8x4x8xf32> -> vector<4x8x8xf32>
    %49 = arith.truncf %48 : vector<4x8x8xf32> to vector<4x8x8xbf16>
    %50 = vector.shape_cast %43 : vector<8x32xf32> to vector<8x4x8xf32>
    %51 = tpu.transpose %50, [1, 0, 2] : vector<8x4x8xf32> -> vector<4x8x8xf32>
    %52 = arith.truncf %51 : vector<4x8x8xf32> to vector<4x8x8xbf16>
    "tpu.trace_start"() <{level = 10 : i32, message = "hld,hsd->hls"}> : () -> ()
    %cst_30 = arith.constant dense<0.000000e+00> : vector<4x8x8xf32>
    %53 = tpu.matmul %46, %49, %cst_30 {dimension_numbers = #tpu.dot_dimension_numbers<[2], [2], [1], [1], [0, 0, 0, 1, 1, 1], [0], [0]>} : vector<4x8x8xbf16>, vector<4x8x8xbf16>, vector<4x8x8xf32> -> vector<4x8x8xf32>
    "tpu.trace_stop"() : () -> ()
    %cst_31 = arith.constant 0.353553385 : f32
    %54 = vector.broadcast %cst_31 : f32 to vector<4x8x8xf32>
    %55 = arith.mulf %53, %54 : vector<4x8x8xf32>
    %56 = vector.shape_cast %8 : vector<8x8xf32> to vector<1x8x8xf32>
    %57 = vector.broadcast %56 : vector<1x8x8xf32> to vector<4x8x8xf32>
    %58 = arith.addf %55, %57 : vector<4x8x8xf32>
    %cst_32 = arith.constant dense<0xFF800000> : vector<4x8xf32>
    %59 = vector.multi_reduction <maximumf>, %58, %cst_32 [2] : vector<4x8x8xf32> to vector<4x8xf32>
    %60 = vector.shape_cast %59 : vector<4x8xf32> to vector<4x8x1xf32>
    %61 = vector.broadcast %60 : vector<4x8x1xf32> to vector<4x8x8xf32>
    %62 = arith.subf %58, %61 : vector<4x8x8xf32>
    %63 = math.exp %62 : vector<4x8x8xf32>
    %cst_33 = arith.constant dense<0.000000e+00> : vector<4x8xf32>
    %64 = vector.multi_reduction <add>, %63, %cst_33 [2] : vector<4x8x8xf32> to vector<4x8xf32>
    %65 = vector.shape_cast %64 : vector<4x8xf32> to vector<4x8x1xf32>
    %66 = tpu.reciprocal %65 {approx = true} : vector<4x8x1xf32> -> vector<4x8x1xf32>
    %67 = vector.broadcast %66 : vector<4x8x1xf32> to vector<4x8x8xf32>
    %68 = arith.mulf %63, %67 : vector<4x8x8xf32>
    %69 = arith.truncf %68 : vector<4x8x8xf32> to vector<4x8x8xbf16>
    "tpu.trace_start"() <{level = 10 : i32, message = "hls,hsd->hld"}> : () -> ()
    %cst_34 = arith.constant dense<0.000000e+00> : vector<4x8x8xf32>
    %70 = tpu.matmul %69, %52, %cst_34 {dimension_numbers = #tpu.dot_dimension_numbers<[2], [1], [1], [2], [0, 0, 0, 1, 1, 2], [0], [0]>} : vector<4x8x8xbf16>, vector<4x8x8xbf16>, vector<4x8x8xf32> -> vector<4x8x8xf32>
    "tpu.trace_stop"() : () -> ()
    %71 = tpu.transpose %70, [1, 0, 2] : vector<4x8x8xf32> -> vector<8x4x8xf32>
    %72 = vector.shape_cast %71 : vector<8x4x8xf32> to vector<8x32xf32>
    %73 = arith.truncf %72 : vector<8x32xf32> to vector<8x32xbf16>
    %cst_35 = arith.constant dense<0.000000e+00> : vector<8x32xf32>
    %74 = tpu.matmul %73, %35, %cst_35 {dimension_numbers = #tpu.dot_dimension_numbers<[1], [0], [0], [1], [0, 0, 1, 1], [], []>} : vector<8x32xbf16>, vector<32x32xbf16>, vector<8x32xf32> -> vector<8x32xf32>
    %75 = vector.broadcast %36 : vector<1x32xf32> to vector<8x32xf32>
    %76 = arith.addf %74, %75 : vector<8x32xf32>
    %77 = arith.addf %1, %76 : vector<8x32xf32>
    %c0_36 = arith.constant 0 : index
    %c0_37 = arith.constant 0 : index
    %78 = vector.load %arg12[%c0_36, %c0_37] : memref<1x32xf32, #tpu.memory_space<vmem>>, vector<1x32xf32>
    %c0_38 = arith.constant 0 : index
    %c0_39 = arith.constant 0 : index
    %79 = vector.load %arg13[%c0_38, %c0_39] : memref<1x32xf32, #tpu.memory_space<vmem>>, vector<1x32xf32>
    %cst_40 = arith.constant dense<0.000000e+00> : vector<8xf32>
    %80 = vector.multi_reduction <add>, %77, %cst_40 [1] : vector<8x32xf32> to vector<8xf32>
    %81 = vector.shape_cast %80 : vector<8xf32> to vector<8x1xf32>
    %cst_41 = arith.constant 3.200000e+01 : f32
    %82 = vector.broadcast %cst_41 : f32 to vector<8x1xf32>
    %83 = arith.divf %81, %82 : vector<8x1xf32>
    %84 = vector.broadcast %83 : vector<8x1xf32> to vector<8x32xf32>
    %85 = arith.subf %77, %84 : vector<8x32xf32>
    %86 = arith.mulf %85, %85 : vector<8x32xf32>
    %cst_42 = arith.constant dense<0.000000e+00> : vector<8xf32>
    %87 = vector.multi_reduction <add>, %86, %cst_42 [1] : vector<8x32xf32> to vector<8xf32>
    %88 = vector.shape_cast %87 : vector<8xf32> to vector<8x1xf32>
    %cst_43 = arith.constant 3.200000e+01 : f32
    %89 = vector.broadcast %cst_43 : f32 to vector<8x1xf32>
    %90 = arith.divf %88, %89 : vector<8x1xf32>
    %cst_44 = arith.constant 9.99999974E-6 : f32
    %91 = vector.broadcast %cst_44 : f32 to vector<8x1xf32>
    %92 = arith.addf %90, %91 : vector<8x1xf32>
    %93 = math.rsqrt %92 : vector<8x1xf32>
    %94 = vector.broadcast %93 : vector<8x1xf32> to vector<8x32xf32>
    %95 = arith.mulf %85, %94 : vector<8x32xf32>
    %96 = vector.broadcast %78 : vector<1x32xf32> to vector<8x32xf32>
    %97 = arith.mulf %95, %96 : vector<8x32xf32>
    %98 = vector.broadcast %79 : vector<1x32xf32> to vector<8x32xf32>
    %99 = arith.addf %97, %98 : vector<8x32xf32>
    %c0_45 = arith.constant 0 : index
    %c0_46 = arith.constant 0 : index
    %100 = vector.load %arg14[%c0_45, %c0_46] : memref<32x32xbf16, #tpu.memory_space<vmem>>, vector<32x32xbf16>
    %c0_47 = arith.constant 0 : index
    %c0_48 = arith.constant 0 : index
    %101 = vector.load %arg15[%c0_47, %c0_48] : memref<1x32xf32, #tpu.memory_space<vmem>>, vector<1x32xf32>
    %c0_49 = arith.constant 0 : index
    %c0_50 = arith.constant 0 : index
    %102 = vector.load %arg16[%c0_49, %c0_50] : memref<32x64xbf16, #tpu.memory_space<vmem>>, vector<32x64xbf16>
    %c0_51 = arith.constant 0 : index
    %c0_52 = arith.constant 0 : index
    %103 = vector.load %arg17[%c0_51, %c0_52] : memref<1x64xf32, #tpu.memory_space<vmem>>, vector<1x64xf32>
    %c0_53 = arith.constant 0 : index
    %c0_54 = arith.constant 0 : index
    %104 = vector.load %arg18[%c0_53, %c0_54] : memref<32x32xbf16, #tpu.memory_space<vmem>>, vector<32x32xbf16>
    %c0_55 = arith.constant 0 : index
    %c0_56 = arith.constant 0 : index
    %105 = vector.load %arg19[%c0_55, %c0_56] : memref<1x32xf32, #tpu.memory_space<vmem>>, vector<1x32xf32>
    %106 = arith.truncf %99 : vector<8x32xf32> to vector<8x32xbf16>
    %cst_57 = arith.constant dense<0.000000e+00> : vector<8x32xf32>
    %107 = tpu.matmul %106, %100, %cst_57 {dimension_numbers = #tpu.dot_dimension_numbers<[1], [0], [0], [1], [0, 0, 1, 1], [], []>} : vector<8x32xbf16>, vector<32x32xbf16>, vector<8x32xf32> -> vector<8x32xf32>
    %108 = vector.broadcast %101 : vector<1x32xf32> to vector<8x32xf32>
    %109 = arith.addf %107, %108 : vector<8x32xf32>
    %110 = arith.truncf %3 : vector<8x32xf32> to vector<8x32xbf16>
    %cst_58 = arith.constant dense<0.000000e+00> : vector<8x64xf32>
    %111 = tpu.matmul %110, %102, %cst_58 {dimension_numbers = #tpu.dot_dimension_numbers<[1], [0], [0], [1], [0, 0, 1, 1], [], []>} : vector<8x32xbf16>, vector<32x64xbf16>, vector<8x64xf32> -> vector<8x64xf32>
    %112 = vector.broadcast %103 : vector<1x64xf32> to vector<8x64xf32>
    %113 = arith.addf %111, %112 : vector<8x64xf32>
    %114 = vector.extract_strided_slice %113 {offsets = [0, 0], sizes = [8, 32], strides = [1, 1]} : vector<8x64xf32> to vector<8x32xf32>
    %115 = vector.extract_strided_slice %113 {offsets = [0, 32], sizes = [8, 32], strides = [1, 1]} : vector<8x64xf32> to vector<8x32xf32>
    %116 = vector.shape_cast %109 : vector<8x32xf32> to vector<8x4x8xf32>
    %117 = tpu.transpose %116, [1, 0, 2] : vector<8x4x8xf32> -> vector<4x8x8xf32>
    %118 = arith.truncf %117 : vector<4x8x8xf32> to vector<4x8x8xbf16>
    %119 = vector.shape_cast %114 : vector<8x32xf32> to vector<8x4x8xf32>
    %120 = tpu.transpose %119, [1, 0, 2] : vector<8x4x8xf32> -> vector<4x8x8xf32>
    %121 = arith.truncf %120 : vector<4x8x8xf32> to vector<4x8x8xbf16>
    %122 = vector.shape_cast %115 : vector<8x32xf32> to vector<8x4x8xf32>
    %123 = tpu.transpose %122, [1, 0, 2] : vector<8x4x8xf32> -> vector<4x8x8xf32>
    %124 = arith.truncf %123 : vector<4x8x8xf32> to vector<4x8x8xbf16>
    "tpu.trace_start"() <{level = 10 : i32, message = "hld,hsd->hls"}> : () -> ()
    %cst_59 = arith.constant dense<0.000000e+00> : vector<4x8x8xf32>
    %125 = tpu.matmul %118, %121, %cst_59 {dimension_numbers = #tpu.dot_dimension_numbers<[2], [2], [1], [1], [0, 0, 0, 1, 1, 1], [0], [0]>} : vector<4x8x8xbf16>, vector<4x8x8xbf16>, vector<4x8x8xf32> -> vector<4x8x8xf32>
    "tpu.trace_stop"() : () -> ()
    %cst_60 = arith.constant 0.353553385 : f32
    %126 = vector.broadcast %cst_60 : f32 to vector<4x8x8xf32>
    %127 = arith.mulf %125, %126 : vector<4x8x8xf32>
    %128 = vector.shape_cast %10 : vector<1x8xf32> to vector<1x1x8xf32>
    %129 = vector.broadcast %128 : vector<1x1x8xf32> to vector<4x8x8xf32>
    %130 = arith.addf %127, %129 : vector<4x8x8xf32>
    %cst_61 = arith.constant dense<0xFF800000> : vector<4x8xf32>
    %131 = vector.multi_reduction <maximumf>, %130, %cst_61 [2] : vector<4x8x8xf32> to vector<4x8xf32>
    %132 = vector.shape_cast %131 : vector<4x8xf32> to vector<4x8x1xf32>
    %133 = vector.broadcast %132 : vector<4x8x1xf32> to vector<4x8x8xf32>
    %134 = arith.subf %130, %133 : vector<4x8x8xf32>
    %135 = math.exp %134 : vector<4x8x8xf32>
    %cst_62 = arith.constant dense<0.000000e+00> : vector<4x8xf32>
    %136 = vector.multi_reduction <add>, %135, %cst_62 [2] : vector<4x8x8xf32> to vector<4x8xf32>
    %137 = vector.shape_cast %136 : vector<4x8xf32> to vector<4x8x1xf32>
    %138 = tpu.reciprocal %137 {approx = true} : vector<4x8x1xf32> -> vector<4x8x1xf32>
    %139 = vector.broadcast %138 : vector<4x8x1xf32> to vector<4x8x8xf32>
    %140 = arith.mulf %135, %139 : vector<4x8x8xf32>
    %141 = arith.truncf %140 : vector<4x8x8xf32> to vector<4x8x8xbf16>
    "tpu.trace_start"() <{level = 10 : i32, message = "hls,hsd->hld"}> : () -> ()
    %cst_63 = arith.constant dense<0.000000e+00> : vector<4x8x8xf32>
    %142 = tpu.matmul %141, %124, %cst_63 {dimension_numbers = #tpu.dot_dimension_numbers<[2], [1], [1], [2], [0, 0, 0, 1, 1, 2], [0], [0]>} : vector<4x8x8xbf16>, vector<4x8x8xbf16>, vector<4x8x8xf32> -> vector<4x8x8xf32>
    "tpu.trace_stop"() : () -> ()
    %143 = tpu.transpose %142, [1, 0, 2] : vector<4x8x8xf32> -> vector<8x4x8xf32>
    %144 = vector.shape_cast %143 : vector<8x4x8xf32> to vector<8x32xf32>
    %145 = arith.truncf %144 : vector<8x32xf32> to vector<8x32xbf16>
    %cst_64 = arith.constant dense<0.000000e+00> : vector<8x32xf32>
    %146 = tpu.matmul %145, %104, %cst_64 {dimension_numbers = #tpu.dot_dimension_numbers<[1], [0], [0], [1], [0, 0, 1, 1], [], []>} : vector<8x32xbf16>, vector<32x32xbf16>, vector<8x32xf32> -> vector<8x32xf32>
    %147 = vector.broadcast %105 : vector<1x32xf32> to vector<8x32xf32>
    %148 = arith.addf %146, %147 : vector<8x32xf32>
    %149 = arith.addf %77, %148 : vector<8x32xf32>
    %c0_65 = arith.constant 0 : index
    %c0_66 = arith.constant 0 : index
    %150 = vector.load %arg20[%c0_65, %c0_66] : memref<1x32xf32, #tpu.memory_space<vmem>>, vector<1x32xf32>
    %c0_67 = arith.constant 0 : index
    %c0_68 = arith.constant 0 : index
    %151 = vector.load %arg21[%c0_67, %c0_68] : memref<1x32xf32, #tpu.memory_space<vmem>>, vector<1x32xf32>
    %cst_69 = arith.constant dense<0.000000e+00> : vector<8xf32>
    %152 = vector.multi_reduction <add>, %149, %cst_69 [1] : vector<8x32xf32> to vector<8xf32>
    %153 = vector.shape_cast %152 : vector<8xf32> to vector<8x1xf32>
    %cst_70 = arith.constant 3.200000e+01 : f32
    %154 = vector.broadcast %cst_70 : f32 to vector<8x1xf32>
    %155 = arith.divf %153, %154 : vector<8x1xf32>
    %156 = vector.broadcast %155 : vector<8x1xf32> to vector<8x32xf32>
    %157 = arith.subf %149, %156 : vector<8x32xf32>
    %158 = arith.mulf %157, %157 : vector<8x32xf32>
    %cst_71 = arith.constant dense<0.000000e+00> : vector<8xf32>
    %159 = vector.multi_reduction <add>, %158, %cst_71 [1] : vector<8x32xf32> to vector<8xf32>
    %160 = vector.shape_cast %159 : vector<8xf32> to vector<8x1xf32>
    %cst_72 = arith.constant 3.200000e+01 : f32
    %161 = vector.broadcast %cst_72 : f32 to vector<8x1xf32>
    %162 = arith.divf %160, %161 : vector<8x1xf32>
    %cst_73 = arith.constant 9.99999974E-6 : f32
    %163 = vector.broadcast %cst_73 : f32 to vector<8x1xf32>
    %164 = arith.addf %162, %163 : vector<8x1xf32>
    %165 = math.rsqrt %164 : vector<8x1xf32>
    %166 = vector.broadcast %165 : vector<8x1xf32> to vector<8x32xf32>
    %167 = arith.mulf %157, %166 : vector<8x32xf32>
    %168 = vector.broadcast %150 : vector<1x32xf32> to vector<8x32xf32>
    %169 = arith.mulf %167, %168 : vector<8x32xf32>
    %170 = vector.broadcast %151 : vector<1x32xf32> to vector<8x32xf32>
    %171 = arith.addf %169, %170 : vector<8x32xf32>
    %c0_74 = arith.constant 0 : index
    %c0_75 = arith.constant 0 : index
    %172 = vector.load %arg22[%c0_74, %c0_75] : memref<32x64xbf16, #tpu.memory_space<vmem>>, vector<32x64xbf16>
    %c0_76 = arith.constant 0 : index
    %c0_77 = arith.constant 0 : index
    %173 = vector.load %arg23[%c0_76, %c0_77] : memref<1x64xf32, #tpu.memory_space<vmem>>, vector<1x64xf32>
    %c0_78 = arith.constant 0 : index
    %c0_79 = arith.constant 0 : index
    %174 = vector.load %arg24[%c0_78, %c0_79] : memref<64x32xbf16, #tpu.memory_space<vmem>>, vector<64x32xbf16>
    %c0_80 = arith.constant 0 : index
    %c0_81 = arith.constant 0 : index
    %175 = vector.load %arg25[%c0_80, %c0_81] : memref<1x32xf32, #tpu.memory_space<vmem>>, vector<1x32xf32>
    %176 = arith.truncf %171 : vector<8x32xf32> to vector<8x32xbf16>
    %cst_82 = arith.constant dense<0.000000e+00> : vector<8x64xf32>
    %177 = tpu.matmul %176, %172, %cst_82 {dimension_numbers = #tpu.dot_dimension_numbers<[1], [0], [0], [1], [0, 0, 1, 1], [], []>} : vector<8x32xbf16>, vector<32x64xbf16>, vector<8x64xf32> -> vector<8x64xf32>
    %178 = vector.broadcast %173 : vector<1x64xf32> to vector<8x64xf32>
    %179 = arith.addf %177, %178 : vector<8x64xf32>
    %cst_83 = arith.constant 5.000000e-01 : f32
    %180 = vector.broadcast %cst_83 : f32 to vector<8x64xf32>
    %181 = arith.mulf %180, %179 : vector<8x64xf32>
    %cst_84 = arith.constant 0.707106769 : f32
    %182 = vector.broadcast %cst_84 : f32 to vector<8x64xf32>
    %183 = arith.mulf %179, %182 : vector<8x64xf32>
    %cst_85 = arith.constant 0.000000e+00 : f32
    %184 = vector.broadcast %cst_85 : f32 to vector<8x64xf32>
    %185 = arith.cmpf oge, %183, %184 : vector<8x64xf32>
    %cst_86 = arith.constant 1.000000e+00 : f32
    %cst_87 = arith.constant -1.000000e+00 : f32
    %186 = vector.broadcast %cst_86 : f32 to vector<8x64xf32>
    %187 = vector.broadcast %cst_87 : f32 to vector<8x64xf32>
    %188 = arith.select %185, %186, %187 : vector<8x64xi1>, vector<8x64xf32>
    %189 = math.absf %183 : vector<8x64xf32>
    %cst_88 = arith.constant 0.327591091 : f32
    %190 = vector.broadcast %cst_88 : f32 to vector<8x64xf32>
    %191 = arith.mulf %190, %189 : vector<8x64xf32>
    %cst_89 = arith.constant 1.000000e+00 : f32
    %192 = vector.broadcast %cst_89 : f32 to vector<8x64xf32>
    %193 = arith.addf %192, %191 : vector<8x64xf32>
    %cst_90 = arith.constant 1.000000e+00 : f32
    %194 = vector.broadcast %cst_90 : f32 to vector<8x64xf32>
    %195 = arith.divf %194, %193 : vector<8x64xf32>
    %cst_91 = arith.constant 1.06140542 : f32
    %196 = vector.broadcast %cst_91 : f32 to vector<8x64xf32>
    %197 = arith.mulf %196, %195 : vector<8x64xf32>
    %cst_92 = arith.constant -1.45315206 : f32
    %198 = vector.broadcast %cst_92 : f32 to vector<8x64xf32>
    %199 = arith.addf %197, %198 : vector<8x64xf32>
    %200 = arith.mulf %199, %195 : vector<8x64xf32>
    %cst_93 = arith.constant 1.42141378 : f32
    %201 = vector.broadcast %cst_93 : f32 to vector<8x64xf32>
    %202 = arith.addf %200, %201 : vector<8x64xf32>
    %203 = arith.mulf %202, %195 : vector<8x64xf32>
    %cst_94 = arith.constant -0.284496725 : f32
    %204 = vector.broadcast %cst_94 : f32 to vector<8x64xf32>
    %205 = arith.addf %203, %204 : vector<8x64xf32>
    %206 = arith.mulf %205, %195 : vector<8x64xf32>
    %cst_95 = arith.constant 0.254829586 : f32
    %207 = vector.broadcast %cst_95 : f32 to vector<8x64xf32>
    %208 = arith.addf %206, %207 : vector<8x64xf32>
    %209 = arith.mulf %208, %195 : vector<8x64xf32>
    %cst_96 = arith.constant 0.000000e+00 : f32
    %210 = vector.broadcast %cst_96 : f32 to vector<8x64xf32>
    %211 = arith.subf %210, %189 : vector<8x64xf32>
    %212 = arith.mulf %211, %189 : vector<8x64xf32>
    %213 = math.exp %212 : vector<8x64xf32>
    %214 = arith.mulf %209, %213 : vector<8x64xf32>
    %cst_97 = arith.constant 1.000000e+00 : f32
    %215 = vector.broadcast %cst_97 : f32 to vector<8x64xf32>
    %216 = arith.subf %215, %214 : vector<8x64xf32>
    %217 = arith.mulf %188, %216 : vector<8x64xf32>
    %cst_98 = arith.constant 1.000000e+00 : f32
    %218 = vector.broadcast %cst_98 : f32 to vector<8x64xf32>
    %219 = arith.addf %218, %217 : vector<8x64xf32>
    %220 = arith.mulf %181, %219 : vector<8x64xf32>
    %221 = arith.truncf %220 : vector<8x64xf32> to vector<8x64xbf16>
    %cst_99 = arith.constant dense<0.000000e+00> : vector<8x32xf32>
    %222 = tpu.matmul %221, %174, %cst_99 {dimension_numbers = #tpu.dot_dimension_numbers<[1], [0], [0], [1], [0, 0, 1, 1], [], []>} : vector<8x64xbf16>, vector<64x32xbf16>, vector<8x32xf32> -> vector<8x32xf32>
    %223 = vector.broadcast %175 : vector<1x32xf32> to vector<8x32xf32>
    %224 = arith.addf %222, %223 : vector<8x32xf32>
    %225 = arith.addf %149, %224 : vector<8x32xf32>
    %c0_100 = arith.constant 0 : index
    %c0_101 = arith.constant 0 : index
    %c0_102 = arith.constant 0 : index
    %226 = vector.load %arg26[%c0_100, %c0_101, %c0_102] : memref<1x8x32xf32, #tpu.memory_space<vmem>>, vector<1x8x32xf32>
    %227 = vector.shape_cast %226 : vector<1x8x32xf32> to vector<8x32xf32>
    %228 = vector.shape_cast %225 : vector<8x32xf32> to vector<1x8x32xf32>
    tpu.vector_store %arg26[%c0_100, %c0_101, %c0_102], %228 {strides = array<i32>} : memref<1x8x32xf32, #tpu.memory_space<vmem>>, vector<1x8x32xf32>,
    return
  }
  func.func @transform_0(%arg0: i32) -> (i32, i32, i32) {
    %c0_i32 = arith.constant 0 : i32
    %c0_i32_0 = arith.constant 0 : i32
    %c0_i32_1 = arith.constant 0 : i32
    return %arg0, %c0_i32, %c0_i32_0 : i32, i32, i32
  }
  func.func @transform_1(%arg0: i32) -> (i32, i32, i32) {
    %c0_i32 = arith.constant 0 : i32
    %c0_i32_0 = arith.constant 0 : i32
    %c0_i32_1 = arith.constant 0 : i32
    return %arg0, %c0_i32, %c0_i32_0 : i32, i32, i32
  }
  func.func @transform_2(%arg0: i32) -> (i32, i32) {
    %c0_i32 = arith.constant 0 : i32
    %c0_i32_0 = arith.constant 0 : i32
    %c0_i32_1 = arith.constant 0 : i32
    return %c0_i32, %c0_i32_0 : i32, i32
  }
  func.func @transform_3(%arg0: i32) -> (i32, i32, i32) {
    %c0_i32 = arith.constant 0 : i32
    %c0_i32_0 = arith.constant 0 : i32
    %c0_i32_1 = arith.constant 0 : i32
    return %arg0, %c0_i32, %c0_i32_0 : i32, i32, i32
  }
  func.func @transform_4(%arg0: i32) -> (i32, i32, i32) {
    %c0_i32 = arith.constant 0 : i32
    %c0_i32_0 = arith.constant 0 : i32
    %c0_i32_1 = arith.constant 0 : i32
    return %arg0, %c0_i32, %c0_i32_0 : i32, i32, i32
  }
  func.func @transform_5(%arg0: i32) -> (i32, i32) {
    %c0_i32 = arith.constant 0 : i32
    %c0_i32_0 = arith.constant 0 : i32
    %c0_i32_1 = arith.constant 0 : i32
    return %c0_i32, %c0_i32_0 : i32, i32
  }
  func.func @transform_6(%arg0: i32) -> (i32, i32) {
    %c0_i32 = arith.constant 0 : i32
    %c0_i32_0 = arith.constant 0 : i32
    %c0_i32_1 = arith.constant 0 : i32
    return %c0_i32, %c0_i32_0 : i32, i32
  }
  func.func @transform_7(%arg0: i32) -> (i32, i32) {
    %c0_i32 = arith.constant 0 : i32
    %c0_i32_0 = arith.constant 0 : i32
    %c0_i32_1 = arith.constant 0 : i32
    return %c0_i32, %c0_i32_0 : i32, i32
  }
  func.func @transform_8(%arg0: i32) -> (i32, i32) {
    %c0_i32 = arith.constant 0 : i32
    %c0_i32_0 = arith.constant 0 : i32
    %c0_i32_1 = arith.constant 0 : i32
    return %c0_i32, %c0_i32_0 : i32, i32
  }
  func.func @transform_9(%arg0: i32) -> (i32, i32) {
    %c0_i32 = arith.constant 0 : i32
    %c0_i32_0 = arith.constant 0 : i32
    %c0_i32_1 = arith.constant 0 : i32
    return %c0_i32, %c0_i32_0 : i32, i32
  }
  func.func @transform_10(%arg0: i32) -> (i32, i32) {
    %c0_i32 = arith.constant 0 : i32
    %c0_i32_0 = arith.constant 0 : i32
    %c0_i32_1 = arith.constant 0 : i32
    return %c0_i32, %c0_i32_0 : i32, i32
  }
  func.func @transform_11(%arg0: i32) -> (i32, i32) {
    %c0_i32 = arith.constant 0 : i32
    %c0_i32_0 = arith.constant 0 : i32
    %c0_i32_1 = arith.constant 0 : i32
    return %c0_i32, %c0_i32_0 : i32, i32
  }
  func.func @transform_12(%arg0: i32) -> (i32, i32) {
    %c0_i32 = arith.constant 0 : i32
    %c0_i32_0 = arith.constant 0 : i32
    %c0_i32_1 = arith.constant 0 : i32
    return %c0_i32, %c0_i32_0 : i32, i32
  }
  func.func @transform_13(%arg0: i32) -> (i32, i32) {
    %c0_i32 = arith.constant 0 : i32
    %c0_i32_0 = arith.constant 0 : i32
    %c0_i32_1 = arith.constant 0 : i32
    return %c0_i32, %c0_i32_0 : i32, i32
  }
  func.func @transform_14(%arg0: i32) -> (i32, i32) {
    %c0_i32 = arith.constant 0 : i32
    %c0_i32_0 = arith.constant 0 : i32
    %c0_i32_1 = arith.constant 0 : i32
    return %c0_i32, %c0_i32_0 : i32, i32
  }
  func.func @transform_15(%arg0: i32) -> (i32, i32) {
    %c0_i32 = arith.constant 0 : i32
    %c0_i32_0 = arith.constant 0 : i32
    %c0_i32_1 = arith.constant 0 : i32
    return %c0_i32, %c0_i32_0 : i32, i32
  }
  func.func @transform_16(%arg0: i32) -> (i32, i32) {
    %c0_i32 = arith.constant 0 : i32
    %c0_i32_0 = arith.constant 0 : i32
    %c0_i32_1 = arith.constant 0 : i32
    return %c0_i32, %c0_i32_0 : i32, i32
  }
  func.func @transform_17(%arg0: i32) -> (i32, i32) {
    %c0_i32 = arith.constant 0 : i32
    %c0_i32_0 = arith.constant 0 : i32
    %c0_i32_1 = arith.constant 0 : i32
    return %c0_i32, %c0_i32_0 : i32, i32
  }
  func.func @transform_18(%arg0: i32) -> (i32, i32) {
    %c0_i32 = arith.constant 0 : i32
    %c0_i32_0 = arith.constant 0 : i32
    %c0_i32_1 = arith.constant 0 : i32
    return %c0_i32, %c0_i32_0 : i32, i32
  }
  func.func @transform_19(%arg0: i32) -> (i32, i32) {
    %c0_i32 = arith.constant 0 : i32
    %c0_i32_0 = arith.constant 0 : i32
    %c0_i32_1 = arith.constant 0 : i32
    return %c0_i32, %c0_i32_0 : i32, i32
  }
  func.func @transform_20(%arg0: i32) -> (i32, i32) {
    %c0_i32 = arith.constant 0 : i32
    %c0_i32_0 = arith.constant 0 : i32
    %c0_i32_1 = arith.constant 0 : i32
    return %c0_i32, %c0_i32_0 : i32, i32
  }
  func.func @transform_21(%arg0: i32) -> (i32, i32) {
    %c0_i32 = arith.constant 0 : i32
    %c0_i32_0 = arith.constant 0 : i32
    %c0_i32_1 = arith.constant 0 : i32
    return %c0_i32, %c0_i32_0 : i32, i32
  }
  func.func @transform_22(%arg0: i32) -> (i32, i32) {
    %c0_i32 = arith.constant 0 : i32
    %c0_i32_0 = arith.constant 0 : i32
    %c0_i32_1 = arith.constant 0 : i32
    return %c0_i32, %c0_i32_0 : i32, i32
  }
  func.func @transform_23(%arg0: i32) -> (i32, i32) {
    %c0_i32 = arith.constant 0 : i32
    %c0_i32_0 = arith.constant 0 : i32
    %c0_i32_1 = arith.constant 0 : i32
    return %c0_i32, %c0_i32_0 : i32, i32
  }
  func.func @transform_24(%arg0: i32) -> (i32, i32) {
    %c0_i32 = arith.constant 0 : i32
    %c0_i32_0 = arith.constant 0 : i32
    %c0_i32_1 = arith.constant 0 : i32
    return %c0_i32, %c0_i32_0 : i32, i32
  }
  func.func @transform_25(%arg0: i32) -> (i32, i32, i32) {
    %c0_i32 = arith.constant 0 : i32
    %c0_i32_0 = arith.constant 0 : i32
    %c0_i32_1 = arith.constant 0 : i32
    return %arg0, %c0_i32, %c0_i32_0 : i32, i32, i32
  }
}

module attributes {stable_mosaic.version = 11 : i64} {
  func.func @_norm_linear_kernel(%arg0: i32, %arg1: i32, %arg2: memref<16x32xf32, #tpu.memory_space<vmem>>, %arg3: memref<1x32xf32, #tpu.memory_space<vmem>>, %arg4: memref<1x32xf32, #tpu.memory_space<vmem>>, %arg5: memref<32x60xbf16, #tpu.memory_space<vmem>>, %arg6: memref<1x60xf32, #tpu.memory_space<vmem>>, %arg7: memref<16x60xf32, #tpu.memory_space<vmem>>) attributes {dimension_semantics = [#tpu.dimension_semantics<parallel>, #tpu.dimension_semantics<parallel>], iteration_bounds = array<i64: 1, 1>, scalar_prefetch = 0 : i64, scratch_operands = 0 : i64, tpu.core_type = #tpu.core_type<tc>, window_params = [{transform_indices = @transform_0, window_bounds = array<i64: 16, 32>}, {pipeline_mode = #tpu.pipeline_mode<synchronous>, transform_indices = @transform_1, window_bounds = array<i64: 1, 32>}, {pipeline_mode = #tpu.pipeline_mode<synchronous>, transform_indices = @transform_2, window_bounds = array<i64: 1, 32>}, {transform_indices = @transform_3, window_bounds = array<i64: 32, 60>}, {transform_indices = @transform_4, window_bounds = array<i64: 1, 60>}, {transform_indices = @transform_5, window_bounds = array<i64: 16, 60>}]} {
    %c0 = arith.constant 0 : index
    %c0_0 = arith.constant 0 : index
    %0 = vector.load %arg2[%c0, %c0_0] : memref<16x32xf32, #tpu.memory_space<vmem>>, vector<16x32xf32>
    %c0_1 = arith.constant 0 : index
    %c0_2 = arith.constant 0 : index
    %1 = vector.load %arg3[%c0_1, %c0_2] : memref<1x32xf32, #tpu.memory_space<vmem>>, vector<1x32xf32>
    %c0_3 = arith.constant 0 : index
    %c0_4 = arith.constant 0 : index
    %2 = vector.load %arg4[%c0_3, %c0_4] : memref<1x32xf32, #tpu.memory_space<vmem>>, vector<1x32xf32>
    %cst = arith.constant dense<0.000000e+00> : vector<16xf32>
    %3 = vector.multi_reduction <add>, %0, %cst [1] : vector<16x32xf32> to vector<16xf32>
    %4 = vector.shape_cast %3 : vector<16xf32> to vector<16x1xf32>
    %cst_5 = arith.constant 3.200000e+01 : f32
    %5 = vector.broadcast %cst_5 : f32 to vector<16x1xf32>
    %6 = arith.divf %4, %5 : vector<16x1xf32>
    %7 = vector.broadcast %6 : vector<16x1xf32> to vector<16x32xf32>
    %8 = arith.subf %0, %7 : vector<16x32xf32>
    %9 = arith.mulf %8, %8 : vector<16x32xf32>
    %cst_6 = arith.constant dense<0.000000e+00> : vector<16xf32>
    %10 = vector.multi_reduction <add>, %9, %cst_6 [1] : vector<16x32xf32> to vector<16xf32>
    %11 = vector.shape_cast %10 : vector<16xf32> to vector<16x1xf32>
    %cst_7 = arith.constant 3.200000e+01 : f32
    %12 = vector.broadcast %cst_7 : f32 to vector<16x1xf32>
    %13 = arith.divf %11, %12 : vector<16x1xf32>
    %cst_8 = arith.constant 9.99999974E-6 : f32
    %14 = vector.broadcast %cst_8 : f32 to vector<16x1xf32>
    %15 = arith.addf %13, %14 : vector<16x1xf32>
    %16 = math.rsqrt %15 : vector<16x1xf32>
    %17 = vector.broadcast %16 : vector<16x1xf32> to vector<16x32xf32>
    %18 = arith.mulf %8, %17 : vector<16x32xf32>
    %19 = vector.broadcast %1 : vector<1x32xf32> to vector<16x32xf32>
    %20 = arith.mulf %18, %19 : vector<16x32xf32>
    %21 = vector.broadcast %2 : vector<1x32xf32> to vector<16x32xf32>
    %22 = arith.addf %20, %21 : vector<16x32xf32>
    %c0_9 = arith.constant 0 : index
    %c0_10 = arith.constant 0 : index
    %23 = vector.load %arg5[%c0_9, %c0_10] : memref<32x60xbf16, #tpu.memory_space<vmem>>, vector<32x60xbf16>
    %24 = arith.truncf %22 : vector<16x32xf32> to vector<16x32xbf16>
    %cst_11 = arith.constant dense<0.000000e+00> : vector<16x60xf32>
    %25 = tpu.matmul %24, %23, %cst_11 {dimension_numbers = #tpu.dot_dimension_numbers<[1], [0], [0], [1], [0, 0, 1, 1], [], []>} : vector<16x32xbf16>, vector<32x60xbf16>, vector<16x60xf32> -> vector<16x60xf32>
    %c0_12 = arith.constant 0 : index
    %c0_13 = arith.constant 0 : index
    %26 = vector.load %arg6[%c0_12, %c0_13] : memref<1x60xf32, #tpu.memory_space<vmem>>, vector<1x60xf32>
    %27 = vector.broadcast %26 : vector<1x60xf32> to vector<16x60xf32>
    %28 = arith.addf %25, %27 : vector<16x60xf32>
    %c0_14 = arith.constant 0 : index
    %c0_15 = arith.constant 0 : index
    %29 = vector.load %arg7[%c0_14, %c0_15] : memref<16x60xf32, #tpu.memory_space<vmem>>, vector<16x60xf32>
    tpu.vector_store %arg7[%c0_14, %c0_15], %28 {strides = array<i32>} : memref<16x60xf32, #tpu.memory_space<vmem>>, vector<16x60xf32>,
    return
  }
  func.func @transform_0(%arg0: i32, %arg1: i32) -> (i32, i32) {
    %c0_i32 = arith.constant 0 : i32
    %c0_i32_0 = arith.constant 0 : i32
    return %arg0, %c0_i32 : i32, i32
  }
  func.func @transform_1(%arg0: i32, %arg1: i32) -> (i32, i32) {
    %c0_i32 = arith.constant 0 : i32
    %c0_i32_0 = arith.constant 0 : i32
    %c0_i32_1 = arith.constant 0 : i32
    return %c0_i32, %c0_i32_0 : i32, i32
  }
  func.func @transform_2(%arg0: i32, %arg1: i32) -> (i32, i32) {
    %c0_i32 = arith.constant 0 : i32
    %c0_i32_0 = arith.constant 0 : i32
    %c0_i32_1 = arith.constant 0 : i32
    return %c0_i32, %c0_i32_0 : i32, i32
  }
  func.func @transform_3(%arg0: i32, %arg1: i32) -> (i32, i32) {
    %c0_i32 = arith.constant 0 : i32
    %c0_i32_0 = arith.constant 0 : i32
    return %c0_i32, %arg1 : i32, i32
  }
  func.func @transform_4(%arg0: i32, %arg1: i32) -> (i32, i32) {
    %c0_i32 = arith.constant 0 : i32
    %c0_i32_0 = arith.constant 0 : i32
    return %c0_i32, %arg1 : i32, i32
  }
  func.func @transform_5(%arg0: i32, %arg1: i32) -> (i32, i32) {
    %c0_i32 = arith.constant 0 : i32
    return %arg0, %arg1 : i32, i32
  }
}

</mosaic_0001>

<bundles_post_ra>
// kernel: tpu_custom_call.1
= control target key start
LH: loop header
LB: loop body
LE: loop exit
PB: predicated region body
PF: predicated region fallthrough
CT: control target
= control target key end

     0   :  { %7 = vsyncpa [#allocation3], 0  ;;  %s649_s0 = inlined_call_operand.hbm [shape: f32[16,128], index: 0, kind: input, shape index: {}]   ;;  %s650_s1 = inlined_call_operand.hbm [shape: f32[8,128], index: 1, kind: input, shape index: {}]   ;;  %s651_s2 = inlined_call_operand.hbm [shape: f32[16,128], index: 2, kind: output, shape index: {}]  }
   0x1   :  { %9 = vsyncpa [#allocation3 + $0x1], 0 }
   0x2   :  { %10 = vsyncpa [#allocation6], 0 }
   0x3   :  { %11 = vsyncpa [#allocation4], 0 }
   0x4   :  { %13 = vsyncpa [#allocation4 + $0x1], 0  ;;  %s483_s9 = smov 0   ;;  %s485_s10 = smov 0  }
   0x5   :  { %s487_s11 = smov 0   ;;  %s489_s12 = smov 0  }
   0x6 LB: > { %s504_s13 = sadd.s32 4294967295, %s463_s12   ;;  %s270_s14 = sadd.s32 4294967294, %s463_s12   ;;  %s463_s12 = sphi %s489_s12, %s674_s12   ;;  %s459_s11 = sphi %s487_s11, %s673_s11   ;;  %s455_s10 = sphi %s485_s10, %s672_s10   ;;  %s451_s9 = sphi %s483_s9, %s671_s9  }
   0x7   : > { %p39_p0 = scmp.ne.s32.totalorder %s455_s10, %s451_s9  ;;  %p652_p1 = scmp.eq.s32.totalorder %s504_s13, 0 }
   0x8   : > { %p90_p3 = scmp.eq.s32.totalorder %s270_s14, 1  ;;  %p271_p5 = scmp.ge.s32.totalorder %s463_s12, 1 }
   0x9   : > { %p513_p4 = por %p652_p1, %p39_p0  ;;  %p97_p7 = scmp.lt.s32.totalorder %s463_s12, 3 }
   0xa   : > { %p518_p6 = por %p90_p3, %p39_p0  ;;  %s465_s18 = smov [#allocation5]  }
   0xb   : > { %s656_s15 = scalar_select %p513_p4, 1, 0 }
   0xc   : > { %s657_s16 = scalar_select %p518_p6, 1, 0 }
   0xd   : > { %p523_p8 = pnand %p271_p5, %p97_p7  ;;  %s110_s19 = sshll.u32 %s465_s18, 4  ;;  %s111_s19 = int_to_ptr.vmem [resolvable:$true] %s110_s19 }
   0xe   : > { %s531_s20 = sadd.s32 1, %s463_s12   ;;  %s26_s24 = sadd.s32 1, %s459_s11 }
   0xf   : > { %s658_s17 = scalar_select %p523_p8, 1, 0 }
  0x10   : > { %p292_p10 = pneg %p523_p8  ;;  %s23_s22 = ssub.s32 %s463_s12, %s531_s20 }
  0x11   : > { %p541_p12 = scmp.eq.s32.totalorder %s23_s22, 0  ;;  %p33_p13 = scmp.ne.s32.totalorder %s459_s11, %s455_s10 }
  0x12   : > { %p535_p11 = pnand %p292_p10, %p652_p1  ;;  %s352_s25 = scalar_lea.vmem %s111_s19, 128 }
  0x13   : > { %p353_p3 = scmp.ne.s32.totalorder %s111_s19, %s352_s25  ;;  %p360_p9 = scmp.lt.s32.totalorder %s111_s19, %s111_s19 }
  0x14   : > { %p343_p0 = pneg %p535_p11  ;;  %p361_p2 = scmp.lt.s32.totalorder %s352_s25, %s352_s25 }
  0x16   : > { %p355_p5 = pnand %p353_p3, %p343_p0  ;;  %p362_p10 = por %p361_p2, %p360_p9 }
  0x18   : > { %p356_p7 = pneg %p355_p5 }
  0x1a   : > { %p363_p1 = pnand %p362_p10, %p356_p7 }
  0x1c   : > { %366 = shalt.err (!%p363_p1)
}
  0x1d   : > { %295 = dma.hbm_to_vmem [thread:$0]  (!%p535_p11), %s650_s1, 128, %s111_s19, [#allocation6]  }
  0x1e   : > { %s558_s28 = scalar_select %p541_p12, %s459_s11, %s26_s24  }
  0x1f   : > { %p34_p1 = scmp.eq.s32.totalorder %s463_s12, 0  ;;  %p661_p2 = scmp.eq.s32.totalorder %s504_s13, 1 }
  0x20   : > { %p305_p0 = scmp.lt.s32.totalorder %s463_s12, 2  ;;  %s121_s30 = sand.u32 1, %s459_s11  }
  0x21   : > { %p566_p9 = por %p661_p2, %p33_p13  ;;  %p35_p3 = por %p34_p1, %p33_p13 }
  0x22   : > { %s274_s3 = sshll.u32 %s121_s30, 3  ;;  %s275_s4 = sshll.u32 %s463_s12, 7 }
  0x23   : > { %s662_s29 = scalar_select %p566_p9, 1, 0 }
  0x24   : > { %s579_s7 = scalar_lea.hbm %s649_s0, %s275_s4  ;;  %s125_s8 = scalar_lea.vmem [#allocation2], %s274_s3 }
  0x25   : > { %s132_s14 = sshll.u32 %s125_s8, 4  ;;  %p581_p11 = pnand %p305_p0, %p35_p3  ;;  %s133_s14 = int_to_ptr.vmem [resolvable:$true] %s132_s14 }
  0x26   : > { %s122_s19 = scalar_lea.sflag [#allocation3], %s121_s30  ;;  %s367_s21 = scalar_lea.hbm %s579_s7, 128 }
  0x27   : > { %p368_p12 = scmp.ne.s32.totalorder %s579_s7, %s367_s21  ;;  %p369_p13 = pneg %p581_p11 }
  0x28   : > { %s372_s24 = scalar_lea.hbm %s649_s0, 256  ;;  %p373_p10 = scmp.lt.s32.totalorder %s579_s7, %s649_s0 }
  0x29   : > { %p370_p5 = pnand %p369_p13, %p368_p12  ;;  %p374_p1 = scmp.lt.s32.totalorder %s372_s24, %s367_s21 }
  0x2b   : > { %p371_p7 = pneg %p370_p5  ;;  %p375_p2 = por %p374_p1, %p373_p10 }
  0x2d   : > { %p376_p0 = pnand %p375_p2, %p371_p7 }
  0x2f   : > { %379 = shalt.err (!%p376_p0)
}
  0x30   : > { %s380_s27 = scalar_lea.vmem %s133_s14, 128  ;;  %s466_s30 = smov [#allocation2]  }
  0x31   : > { %p381_p3 = scmp.ne.s32.totalorder %s133_s14, %s380_s27  ;;  %s385_s3 = sshll.u32 %s466_s30, 4  ;;  %s386_s3 = int_to_ptr.vmem [resolvable:$false] %s385_s3 }
  0x32   : > { %s387_s4 = scalar_lea.vmem %s386_s3, 256  ;;  %p388_p12 = scmp.lt.s32.totalorder %s133_s14, %s386_s3 }
  0x33   : > { %p383_p6 = pnand %p381_p3, %p369_p13  ;;  %p389_p5 = scmp.lt.s32.totalorder %s387_s4, %s380_s27 }
  0x35   : > { %p384_p9 = pneg %p383_p6  ;;  %p390_p4 = por %p389_p5, %p388_p12 }
  0x37   : > { %p391_p8 = pnand %p390_p4, %p384_p9 }
  0x39   : > { %394 = shalt.err (!%p391_p8)
}
  0x3a   : > { %299 = dma.hbm_to_vmem [thread:$0]  (!%p581_p11), %s579_s7, 128, %s133_s14, %s122_s19  }
  0x3b   : > { %p664_p7 = scmp.ne.s32.totalorder %s658_s17, 0 }
  0x3c   : > { %s602_s5 = sand.u32 (!%p664_p7), 1, %s455_s10   ;;  %p665_p6 = scmp.ne.s32.totalorder (!%p664_p7), %s656_s15, 0 }
  0x3d   : > { %141 = sbr.rel (%p664_p7) target bundleno = 95 (0x5f), region = 28  ;;  %s277_s6 = sshll.u32 (!%p664_p7), %s602_s5, 3 }
  0x3e   : > { %s144_s8 = scalar_lea.sflag (!%p664_p7), [#allocation3], %s602_s5  ;;  %s147_s21 = scalar_lea.vmem (!%p664_p7), [#allocation2], %s277_s6 }
  0x42   : > { %438 = dma.done.wait (%p665_p6), %s144_s8, 128  }
  0x43   : > { %440 = vsyncadd (%p665_p6), %s144_s8, 4294967168  ;;  %p666_p4 = scmp.eq.s32.totalorder %s504_s13, 0 }
  0x45   : > { %442 = dma.done.wait (%p666_p4), [#allocation6], 128   ;;  %p667_p8 = pmov %p666_p4 }
  0x46   : > { %s171_s17 = scalar_lea.vmem [#allocation7], %s277_s6  ;;  %s281_s14 = sshll.u32 %s504_s13, 7  ;;  %v172_v0 = vld [vmem:[%s147_s21] sm:$0xff]  ;;  %v173_v1 = vld [vmem:[#allocation5] sm:$0xff] }
  0x47   : > { %444 = vsyncadd (%p667_p8), [#allocation6], 4294967168  ;;  %s190_s7 = sshll.u32 %s171_s17, 4  ;;  %v174_v2 = vadd.f32 %v173_v1, %v172_v0  ;;  %s188_s15 = scalar_lea.hbm %s651_s2, %s281_s14  ;;  %s191_s7 = int_to_ptr.vmem [resolvable:$true] %s190_s7 }
  0x48   : > { %s177_s22 = scalar_lea.sflag [#allocation4], %s602_s5  ;;  %s395_s23 = scalar_lea.vmem %s191_s7, 128 }
  0x49   : > { %175 = vst [vmem:[%s171_s17] sm:$0xff] %v174_v2  ;;  %p396_p9 = scmp.ne.s32.totalorder %s191_s7, %s395_s23  ;;  %p668_p11 = scmp.ne.s32.totalorder %s662_s29, 0 }
  0x4a   : > { %s467_s24 = smov [#allocation7]  }
  0x4b   : > { %p397_p13 = pnand %p396_p9, %p668_p11  ;;  %s399_s25 = sshll.u32 %s467_s24, 4  ;;  %s400_s25 = int_to_ptr.vmem [resolvable:$false] %s399_s25 }
  0x4c   : > { %s401_s26 = scalar_lea.vmem %s400_s25, 256  ;;  %p402_p1 = scmp.lt.s32.totalorder %s191_s7, %s400_s25 }
  0x4d   : > { %p398_p10 = pneg %p397_p13  ;;  %p403_p2 = scmp.lt.s32.totalorder %s401_s26, %s395_s23 }
  0x4f   : > { %p404_p0 = por %p403_p2, %p402_p1 }
  0x51   : > { %p405_p3 = pnand %p404_p0, %p398_p10 }
  0x53   : > { %408 = shalt.err (!%p405_p3)
}
  0x54   : > { %s409_s13 = scalar_lea.hbm %s188_s15, 128  ;;  %s413_s3 = scalar_lea.hbm %s651_s2, 256 }
  0x55   : > { %p410_p12 = scmp.ne.s32.totalorder %s188_s15, %s409_s13  ;;  %p414_p6 = scmp.lt.s32.totalorder %s188_s15, %s651_s2 }
  0x56   : > { %p415_p4 = scmp.lt.s32.totalorder %s413_s3, %s409_s13 }
  0x57   : > { %p411_p5 = pnand %p410_p12, %p668_p11 }
  0x58   : > { %p416_p8 = por %p415_p4, %p414_p6 }
  0x59   : > { %p412_p7 = pneg %p411_p5 }
  0x5b   : > { %p417_p9 = pnand %p416_p8, %p412_p7 }
  0x5d   : > { %420 = shalt.err (!%p417_p9)
}
  0x5e   : > { %290 = dma.vmem_to_hbm [thread:$0]  (%p668_p11), %s191_s7, 128, %s188_s15, %s177_s22  }
  0x5f PF: > { %s202_s6 = sand.u32 1, %s451_s9   ;;  %p669_p13 = scmp.ne.s32.totalorder %s657_s16, 0 }
  0x60   : > { %p670_p10 = scmp.ge.s32.totalorder %s463_s12, 2  ;;  %s203_s8 = scalar_lea.sflag [#allocation4], %s202_s6 }
  0x62   : > { %p301_p1 = pnand %p670_p10, %p669_p13 }
  0x64   : > { %p302_p2 = pneg %p301_p1 }
  0x66   : > { %446 = dma.done.wait (%p302_p2), %s203_s8, 128  }
  0x67   : > { %448 = vsyncadd (%p302_p2), %s203_s8, 4294967168  ;;  %p16_p0 = scmp.ge.s32.totalorder %s531_s20, 4   ;;  %s671_s9 = smov %s455_s10 }
  0x68   : > { %s672_s10 = smov %s459_s11  ;;  %s673_s11 = smov %s558_s28 }
  0x69   : > { %s674_s12 = smov %s531_s20  ;;  %18 = sbr.rel (!%p16_p0) target bundleno = 6 (0x6), region = 77 }
  0x6e   :  { %208 = vsyncpa [#allocation3], 1 }
  0x6f   :  { %210 = vsyncpa [#allocation3 + $0x1], 1 }
  0x70   :  { %211 = vsyncpa [#allocation6], 1 }
  0x71   :  { %212 = vsyncpa [#allocation4], 1 }
  0x72   :  { %214 = vsyncpa [#allocation4 + $0x1], 1 }

// kernel: seq2seq_forward.8
= control target key start
LH: loop header
LB: loop body
LE: loop exit
PB: predicated region body
PF: predicated region fallthrough
CT: control target
= control target key end

     0   :  { %vm18_vm0 = vcmask 261120   ;;  %s118_s0 = inlined_call_operand.vmem [shape: f32[16,32], index: 0, kind: input, shape index: {}]   ;;  %s119_s1 = inlined_call_operand.vmem [shape: f32[1,32], index: 1, kind: input, shape index: {}]   ;;  %s120_s2 = inlined_call_operand.vmem [shape: f32[1,32], index: 2, kind: input, shape index: {}]   ;;  %s121_s3 = inlined_call_operand.vmem [shape: f32[16,32], index: 3, kind: output, shape index: {}]  }
   0x1   :  { %v14_v0 = vld [vmem:[%s118_s0] sm:$0xff]  ;;  %v15_v1 = vld [vmem:[%s118_s0 + $0x8] sm:$0xff] }
   0x2   :  { %v19_v2 = vsel %vm18_vm0, %v14_v0, 0.0  ;;  %v22_v3 = vsel %vm18_vm0, %v15_v1, 0.0  ;;  %v68_v21 = vld [vmem:[%s119_s1] ss:$0 sm:$0xff] }
   0x3   :  { %20 = vadd.xlane.f32.xlu0 %v19_v2  ;;  %v69_v23 = vld [vmem:[%s120_s2] ss:$0 sm:$0xff] }
   0x7   :  { %23 = vadd.xlane.f32.xlu0 %v22_v3 }
  0x8c   :  { %v21_v4 = vpop.xlane.xlu0 %20 }
  0x8d   :  { %v26_v5 = vmul.f32 0.03125, %v21_v4 }
  0x8f   :  { %v28_v6 = vsub.f32 %v14_v0, %v26_v5 }
  0x90   :  { %v24_v7 = vpop.xlane.xlu0 %23 }
  0x91   :  { %v27_v8 = vmul.f32 0.03125, %v24_v7  ;;  %v30_v9 = vmul.f32 %v28_v6, %v28_v6 }
  0x93   :  { %v29_v10 = vsub.f32 %v15_v1, %v27_v8  ;;  %v32_v11 = vsel %vm18_vm0, %v30_v9, 0.0 }
  0x94   :  { %33 = vadd.xlane.f32.xlu1 %v32_v11 }
  0x95   :  { %v31_v12 = vmul.f32 %v29_v10, %v29_v10 }
  0x97   :  { %v35_v13 = vsel %vm18_vm0, %v31_v12, 0.0 }
  0x98   :  { %36 = vadd.xlane.f32.xlu1 %v35_v13 }
 0x11d   :  { %v34_v14 = vpop.xlane.xlu1 %33 }
 0x11e   :  { %v38_v15 = vmul.f32 0.03125, %v34_v14 }
 0x120   :  { %v40_v16 = vadd.f32 1e-05, %v38_v15 }
 0x121   :  { %v37_v17 = vpop.xlane.xlu1 %36 }
 0x122   :  { %70 = vrsqrt.f32 %v40_v16  ;;  %v39_v18 = vmul.f32 0.03125, %v37_v17 }
 0x124   :  { %v41_v19 = vadd.f32 1e-05, %v39_v18 }
 0x126   :  { %72 = vrsqrt.f32 %v41_v19 }
 0x12f   :  { %v71_v20 = vpop.eup %70 }
 0x130   :  { %v44_v22 = vmul.f32 %v71_v20, %v28_v6 }
 0x132   :  { %v52_v24 = vmul.f32 %v68_v21, %v44_v22 }
 0x133   :  { %v73_v25 = vpop.eup %72 }
 0x134   :  { %v60_v26 = vadd.f32 %v69_v23, %v52_v24  ;;  %v45_v27 = vmul.f32 %v73_v25, %v29_v10 }
 0x136   :  { %62 = vst.msk [vmem:[%s121_s3] sm:$0xff] %vm18_vm0, %v60_v26  ;;  %v53_v28 = vmul.f32 %v68_v21, %v45_v27 }
 0x138   :  { %v61_v29 = vadd.f32 %v69_v23, %v53_v28 }
 0x13a   :  { %63 = vst.msk [vmem:[%s121_s3 + $0x8] sm:$0xff] %vm18_vm0, %v61_v29 }

// kernel: seq2seq_forward.11
= control target key start
LH: loop header
LB: loop body
LE: loop exit
PB: predicated region body
PF: predicated region fallthrough
CT: control target
= control target key end

     0   :  { %vm26_vm0 = vcmask 261120   ;;  %s271_s0 = inlined_call_operand.vmem [shape: f32[16,32], index: 0, kind: input, shape index: {}]   ;;  %s272_s1 = inlined_call_operand.vmem [shape: f32[1,32], index: 1, kind: input, shape index: {}]   ;;  %s273_s2 = inlined_call_operand.vmem [shape: f32[1,32], index: 2, kind: input, shape index: {}]   ;;  %s274_s3 = inlined_call_operand.vmem [shape: bf16[32,60], index: 3, kind: input, shape index: {}]   ;;  %s275_s4 = inlined_call_operand.vmem [shape: f32[1,60], index: 4, kind: input, shape index: {}]   ;;  %s276_s5 = inlined_call_operand.hbm [shape: f32[16,60], index: 5, kind: output, shape index: {}]  }
   0x1   :  { %v22_v0 = vld [vmem:[%s271_s0] sm:$0xff]  ;;  %v23_v1 = vld [vmem:[%s271_s0 + $0x8] sm:$0xff] }
   0x2   :  { %v27_v2 = vsel %vm26_vm0, %v22_v0, 0.0 }
   0x3   :  { %28 = vadd.xlane.f32.xlu0 %v27_v2 }
   0x4   :  { %10 = vsyncpa [#allocation3], 0  ;;  %v30_v3 = vsel %vm26_vm0, %v23_v1, 0.0  ;;  %v179_v14 = vld [vmem:[%s274_s3 + $0x8] sm:$0xff]   ;;  %v207_v15 = vmov 0.0   ;;  %vm208_vm1 = vmmov 0  }
   0x5   :  { %166 = vmatprep.subr.bf16.mxu0 %v207_v15  ;;  %170 = vmatprep.mubr.msk.bf16.mxu0 %vm208_vm1, %v207_v15  ;;  %v180_v16 = vld [vmem:[%s274_s3] sm:$0xff]   ;;  %vm138_vm2 = vcmask 490496  }
   0x6   :  { %167 = vmatpush3.bf16.msra.mxu0 %v179_v14  ;;  %v157_v25 = vld [vmem:[%s272_s1] ss:$0 sm:$0xff]  ;;  %s209_s1 = smov [#allocation2]  }
   0x7   :  { %31 = vadd.xlane.f32.xlu0 %v30_v3  ;;  %168 = vmatprep.subr.bf16.mxu0 %v207_v15  ;;  %v158_v29 = vld [vmem:[%s273_s2] ss:$0 sm:$0xff]  ;;  %s146_s30 = sshll.u32 %s209_s1, 4  ;;  %s147_s30 = int_to_ptr.vmem [resolvable:$true] %s146_s30 }
   0x8   :  { %v159_v34 = vld [vmem:[%s275_s4] ss:$0 sm:$0xff]  ;;  %s185_s2 = scalar_lea.vmem %s147_s30, 256  ;;  %p190_p1 = scmp.lt.s32.totalorder %s147_s30, %s147_s30 }
   0x9   :  { %p186_p0 = scmp.ne.s32.totalorder %s147_s30, %s185_s2  ;;  %p191_p2 = scmp.lt.s32.totalorder %s185_s2, %s185_s2 }
   0xa   :  { %169 = vmatpush3.bf16.msra.mxu0 %v180_v16 }
   0xb   :  { %p192_p3 = por %p191_p2, %p190_p1 }
   0xd   :  { %p193_p4 = pnand %p192_p3, %p186_p0 }
  0x8c   :  { %v29_v4 = vpop.xlane.xlu0 %28 }
  0x8d   :  { %v34_v5 = vmul.f32 0.03125, %v29_v4 }
  0x8f   :  { %v36_v6 = vsub.f32 %v22_v0, %v34_v5 }
  0x90   :  { %v32_v7 = vpop.xlane.xlu0 %31 }
  0x91   :  { %v35_v8 = vmul.f32 0.03125, %v32_v7  ;;  %v38_v9 = vmul.f32 %v36_v6, %v36_v6 }
  0x93   :  { %v37_v10 = vsub.f32 %v23_v1, %v35_v8  ;;  %v40_v11 = vsel %vm26_vm0, %v38_v9, 0.0 }
  0x94   :  { %41 = vadd.xlane.f32.xlu1 %v40_v11 }
  0x95   :  { %v39_v12 = vmul.f32 %v37_v10, %v37_v10 }
  0x97   :  { %v43_v13 = vsel %vm26_vm0, %v39_v12, 0.0 }
  0x98   :  { %44 = vadd.xlane.f32.xlu1 %v43_v13 }
 0x11d   :  { %v42_v17 = vpop.xlane.xlu1 %41 }
 0x11e   :  { %v46_v18 = vmul.f32 0.03125, %v42_v17 }
 0x120   :  { %v48_v19 = vadd.f32 1e-05, %v46_v18 }
 0x121   :  { %v45_v20 = vpop.xlane.xlu1 %44 }
 0x122   :  { %181 = vrsqrt.f32 %v48_v19  ;;  %v47_v21 = vmul.f32 0.03125, %v45_v20 }
 0x124   :  { %v49_v22 = vadd.f32 1e-05, %v47_v21 }
 0x126   :  { %183 = vrsqrt.f32 %v49_v22 }
 0x12f   :  { %v182_v23 = vpop.eup %181 }
 0x130   :  { %v52_v24 = vmul.f32 %v182_v23, %v36_v6 }
 0x132   :  { %v60_v28 = vmul.f32 %v157_v25, %v52_v24 }
 0x133   :  { %v184_v26 = vpop.eup %183 }
 0x134   :  { %v53_v27 = vmul.f32 %v184_v26, %v37_v10  ;;  %v68_v31 = vadd.f32 %v158_v29, %v60_v28 }
 0x136   :  { %v61_v30 = vmul.f32 %v157_v25, %v53_v27 }
 0x138   :  { %v69_v32 = vadd.f32 %v158_v29, %v61_v30 }
 0x13a   :  { %v74_v33 = vpack.c.bf16 %v69_v32, %v68_v31 }
 0x13c   :  { %171 = vmatmul.mubr.msk.bf16.vlgmr.msra.gmra.mxu0 %vm26_vm0, %v74_v33 }
 0x1fc   :  { %v131_v35 = vpop.f32.mrf.mxu0 }
 0x1fd   :  { %v132_v36 = vadd.f32 %v159_v34, %v131_v35 }
 0x1fe   :  { %v172_v37 = vpop.f32.mrf.mxu0 }
 0x1ff   :  { %139 = vst.msk [vmem:[#allocation2] sm:$0xff] %vm138_vm2, %v132_v36 }
 0x200   :  { %v134_v38 = vpop.f32.mrf.mxu0 }
 0x201   :  { %v135_v39 = vadd.f32 %v159_v34, %v134_v38 }
 0x202   :  { %v173_v40 = vpop.f32.mrf.mxu0 }
 0x203   :  { %140 = vst.msk [vmem:[#allocation2 + $0x8] sm:$0xff] %vm138_vm2, %v135_v39 }
 0x204   :  { %196 = shalt.err (!%p193_p4)
}
 0x205   :  { %s210_s4 = smov 128   ;;  %s211_s6 = smov 8  }
 0x206   :  { %152 = dma.vmem_to_hbm [thread:$0]  %s147_s30, 256, %s276_s5, [#allocation3], %s210_s4, %s210_s4, %s211_s6  }
 0x207   :  { %205 = dma.done.wait [#allocation3], 256  }
 0x208   :  { %206 = vsyncadd [#allocation3], 4294967040 }
 0x209   :  { %156 = vsyncpa [#allocation3], 1 }

// kernel: seq2seq_forward.6
= control target key start
LH: loop header
LB: loop body
LE: loop exit
PB: predicated region body
PF: predicated region fallthrough
CT: control target
= control target key end

     0   :  { %s2303_s18 = smov 0   ;;  %s2584_s0 = inlined_call_operand.vmem [shape: f32[2,8,32], index: 0, kind: input, shape index: {}]   ;;  %s2585_s1 = inlined_call_operand.vmem [shape: f32[8,8], index: 1, kind: input, shape index: {}]   ;;  %s2586_s2 = inlined_call_operand.vmem [shape: f32[2,1,8], index: 2, kind: input, shape index: {}]   ;;  %s2587_s3 = inlined_call_operand.vmem [shape: f32[1,32], index: 3, kind: input, shape index: {}]   ;;  %s2588_s4 = inlined_call_operand.vmem [shape: f32[1,32], index: 4, kind: input, shape index: {}]   ;;  %s2589_s5 = inlined_call_operand.vmem [shape: bf16[32,96], index: 5, kind: input, shape index: {}]   ;;  %s2590_s6 = inlined_call_operand.vmem [shape: f32[1,96], index: 6, kind: input, shape index: {}]   ;;  %s2591_s7 = inlined_call_operand.vmem [shape: bf16[32,32], index: 7, kind: input, shape index: {}]   ;;  %s2592_s8 = inlined_call_operand.vmem [shape: f32[1,32], index: 8, kind: input, shape index: {}]   ;;  %s2593_s9 = inlined_call_operand.vmem [shape: f32[1,32], index: 9, kind: input, shape index: {}]   ;;  %s2594_s10 = inlined_call_operand.vmem [shape: f32[1,32], index: 10, kind: input, shape index: {}]   ;;  %s2595_s11 = inlined_call_operand.vmem [shape: bf16[32,64], index: 11, kind: input, shape index: {}]   ;;  %s2596_s12 = inlined_call_operand.vmem [shape: f32[1,64], index: 12, kind: input, shape index: {}]   ;;  %s2597_s13 = inlined_call_operand.vmem [shape: bf16[64,32], index: 13, kind: input, shape index: {}]   ;;  %s2598_s14 = inlined_call_operand.vmem [shape: f32[1,32], index: 14, kind: input, shape index: {}]   ;;  %s2599_s15 = inlined_call_operand.vmem [shape: f32[2,8,32], index: 15, kind: output, shape index: {}]  }
   0x1 LB: > { %s1985_s19 = sadd.s32 4294967295, %s2208_s18   ;;  %p1989_p0 = scmp.ge.s32.totalorder %s2208_s18, 1  ;;  %s2208_s18 = sphi %s2303_s18, %s25_s18  }
   0x2   : > { %p444_p1 = scmp.lt.s32.totalorder %s2208_s18, 3 }
   0x4   : > { %p445_p2 = pnand %p1989_p0, %p444_p1 }
   0x5   : > { %p493_p3 = scmp.lt.s32.totalorder (!%p445_p2), %s1985_s19, 1  ;;  %s2212_s22 = smov (!%p445_p2), 104  }
   0x6   : > { %448 = sbr.rel (%p445_p2) target bundleno = 2640 (0xa50), region = 80  ;;  %s2214_s24 = smov (!%p445_p2), 112  }
   0x7   : > { %s2215_s25 = smov (!%p445_p2), 96   ;;  %s2218_s16 = smov (!%p445_p2), 64  }
   0x8   : > { %s2221_s26 = smov (!%p445_p2), 24  }
   0xb   : > { %s2601_s19 = smov (!%p493_p3, %s1985_s19), 1  ;;  %vm517_vm0 = vcmask 261120   ;;  %v2168_v7 = vld [vmem:[%s2589_s5 + $0x8] sm:$0xff]   ;;  %v2210_v8 = vmov 0.0   ;;  %vm2211_vm1 = vmmov 0   ;;  %v2169_v9 = vld [vmem:[%s2589_s5] sm:$0xff]   ;;  %v633_v31 = vlaneseq }
   0xc   : > { %s1990_s20 = sshll.u32 %s2601_s19, 3  ;;  %2063 = vmatprep.subr.bf16.mxu0 %v2210_v8  ;;  %2067 = vmatprep.mubr.msk.bf16.mxu0 %vm2211_vm1, %v2210_v8  ;;  %v1993_v14 = vld [vmem:[%s2587_s3] ss:$0 sm:$0xff]  ;;  %v2216_v29 = vmov 1983009808   ;;  %vm1072_vm2 = vcmask 64512   ;;  %s499_s28 = scalar_lea.vmem %s2586_s2, %s2601_s19 }
   0xd   : > { %s496_s23 = scalar_lea.vmem %s2584_s0, %s1990_s20  ;;  %2064 = vmatpush3.bf16.msra.mxu0 %v2168_v7  ;;  %2071 = vmatprep.subr.bf16.mxu1 %v2210_v8  ;;  %v1994_v16 = vld [vmem:[%s2588_s4] ss:$0 sm:$0xff]  ;;  %v631_v30 = vunpack.c.l.s4 %v2216_v29  ;;  %v634_v33 = vshrl.u32 %v633_v31, 7  ;;  %v2217_v35 = vmov 1934713408   ;;  %vm1316_vm3 = vcmask 1043456   ;;  %s503_s27 = scalar_lea.vmem %s2599_s15, %s1990_s20 }
   0xe   : > { %v2319_v0 = vld [vmem:[%s496_s23] sm:$0xff]  ;;  %2065 = vmatprep.subr.bf16.mxu0 %v2210_v8  ;;  %2073 = vmatprep.mubr.msk.bf16.mxu1 %vm2211_vm1, %v2210_v8  ;;  %s2213_s23 = smov 120   ;;  %v663_v36 = vunpack.c.l.s4 %v2217_v35  ;;  %vm1647_vm4 = vcmask 130048   ;;  %vm1649_vm5 = vcmask 195584   ;;  %vm1877_vm7 = vcmask 523264  }
   0xf   : > { %v518_v1 = vsel %vm517_vm0, %v2319_v0, 0.0  ;;  %v1995_v20 = vld [vmem:[%s2590_s6] ss:$0 sm:$0xff]  ;;  %v632_v32 = vunpack.c.0.s8 %v631_v30 }
  0x10   : > { %519 = vadd.xlane.f32.xlu0 %v518_v1  ;;  %v664_v43 = vunpack.c.0.s8 %v663_v36 }
  0x11   : > { %2066 = vmatpush3.bf16.msra.mxu0 %v2169_v9  ;;  %v2370_v39 = vsub.s32 %v632_v32, %v634_v33 }
  0x12   : > { %2077 = vmatprep.subr.bf16.mxu0 %v2210_v8  ;;  %v2380_v49 = vsub.s32 %v664_v43, %v634_v33 }
  0x99   : > { %v520_v2 = vpop.xlane.xlu0 %519 }
  0x9a   : > { %v522_v3 = vmul.f32 0.03125, %v520_v2 }
  0x9c   : > { %v523_v4 = vsub.f32 %v2319_v0, %v522_v3 }
  0x9e   : > { %v524_v5 = vmul.f32 %v523_v4, %v523_v4 }
  0xa0   : > { %v525_v6 = vsel %vm517_vm0, %v524_v5, 0.0 }
  0xa1   : > { %526 = vadd.xlane.f32.xlu0 %v525_v6 }
 0x12a   : > { %v527_v10 = vpop.xlane.xlu0 %526 }
 0x12b   : > { %v528_v11 = vmul.f32 0.03125, %v527_v10 }
 0x12d   : > { %v529_v12 = vadd.f32 1e-05, %v528_v11 }
 0x12f   : > { %2178 = vrsqrt.f32 %v529_v12 }
 0x13c   : > { %v2179_v13 = vpop.eup %2178 }
 0x13d   : > { %v531_v15 = vmul.f32 %v2179_v13, %v523_v4 }
 0x13f   : > { %v538_v17 = vmul.f32 %v1993_v14, %v531_v15 }
 0x141   : > { %v545_v18 = vadd.f32 %v1994_v16, %v538_v17 }
 0x143   : > { %v556_v19 = vpack.c.bf16 %v545_v18, %v545_v18 }
 0x145   : > { %2068 = vmatmul.mubr.msk.bf16.vlgmr.msra.gmra.mxu0 %vm517_vm0, %v556_v19 }
 0x146   : > { %2079 = vmatprep.mubr.msk.bf16.mxu0 %vm2211_vm1, %v2210_v8 }
 0x205   : > { %v612_v21 = vpop.f32.mrf.mxu0 }
 0x206   : > { %v2351_v22 = vadd.f32 %v1995_v20, %v612_v21 }
 0x207   : > { %v2069_v23 = vpop.f32.mrf.mxu0 }
 0x208   : > { %625 = vrot.lane.b32.xlu0 %v2351_v22, %s2212_s22  ;;  %619 = vrot.lane.b32.xlu1 %v2351_v22, %s2213_s23 }
 0x209   : > { %v615_v24 = vpop.f32.mrf.mxu0 }
 0x20b   : > { %v2070_v25 = vpop.f32.mrf.mxu0 }
 0x20c   : > { %622 = vrot.lane.b32.xlu1 %v2351_v22, %s2214_s24  ;;  %s2219_s24 = smov 16  }
 0x210   : > { %768 = vrot.lane.b32.xlu1 %v2351_v22, %s2215_s25 }
 0x27a   : > { %v2357_v26 = vpop.permute.xlu1 %619  ;;  %v2363_v28 = vpop.permute.xlu0 %625 }
 0x27b   : > { %770 = vrot.lane.b32.xlu1 %v2357_v26, %s2215_s25  ;;  %v644_v40 = vcombine.low %v2357_v26, %v2363_v28  ;;  %v645_v41 = vcombine.high %v2357_v26, %v2363_v28 }
 0x27d   : > { %v652_v46 = vrot.slane %v644_v40, %v2370_v39  ;;  %v659_v47 = vrot.slane %v645_v41, %v2370_v39 }
 0x27e   : > { %v2360_v27 = vpop.permute.xlu1 %622 }
 0x27f   : > { %772 = vrot.lane.b32.xlu1 %v2360_v27, %s2215_s25  ;;  %v628_v37 = vcombine.low %v2351_v22, %v2360_v27  ;;  %v629_v38 = vcombine.high %v2351_v22, %v2360_v27 }
 0x281   : > { %v636_v44 = vrot.slane %v628_v37, %v2370_v39  ;;  %v643_v45 = vrot.slane %v629_v38, %v2370_v39 }
 0x282   : > { %v769_v34 = vpop.permute.xlu1 %768 }
 0x283   : > { %774 = vrot.lane.b32.xlu1 %v2363_v28, %s2215_s25  ;;  %v660_v50 = vcombine.low %v636_v44, %v652_v46  ;;  %v661_v51 = vcombine.high %v636_v44, %v652_v46  ;;  %v676_v52 = vcombine.low %v643_v45, %v659_v47  ;;  %v677_v53 = vcombine.high %v643_v45, %v659_v47  ;;  %s2220_s25 = smov 8  }
 0x285   : > { %v668_v59 = vrot.slane %v660_v50, %v2380_v49  ;;  %v675_v60 = vrot.slane %v661_v51, %v2380_v49  ;;  %v684_v61 = vrot.slane %v676_v52, %v2380_v49  ;;  %v691_v62 = vrot.slane %v677_v53, %v2380_v49 }
 0x287   : > { %v696_v9 = vcombine.low %v668_v59, %v675_v60  ;;  %v1999_v10 = vcombine.high %v668_v59, %v675_v60  ;;  %v712_v11 = vcombine.low %v684_v61, %v691_v62  ;;  %v2000_v12 = vcombine.high %v684_v61, %v691_v62 }
 0x289   : > { %v703_v21 = vrot.slane %v696_v9, %v2370_v39  ;;  %v711_v23 = vrot.slane %v1999_v10, %v2370_v39  ;;  %v719_v24 = vrot.slane %v712_v11, %v2370_v39  ;;  %v727_v25 = vrot.slane %v2000_v12, %v2370_v39  ;;  %v506_v9 = vld [vmem:[%s2585_s1] sm:$0xff] }
 0x28a   : > { %v1992_v10 = vld [vmem:[%s499_s28] ss:$0 sm:$0xff] }
 0x28b   : > { %v728_v40 = vcombine.low %v703_v21, %v711_v23  ;;  %v744_v41 = vcombine.low %v719_v24, %v727_v25  ;;  %v514_v11 = vadd.f32 %v1992_v10, %v506_v9 }
 0x28d   : > { %v752_v50 = vrot.slane %v744_v41, %v2380_v49 }
 0x2ed   : > { %v771_v42 = vpop.permute.xlu1 %770 }
 0x2f1   : > { %v773_v48 = vpop.permute.xlu1 %772 }
 0x2f2   : > { %v780_v54 = vcombine.low %v769_v34, %v773_v48  ;;  %v781_v55 = vcombine.high %v769_v34, %v773_v48  ;;  %v736_v48 = vrot.slane %v728_v40, %v2380_v49 }
 0x2f4   : > { %v788_v63 = vrot.slane %v780_v54, %v2370_v39  ;;  %v795_v1 = vrot.slane %v781_v55, %v2370_v39  ;;  %v729_v55 = vcombine.high %v703_v21, %v711_v23 }
 0x2f5   : > { %v775_v56 = vpop.permute.xlu1 %774 }
 0x2f6   : > { %v796_v57 = vcombine.low %v771_v42, %v775_v56  ;;  %v797_v58 = vcombine.high %v771_v42, %v775_v56  ;;  %v745_v56 = vcombine.high %v719_v24, %v727_v25 }
 0x2f8   : > { %v804_v2 = vrot.slane %v796_v57, %v2370_v39  ;;  %v811_v3 = vrot.slane %v797_v58, %v2370_v39  ;;  %v760_v57 = vcombine.low %v736_v48, %v752_v50  ;;  %v761_v58 = vcombine.high %v736_v48, %v752_v50 }
 0x2fa   : > { %v812_v4 = vcombine.low %v788_v63, %v804_v2  ;;  %v813_v5 = vcombine.high %v788_v63, %v804_v2  ;;  %v828_v6 = vcombine.low %v795_v1, %v811_v3  ;;  %v829_v7 = vcombine.high %v795_v1, %v811_v3 }
 0x2fb   : > { %v764_v61 = vpack.c.bf16 %v760_v57, %v760_v57  ;;  %v765_v62 = vpack.c.bf16 %v761_v58, %v761_v58  ;;  %v743_v63 = vrot.slane %v729_v55, %v2380_v49  ;;  %v759_v1 = vrot.slane %v745_v56, %v2380_v49 }
 0x2fc   : > { %v820_v13 = vrot.slane %v812_v4, %v2380_v49  ;;  %v827_v14 = vrot.slane %v813_v5, %v2380_v49  ;;  %v836_v15 = vrot.slane %v828_v6, %v2380_v49  ;;  %v843_v16 = vrot.slane %v829_v7, %v2380_v49 }
 0x2fd   : > { %v762_v4 = vcombine.low %v743_v63, %v759_v1  ;;  %v763_v5 = vcombine.high %v743_v63, %v759_v1 }
 0x2fe   : > { %v848_v17 = vcombine.low %v820_v13, %v827_v14  ;;  %v2001_v18 = vcombine.high %v820_v13, %v827_v14  ;;  %v864_v19 = vcombine.low %v836_v15, %v843_v16  ;;  %v2002_v20 = vcombine.high %v836_v15, %v843_v16 }
 0x2ff   : > { %v766_v6 = vpack.c.bf16 %v762_v4, %v762_v4  ;;  %v767_v7 = vpack.c.bf16 %v763_v5, %v763_v5 }
 0x300   : > { %v855_v29 = vrot.slane %v848_v17, %v2370_v39  ;;  %v863_v30 = vrot.slane %v2001_v18, %v2370_v39  ;;  %v871_v31 = vrot.slane %v864_v19, %v2370_v39  ;;  %v879_v32 = vrot.slane %v2002_v20, %v2370_v39 }
 0x302   : > { %v880_v33 = vcombine.low %v855_v29, %v863_v30  ;;  %v896_v34 = vcombine.low %v871_v31, %v879_v32  ;;  %v881_v35 = vcombine.high %v855_v29, %v863_v30  ;;  %v897_v36 = vcombine.high %v871_v31, %v879_v32 }
 0x304   : > { %v888_v37 = vrot.slane %v880_v33, %v2380_v49  ;;  %v904_v38 = vrot.slane %v896_v34, %v2380_v49  ;;  %v895_v44 = vrot.slane %v881_v35, %v2380_v49  ;;  %v911_v45 = vrot.slane %v897_v36, %v2380_v49 }
 0x306   : > { %v912_v42 = vcombine.low %v888_v37, %v904_v38  ;;  %v913_v43 = vcombine.high %v888_v37, %v904_v38  ;;  %v914_v53 = vcombine.low %v895_v44, %v911_v45  ;;  %v915_v54 = vcombine.high %v895_v44, %v911_v45 }
 0x308   : > { %v916_v46 = vpack.c.bf16 %v912_v42, %v912_v42  ;;  %v917_v47 = vpack.c.bf16 %v913_v43, %v913_v43  ;;  %v918_v59 = vpack.c.bf16 %v914_v53, %v914_v53  ;;  %v919_v60 = vpack.c.bf16 %v915_v54, %v915_v54 }
 0x30a   : > { %v1077_v51 = vsel %vm1072_vm2, %v916_v46, 0  ;;  %v1123_v52 = vsel %vm1072_vm2, %v917_v47, 0  ;;  %v1169_v2 = vsel %vm1072_vm2, %v918_v59, 0  ;;  %v1215_v3 = vsel %vm1072_vm2, %v919_v60, 0 }
 0x30b   : > { %2072 = vmatpush3.bf16.xpose.msra.mxu1 %v1077_v51  ;;  %2078 = vmatpush3.bf16.xpose.msra.mxu0 %v1123_v52 }
 0x30c   : > { %2083 = vmatprep.subr.bf16.mxu1 %v2210_v8  ;;  %2089 = vmatprep.subr.bf16.mxu0 %v2210_v8 }
 0x312   : > { %2074 = vmatmul.mubr.msk.bf16.vlgmr.msra.gmra.mxu1 %vm1072_vm2, %v764_v61  ;;  %2080 = vmatmul.mubr.msk.bf16.vlgmr.msra.gmra.mxu0 %vm1072_vm2, %v765_v62 }
 0x313   : > { %2084 = vmatpush3.bf16.xpose.msra.mxu1 %v1169_v2  ;;  %2090 = vmatpush3.bf16.xpose.msra.mxu0 %v1215_v3 }
 0x314   : > { %2085 = vmatprep.mubr.msk.bf16.mxu1 %vm2211_vm1, %v2210_v8  ;;  %2091 = vmatprep.mubr.msk.bf16.mxu0 %vm2211_vm1, %v2210_v8 }
 0x315   : > { %2095 = vmatprep.subr.bf16.mxu1 %v2210_v8  ;;  %2101 = vmatprep.subr.bf16.mxu0 %v2210_v8 }
 0x31a   : > { %2086 = vmatmul.mubr.msk.bf16.vlgmr.msra.gmra.mxu1 %vm1072_vm2, %v766_v6  ;;  %2092 = vmatmul.mubr.msk.bf16.vlgmr.msra.gmra.mxu0 %vm1072_vm2, %v767_v7 }
 0x31b   : > { %2097 = vmatprep.mubr.msk.bf16.mxu1 %vm2211_vm1, %v2210_v8  ;;  %2103 = vmatprep.mubr.msk.bf16.mxu0 %vm2211_vm1, %v2210_v8 }
 0x3d2   : > { %v1113_v12 = vpop.f32.mrf.mxu1  ;;  %v1159_v13 = vpop.f32.mrf.mxu0 }
 0x3d3   : > { %v1257_v14 = vmul.f32 0.35355338, %v1113_v12  ;;  %v1258_v15 = vmul.f32 0.35355338, %v1159_v13 }
 0x3d4   : > { %v2075_v16 = vpop.f32.mrf.mxu1  ;;  %v2081_v17 = vpop.f32.mrf.mxu0 }
 0x3d5   : > { %v1261_v18 = vadd.f32 %v1257_v14, %v514_v11  ;;  %v1262_v19 = vadd.f32 %v1258_v15, %v514_v11 }
 0x3d6   : > { %v1116_v20 = vpop.f32.mrf.mxu1  ;;  %v1162_v21 = vpop.f32.mrf.mxu0 }
 0x3d7   : > { %v1265_v23 = vsel %vm1072_vm2, %v1261_v18, -inf  ;;  %v1268_v24 = vsel %vm1072_vm2, %v1262_v19, -inf }
 0x3d8   : > { %1266 = vmax.xlane.f32.xlu1 %v1265_v23  ;;  %v2076_v25 = vpop.f32.mrf.mxu1  ;;  %1269 = vmax.xlane.f32.xlu0 %v1268_v24  ;;  %v2082_v29 = vpop.f32.mrf.mxu0 }
 0x3da   : > { %v1205_v30 = vpop.f32.mrf.mxu1  ;;  %v1251_v31 = vpop.f32.mrf.mxu0 }
 0x3db   : > { %v1259_v32 = vmul.f32 0.35355338, %v1205_v30  ;;  %v1260_v33 = vmul.f32 0.35355338, %v1251_v31 }
 0x3dc   : > { %v2087_v34 = vpop.f32.mrf.mxu1  ;;  %v2093_v35 = vpop.f32.mrf.mxu0 }
 0x3dd   : > { %v1263_v36 = vadd.f32 %v1259_v32, %v514_v11  ;;  %v1264_v37 = vadd.f32 %v1260_v33, %v514_v11 }
 0x3de   : > { %v1208_v38 = vpop.f32.mrf.mxu1  ;;  %v1254_v40 = vpop.f32.mrf.mxu0 }
 0x3df   : > { %v1271_v41 = vsel %vm1072_vm2, %v1263_v36, -inf  ;;  %v1274_v42 = vsel %vm1072_vm2, %v1264_v37, -inf }
 0x3e0   : > { %1272 = vmax.xlane.f32.xlu1 %v1271_v41  ;;  %v2088_v43 = vpop.f32.mrf.mxu1  ;;  %1275 = vmax.xlane.f32.xlu0 %v1274_v42  ;;  %v2094_v44 = vpop.f32.mrf.mxu0 }
 0x3f1   : > { %920 = vrot.lane.b32.xlu1 %v2351_v22, %s2218_s16 }
 0x461   : > { %v1267_v45 = vpop.xlane.xlu1 %1266  ;;  %v1270_v46 = vpop.xlane.xlu0 %1269 }
 0x462   : > { %v1277_v47 = vsub.f32 %v1261_v18, %v1267_v45  ;;  %v1278_v48 = vsub.f32 %v1262_v19, %v1270_v46 }
 0x464   : > { %v1281_v50 = vmul.f32 1.442695, %v1277_v47  ;;  %v1283_v51 = vmul.f32 1.442695, %v1278_v48 }
 0x466   : > { %2180 = vpow2.f32 %v1281_v50 }
 0x467   : > { %2182 = vpow2.f32 %v1283_v51 }
 0x469   : > { %v1273_v22 = vpop.xlane.xlu1 %1272  ;;  %v1276_v57 = vpop.xlane.xlu0 %1275 }
 0x46a   : > { %v1279_v56 = vsub.f32 %v1263_v36, %v1273_v22  ;;  %v1280_v58 = vsub.f32 %v1264_v37, %v1276_v57 }
 0x46c   : > { %v1285_v59 = vmul.f32 1.442695, %v1279_v56  ;;  %v1287_v60 = vmul.f32 1.442695, %v1280_v58 }
 0x46e   : > { %2184 = vpow2.f32 %v1285_v59 }
 0x46f   : > { %2186 = vpow2.f32 %v1287_v60 }
 0x473   : > { %v2442_v52 = vpop.eup %2180 }
 0x474   : > { %v2444_v53 = vpop.eup %2182  ;;  %v1289_v54 = vsel %vm1072_vm2, %v2442_v52, 0.0 }
 0x475   : > { %1290 = vadd.xlane.f32.xlu1 %v1289_v54  ;;  %v1292_v55 = vsel %vm1072_vm2, %v2444_v53, 0.0 }
 0x476   : > { %1293 = vadd.xlane.f32.xlu0 %v1292_v55 }
 0x47b   : > { %v2453_v61 = vpop.eup %2184 }
 0x47c   : > { %v2455_v62 = vpop.eup %2186  ;;  %v1295_v63 = vsel %vm1072_vm2, %v2453_v61, 0.0 }
 0x486   : > { %924 = vrot.lane.b32.xlu1 %v2360_v27, %s2218_s16  ;;  %v1298_v27 = vsel %vm1072_vm2, %v2455_v62, 0.0 }
 0x48a   : > { %926 = vrot.lane.b32.xlu1 %v2363_v28, %s2218_s16 }
 0x48c   : > { %922 = vrot.lane.b32.xlu0 %v2357_v26, %s2218_s16  ;;  %v921_v26 = vpop.permute.xlu1 %920 }
 0x4ab   : > { %1296 = vadd.xlane.f32.xlu0 %v1295_v63 }
 0x4ae   : > { %1299 = vadd.xlane.f32.xlu1 %v1298_v27 }
 0x4fe   : > { %v1291_v28 = vpop.xlane.xlu1 %1290 }
 0x4ff   : > { %v1294_v1 = vpop.xlane.xlu0 %1293  ;;  %2188 = vrcp.f32 %v1291_v28 }
 0x500   : > { %2190 = vrcp.f32 %v1294_v1 }
 0x502   : > { %v925_v2 = vpop.permute.xlu1 %924 }
 0x503   : > { %v932_v3 = vcombine.low %v921_v26, %v925_v2  ;;  %v933_v4 = vcombine.high %v921_v26, %v925_v2  ;;  %v923_v5 = vpop.permute.xlu0 %922 }
 0x505   : > { %v940_v10 = vrot.slane %v932_v3, %v2370_v39  ;;  %v947_v11 = vrot.slane %v933_v4, %v2370_v39 }
 0x506   : > { %v927_v6 = vpop.permute.xlu1 %926 }
 0x507   : > { %v948_v7 = vcombine.low %v923_v5, %v927_v6  ;;  %v949_v9 = vcombine.high %v923_v5, %v927_v6  ;;  %v2170_v5 = vld [vmem:[%s2591_s7 + $0x8] sm:$0xff]  }
 0x509   : > { %v956_v12 = vrot.slane %v948_v7, %v2370_v39  ;;  %v963_v13 = vrot.slane %v949_v9, %v2370_v39 }
 0x50b   : > { %v964_v14 = vcombine.low %v940_v10, %v956_v12  ;;  %v965_v15 = vcombine.high %v940_v10, %v956_v12  ;;  %v980_v16 = vcombine.low %v947_v11, %v963_v13  ;;  %v981_v17 = vcombine.high %v947_v11, %v963_v13 }
 0x50c   : > { %v2189_v38 = vpop.eup %2188 }
 0x50d   : > { %v972_v18 = vrot.slane %v964_v14, %v2380_v49  ;;  %v979_v19 = vrot.slane %v965_v15, %v2380_v49  ;;  %v988_v20 = vrot.slane %v980_v16, %v2380_v49  ;;  %v995_v21 = vrot.slane %v981_v17, %v2380_v49  ;;  %v2191_v40 = vpop.eup %2190 }
 0x50e   : > { %v1305_v54 = vmul.f32 %v2189_v38, %v2442_v52  ;;  %v1306_v55 = vmul.f32 %v2191_v40, %v2444_v53 }
 0x50f   : > { %v1000_v23 = vcombine.low %v972_v18, %v979_v19  ;;  %v2003_v24 = vcombine.high %v972_v18, %v979_v19  ;;  %v1016_v25 = vcombine.low %v988_v20, %v995_v21  ;;  %v2004_v29 = vcombine.high %v988_v20, %v995_v21 }
 0x510   : > { %v1309_v59 = vpack.c.bf16 %v1305_v54, %v1305_v54  ;;  %v1310_v60 = vpack.c.bf16 %v1306_v55, %v1306_v55 }
 0x511   : > { %v1007_v30 = vrot.slane %v1000_v23, %v2370_v39  ;;  %v1015_v31 = vrot.slane %v2003_v24, %v2370_v39  ;;  %v1023_v32 = vrot.slane %v1016_v25, %v2370_v39  ;;  %v1031_v33 = vrot.slane %v2004_v29, %v2370_v39 }
 0x513   : > { %v1032_v34 = vcombine.low %v1007_v30, %v1015_v31  ;;  %v1048_v35 = vcombine.low %v1023_v32, %v1031_v33  ;;  %v1033_v36 = vcombine.high %v1007_v30, %v1015_v31  ;;  %v1049_v37 = vcombine.high %v1023_v32, %v1031_v33 }
 0x515   : > { %v1040_v41 = vrot.slane %v1032_v34, %v2380_v49  ;;  %v1056_v42 = vrot.slane %v1048_v35, %v2380_v49  ;;  %v1047_v43 = vrot.slane %v1033_v36, %v2380_v49  ;;  %v1063_v44 = vrot.slane %v1049_v37, %v2380_v49  ;;  %v2171_v37 = vld [vmem:[%s2591_s7] sm:$0xff]  }
 0x517   : > { %v1064_v45 = vcombine.low %v1040_v41, %v1056_v42  ;;  %v1065_v46 = vcombine.high %v1040_v41, %v1056_v42  ;;  %v1066_v47 = vcombine.low %v1047_v43, %v1063_v44  ;;  %v1067_v48 = vcombine.high %v1047_v43, %v1063_v44 }
 0x519   : > { %v1068_v50 = vpack.c.bf16 %v1064_v45, %v1064_v45  ;;  %v1069_v51 = vpack.c.bf16 %v1065_v46, %v1065_v46  ;;  %v1070_v57 = vpack.c.bf16 %v1066_v47, %v1066_v47  ;;  %v1071_v58 = vpack.c.bf16 %v1067_v48, %v1067_v48 }
 0x51b   : > { %v1318_v22 = vsel %vm1316_vm3, %v1068_v50, 0  ;;  %v1364_v56 = vsel %vm1316_vm3, %v1069_v51, 0  ;;  %v1410_v52 = vsel %vm1316_vm3, %v1070_v57, 0  ;;  %v1456_v53 = vsel %vm1316_vm3, %v1071_v58, 0 }
 0x51c   : > { %2096 = vmatpush3.bf16.msra.mxu1 %v1318_v22  ;;  %2102 = vmatpush3.bf16.msra.mxu0 %v1364_v56 }
 0x51d   : > { %2107 = vmatprep.subr.bf16.mxu1 %v2210_v8  ;;  %2113 = vmatprep.subr.bf16.mxu0 %v2210_v8 }
 0x51f   : > { %2098 = vmatmul.mubr.msk.bf16.vlgmr.msra.gmra.mxu1 %vm1072_vm2, %v1309_v59  ;;  %2104 = vmatmul.mubr.msk.bf16.vlgmr.msra.gmra.mxu0 %vm1072_vm2, %v1310_v60 }
 0x520   : > { %2108 = vmatpush3.bf16.msra.mxu1 %v1410_v52  ;;  %2114 = vmatpush3.bf16.msra.mxu0 %v1456_v53 }
 0x521   : > { %2109 = vmatprep.mubr.msk.bf16.mxu1 %vm2211_vm1, %v2210_v8  ;;  %2115 = vmatprep.mubr.msk.bf16.mxu0 %vm2211_vm1, %v2210_v8 }
 0x522   : > { %2119 = vmatprep.subr.bf16.mxu1 %v2210_v8  ;;  %2127 = vmatprep.subr.bf16.mxu0 %v2210_v8 }
 0x534   : > { %v1297_v63 = vpop.xlane.xlu0 %1296 }
 0x535   : > { %2192 = vrcp.f32 %v1297_v63 }
 0x537   : > { %v1300_v27 = vpop.xlane.xlu1 %1299 }
 0x538   : > { %2194 = vrcp.f32 %v1300_v27 }
 0x542   : > { %v2193_v26 = vpop.eup %2192 }
 0x543   : > { %v1307_v28 = vmul.f32 %v2193_v26, %v2453_v61 }
 0x545   : > { %v2195_v1 = vpop.eup %2194  ;;  %v1311_v2 = vpack.c.bf16 %v1307_v28, %v1307_v28 }
 0x546   : > { %v1308_v3 = vmul.f32 %v2195_v1, %v2455_v62 }
 0x547   : > { %2110 = vmatmul.mubr.msk.bf16.vlgmr.msra.gmra.mxu1 %vm1072_vm2, %v1311_v2 }
 0x548   : > { %v1312_v4 = vpack.c.bf16 %v1308_v3, %v1308_v3  ;;  %2123 = vmatprep.mubr.msk.bf16.mxu1 %vm2211_vm1, %v2210_v8  ;;  %2120 = vmatpush3.bf16.msra.mxu1 %v2170_v5 }
 0x549   : > { %2121 = vmatprep.subr.bf16.mxu1 %v2210_v8 }
 0x54a   : > { %2116 = vmatmul.mubr.msk.bf16.vlgmr.msra.gmra.mxu0 %vm1072_vm2, %v1312_v4  ;;  %v2015_v4 = vld [vmem:[%s2592_s8] ss:$0 sm:$0xff] }
 0x54b   : > { %2131 = vmatprep.mubr.msk.bf16.mxu0 %vm2211_vm1, %v2210_v8 }
 0x54c   : > { %2122 = vmatpush3.bf16.msra.mxu1 %v2171_v37 }
 0x54d   : > { %2135 = vmatprep.subr.bf16.mxu1 %v2210_v8 }
 0x5df   : > { %v1354_v61 = vpop.f32.mrf.mxu1  ;;  %v1400_v62 = vpop.f32.mrf.mxu0 }
 0x5e1   : > { %v2099_v6 = vpop.f32.mrf.mxu1  ;;  %v2105_v7 = vpop.f32.mrf.mxu0 }
 0x5e3   : > { %v1357_v9 = vpop.f32.mrf.mxu1  ;;  %v1403_v10 = vpop.f32.mrf.mxu0 }
 0x5e5   : > { %v2100_v11 = vpop.f32.mrf.mxu1  ;;  %v2106_v12 = vpop.f32.mrf.mxu0 }
 0x607   : > { %v1446_v13 = vpop.f32.mrf.mxu1 }
 0x608   : > { %v1498_v14 = vcombine.low %v1354_v61, %v1446_v13  ;;  %v1499_v15 = vcombine.high %v1354_v61, %v1446_v13 }
 0x609   : > { %v2111_v16 = vpop.f32.mrf.mxu1 }
 0x60a   : > { %v1492_v17 = vpop.f32.mrf.mxu0  ;;  %v1506_v23 = vrot.slane %v1498_v14, %v2370_v39  ;;  %v1513_v24 = vrot.slane %v1499_v15, %v2370_v39  ;;  %v2172_v16 = vld [vmem:[%s2595_s11 + $0x8] sm:$0xff]  }
 0x60b   : > { %v1449_v18 = vpop.f32.mrf.mxu1  ;;  %v1514_v19 = vcombine.low %v1400_v62, %v1492_v17  ;;  %v1515_v20 = vcombine.high %v1400_v62, %v1492_v17  ;;  %2128 = vmatpush3.bf16.msra.mxu0 %v2172_v16 }
 0x60c   : > { %v2117_v21 = vpop.f32.mrf.mxu0  ;;  %2129 = vmatprep.subr.bf16.mxu0 %v2210_v8 }
 0x60d   : > { %v1522_v25 = vrot.slane %v1514_v19, %v2370_v39  ;;  %v1529_v29 = vrot.slane %v1515_v20, %v2370_v39  ;;  %v2112_v30 = vpop.f32.mrf.mxu1  ;;  %v2019_v21 = vld [vmem:[%s2593_s9] ss:$0 sm:$0xff] }
 0x60e   : > { %v1495_v31 = vpop.f32.mrf.mxu0 }
 0x60f   : > { %v1530_v32 = vcombine.low %v1506_v23, %v1522_v25  ;;  %v1531_v33 = vcombine.high %v1506_v23, %v1522_v25  ;;  %v1546_v34 = vcombine.low %v1513_v24, %v1529_v29  ;;  %v1547_v35 = vcombine.high %v1513_v24, %v1529_v29  ;;  %v2020_v24 = vld [vmem:[%s2594_s10] ss:$0 sm:$0xff]  ;;  %v2174_v31 = vld [vmem:[%s2597_s13 + $0x18] sm:$0xff]  }
 0x610   : > { %v2118_v36 = vpop.f32.mrf.mxu0 }
 0x611   : > { %v1538_v38 = vrot.slane %v1530_v32, %v2380_v49  ;;  %v1545_v40 = vrot.slane %v1531_v33, %v2380_v49  ;;  %v1554_v41 = vrot.slane %v1546_v34, %v2380_v49  ;;  %v1561_v42 = vrot.slane %v1547_v35, %v2380_v49  ;;  %v2175_v32 = vld [vmem:[%s2597_s13 + $0x10] sm:$0xff]   ;;  %v2176_v33 = vld [vmem:[%s2597_s13 + $0x8] sm:$0xff]   ;;  %v2177_v34 = vld [vmem:[%s2597_s13] sm:$0xff]  }
 0x612   : > { %v2021_v35 = vld [vmem:[%s2596_s12] ss:$0 sm:$0xff] }
 0x613   : > { %v1566_v43 = vcombine.low %v1538_v38, %v1545_v40  ;;  %v2013_v44 = vcombine.high %v1538_v38, %v1545_v40  ;;  %v1582_v45 = vcombine.low %v1554_v41, %v1561_v42  ;;  %v2014_v46 = vcombine.high %v1554_v41, %v1561_v42 }
 0x615   : > { %v1573_v47 = vrot.slane %v1566_v43, %v2370_v39  ;;  %v1581_v48 = vrot.slane %v2013_v44, %v2370_v39  ;;  %v1589_v50 = vrot.slane %v1582_v45, %v2370_v39  ;;  %v1597_v51 = vrot.slane %v2014_v46, %v2370_v39 }
 0x617   : > { %v1599_v54 = vcombine.high %v1573_v47, %v1581_v48  ;;  %v1615_v55 = vcombine.high %v1589_v50, %v1597_v51  ;;  %v1598_v22 = vcombine.low %v1573_v47, %v1581_v48  ;;  %v1614_v56 = vcombine.low %v1589_v50, %v1597_v51 }
 0x619   : > { %v1613_v57 = vrot.slane %v1599_v54, %v2380_v49  ;;  %v1629_v58 = vrot.slane %v1615_v55, %v2380_v49  ;;  %v1606_v59 = vrot.slane %v1598_v22, %v2380_v49  ;;  %v1622_v60 = vrot.slane %v1614_v56, %v2380_v49 }
 0x61b   : > { %v1632_v52 = vcombine.low %v1613_v57, %v1629_v58  ;;  %v1631_v53 = vcombine.high %v1606_v59, %v1622_v60  ;;  %v1630_v63 = vcombine.low %v1606_v59, %v1622_v60  ;;  %v1633_v39 = vcombine.high %v1613_v57, %v1629_v58 }
 0x61d   : > { %1639 = vrot.lane.b32.xlu1 %v1632_v52, %s2219_s24  ;;  %1635 = vrot.lane.b32.xlu0 %v1631_v53, %s2220_s25 }
 0x621   : > { %1643 = vrot.lane.b32.xlu0 %v1633_v39, %s2221_s26 }
 0x68f   : > { %v1636_v27 = vpop.permute.xlu0 %1635  ;;  %v1640_v26 = vpop.permute.xlu1 %1639 }
 0x690   : > { %v1646_v28 = vsel %vm1072_vm2, %v1630_v63, %v1636_v27  ;;  %v2222_v63 = vmov -1.0  }
 0x691   : > { %v1648_v2 = vsel %vm1647_vm4, %v1646_v28, %v1640_v26 }
 0x693   : > { %v1644_v1 = vpop.permute.xlu0 %1643 }
 0x694   : > { %v1650_v3 = vsel %vm1649_vm5, %v1648_v2, %v1644_v1 }
 0x695   : > { %v1651_v49 = vpack.c.bf16 %v1650_v3, %v1650_v3  ;;  %v2025_v3 = vld [vmem:[%s2598_s14] ss:$0 sm:$0xff] }
 0x697   : > { %2124 = vmatmul.mubr.msk.bf16.vlgmr.msra.gmra.mxu1 %vm517_vm0, %v1651_v49 }
 0x698   : > { %2143 = vmatprep.mubr.msk.bf16.mxu1 %vm2211_vm1, %v2210_v8  ;;  %2136 = vmatpush3.bf16.msra.mxu1 %v2174_v31 }
 0x699   : > { %2137 = vmatprep.subr.bf16.mxu1 %v2210_v8 }
 0x69c   : > { %2138 = vmatpush3.bf16.msra.mxu1 %v2175_v32 }
 0x69d   : > { %2139 = vmatprep.subr.bf16.mxu1 %v2210_v8 }
 0x6a0   : > { %2140 = vmatpush3.bf16.msra.mxu1 %v2176_v33 }
 0x6a1   : > { %2141 = vmatprep.subr.bf16.mxu1 %v2210_v8 }
 0x6a4   : > { %2142 = vmatpush3.bf16.msra.mxu1 %v2177_v34 }
 0x757   : > { %v1707_v5 = vpop.f32.mrf.mxu1 }
 0x758   : > { %v1708_v61 = vadd.f32 %v2015_v4, %v1707_v5 }
 0x759   : > { %v2125_v62 = vpop.f32.mrf.mxu1 }
 0x75a   : > { %v2533_v6 = vadd.f32 %v1708_v61, %v2319_v0  ;;  %v2173_v0 = vld [vmem:[%s2595_s11] sm:$0xff]  }
 0x75b   : > { %v1710_v7 = vpop.f32.mrf.mxu1  ;;  %2130 = vmatpush3.bf16.msra.mxu0 %v2173_v0 }
 0x75c   : > { %v1716_v9 = vsel %vm517_vm0, %v2533_v6, 0.0 }
 0x75d   : > { %1717 = vadd.xlane.f32.xlu1 %v1716_v9  ;;  %v2126_v10 = vpop.f32.mrf.mxu1 }
 0x7e6   : > { %v1718_v11 = vpop.xlane.xlu1 %1717 }
 0x7e7   : > { %v1719_v12 = vmul.f32 0.03125, %v1718_v11 }
 0x7e9   : > { %v1720_v13 = vsub.f32 %v2533_v6, %v1719_v12 }
 0x7eb   : > { %v1721_v14 = vmul.f32 %v1720_v13, %v1720_v13 }
 0x7ed   : > { %v1722_v15 = vsel %vm517_vm0, %v1721_v14, 0.0 }
 0x7ee   : > { %1723 = vadd.xlane.f32.xlu0 %v1722_v15 }
 0x877   : > { %v1724_v17 = vpop.xlane.xlu0 %1723 }
 0x878   : > { %v1725_v18 = vmul.f32 0.03125, %v1724_v17 }
 0x87a   : > { %v1726_v19 = vadd.f32 1e-05, %v1725_v18 }
 0x87c   : > { %2196 = vrsqrt.f32 %v1726_v19 }
 0x889   : > { %v2197_v20 = vpop.eup %2196 }
 0x88a   : > { %v1728_v23 = vmul.f32 %v2197_v20, %v1720_v13 }
 0x88c   : > { %v1735_v25 = vmul.f32 %v2019_v21, %v1728_v23 }
 0x88e   : > { %v1742_v29 = vadd.f32 %v2020_v24, %v1735_v25 }
 0x890   : > { %v1757_v30 = vpack.c.bf16 %v1742_v29, %v1742_v29 }
 0x892   : > { %2132 = vmatmul.mubr.msk.bf16.vlgmr.msra.gmra.mxu0 %vm517_vm0, %v1757_v30 }
 0x952   : > { %v1813_v36 = vpop.f32.mrf.mxu0 }
 0x953   : > { %v1814_v37 = vadd.f32 %v2021_v35, %v1813_v36 }
 0x954   : > { %v2133_v38 = vpop.f32.mrf.mxu0 }
 0x955   : > { %v1820_v40 = vmul.f32 0.70710677, %v1814_v37  ;;  %v1819_v26 = vmul.f32 0.5, %v1814_v37 }
 0x956   : > { %v1816_v41 = vpop.f32.mrf.mxu0 }
 0x957   : > { %v1823_v42 = vand.u32 2147483647, %v1820_v40  ;;  %vm1821_vm6 = vcmp.ge.f32.partialorder %v1820_v40, 0.0 }
 0x958   : > { %v2134_v43 = vpop.f32.mrf.mxu0  ;;  %v1822_v39 = vsel %vm1821_vm6, 1.0, %v2222_v63 }
 0x959   : > { %v1824_v44 = vmul.f32 0.3275911, %v1823_v42  ;;  %v1837_v8 = vsub.f32 0.0, %v1823_v42 }
 0x95b   : > { %v1825_v45 = vadd.f32 1.0, %v1824_v44  ;;  %v1838_v46 = vmul.f32 %v1837_v8, %v1823_v42 }
 0x95d   : > { %2198 = vrcp.f32 %v1825_v45  ;;  %v1839_v50 = vmul.f32 1.442695, %v1838_v46 }
 0x95f   : > { %2200 = vpow2.f32 %v1839_v50 }
 0x96a   : > { %v2199_v47 = vpop.eup %2198 }
 0x96b   : > { %v1828_v48 = vmul.f32 1.0614054, %v2199_v47 }
 0x96c   : > { %v2201_v60 = vpop.eup %2200 }
 0x96d   : > { %v1829_v51 = vadd.f32 -1.4531521, %v1828_v48 }
 0x96f   : > { %v1830_v54 = vmul.f32 %v2199_v47, %v1829_v51 }
 0x971   : > { %v1831_v55 = vadd.f32 1.4214138, %v1830_v54 }
 0x973   : > { %v1832_v22 = vmul.f32 %v2199_v47, %v1831_v55 }
 0x975   : > { %v1833_v56 = vadd.f32 -0.28449672, %v1832_v22 }
 0x977   : > { %v1834_v57 = vmul.f32 %v2199_v47, %v1833_v56 }
 0x979   : > { %v1835_v58 = vadd.f32 0.2548296, %v1834_v57 }
 0x97b   : > { %v1836_v59 = vmul.f32 %v2199_v47, %v1835_v58 }
 0x97d   : > { %v1841_v52 = vmul.f32 %v2201_v60, %v1836_v59 }
 0x97f   : > { %v1842_v53 = vsub.f32 1.0, %v1841_v52 }
 0x981   : > { %v1843_v27 = vmul.f32 %v1842_v53, %v1822_v39 }
 0x983   : > { %v1844_v28 = vadd.f32 1.0, %v1843_v27 }
 0x985   : > { %v1845_v1 = vmul.f32 %v1844_v28, %v1819_v26 }
 0x987   : > { %v1846_v2 = vpack.c.bf16 %v1845_v1, %v1845_v1 }
 0x989   : > { %2144 = vmatmul.mubr.msk.bf16.vlgmr.msra.gmra.mxu1 %vm1877_vm7, %v1846_v2 }
 0xa49   : > { %v1915_v49 = vpop.f32.mrf.mxu1 }
 0xa4a   : > { %v1916_v4 = vadd.f32 %v2025_v3, %v1915_v49 }
 0xa4b   : > { %v2145_v5 = vpop.f32.mrf.mxu1 }
 0xa4c   : > { %v1921_v61 = vadd.f32 %v1916_v4, %v2533_v6 }
 0xa4d   : > { %v1918_v62 = vpop.f32.mrf.mxu1 }
 0xa4e   : > { %1922 = vst.msk [vmem:[%s503_s27] sm:$0xff] %vm517_vm0, %v1921_v61 }
 0xa4f   : > { %v2146_v7 = vpop.f32.mrf.mxu1 }
 0xa50 PF: > { %s25_s18 = sadd.s32 1, %s2208_s18  }
 0xa51   : > { %p22_p4 = scmp.ge.s32.totalorder %s25_s18, 4  }
 0xa53   :  { %24 = sbr.rel (!%p22_p4) target bundleno = 1 (0x1), region = 113 }

// kernel: seq2seq_forward.9
= control target key start
LH: loop header
LB: loop body
LE: loop exit
PB: predicated region body
PF: predicated region fallthrough
CT: control target
= control target key end

     0   :  { %s4705_s0 = inlined_call_operand.vmem [shape: f32[2,8,32], index: 0, kind: input, shape index: {}]   ;;  %s4706_s1 = inlined_call_operand.vmem [shape: f32[2,8,32], index: 1, kind: input, shape index: {}]   ;;  %s4707_s2 = inlined_call_operand.vmem [shape: f32[8,8], index: 2, kind: input, shape index: {}]   ;;  %s4708_s3 = inlined_call_operand.vmem [shape: f32[2,1,8], index: 3, kind: input, shape index: {}]   ;;  %s4709_s4 = inlined_call_operand.vmem [shape: f32[2,1,8], index: 4, kind: input, shape index: {}]   ;;  %s4710_s5 = inlined_call_operand.vmem [shape: f32[1,32], index: 5, kind: input, shape index: {}]   ;;  %s4711_s6 = inlined_call_operand.vmem [shape: f32[1,32], index: 6, kind: input, shape index: {}]   ;;  %s4712_s7 = inlined_call_operand.vmem [shape: bf16[32,96], index: 7, kind: input, shape index: {}]   ;;  %s4713_s8 = inlined_call_operand.vmem [shape: f32[1,96], index: 8, kind: input, shape index: {}]   ;;  %s4714_s9 = inlined_call_operand.vmem [shape: bf16[32,32], index: 9, kind: input, shape index: {}]   ;;  %s4715_s10 = inlined_call_operand.vmem [shape: f32[1,32], index: 10, kind: input, shape index: {}]   ;;  %s4716_s11 = inlined_call_operand.vmem [shape: f32[1,32], index: 11, kind: input, shape index: {}]   ;;  %s4717_s12 = inlined_call_operand.vmem [shape: f32[1,32], index: 12, kind: input, shape index: {}]   ;;  %s4718_s13 = inlined_call_operand.vmem [shape: bf16[32,32], index: 13, kind: input, shape index: {}]   ;;  %s4719_s14 = inlined_call_operand.vmem [shape: f32[1,32], index: 14, kind: input, shape index: {}]   ;;  %s4720_s15 = inlined_call_operand.vmem [shape: bf16[32,64], index: 15, kind: input, shape index: {}]   ;;  %s4721_s16 = inlined_call_operand.vmem [shape: f32[1,64], index: 16, kind: input, shape index: {}]   ;;  %s4722_s17 = inlined_call_operand.vmem [shape: bf16[32,32], index: 17, kind: input, shape index: {}]   ;;  %s4723_s18 = inlined_call_operand.vmem [shape: f32[1,32], index: 18, kind: input, shape index: {}]   ;;  %s4724_s19 = inlined_call_operand.vmem [shape: f32[1,32], index: 19, kind: input, shape index: {}]   ;;  %s4725_s20 = inlined_call_operand.vmem [shape: f32[1,32], index: 20, kind: input, shape index: {}]   ;;  %s4726_s21 = inlined_call_operand.vmem [shape: bf16[32,64], index: 21, kind: input, shape index: {}]   ;;  %s4727_s22 = inlined_call_operand.vmem [shape: f32[1,64], index: 22, kind: input, shape index: {}]   ;;  %s4728_s23 = inlined_call_operand.vmem [shape: bf16[64,32], index: 23, kind: input, shape index: {}]   ;;  %s4729_s24 = inlined_call_operand.hbm [shape: f32[1,32], index: 24, kind: input, shape index: {}]   ;;  %s4730_s25 = inlined_call_operand.vmem [shape: f32[2,8,32], index: 25, kind: output, shape index: {}]  }
   0x1   :  { %4740 = sst [smem:[#allocation5_spill]] %s4705_s0 }
   0x2   :  { %4741 = sst [smem:[#allocation6_spill]] %s4706_s1 }
   0x3   :  { %4742 = sst [smem:[#allocation7_spill]] %s4707_s2 }
   0x4   :  { %4743 = sst [smem:[#allocation8_spill]] %s4708_s3 }
   0x5   :  { %4744 = sst [smem:[#allocation9_spill]] %s4709_s4 }
   0x6   :  { %4745 = sst [smem:[#allocation10_spill]] %s4710_s5 }
   0x7   :  { %4746 = sst [smem:[#allocation11_spill]] %s4711_s6 }
   0x8   :  { %4747 = sst [smem:[#allocation12_spill]] %s4712_s7 }
   0x9   :  { %4748 = sst [smem:[#allocation13_spill]] %s4713_s8 }
   0xa   :  { %4749 = sst [smem:[#allocation14_spill]] %s4714_s9 }
   0xb   :  { %30 = vsyncpa [#allocation3], 0  ;;  %s4163_s29 = smov 0  }
   0xc LB: > { %s3598_s2 = sadd.s32 4294967295, %s4017_s29   ;;  %p3600_p0 = scmp.ge.s32.totalorder %s4017_s29, 1  ;;  %s4017_s29 = sphi %s4163_s29, %s36_s29  }
   0xd   : > { %p612_p1 = scmp.lt.s32.totalorder %s4017_s29, 3  ;;  %p3899_p3 = scmp.eq.s32.totalorder %s3598_s2, 0 }
   0xe   : > { %s4019_s30 = smov [#allocation2]  }
   0xf   : > { %p4171_p2 = pnand %p3600_p0, %p612_p1  ;;  %s685_s7 = sshll.u32 %s4019_s30, 4  ;;  %s686_s7 = int_to_ptr.vmem [resolvable:$true] %s685_s7 }
  0x10   : > { %s3992_s3 = scalar_lea.vmem %s686_s7, 16  ;;  %s3999_s26 = scalar_lea.vmem %s686_s7, 32 }
  0x11   : > { %p3895_p4 = pneg %p4171_p2  ;;  %p3993_p7 = scmp.ne.s32.totalorder %s686_s7, %s3992_s3 }
  0x12   : > { %p4000_p10 = scmp.lt.s32.totalorder %s686_s7, %s686_s7  ;;  %p4001_p11 = scmp.lt.s32.totalorder %s3999_s26, %s3992_s3 }
  0x13   : > { %p3896_p5 = pnand %p3899_p3, %p3895_p4 }
  0x14   : > { %p4002_p12 = por %p4001_p11, %p4000_p10 }
  0x15   : > { %p3983_p6 = pneg %p3896_p5 }
  0x17   : > { %p3995_p8 = pnand %p3993_p7, %p3983_p6 }
  0x19   : > { %p3996_p9 = pneg %p3995_p8 }
  0x1b   : > { %p4003_p13 = pnand %p4002_p12, %p3996_p9 }
  0x1d   : > { %4006 = shalt.err (!%p4003_p13)
}
  0x1e   : > { %3898 = dma.hbm_to_vmem [thread:$0]  (!%p3896_p5), %s4729_s24, 16, %s686_s7, [#allocation3]  }
  0x1f   : > { %724 = sbr.rel (%p4171_p2) target bundleno = 4410 (0x113a), region = 120 }
  0x24   : > { %4012 = dma.done.wait (%p3899_p3), [#allocation3], 16  }
  0x25   : > { %4014 = vsyncadd (%p3899_p3), [#allocation3], 4294967280  ;;  %p800_p0 = scmp.lt.s32.totalorder %s3598_s2, 1  ;;  %s4751_s9 = sld [smem:[#allocation5_spill]]  ;;  %vm833_vm0 = vcmask 261120   ;;  %v4020_v8 = vmov 0.0   ;;  %v949_v31 = vlaneseq }
  0x26   : > { %s4752_s30 = sld [smem:[#allocation12_spill]]  ;;  %3735 = vmatprep.subr.bf16.mxu1 %v4020_v8  ;;  %vm4021_vm1 = vmmov 0   ;;  %3749 = vmatprep.subr.bf16.mxu0 %v4020_v8  ;;  %s4738_s7 = smov 104   ;;  %v4026_v29 = vmov 1983009808   ;;  %vm1388_vm2 = vcmask 64512  }
  0x27   : > { %s4767_s2 = smov (!%p800_p0, %s3598_s2), 1  ;;  %3739 = vmatprep.mubr.msk.bf16.mxu1 %vm4021_vm1, %v4020_v8  ;;  %3751 = vmatprep.mubr.msk.bf16.mxu0 %vm4021_vm1, %v4020_v8  ;;  %s4753_s8 = sld [smem:[#allocation10_spill]]  ;;  %v947_v30 = vunpack.c.l.s4 %v4026_v29  ;;  %v950_v33 = vshrl.u32 %v949_v31, 7  ;;  %v4027_v35 = vmov 1934713408   ;;  %vm1632_vm3 = vcmask 1043456  }
  0x28   : > { %s4188_s27 = sshll.u32 %s4767_s2, 3  ;;  %s4755_s6 = sld [smem:[#allocation13_spill]]  ;;  %v979_v36 = vunpack.c.l.s4 %v4027_v35  ;;  %vm1963_vm4 = vcmask 130048   ;;  %vm1965_vm5 = vcmask 195584   ;;  %vm3457_vm7 = vcmask 523264  }
  0x29   : > { %s4023_s3 = smov 120   ;;  %s4024_s26 = smov 112   ;;  %v948_v32 = vunpack.c.0.s8 %v947_v30 }
  0x2a   : > { %s4736_s1 = smov 96   ;;  %v980_v43 = vunpack.c.0.s8 %v979_v36  ;;  %s4756_s28 = sld [smem:[#allocation8_spill]] }
  0x2b   : > { %s803_s5 = scalar_lea.vmem %s4751_s9, %s4188_s27  ;;  %s4754_s9 = sld [smem:[#allocation11_spill]]  ;;  %v4252_v39 = vsub.s32 %v948_v32, %v950_v33 }
  0x2c   : > { %v4194_v0 = vld [vmem:[%s803_s5] sm:$0xff]  ;;  %v3923_v7 = vld [vmem:[%s4752_s30 + $0x8] sm:$0xff]   ;;  %v4262_v49 = vsub.s32 %v980_v43, %v950_v33  ;;  %s4733_s4 = smov 24   ;;  %s4761_s0 = sld [smem:[#allocation9_spill]] }
  0x2d   : > { %v834_v1 = vsel %vm833_vm0, %v4194_v0, 0.0  ;;  %3736 = vmatpush3.bf16.msra.mxu1 %v3923_v7  ;;  %v3924_v9 = vld [vmem:[%s4752_s30] sm:$0xff]  }
  0x2e   : > { %835 = vadd.xlane.f32.xlu0 %v834_v1  ;;  %3737 = vmatprep.subr.bf16.mxu1 %v4020_v8  ;;  %v3609_v14 = vld [vmem:[%s4753_s8] ss:$0 sm:$0xff]  ;;  %s4028_s8 = smov 64  }
  0x2f   : > { %v3611_v20 = vld [vmem:[%s4755_s6] ss:$0 sm:$0xff]  ;;  %s4757_s6 = sld [smem:[#allocation7_spill]] }
  0x31   : > { %3738 = vmatpush3.bf16.msra.mxu1 %v3924_v9  ;;  %v3610_v16 = vld [vmem:[%s4754_s9] ss:$0 sm:$0xff]  ;;  %s810_s9 = scalar_lea.vmem %s4756_s28, %s4767_s2  ;;  %s4760_s28 = smov 104  }
  0x32   : > { %3743 = vmatprep.subr.bf16.mxu1 %v4020_v8 }
  0xb7   : > { %v836_v2 = vpop.xlane.xlu0 %835 }
  0xb8   : > { %v838_v3 = vmul.f32 0.03125, %v836_v2 }
  0xba   : > { %v839_v4 = vsub.f32 %v4194_v0, %v838_v3 }
  0xbc   : > { %v840_v5 = vmul.f32 %v839_v4, %v839_v4 }
  0xbe   : > { %v841_v6 = vsel %vm833_vm0, %v840_v5, 0.0 }
  0xbf   : > { %842 = vadd.xlane.f32.xlu0 %v841_v6 }
 0x148   : > { %v843_v10 = vpop.xlane.xlu0 %842 }
 0x149   : > { %v844_v11 = vmul.f32 0.03125, %v843_v10 }
 0x14b   : > { %v845_v12 = vadd.f32 1e-05, %v844_v11 }
 0x14d   : > { %3939 = vrsqrt.f32 %v845_v12 }
 0x15a   : > { %v3940_v13 = vpop.eup %3939 }
 0x15b   : > { %v847_v15 = vmul.f32 %v3940_v13, %v839_v4 }
 0x15d   : > { %v854_v17 = vmul.f32 %v3609_v14, %v847_v15 }
 0x15f   : > { %v861_v18 = vadd.f32 %v3610_v16, %v854_v17 }
 0x161   : > { %v872_v19 = vpack.c.bf16 %v861_v18, %v861_v18 }
 0x163   : > { %3740 = vmatmul.mubr.msk.bf16.vlgmr.msra.gmra.mxu1 %vm833_vm0, %v872_v19 }
 0x164   : > { %3745 = vmatprep.mubr.msk.bf16.mxu1 %vm4021_vm1, %v4020_v8 }
 0x223   : > { %v928_v21 = vpop.f32.mrf.mxu1 }
 0x224   : > { %v4226_v22 = vadd.f32 %v3611_v20, %v928_v21 }
 0x225   : > { %v3741_v23 = vpop.f32.mrf.mxu1 }
 0x226   : > { %941 = vrot.lane.b32.xlu0 %v4226_v22, %s4738_s7  ;;  %935 = vrot.lane.b32.xlu1 %v4226_v22, %s4023_s3 }
 0x227   : > { %v931_v24 = vpop.f32.mrf.mxu1 }
 0x229   : > { %v3742_v25 = vpop.f32.mrf.mxu1 }
 0x22a   : > { %938 = vrot.lane.b32.xlu1 %v4226_v22, %s4024_s26 }
 0x22e   : > { %1084 = vrot.lane.b32.xlu1 %v4226_v22, %s4736_s1 }
 0x298   : > { %v4236_v26 = vpop.permute.xlu1 %935  ;;  %v4244_v28 = vpop.permute.xlu0 %941 }
 0x299   : > { %1086 = vrot.lane.b32.xlu1 %v4236_v26, %s4736_s1  ;;  %v960_v40 = vcombine.low %v4236_v26, %v4244_v28  ;;  %v961_v41 = vcombine.high %v4236_v26, %v4244_v28 }
 0x29b   : > { %v968_v46 = vrot.slane %v960_v40, %v4252_v39  ;;  %v975_v47 = vrot.slane %v961_v41, %v4252_v39 }
 0x29c   : > { %v4240_v27 = vpop.permute.xlu1 %938 }
 0x29d   : > { %1088 = vrot.lane.b32.xlu1 %v4240_v27, %s4736_s1  ;;  %v944_v37 = vcombine.low %v4226_v22, %v4240_v27  ;;  %v945_v38 = vcombine.high %v4226_v22, %v4240_v27 }
 0x29f   : > { %v952_v44 = vrot.slane %v944_v37, %v4252_v39  ;;  %v959_v45 = vrot.slane %v945_v38, %v4252_v39 }
 0x2a0   : > { %v1085_v34 = vpop.permute.xlu1 %1084 }
 0x2a1   : > { %1090 = vrot.lane.b32.xlu1 %v4244_v28, %s4736_s1  ;;  %v976_v50 = vcombine.low %v952_v44, %v968_v46  ;;  %v977_v51 = vcombine.high %v952_v44, %v968_v46  ;;  %v992_v52 = vcombine.low %v959_v45, %v975_v47  ;;  %v993_v53 = vcombine.high %v959_v45, %v975_v47 }
 0x2a3   : > { %v984_v59 = vrot.slane %v976_v50, %v4262_v49  ;;  %v991_v60 = vrot.slane %v977_v51, %v4262_v49  ;;  %v1000_v61 = vrot.slane %v992_v52, %v4262_v49  ;;  %v1007_v62 = vrot.slane %v993_v53, %v4262_v49 }
 0x2a5   : > { %v1012_v9 = vcombine.low %v984_v59, %v991_v60  ;;  %v3615_v10 = vcombine.high %v984_v59, %v991_v60  ;;  %v1028_v11 = vcombine.low %v1000_v61, %v1007_v62  ;;  %v3616_v12 = vcombine.high %v1000_v61, %v1007_v62 }
 0x2a7   : > { %v1019_v21 = vrot.slane %v1012_v9, %v4252_v39  ;;  %v1027_v23 = vrot.slane %v3615_v10, %v4252_v39  ;;  %v1035_v24 = vrot.slane %v1028_v11, %v4252_v39  ;;  %v1043_v25 = vrot.slane %v3616_v12, %v4252_v39  ;;  %v821_v9 = vld [vmem:[%s4757_s6] sm:$0xff]  ;;  %s4735_s6 = smov 16  }
 0x2a8   : > { %v3608_v10 = vld [vmem:[%s810_s9] ss:$0 sm:$0xff]  ;;  %s4758_s9 = sld [smem:[#allocation14_spill]] }
 0x2a9   : > { %v1044_v40 = vcombine.low %v1019_v21, %v1027_v23  ;;  %v1060_v41 = vcombine.low %v1035_v24, %v1043_v25  ;;  %v829_v11 = vadd.f32 %v3608_v10, %v821_v9 }
 0x2ab   : > { %v1068_v50 = vrot.slane %v1060_v41, %v4262_v49 }
 0x30b   : > { %v1087_v42 = vpop.permute.xlu1 %1086 }
 0x30f   : > { %v1089_v48 = vpop.permute.xlu1 %1088 }
 0x310   : > { %v1096_v54 = vcombine.low %v1085_v34, %v1089_v48  ;;  %v1097_v55 = vcombine.high %v1085_v34, %v1089_v48  ;;  %v1052_v48 = vrot.slane %v1044_v40, %v4262_v49 }
 0x312   : > { %v1104_v63 = vrot.slane %v1096_v54, %v4252_v39  ;;  %v1111_v1 = vrot.slane %v1097_v55, %v4252_v39  ;;  %v1045_v55 = vcombine.high %v1019_v21, %v1027_v23 }
 0x313   : > { %v1091_v56 = vpop.permute.xlu1 %1090 }
 0x314   : > { %v1112_v57 = vcombine.low %v1087_v42, %v1091_v56  ;;  %v1113_v58 = vcombine.high %v1087_v42, %v1091_v56  ;;  %v1076_v56 = vcombine.low %v1052_v48, %v1068_v50 }
 0x316   : > { %v1120_v2 = vrot.slane %v1112_v57, %v4252_v39  ;;  %v1127_v3 = vrot.slane %v1113_v58, %v4252_v39  ;;  %v1077_v57 = vcombine.high %v1052_v48, %v1068_v50  ;;  %v1061_v58 = vcombine.high %v1035_v24, %v1043_v25 }
 0x317   : > { %v1080_v61 = vpack.c.bf16 %v1076_v56, %v1076_v56 }
 0x318   : > { %v1128_v4 = vcombine.low %v1104_v63, %v1120_v2  ;;  %v1129_v5 = vcombine.high %v1104_v63, %v1120_v2  ;;  %v1144_v6 = vcombine.low %v1111_v1, %v1127_v3  ;;  %v1145_v7 = vcombine.high %v1111_v1, %v1127_v3 }
 0x319   : > { %v1081_v62 = vpack.c.bf16 %v1077_v57, %v1077_v57  ;;  %v1059_v63 = vrot.slane %v1045_v55, %v4262_v49  ;;  %v1075_v1 = vrot.slane %v1061_v58, %v4262_v49 }
 0x31a   : > { %v1136_v13 = vrot.slane %v1128_v4, %v4262_v49  ;;  %v1143_v14 = vrot.slane %v1129_v5, %v4262_v49  ;;  %v1152_v15 = vrot.slane %v1144_v6, %v4262_v49  ;;  %v1159_v16 = vrot.slane %v1145_v7, %v4262_v49 }
 0x31b   : > { %v1078_v4 = vcombine.low %v1059_v63, %v1075_v1  ;;  %v1079_v5 = vcombine.high %v1059_v63, %v1075_v1 }
 0x31c   : > { %v1164_v17 = vcombine.low %v1136_v13, %v1143_v14  ;;  %v3617_v18 = vcombine.high %v1136_v13, %v1143_v14  ;;  %v1180_v19 = vcombine.low %v1152_v15, %v1159_v16  ;;  %v3618_v20 = vcombine.high %v1152_v15, %v1159_v16 }
 0x31d   : > { %v1082_v6 = vpack.c.bf16 %v1078_v4, %v1078_v4  ;;  %v1083_v7 = vpack.c.bf16 %v1079_v5, %v1079_v5 }
 0x31e   : > { %v1171_v29 = vrot.slane %v1164_v17, %v4252_v39  ;;  %v1179_v30 = vrot.slane %v3617_v18, %v4252_v39  ;;  %v1187_v31 = vrot.slane %v1180_v19, %v4252_v39  ;;  %v1195_v32 = vrot.slane %v3618_v20, %v4252_v39 }
 0x320   : > { %v1196_v33 = vcombine.low %v1171_v29, %v1179_v30  ;;  %v1212_v34 = vcombine.low %v1187_v31, %v1195_v32  ;;  %v1197_v35 = vcombine.high %v1171_v29, %v1179_v30  ;;  %v1213_v36 = vcombine.high %v1187_v31, %v1195_v32 }
 0x322   : > { %v1204_v37 = vrot.slane %v1196_v33, %v4262_v49  ;;  %v1220_v38 = vrot.slane %v1212_v34, %v4262_v49  ;;  %v1211_v44 = vrot.slane %v1197_v35, %v4262_v49  ;;  %v1227_v45 = vrot.slane %v1213_v36, %v4262_v49 }
 0x324   : > { %v1228_v42 = vcombine.low %v1204_v37, %v1220_v38  ;;  %v1229_v43 = vcombine.high %v1204_v37, %v1220_v38  ;;  %v1230_v53 = vcombine.low %v1211_v44, %v1227_v45  ;;  %v1231_v54 = vcombine.high %v1211_v44, %v1227_v45 }
 0x326   : > { %v1232_v46 = vpack.c.bf16 %v1228_v42, %v1228_v42  ;;  %v1233_v47 = vpack.c.bf16 %v1229_v43, %v1229_v43  ;;  %v1234_v59 = vpack.c.bf16 %v1230_v53, %v1230_v53  ;;  %v1235_v60 = vpack.c.bf16 %v1231_v54, %v1231_v54 }
 0x328   : > { %v1393_v51 = vsel %vm1388_vm2, %v1232_v46, 0  ;;  %v1439_v52 = vsel %vm1388_vm2, %v1233_v47, 0  ;;  %v1485_v2 = vsel %vm1388_vm2, %v1234_v59, 0  ;;  %v1531_v3 = vsel %vm1388_vm2, %v1235_v60, 0 }
 0x329   : > { %3744 = vmatpush3.bf16.xpose.msra.mxu1 %v1393_v51  ;;  %3750 = vmatpush3.bf16.xpose.msra.mxu0 %v1439_v52 }
 0x32a   : > { %3755 = vmatprep.subr.bf16.mxu1 %v4020_v8  ;;  %3761 = vmatprep.subr.bf16.mxu0 %v4020_v8 }
 0x330   : > { %3746 = vmatmul.mubr.msk.bf16.vlgmr.msra.gmra.mxu1 %vm1388_vm2, %v1080_v61  ;;  %3752 = vmatmul.mubr.msk.bf16.vlgmr.msra.gmra.mxu0 %vm1388_vm2, %v1081_v62 }
 0x331   : > { %3756 = vmatpush3.bf16.xpose.msra.mxu1 %v1485_v2  ;;  %3762 = vmatpush3.bf16.xpose.msra.mxu0 %v1531_v3 }
 0x332   : > { %3757 = vmatprep.mubr.msk.bf16.mxu1 %vm4021_vm1, %v4020_v8  ;;  %3763 = vmatprep.mubr.msk.bf16.mxu0 %vm4021_vm1, %v4020_v8 }
 0x333   : > { %3767 = vmatprep.subr.bf16.mxu1 %v4020_v8  ;;  %3773 = vmatprep.subr.bf16.mxu0 %v4020_v8 }
 0x338   : > { %3758 = vmatmul.mubr.msk.bf16.vlgmr.msra.gmra.mxu1 %vm1388_vm2, %v1082_v6  ;;  %3764 = vmatmul.mubr.msk.bf16.vlgmr.msra.gmra.mxu0 %vm1388_vm2, %v1083_v7 }
 0x339   : > { %3769 = vmatprep.mubr.msk.bf16.mxu1 %vm4021_vm1, %v4020_v8  ;;  %3775 = vmatprep.mubr.msk.bf16.mxu0 %vm4021_vm1, %v4020_v8 }
 0x3f0   : > { %v1429_v12 = vpop.f32.mrf.mxu1  ;;  %v1475_v13 = vpop.f32.mrf.mxu0 }
 0x3f1   : > { %v1573_v14 = vmul.f32 0.35355338, %v1429_v12  ;;  %v1574_v15 = vmul.f32 0.35355338, %v1475_v13 }
 0x3f2   : > { %v3747_v16 = vpop.f32.mrf.mxu1  ;;  %v3753_v17 = vpop.f32.mrf.mxu0 }
 0x3f3   : > { %v1578_v18 = vadd.f32 %v1574_v15, %v829_v11  ;;  %v1577_v19 = vadd.f32 %v1573_v14, %v829_v11 }
 0x3f4   : > { %v1432_v20 = vpop.f32.mrf.mxu1  ;;  %v1478_v21 = vpop.f32.mrf.mxu0 }
 0x3f5   : > { %v1584_v23 = vsel %vm1388_vm2, %v1578_v18, -inf  ;;  %v1581_v24 = vsel %vm1388_vm2, %v1577_v19, -inf }
 0x3f6   : > { %1585 = vmax.xlane.f32.xlu0 %v1584_v23  ;;  %v3754_v25 = vpop.f32.mrf.mxu0  ;;  %1582 = vmax.xlane.f32.xlu1 %v1581_v24  ;;  %v3748_v29 = vpop.f32.mrf.mxu1 }
 0x3f8   : > { %v1521_v30 = vpop.f32.mrf.mxu1  ;;  %v1567_v31 = vpop.f32.mrf.mxu0 }
 0x3f9   : > { %v1575_v32 = vmul.f32 0.35355338, %v1521_v30  ;;  %v1576_v33 = vmul.f32 0.35355338, %v1567_v31 }
 0x3fa   : > { %v3759_v34 = vpop.f32.mrf.mxu1  ;;  %v3765_v35 = vpop.f32.mrf.mxu0 }
 0x3fb   : > { %v1580_v36 = vadd.f32 %v1576_v33, %v829_v11  ;;  %v1579_v37 = vadd.f32 %v1575_v32, %v829_v11 }
 0x3fc   : > { %v1524_v38 = vpop.f32.mrf.mxu1  ;;  %v1570_v40 = vpop.f32.mrf.mxu0 }
 0x3fd   : > { %v1590_v41 = vsel %vm1388_vm2, %v1580_v36, -inf  ;;  %v1587_v42 = vsel %vm1388_vm2, %v1579_v37, -inf }
 0x3fe   : > { %1591 = vmax.xlane.f32.xlu0 %v1590_v41  ;;  %v3766_v43 = vpop.f32.mrf.mxu0  ;;  %1588 = vmax.xlane.f32.xlu1 %v1587_v42  ;;  %v3760_v44 = vpop.f32.mrf.mxu1 }
 0x40f   : > { %1236 = vrot.lane.b32.xlu1 %v4226_v22, %s4028_s8 }
 0x47f   : > { %v1586_v45 = vpop.xlane.xlu0 %1585  ;;  %v1583_v46 = vpop.xlane.xlu1 %1582 }
 0x480   : > { %v1594_v47 = vsub.f32 %v1578_v18, %v1586_v45  ;;  %v1593_v48 = vsub.f32 %v1577_v19, %v1583_v46 }
 0x482   : > { %v1599_v50 = vmul.f32 1.442695, %v1594_v47  ;;  %v1597_v51 = vmul.f32 1.442695, %v1593_v48 }
 0x484   : > { %3941 = vpow2.f32 %v1599_v50 }
 0x485   : > { %3943 = vpow2.f32 %v1597_v51 }
 0x487   : > { %v1589_v22 = vpop.xlane.xlu1 %1588  ;;  %v1592_v57 = vpop.xlane.xlu0 %1591 }
 0x488   : > { %v1595_v56 = vsub.f32 %v1579_v37, %v1589_v22  ;;  %v1596_v59 = vsub.f32 %v1580_v36, %v1592_v57 }
 0x48a   : > { %v1601_v58 = vmul.f32 1.442695, %v1595_v56  ;;  %v1603_v60 = vmul.f32 1.442695, %v1596_v59 }
 0x48c   : > { %3945 = vpow2.f32 %v1601_v58 }
 0x48d   : > { %3947 = vpow2.f32 %v1603_v60 }
 0x491   : > { %v4324_v52 = vpop.eup %3941 }
 0x492   : > { %v4326_v53 = vpop.eup %3943  ;;  %v1608_v54 = vsel %vm1388_vm2, %v4324_v52, 0.0 }
 0x493   : > { %1609 = vadd.xlane.f32.xlu0 %v1608_v54  ;;  %v1605_v55 = vsel %vm1388_vm2, %v4326_v53, 0.0 }
 0x494   : > { %1606 = vadd.xlane.f32.xlu1 %v1605_v55 }
 0x499   : > { %v4335_v61 = vpop.eup %3945 }
 0x49a   : > { %v1611_v62 = vsel %vm1388_vm2, %v4335_v61, 0.0  ;;  %v4339_v63 = vpop.eup %3947 }
 0x4a5   : > { %1240 = vrot.lane.b32.xlu1 %v4240_v27, %s4028_s8  ;;  %v1614_v27 = vsel %vm1388_vm2, %v4339_v63, 0.0 }
 0x4a9   : > { %1242 = vrot.lane.b32.xlu1 %v4244_v28, %s4028_s8  ;;  %1238 = vrot.lane.b32.xlu0 %v4236_v26, %s4028_s8  ;;  %v1237_v26 = vpop.permute.xlu1 %1236  ;;  %s4734_s8 = smov 8  }
 0x4c8   : > { %1612 = vadd.xlane.f32.xlu0 %v1611_v62 }
 0x4cd   : > { %1615 = vadd.xlane.f32.xlu1 %v1614_v27 }
 0x51c   : > { %v1610_v1 = vpop.xlane.xlu0 %1609 }
 0x51d   : > { %v1607_v28 = vpop.xlane.xlu1 %1606  ;;  %3949 = vrcp.f32 %v1610_v1 }
 0x51e   : > { %3951 = vrcp.f32 %v1607_v28 }
 0x520   : > { %v1239_v5 = vpop.permute.xlu0 %1238 }
 0x521   : > { %v1241_v2 = vpop.permute.xlu1 %1240 }
 0x522   : > { %v1248_v3 = vcombine.low %v1237_v26, %v1241_v2  ;;  %v1249_v4 = vcombine.high %v1237_v26, %v1241_v2 }
 0x524   : > { %v1256_v10 = vrot.slane %v1248_v3, %v4252_v39  ;;  %v1263_v11 = vrot.slane %v1249_v4, %v4252_v39 }
 0x525   : > { %v1243_v6 = vpop.permute.xlu1 %1242 }
 0x526   : > { %v1264_v7 = vcombine.low %v1239_v5, %v1243_v6  ;;  %v1265_v9 = vcombine.high %v1239_v5, %v1243_v6 }
 0x528   : > { %v1272_v12 = vrot.slane %v1264_v7, %v4252_v39  ;;  %v1279_v13 = vrot.slane %v1265_v9, %v4252_v39 }
 0x52a   : > { %v1280_v14 = vcombine.low %v1256_v10, %v1272_v12  ;;  %v1281_v15 = vcombine.high %v1256_v10, %v1272_v12  ;;  %v1296_v16 = vcombine.low %v1263_v11, %v1279_v13  ;;  %v1297_v17 = vcombine.high %v1263_v11, %v1279_v13  ;;  %v3950_v38 = vpop.eup %3949 }
 0x52b   : > { %v3952_v40 = vpop.eup %3951  ;;  %v1622_v55 = vmul.f32 %v3950_v38, %v4324_v52 }
 0x52c   : > { %v1288_v18 = vrot.slane %v1280_v14, %v4262_v49  ;;  %v1295_v19 = vrot.slane %v1281_v15, %v4262_v49  ;;  %v1304_v20 = vrot.slane %v1296_v16, %v4262_v49  ;;  %v1311_v21 = vrot.slane %v1297_v17, %v4262_v49 }
 0x52d   : > { %v1621_v54 = vmul.f32 %v3952_v40, %v4326_v53  ;;  %v1626_v60 = vpack.c.bf16 %v1622_v55, %v1622_v55 }
 0x52e   : > { %v1316_v23 = vcombine.low %v1288_v18, %v1295_v19  ;;  %v3619_v24 = vcombine.high %v1288_v18, %v1295_v19  ;;  %v1332_v25 = vcombine.low %v1304_v20, %v1311_v21  ;;  %v3620_v29 = vcombine.high %v1304_v20, %v1311_v21 }
 0x52f   : > { %v1625_v59 = vpack.c.bf16 %v1621_v54, %v1621_v54 }
 0x530   : > { %v1323_v30 = vrot.slane %v1316_v23, %v4252_v39  ;;  %v1331_v31 = vrot.slane %v3619_v24, %v4252_v39  ;;  %v1339_v32 = vrot.slane %v1332_v25, %v4252_v39  ;;  %v1347_v33 = vrot.slane %v3620_v29, %v4252_v39 }
 0x532   : > { %v1348_v34 = vcombine.low %v1323_v30, %v1331_v31  ;;  %v1364_v35 = vcombine.low %v1339_v32, %v1347_v33  ;;  %v1349_v36 = vcombine.high %v1323_v30, %v1331_v31  ;;  %v1365_v37 = vcombine.high %v1339_v32, %v1347_v33 }
 0x534   : > { %v1356_v41 = vrot.slane %v1348_v34, %v4262_v49  ;;  %v1372_v42 = vrot.slane %v1364_v35, %v4262_v49  ;;  %v1363_v43 = vrot.slane %v1349_v36, %v4262_v49  ;;  %v1379_v44 = vrot.slane %v1365_v37, %v4262_v49  ;;  %v3925_v35 = vld [vmem:[%s4758_s9 + $0x8] sm:$0xff]  }
 0x536   : > { %v1380_v45 = vcombine.low %v1356_v41, %v1372_v42  ;;  %v1381_v46 = vcombine.high %v1356_v41, %v1372_v42  ;;  %v1382_v47 = vcombine.low %v1363_v43, %v1379_v44  ;;  %v1383_v48 = vcombine.high %v1363_v43, %v1379_v44 }
 0x538   : > { %v1384_v50 = vpack.c.bf16 %v1380_v45, %v1380_v45  ;;  %v1385_v51 = vpack.c.bf16 %v1381_v46, %v1381_v46  ;;  %v1386_v57 = vpack.c.bf16 %v1382_v47, %v1382_v47  ;;  %v1387_v58 = vpack.c.bf16 %v1383_v48, %v1383_v48  ;;  %v3926_v46 = vld [vmem:[%s4758_s9] sm:$0xff]  }
 0x53a   : > { %v1634_v22 = vsel %vm1632_vm3, %v1384_v50, 0  ;;  %v1680_v56 = vsel %vm1632_vm3, %v1385_v51, 0  ;;  %v1726_v52 = vsel %vm1632_vm3, %v1386_v57, 0  ;;  %v1772_v53 = vsel %vm1632_vm3, %v1387_v58, 0 }
 0x53b   : > { %3768 = vmatpush3.bf16.msra.mxu1 %v1634_v22  ;;  %3774 = vmatpush3.bf16.msra.mxu0 %v1680_v56 }
 0x53c   : > { %3779 = vmatprep.subr.bf16.mxu1 %v4020_v8  ;;  %3785 = vmatprep.subr.bf16.mxu0 %v4020_v8 }
 0x53e   : > { %3770 = vmatmul.mubr.msk.bf16.vlgmr.msra.gmra.mxu1 %vm1388_vm2, %v1625_v59  ;;  %3776 = vmatmul.mubr.msk.bf16.vlgmr.msra.gmra.mxu0 %vm1388_vm2, %v1626_v60 }
 0x53f   : > { %3780 = vmatpush3.bf16.msra.mxu1 %v1726_v52  ;;  %3786 = vmatpush3.bf16.msra.mxu0 %v1772_v53 }
 0x540   : > { %3781 = vmatprep.mubr.msk.bf16.mxu1 %vm4021_vm1, %v4020_v8  ;;  %3787 = vmatprep.mubr.msk.bf16.mxu0 %vm4021_vm1, %v4020_v8 }
 0x541   : > { %3791 = vmatprep.subr.bf16.mxu1 %v4020_v8  ;;  %3799 = vmatprep.subr.bf16.mxu0 %v4020_v8 }
 0x551   : > { %v1613_v62 = vpop.xlane.xlu0 %1612 }
 0x552   : > { %3953 = vrcp.f32 %v1613_v62 }
 0x556   : > { %v1616_v27 = vpop.xlane.xlu1 %1615 }
 0x557   : > { %3955 = vrcp.f32 %v1616_v27 }
 0x55f   : > { %v3954_v26 = vpop.eup %3953 }
 0x560   : > { %v1623_v28 = vmul.f32 %v3954_v26, %v4335_v61 }
 0x562   : > { %v1627_v1 = vpack.c.bf16 %v1623_v28, %v1623_v28 }
 0x564   : > { %v3956_v2 = vpop.eup %3955  ;;  %3782 = vmatmul.mubr.msk.bf16.vlgmr.msra.gmra.mxu1 %vm1388_vm2, %v1627_v1 }
 0x565   : > { %v1624_v3 = vmul.f32 %v3956_v2, %v4339_v63  ;;  %3795 = vmatprep.mubr.msk.bf16.mxu1 %vm4021_vm1, %v4020_v8  ;;  %3792 = vmatpush3.bf16.msra.mxu1 %v3925_v35 }
 0x566   : > { %3793 = vmatprep.subr.bf16.mxu1 %v4020_v8 }
 0x567   : > { %v1628_v4 = vpack.c.bf16 %v1624_v3, %v1624_v3 }
 0x569   : > { %3788 = vmatmul.mubr.msk.bf16.vlgmr.msra.gmra.mxu0 %vm1388_vm2, %v1628_v4  ;;  %3794 = vmatpush3.bf16.msra.mxu1 %v3926_v46 }
 0x56a   : > { %3803 = vmatprep.mubr.msk.bf16.mxu0 %vm4021_vm1, %v4020_v8  ;;  %3807 = vmatprep.subr.bf16.mxu1 %v4020_v8 }
 0x5fe   : > { %v1670_v5 = vpop.f32.mrf.mxu1  ;;  %v1716_v6 = vpop.f32.mrf.mxu0 }
 0x600   : > { %v3771_v7 = vpop.f32.mrf.mxu1  ;;  %v3777_v9 = vpop.f32.mrf.mxu0 }
 0x602   : > { %v1673_v61 = vpop.f32.mrf.mxu1  ;;  %v1719_v10 = vpop.f32.mrf.mxu0 }
 0x604   : > { %v3772_v11 = vpop.f32.mrf.mxu1  ;;  %v3778_v12 = vpop.f32.mrf.mxu0 }
 0x624   : > { %v1762_v13 = vpop.f32.mrf.mxu1 }
 0x625   : > { %v1814_v63 = vcombine.low %v1670_v5, %v1762_v13  ;;  %v1815_v15 = vcombine.high %v1670_v5, %v1762_v13 }
 0x626   : > { %v3783_v14 = vpop.f32.mrf.mxu1 }
 0x627   : > { %v1822_v23 = vrot.slane %v1814_v63, %v4252_v39  ;;  %v1829_v24 = vrot.slane %v1815_v15, %v4252_v39  ;;  %v3927_v14 = vld [vmem:[%s4720_s15 + $0x8] sm:$0xff]  }
 0x628   : > { %v1765_v16 = vpop.f32.mrf.mxu1 }
 0x629   : > { %v1808_v17 = vpop.f32.mrf.mxu0 }
 0x62a   : > { %v1830_v18 = vcombine.low %v1716_v6, %v1808_v17  ;;  %v1831_v19 = vcombine.high %v1716_v6, %v1808_v17  ;;  %v3784_v20 = vpop.f32.mrf.mxu1  ;;  %v3631_v6 = vld [vmem:[%s4715_s10] ss:$0 sm:$0xff] }
 0x62b   : > { %v3789_v21 = vpop.f32.mrf.mxu0 }
 0x62c   : > { %v1838_v25 = vrot.slane %v1830_v18, %v4252_v39  ;;  %v1845_v29 = vrot.slane %v1831_v19, %v4252_v39  ;;  %v3929_v21 = vld [vmem:[%s4718_s13 + $0x8] sm:$0xff]  }
 0x62d   : > { %v1811_v30 = vpop.f32.mrf.mxu0  ;;  %3800 = vmatpush3.bf16.msra.mxu0 %v3929_v21 }
 0x62e   : > { %v1846_v31 = vcombine.low %v1822_v23, %v1838_v25  ;;  %v1847_v32 = vcombine.high %v1822_v23, %v1838_v25  ;;  %v1862_v33 = vcombine.low %v1829_v24, %v1845_v29  ;;  %v1863_v34 = vcombine.high %v1829_v24, %v1845_v29  ;;  %v3930_v23 = vld [vmem:[%s4718_s13] sm:$0xff]   ;;  %3801 = vmatprep.subr.bf16.mxu0 %v4020_v8 }
 0x62f   : > { %v3790_v36 = vpop.f32.mrf.mxu0  ;;  %v3641_v24 = vld [vmem:[%s4721_s16] ss:$0 sm:$0xff] }
 0x630   : > { %v1854_v37 = vrot.slane %v1846_v31, %v4262_v49  ;;  %v1861_v38 = vrot.slane %v1847_v32, %v4262_v49  ;;  %v1870_v40 = vrot.slane %v1862_v33, %v4262_v49  ;;  %v1877_v41 = vrot.slane %v1863_v34, %v4262_v49 }
 0x631   : > { %3802 = vmatpush3.bf16.msra.mxu0 %v3930_v23  ;;  %v3637_v23 = vld [vmem:[%s4719_s14] ss:$0 sm:$0xff] }
 0x632   : > { %v1882_v42 = vcombine.low %v1854_v37, %v1861_v38  ;;  %v3629_v43 = vcombine.high %v1854_v37, %v1861_v38  ;;  %v1898_v44 = vcombine.low %v1870_v40, %v1877_v41  ;;  %v3630_v45 = vcombine.high %v1870_v40, %v1877_v41  ;;  %3815 = vmatprep.subr.bf16.mxu0 %v4020_v8  ;;  %v3635_v37 = vld [vmem:[%s4716_s11] ss:$0 sm:$0xff] }
 0x633   : > { %v3636_v40 = vld [vmem:[%s4717_s12] ss:$0 sm:$0xff] }
 0x634   : > { %v1889_v47 = vrot.slane %v1882_v42, %v4252_v39  ;;  %v1897_v48 = vrot.slane %v3629_v43, %v4252_v39  ;;  %v1905_v50 = vrot.slane %v1898_v44, %v4252_v39  ;;  %v1913_v51 = vrot.slane %v3630_v45, %v4252_v39 }
 0x636   : > { %v1915_v54 = vcombine.high %v1889_v47, %v1897_v48  ;;  %v1931_v55 = vcombine.high %v1905_v50, %v1913_v51  ;;  %v1914_v22 = vcombine.low %v1889_v47, %v1897_v48  ;;  %v1930_v56 = vcombine.low %v1905_v50, %v1913_v51 }
 0x638   : > { %v1929_v57 = vrot.slane %v1915_v54, %v4262_v49  ;;  %v1945_v58 = vrot.slane %v1931_v55, %v4262_v49  ;;  %v1922_v59 = vrot.slane %v1914_v22, %v4262_v49  ;;  %v1938_v60 = vrot.slane %v1930_v56, %v4262_v49 }
 0x63a   : > { %v1948_v52 = vcombine.low %v1929_v57, %v1945_v58  ;;  %v1947_v53 = vcombine.high %v1922_v59, %v1938_v60  ;;  %v1946_v62 = vcombine.low %v1922_v59, %v1938_v60  ;;  %v1949_v27 = vcombine.high %v1929_v57, %v1945_v58 }
 0x63c   : > { %1955 = vrot.lane.b32.xlu1 %v1948_v52, %s4735_s6  ;;  %1951 = vrot.lane.b32.xlu0 %v1947_v53, %s4734_s8  ;;  %s4759_s8 = sld [smem:[#allocation6_spill]] }
 0x640   : > { %1959 = vrot.lane.b32.xlu0 %v1949_v27, %s4733_s4  ;;  %s4764_s4 = smov 8  }
 0x642   : > { %s807_s6 = scalar_lea.vmem %s4759_s8, %s4188_s27  ;;  %s4763_s8 = smov 16  }
 0x643   : > { %v820_v63 = vld [vmem:[%s807_s6] sm:$0xff] }
 0x644   : > { %v2136_v15 = vpack.c.bf16 %v820_v63, %v820_v63 }
 0x6ae   : > { %v1952_v26 = vpop.permute.xlu0 %1951  ;;  %v1956_v28 = vpop.permute.xlu1 %1955 }
 0x6af   : > { %v1962_v1 = vsel %vm1388_vm2, %v1946_v62, %v1952_v26 }
 0x6b0   : > { %v1964_v3 = vsel %vm1963_vm4, %v1962_v1, %v1956_v28 }
 0x6b2   : > { %v1960_v2 = vpop.permute.xlu0 %1959 }
 0x6b3   : > { %v1966_v4 = vsel %vm1965_vm5, %v1964_v3, %v1960_v2 }
 0x6b4   : > { %v1967_v5 = vpack.c.bf16 %v1966_v4, %v1966_v4 }
 0x6b6   : > { %3796 = vmatmul.mubr.msk.bf16.vlgmr.msra.gmra.mxu1 %vm833_vm0, %v1967_v5 }
 0x6b7   : > { %3811 = vmatprep.mubr.msk.bf16.mxu1 %vm4021_vm1, %v4020_v8  ;;  %3808 = vmatpush3.bf16.msra.mxu1 %v3927_v14 }
 0x6b8   : > { %3809 = vmatprep.subr.bf16.mxu1 %v4020_v8 }
 0x776   : > { %v2023_v7 = vpop.f32.mrf.mxu1 }
 0x777   : > { %v2024_v9 = vadd.f32 %v3631_v6, %v2023_v7 }
 0x778   : > { %v3797_v61 = vpop.f32.mrf.mxu1 }
 0x779   : > { %v4420_v10 = vadd.f32 %v2024_v9, %v4194_v0  ;;  %v3928_v0 = vld [vmem:[%s4720_s15] sm:$0xff]  }
 0x77a   : > { %v2026_v11 = vpop.f32.mrf.mxu1  ;;  %3810 = vmatpush3.bf16.msra.mxu1 %v3928_v0 }
 0x77b   : > { %v2032_v12 = vsel %vm833_vm0, %v4420_v10, 0.0  ;;  %3821 = vmatprep.subr.bf16.mxu1 %v4020_v8 }
 0x77c   : > { %2033 = vadd.xlane.f32.xlu1 %v2032_v12  ;;  %v3798_v13 = vpop.f32.mrf.mxu1 }
 0x77d   : > { %3812 = vmatmul.mubr.msk.bf16.vlgmr.msra.gmra.mxu1 %vm833_vm0, %v2136_v15 }
 0x77e   : > { %3823 = vmatprep.mubr.msk.bf16.mxu1 %vm4021_vm1, %v4020_v8 }
 0x805   : > { %v2034_v16 = vpop.xlane.xlu1 %2033 }
 0x806   : > { %v2035_v17 = vmul.f32 0.03125, %v2034_v16 }
 0x808   : > { %v2036_v18 = vsub.f32 %v4420_v10, %v2035_v17 }
 0x80a   : > { %v2037_v19 = vmul.f32 %v2036_v18, %v2036_v18 }
 0x80c   : > { %v2038_v20 = vsel %vm833_vm0, %v2037_v19, 0.0 }
 0x80d   : > { %2039 = vadd.xlane.f32.xlu0 %v2038_v20 }
 0x83d   : > { %v2192_v25 = vpop.f32.mrf.mxu1 }
 0x83e   : > { %v4452_v29 = vadd.f32 %v3641_v24, %v2192_v25 }
 0x83f   : > { %v3813_v30 = vpop.f32.mrf.mxu1 }
 0x840   : > { %2352 = vrot.lane.b32.xlu1 %v4452_v29, %s4024_s26  ;;  %2349 = vrot.lane.b32.xlu0 %v4452_v29, %s4023_s3 }
 0x841   : > { %v2195_v31 = vpop.f32.mrf.mxu1 }
 0x843   : > { %v3814_v32 = vpop.f32.mrf.mxu1 }
 0x844   : > { %2355 = vrot.lane.b32.xlu1 %v4452_v29, %s4760_s28 }
 0x896   : > { %v2040_v33 = vpop.xlane.xlu0 %2039 }
 0x897   : > { %v2041_v34 = vmul.f32 0.03125, %v2040_v33 }
 0x899   : > { %v2042_v35 = vadd.f32 1e-05, %v2041_v34 }
 0x89b   : > { %3957 = vrsqrt.f32 %v2042_v35 }
 0x8a8   : > { %v3958_v36 = vpop.eup %3957 }
 0x8a9   : > { %v2044_v38 = vmul.f32 %v3958_v36, %v2036_v18 }
 0x8ab   : > { %v2051_v41 = vmul.f32 %v3635_v37, %v2044_v38 }
 0x8ad   : > { %v2058_v42 = vadd.f32 %v3636_v40, %v2051_v41 }
 0x8af   : > { %v2074_v43 = vpack.c.bf16 %v2058_v42, %v2058_v42 }
 0x8b1   : > { %3804 = vmatmul.mubr.msk.bf16.vlgmr.msra.gmra.mxu0 %vm833_vm0, %v2074_v43 }
 0x8b2   : > { %3817 = vmatprep.mubr.msk.bf16.mxu0 %vm4021_vm1, %v4020_v8  ;;  %v4469_v44 = vpop.permute.xlu1 %2352  ;;  %v4473_v46 = vpop.permute.xlu0 %2349 }
 0x8b3   : > { %v2358_v47 = vcombine.low %v4452_v29, %v4469_v44  ;;  %v2359_v48 = vcombine.high %v4452_v29, %v4469_v44 }
 0x8b5   : > { %v2366_v54 = vrot.slane %v2358_v47, %v4252_v39  ;;  %v2373_v55 = vrot.slane %v2359_v48, %v4252_v39 }
 0x8b6   : > { %v4471_v45 = vpop.permute.xlu1 %2355 }
 0x8b7   : > { %v2374_v50 = vcombine.low %v4473_v46, %v4471_v45  ;;  %v2375_v51 = vcombine.high %v4473_v46, %v4471_v45 }
 0x8b9   : > { %v2382_v22 = vrot.slane %v2374_v50, %v4252_v39  ;;  %v2389_v56 = vrot.slane %v2375_v51, %v4252_v39 }
 0x8bb   : > { %v2390_v57 = vcombine.low %v2366_v54, %v2382_v22  ;;  %v2391_v58 = vcombine.high %v2366_v54, %v2382_v22  ;;  %v2406_v59 = vcombine.low %v2373_v55, %v2389_v56  ;;  %v2407_v60 = vcombine.high %v2373_v55, %v2389_v56 }
 0x8bd   : > { %v2398_v52 = vrot.slane %v2390_v57, %v4262_v49  ;;  %v2405_v53 = vrot.slane %v2391_v58, %v4262_v49  ;;  %v2414_v62 = vrot.slane %v2406_v59, %v4262_v49  ;;  %v2421_v27 = vrot.slane %v2407_v60, %v4262_v49 }
 0x8bf   : > { %v2426_v26 = vcombine.low %v2398_v52, %v2405_v53  ;;  %v3647_v28 = vcombine.high %v2398_v52, %v2405_v53  ;;  %v2442_v1 = vcombine.low %v2414_v62, %v2421_v27  ;;  %v3648_v2 = vcombine.high %v2414_v62, %v2421_v27 }
 0x8c1   : > { %v2433_v3 = vrot.slane %v2426_v26, %v4252_v39  ;;  %v2441_v4 = vrot.slane %v3647_v28, %v4252_v39  ;;  %v2449_v5 = vrot.slane %v2442_v1, %v4252_v39  ;;  %v2457_v6 = vrot.slane %v3648_v2, %v4252_v39 }
 0x8c3   : > { %v2458_v7 = vcombine.low %v2433_v3, %v2441_v4  ;;  %v2474_v9 = vcombine.low %v2449_v5, %v2457_v6  ;;  %v2459_v61 = vcombine.high %v2433_v3, %v2441_v4  ;;  %v2475_v11 = vcombine.high %v2449_v5, %v2457_v6 }
 0x8c5   : > { %v2466_v12 = vrot.slane %v2458_v7, %v4262_v49  ;;  %v2482_v13 = vrot.slane %v2474_v9, %v4262_v49  ;;  %v2473_v14 = vrot.slane %v2459_v61, %v4262_v49  ;;  %v2489_v63 = vrot.slane %v2475_v11, %v4262_v49 }
 0x8c7   : > { %v2490_v0 = vcombine.low %v2466_v12, %v2482_v13  ;;  %v2491_v15 = vcombine.high %v2466_v12, %v2482_v13  ;;  %v4499_v16 = vcombine.low %v2473_v14, %v2489_v63  ;;  %v4501_v17 = vcombine.high %v2473_v14, %v2489_v63 }
 0x8c9   : > { %v2494_v18 = vpack.c.bf16 %v2490_v0, %v2490_v0  ;;  %v2495_v19 = vpack.c.bf16 %v2491_v15, %v2491_v15  ;;  %v2496_v9 = vpack.c.bf16 %v4499_v16, %v4499_v16  ;;  %v2497_v61 = vpack.c.bf16 %v4501_v17, %v4501_v17 }
 0x8cb   : > { %v2654_v20 = vsel %vm1388_vm2, %v2494_v18, 0  ;;  %v2700_v21 = vsel %vm1388_vm2, %v2495_v19, 0  ;;  %v2746_v63 = vsel %vm1388_vm2, %v2496_v9, 0  ;;  %v2792_v0 = vsel %vm1388_vm2, %v2497_v61, 0 }
 0x8cc   : > { %3816 = vmatpush3.bf16.xpose.msra.mxu0 %v2654_v20  ;;  %3822 = vmatpush3.bf16.xpose.msra.mxu1 %v2700_v21 }
 0x8cd   : > { %3827 = vmatprep.subr.bf16.mxu0 %v4020_v8  ;;  %3833 = vmatprep.subr.bf16.mxu1 %v4020_v8 }
 0x971   : > { %v2130_v24 = vpop.f32.mrf.mxu0 }
 0x972   : > { %v2131_v25 = vadd.f32 %v3637_v23, %v2130_v24 }
 0x973   : > { %v3805_v30 = vpop.f32.mrf.mxu0 }
 0x974   : > { %2202 = vrot.lane.b32.xlu1 %v2131_v25, %s4024_s26  ;;  %2199 = vrot.lane.b32.xlu0 %v2131_v25, %s4023_s3  ;;  %s4765_s3 = smov 24   ;;  %s817_s26 = scalar_lea.vmem %s4730_s25, %s4188_s27 }
 0x975   : > { %v2133_v31 = vpop.f32.mrf.mxu0 }
 0x977   : > { %v3806_v32 = vpop.f32.mrf.mxu0 }
 0x978   : > { %2205 = vrot.lane.b32.xlu0 %v2131_v25, %s4760_s28  ;;  %s813_s28 = scalar_lea.vmem %s4761_s0, %s4767_s2  ;;  %s4762_s2 = smov 96  }
 0x979   : > { %v3655_v21 = vld [vmem:[%s813_s28] ss:$0 sm:$0xff] }
 0x9e6   : > { %v2203_v33 = vpop.permute.xlu1 %2202  ;;  %v2200_v34 = vpop.permute.xlu0 %2199 }
 0x9e7   : > { %v2208_v35 = vcombine.low %v2131_v25, %v2203_v33  ;;  %v2209_v36 = vcombine.high %v2131_v25, %v2203_v33 }
 0x9e9   : > { %v2216_v41 = vrot.slane %v2208_v35, %v4252_v39  ;;  %v2223_v42 = vrot.slane %v2209_v36, %v4252_v39 }
 0x9ea   : > { %v2206_v37 = vpop.permute.xlu0 %2205 }
 0x9eb   : > { %v2224_v38 = vcombine.low %v2200_v34, %v2206_v37  ;;  %v2225_v40 = vcombine.high %v2200_v34, %v2206_v37 }
 0x9ed   : > { %v2232_v43 = vrot.slane %v2224_v38, %v4252_v39  ;;  %v2239_v47 = vrot.slane %v2225_v40, %v4252_v39 }
 0x9ef   : > { %v2240_v48 = vcombine.low %v2216_v41, %v2232_v43  ;;  %v2241_v50 = vcombine.high %v2216_v41, %v2232_v43  ;;  %v2256_v51 = vcombine.low %v2223_v42, %v2239_v47  ;;  %v2257_v54 = vcombine.high %v2223_v42, %v2239_v47 }
 0x9f1   : > { %v2248_v55 = vrot.slane %v2240_v48, %v4262_v49  ;;  %v2255_v22 = vrot.slane %v2241_v50, %v4262_v49  ;;  %v2264_v56 = vrot.slane %v2256_v51, %v4262_v49  ;;  %v2271_v57 = vrot.slane %v2257_v54, %v4262_v49 }
 0x9f3   : > { %v2276_v58 = vcombine.low %v2248_v55, %v2255_v22  ;;  %v3645_v59 = vcombine.high %v2248_v55, %v2255_v22  ;;  %v2292_v60 = vcombine.low %v2264_v56, %v2271_v57  ;;  %v3646_v52 = vcombine.high %v2264_v56, %v2271_v57 }
 0x9f5   : > { %v2283_v53 = vrot.slane %v2276_v58, %v4252_v39  ;;  %v2291_v62 = vrot.slane %v3645_v59, %v4252_v39  ;;  %v2299_v27 = vrot.slane %v2292_v60, %v4252_v39  ;;  %v2307_v26 = vrot.slane %v3646_v52, %v4252_v39 }
 0x9f7   : > { %v2308_v28 = vcombine.low %v2283_v53, %v2291_v62  ;;  %v2324_v1 = vcombine.low %v2299_v27, %v2307_v26  ;;  %v2309_v2 = vcombine.high %v2283_v53, %v2291_v62  ;;  %v2325_v3 = vcombine.high %v2299_v27, %v2307_v26 }
 0x9f9   : > { %v2316_v4 = vrot.slane %v2308_v28, %v4262_v49  ;;  %v2332_v5 = vrot.slane %v2324_v1, %v4262_v49  ;;  %v2323_v13 = vrot.slane %v2309_v2, %v4262_v49  ;;  %v2339_v14 = vrot.slane %v2325_v3, %v4262_v49 }
 0x9fb   : > { %v2340_v6 = vcombine.low %v2316_v4, %v2332_v5  ;;  %v2341_v7 = vcombine.high %v2316_v4, %v2332_v5  ;;  %v2342_v15 = vcombine.low %v2323_v13, %v2339_v14  ;;  %v2343_v16 = vcombine.high %v2323_v13, %v2339_v14 }
 0x9fd   : > { %v2344_v11 = vpack.c.bf16 %v2340_v6, %v2340_v6  ;;  %v2345_v12 = vpack.c.bf16 %v2341_v7, %v2341_v7  ;;  %v2346_v17 = vpack.c.bf16 %v2342_v15, %v2342_v15  ;;  %v2347_v18 = vpack.c.bf16 %v2343_v16, %v2343_v16 }
 0x9ff   : > { %3818 = vmatmul.mubr.msk.bf16.vlgmr.msra.gmra.mxu0 %vm1388_vm2, %v2344_v11  ;;  %3824 = vmatmul.mubr.msk.bf16.vlgmr.msra.gmra.mxu1 %vm1388_vm2, %v2345_v12 }
 0xa00   : > { %3828 = vmatpush3.bf16.xpose.msra.mxu0 %v2746_v63  ;;  %3834 = vmatpush3.bf16.xpose.msra.mxu1 %v2792_v0 }
 0xa01   : > { %3829 = vmatprep.mubr.msk.bf16.mxu0 %vm4021_vm1, %v4020_v8  ;;  %3835 = vmatprep.mubr.msk.bf16.mxu1 %vm4021_vm1, %v4020_v8 }
 0xa02   : > { %3839 = vmatprep.subr.bf16.mxu0 %v4020_v8  ;;  %3845 = vmatprep.subr.bf16.mxu1 %v4020_v8 }
 0xa07   : > { %3830 = vmatmul.mubr.msk.bf16.vlgmr.msra.gmra.mxu0 %vm1388_vm2, %v2346_v17  ;;  %3836 = vmatmul.mubr.msk.bf16.vlgmr.msra.gmra.mxu1 %vm1388_vm2, %v2347_v18 }
 0xa08   : > { %3841 = vmatprep.mubr.msk.bf16.mxu0 %vm4021_vm1, %v4020_v8  ;;  %3847 = vmatprep.mubr.msk.bf16.mxu1 %vm4021_vm1, %v4020_v8 }
 0xabf   : > { %v2690_v19 = vpop.f32.mrf.mxu0  ;;  %v2736_v20 = vpop.f32.mrf.mxu1 }
 0xac0   : > { %v2834_v23 = vmul.f32 0.35355338, %v2690_v19  ;;  %v2835_v24 = vmul.f32 0.35355338, %v2736_v20 }
 0xac1   : > { %v3819_v25 = vpop.f32.mrf.mxu0  ;;  %v3825_v30 = vpop.f32.mrf.mxu1 }
 0xac2   : > { %v2844_v31 = vadd.f32 %v3655_v21, %v2834_v23  ;;  %v2845_v32 = vadd.f32 %v3655_v21, %v2835_v24 }
 0xac3   : > { %v2693_v33 = vpop.f32.mrf.mxu0  ;;  %v2739_v34 = vpop.f32.mrf.mxu1 }
 0xac4   : > { %v2848_v35 = vsel %vm1388_vm2, %v2844_v31, -inf  ;;  %v2851_v36 = vsel %vm1388_vm2, %v2845_v32, -inf }
 0xac5   : > { %2849 = vmax.xlane.f32.xlu1 %v2848_v35  ;;  %v3820_v37 = vpop.f32.mrf.mxu0  ;;  %2852 = vmax.xlane.f32.xlu0 %v2851_v36  ;;  %v3826_v38 = vpop.f32.mrf.mxu1 }
 0xac7   : > { %v2782_v40 = vpop.f32.mrf.mxu0  ;;  %v2828_v41 = vpop.f32.mrf.mxu1 }
 0xac8   : > { %v2836_v42 = vmul.f32 0.35355338, %v2782_v40  ;;  %v2837_v43 = vmul.f32 0.35355338, %v2828_v41 }
 0xac9   : > { %v3831_v47 = vpop.f32.mrf.mxu0  ;;  %v3837_v48 = vpop.f32.mrf.mxu1 }
 0xaca   : > { %v2846_v50 = vadd.f32 %v3655_v21, %v2836_v42  ;;  %v2847_v51 = vadd.f32 %v3655_v21, %v2837_v43 }
 0xacb   : > { %v2785_v54 = vpop.f32.mrf.mxu0  ;;  %v2831_v55 = vpop.f32.mrf.mxu1 }
 0xacc   : > { %v2854_v22 = vsel %vm1388_vm2, %v2846_v50, -inf  ;;  %v2857_v56 = vsel %vm1388_vm2, %v2847_v51, -inf }
 0xacd   : > { %v3832_v57 = vpop.f32.mrf.mxu0  ;;  %2855 = vmax.xlane.f32.xlu0 %v2854_v22  ;;  %2858 = vmax.xlane.f32.xlu1 %v2857_v56  ;;  %v3838_v58 = vpop.f32.mrf.mxu1 }
 0xade   : > { %2500 = vrot.lane.b32.xlu1 %v4473_v46, %s4762_s2 }
 0xae3   : > { %2498 = vrot.lane.b32.xlu0 %v4452_v29, %s4762_s2 }
 0xb4e   : > { %v2850_v59 = vpop.xlane.xlu1 %2849  ;;  %v2853_v60 = vpop.xlane.xlu0 %2852 }
 0xb4f   : > { %v2860_v52 = vsub.f32 %v2844_v31, %v2850_v59  ;;  %v2861_v53 = vsub.f32 %v2845_v32, %v2853_v60 }
 0xb51   : > { %v2864_v62 = vmul.f32 1.442695, %v2860_v52  ;;  %v2866_v27 = vmul.f32 1.442695, %v2861_v53 }
 0xb53   : > { %3959 = vpow2.f32 %v2864_v62 }
 0xb54   : > { %3961 = vpow2.f32 %v2866_v27 }
 0xb56   : > { %v2859_v29 = vpop.xlane.xlu1 %2858  ;;  %v2856_v2 = vpop.xlane.xlu0 %2855 }
 0xb57   : > { %v2863_v3 = vsub.f32 %v2847_v51, %v2859_v29  ;;  %v2862_v4 = vsub.f32 %v2846_v50, %v2856_v2 }
 0xb59   : > { %v2870_v5 = vmul.f32 1.442695, %v2863_v3  ;;  %v2868_v6 = vmul.f32 1.442695, %v2862_v4 }
 0xb5a   : > { %v2501_v11 = vpop.permute.xlu1 %2500 }
 0xb5b   : > { %3963 = vpow2.f32 %v2870_v5 }
 0xb5c   : > { %3965 = vpow2.f32 %v2868_v6 }
 0xb60   : > { %v4561_v26 = vpop.eup %3959 }
 0xb61   : > { %v4563_v28 = vpop.eup %3961  ;;  %v2872_v1 = vsel %vm1388_vm2, %v4561_v26, 0.0 }
 0xb62   : > { %2873 = vadd.xlane.f32.xlu0 %v2872_v1  ;;  %v2875_v46 = vsel %vm1388_vm2, %v4563_v28, 0.0 }
 0xb63   : > { %2876 = vadd.xlane.f32.xlu1 %v2875_v46 }
 0xb68   : > { %v4573_v7 = vpop.eup %3963 }
 0xb69   : > { %v4575_v9 = vpop.eup %3965  ;;  %v2881_v61 = vsel %vm1388_vm2, %v4573_v7, 0.0 }
 0xb74   : > { %2502 = vrot.lane.b32.xlu1 %v4469_v44, %s4762_s2  ;;  %v2878_v44 = vsel %vm1388_vm2, %v4575_v9, 0.0 }
 0xb78   : > { %2504 = vrot.lane.b32.xlu0 %v4471_v45, %s4762_s2  ;;  %v2499_v45 = vpop.permute.xlu0 %2498 }
 0xb97   : > { %2882 = vadd.xlane.f32.xlu0 %v2881_v61 }
 0xb98   : > { %2879 = vadd.xlane.f32.xlu1 %v2878_v44 }
 0xbeb   : > { %v2874_v12 = vpop.xlane.xlu0 %2873 }
 0xbec   : > { %v2877_v13 = vpop.xlane.xlu1 %2876  ;;  %3967 = vrcp.f32 %v2874_v12 }
 0xbed   : > { %3969 = vrcp.f32 %v2877_v13 }
 0xbef   : > { %v2505_v14 = vpop.permute.xlu0 %2504 }
 0xbf0   : > { %v2526_v63 = vcombine.low %v2501_v11, %v2505_v14  ;;  %v2527_v0 = vcombine.high %v2501_v11, %v2505_v14  ;;  %v2503_v15 = vpop.permute.xlu1 %2502 }
 0xbf1   : > { %v2510_v16 = vcombine.low %v2499_v45, %v2503_v15  ;;  %v2511_v17 = vcombine.high %v2499_v45, %v2503_v15 }
 0xbf2   : > { %v2534_v18 = vrot.slane %v2526_v63, %v4252_v39  ;;  %v2541_v19 = vrot.slane %v2527_v0, %v4252_v39 }
 0xbf3   : > { %v2518_v20 = vrot.slane %v2510_v16, %v4252_v39  ;;  %v2525_v21 = vrot.slane %v2511_v17, %v4252_v39 }
 0xbf5   : > { %v2542_v23 = vcombine.low %v2518_v20, %v2534_v18  ;;  %v2543_v24 = vcombine.high %v2518_v20, %v2534_v18  ;;  %v2558_v25 = vcombine.low %v2525_v21, %v2541_v19  ;;  %v2559_v30 = vcombine.high %v2525_v21, %v2541_v19 }
 0xbf7   : > { %v2550_v31 = vrot.slane %v2542_v23, %v4262_v49  ;;  %v2557_v32 = vrot.slane %v2543_v24, %v4262_v49  ;;  %v2566_v33 = vrot.slane %v2558_v25, %v4262_v49  ;;  %v2573_v34 = vrot.slane %v2559_v30, %v4262_v49 }
 0xbf9   : > { %v2578_v35 = vcombine.low %v2550_v31, %v2557_v32  ;;  %v3649_v36 = vcombine.high %v2550_v31, %v2557_v32  ;;  %v2594_v37 = vcombine.low %v2566_v33, %v2573_v34  ;;  %v3650_v38 = vcombine.high %v2566_v33, %v2573_v34  ;;  %v3968_v54 = vpop.eup %3967 }
 0xbfa   : > { %v3970_v58 = vpop.eup %3969  ;;  %v2888_v1 = vmul.f32 %v3968_v54, %v4561_v26 }
 0xbfb   : > { %v2585_v40 = vrot.slane %v2578_v35, %v4252_v39  ;;  %v2593_v41 = vrot.slane %v3649_v36, %v4252_v39  ;;  %v2601_v42 = vrot.slane %v2594_v37, %v4252_v39  ;;  %v2609_v43 = vrot.slane %v3650_v38, %v4252_v39 }
 0xbfc   : > { %v2889_v46 = vmul.f32 %v3970_v58, %v4563_v28  ;;  %v2892_v5 = vpack.c.bf16 %v2888_v1, %v2888_v1 }
 0xbfd   : > { %v2610_v47 = vcombine.low %v2585_v40, %v2593_v41  ;;  %v2626_v48 = vcombine.low %v2601_v42, %v2609_v43  ;;  %v2611_v50 = vcombine.high %v2585_v40, %v2593_v41  ;;  %v2627_v51 = vcombine.high %v2601_v42, %v2609_v43 }
 0xbfe   : > { %v2893_v6 = vpack.c.bf16 %v2889_v46, %v2889_v46 }
 0xbff   : > { %v2618_v55 = vrot.slane %v2610_v47, %v4262_v49  ;;  %v2634_v22 = vrot.slane %v2626_v48, %v4262_v49  ;;  %v2625_v56 = vrot.slane %v2611_v50, %v4262_v49  ;;  %v2641_v57 = vrot.slane %v2627_v51, %v4262_v49  ;;  %v3931_v48 = vld [vmem:[%s4722_s17 + $0x8] sm:$0xff]  }
 0xc01   : > { %v2642_v59 = vcombine.low %v2618_v55, %v2634_v22  ;;  %v2643_v60 = vcombine.high %v2618_v55, %v2634_v22  ;;  %v2644_v52 = vcombine.low %v2625_v56, %v2641_v57  ;;  %v2645_v53 = vcombine.high %v2625_v56, %v2641_v57 }
 0xc03   : > { %v2646_v62 = vpack.c.bf16 %v2642_v59, %v2642_v59  ;;  %v2647_v27 = vpack.c.bf16 %v2643_v60, %v2643_v60  ;;  %v2648_v3 = vpack.c.bf16 %v2644_v52, %v2644_v52  ;;  %v2649_v4 = vpack.c.bf16 %v2645_v53, %v2645_v53  ;;  %v3932_v60 = vld [vmem:[%s4722_s17] sm:$0xff]  }
 0xc05   : > { %v2900_v29 = vsel %vm1632_vm3, %v2646_v62, 0  ;;  %v2946_v2 = vsel %vm1632_vm3, %v2647_v27, 0  ;;  %v2992_v26 = vsel %vm1632_vm3, %v2648_v3, 0  ;;  %v3038_v28 = vsel %vm1632_vm3, %v2649_v4, 0 }
 0xc06   : > { %3840 = vmatpush3.bf16.msra.mxu0 %v2900_v29  ;;  %3846 = vmatpush3.bf16.msra.mxu1 %v2946_v2 }
 0xc07   : > { %3851 = vmatprep.subr.bf16.mxu0 %v4020_v8  ;;  %3857 = vmatprep.subr.bf16.mxu1 %v4020_v8 }
 0xc09   : > { %3842 = vmatmul.mubr.msk.bf16.vlgmr.msra.gmra.mxu0 %vm1388_vm2, %v2892_v5  ;;  %3848 = vmatmul.mubr.msk.bf16.vlgmr.msra.gmra.mxu1 %vm1388_vm2, %v2893_v6 }
 0xc0a   : > { %3852 = vmatpush3.bf16.msra.mxu0 %v2992_v26  ;;  %3858 = vmatpush3.bf16.msra.mxu1 %v3038_v28 }
 0xc0b   : > { %3853 = vmatprep.mubr.msk.bf16.mxu0 %vm4021_vm1, %v4020_v8  ;;  %3859 = vmatprep.mubr.msk.bf16.mxu1 %vm4021_vm1, %v4020_v8 }
 0xc0c   : > { %3863 = vmatprep.subr.bf16.mxu0 %v4020_v8  ;;  %3871 = vmatprep.subr.bf16.mxu1 %v4020_v8 }
 0xc20   : > { %v2883_v61 = vpop.xlane.xlu0 %2882 }
 0xc21   : > { %3971 = vrcp.f32 %v2883_v61  ;;  %v2880_v44 = vpop.xlane.xlu1 %2879 }
 0xc22   : > { %3973 = vrcp.f32 %v2880_v44 }
 0xc2e   : > { %v3972_v45 = vpop.eup %3971 }
 0xc2f   : > { %v3974_v11 = vpop.eup %3973  ;;  %v2891_v12 = vmul.f32 %v3972_v45, %v4573_v7 }
 0xc30   : > { %v2890_v13 = vmul.f32 %v3974_v11, %v4575_v9 }
 0xc31   : > { %v2895_v14 = vpack.c.bf16 %v2891_v12, %v2891_v12 }
 0xc32   : > { %v2894_v63 = vpack.c.bf16 %v2890_v13, %v2890_v13 }
 0xc33   : > { %3860 = vmatmul.mubr.msk.bf16.vlgmr.msra.gmra.mxu1 %vm1388_vm2, %v2895_v14 }
 0xc34   : > { %3854 = vmatmul.mubr.msk.bf16.vlgmr.msra.gmra.mxu0 %vm1388_vm2, %v2894_v63  ;;  %3875 = vmatprep.mubr.msk.bf16.mxu1 %vm4021_vm1, %v4020_v8  ;;  %v3662_v63 = vld [vmem:[%s4723_s18] ss:$0 sm:$0xff] }
 0xc35   : > { %3867 = vmatprep.mubr.msk.bf16.mxu0 %vm4021_vm1, %v4020_v8  ;;  %3864 = vmatpush3.bf16.msra.mxu0 %v3931_v48  ;;  %v3668_v48 = vld [vmem:[%s4727_s22] ss:$0 sm:$0xff] }
 0xc36   : > { %3865 = vmatprep.subr.bf16.mxu0 %v4020_v8 }
 0xc39   : > { %3866 = vmatpush3.bf16.msra.mxu0 %v3932_v60 }
 0xc3a   : > { %3879 = vmatprep.subr.bf16.mxu0 %v4020_v8 }
 0xcc9   : > { %v2936_v0 = vpop.f32.mrf.mxu0  ;;  %v2982_v15 = vpop.f32.mrf.mxu1 }
 0xccb   : > { %v3843_v16 = vpop.f32.mrf.mxu0  ;;  %v3849_v17 = vpop.f32.mrf.mxu1 }
 0xccd   : > { %v2939_v18 = vpop.f32.mrf.mxu0  ;;  %v2985_v7 = vpop.f32.mrf.mxu1 }
 0xccf   : > { %v3844_v19 = vpop.f32.mrf.mxu0  ;;  %v3850_v9 = vpop.f32.mrf.mxu1 }
 0xcf3   : > { %v3074_v20 = vpop.f32.mrf.mxu1 }
 0xcf4   : > { %v3028_v21 = vpop.f32.mrf.mxu0  ;;  %v3096_v23 = vcombine.low %v2982_v15, %v3074_v20  ;;  %v3097_v24 = vcombine.high %v2982_v15, %v3074_v20 }
 0xcf5   : > { %v3080_v25 = vcombine.low %v2936_v0, %v3028_v21  ;;  %v3081_v30 = vcombine.high %v2936_v0, %v3028_v21  ;;  %v3861_v31 = vpop.f32.mrf.mxu1 }
 0xcf6   : > { %v3104_v32 = vrot.slane %v3096_v23, %v4252_v39  ;;  %v3111_v33 = vrot.slane %v3097_v24, %v4252_v39  ;;  %v3855_v34 = vpop.f32.mrf.mxu0 }
 0xcf7   : > { %v3088_v35 = vrot.slane %v3080_v25, %v4252_v39  ;;  %v3095_v36 = vrot.slane %v3081_v30, %v4252_v39  ;;  %v3077_v37 = vpop.f32.mrf.mxu1  ;;  %v3933_v25 = vld [vmem:[%s4726_s21 + $0x8] sm:$0xff]   ;;  %v3666_v34 = vld [vmem:[%s4724_s19] ss:$0 sm:$0xff] }
 0xcf8   : > { %v3031_v38 = vpop.f32.mrf.mxu0  ;;  %3872 = vmatpush3.bf16.msra.mxu1 %v3933_v25 }
 0xcf9   : > { %v3112_v40 = vcombine.low %v3088_v35, %v3104_v32  ;;  %v3113_v41 = vcombine.high %v3088_v35, %v3104_v32  ;;  %v3128_v42 = vcombine.low %v3095_v36, %v3111_v33  ;;  %v3129_v43 = vcombine.high %v3095_v36, %v3111_v33  ;;  %v3862_v47 = vpop.f32.mrf.mxu1  ;;  %3873 = vmatprep.subr.bf16.mxu1 %v4020_v8  ;;  %v3667_v36 = vld [vmem:[%s4725_s20] ss:$0 sm:$0xff] }
 0xcfa   : > { %v3856_v50 = vpop.f32.mrf.mxu0  ;;  %v3938_v47 = vld [vmem:[%s4728_s23] sm:$0xff]  }
 0xcfb   : > { %v3120_v51 = vrot.slane %v3112_v40, %v4262_v49  ;;  %v3127_v54 = vrot.slane %v3113_v41, %v4262_v49  ;;  %v3136_v55 = vrot.slane %v3128_v42, %v4262_v49  ;;  %v3143_v22 = vrot.slane %v3129_v43, %v4262_v49  ;;  %v3935_v41 = vld [vmem:[%s4728_s23 + $0x18] sm:$0xff]   ;;  %v3936_v42 = vld [vmem:[%s4728_s23 + $0x10] sm:$0xff]   ;;  %v3937_v43 = vld [vmem:[%s4728_s23 + $0x8] sm:$0xff]  }
 0xcfd   : > { %v3148_v56 = vcombine.low %v3120_v51, %v3127_v54  ;;  %v3660_v57 = vcombine.high %v3120_v51, %v3127_v54  ;;  %v3164_v58 = vcombine.low %v3136_v55, %v3143_v22  ;;  %v3661_v59 = vcombine.high %v3136_v55, %v3143_v22 }
 0xcff   : > { %v3155_v52 = vrot.slane %v3148_v56, %v4252_v39  ;;  %v3163_v53 = vrot.slane %v3660_v57, %v4252_v39  ;;  %v3171_v62 = vrot.slane %v3164_v58, %v4252_v39  ;;  %v3179_v27 = vrot.slane %v3661_v59, %v4252_v39 }
 0xd01   : > { %v3181_v1 = vcombine.high %v3155_v52, %v3163_v53  ;;  %v3197_v46 = vcombine.high %v3171_v62, %v3179_v27  ;;  %v3180_v29 = vcombine.low %v3155_v52, %v3163_v53  ;;  %v3196_v2 = vcombine.low %v3171_v62, %v3179_v27 }
 0xd03   : > { %v3195_v3 = vrot.slane %v3181_v1, %v4262_v49  ;;  %v3211_v4 = vrot.slane %v3197_v46, %v4262_v49  ;;  %v3188_v5 = vrot.slane %v3180_v29, %v4262_v49  ;;  %v3204_v6 = vrot.slane %v3196_v2, %v4262_v49 }
 0xd05   : > { %v3214_v26 = vcombine.low %v3195_v3, %v3211_v4  ;;  %v3213_v28 = vcombine.high %v3188_v5, %v3204_v6  ;;  %v3212_v61 = vcombine.low %v3188_v5, %v3204_v6  ;;  %v3215_v39 = vcombine.high %v3195_v3, %v3211_v4 }
 0xd07   : > { %3221 = vrot.lane.b32.xlu1 %v3214_v26, %s4763_s8  ;;  %3217 = vrot.lane.b32.xlu0 %v3213_v28, %s4764_s4 }
 0xd0b   : > { %3225 = vrot.lane.b32.xlu1 %v3215_v39, %s4765_s3 }
 0xd79   : > { %v3222_v44 = vpop.permute.xlu1 %3221  ;;  %v3218_v45 = vpop.permute.xlu0 %3217 }
 0xd7a   : > { %v3228_v11 = vsel %vm1388_vm2, %v3212_v61, %v3218_v45  ;;  %v4032_v61 = vmov -1.0  }
 0xd7b   : > { %v3229_v13 = vsel %vm1963_vm4, %v3228_v11, %v3222_v44 }
 0xd7d   : > { %v3226_v12 = vpop.permute.xlu1 %3225 }
 0xd7e   : > { %v3230_v14 = vsel %vm1965_vm5, %v3229_v13, %v3226_v12 }
 0xd7f   : > { %v3231_v49 = vpack.c.bf16 %v3230_v14, %v3230_v14  ;;  %v3672_v14 = vld [vmem:[#allocation2] ss:$0 sm:$0xff] }
 0xd81   : > { %3868 = vmatmul.mubr.msk.bf16.vlgmr.msra.gmra.mxu0 %vm833_vm0, %v3231_v49 }
 0xd82   : > { %3887 = vmatprep.mubr.msk.bf16.mxu0 %vm4021_vm1, %v4020_v8  ;;  %3880 = vmatpush3.bf16.msra.mxu0 %v3935_v41 }
 0xd83   : > { %3881 = vmatprep.subr.bf16.mxu0 %v4020_v8 }
 0xd86   : > { %3882 = vmatpush3.bf16.msra.mxu0 %v3936_v42 }
 0xd87   : > { %3883 = vmatprep.subr.bf16.mxu0 %v4020_v8 }
 0xd8a   : > { %3884 = vmatpush3.bf16.msra.mxu0 %v3937_v43 }
 0xd8b   : > { %3885 = vmatprep.subr.bf16.mxu0 %v4020_v8 }
 0xd8e   : > { %3886 = vmatpush3.bf16.msra.mxu0 %v3938_v47 }
 0xe41   : > { %v3287_v0 = vpop.f32.mrf.mxu0 }
 0xe42   : > { %v3288_v15 = vadd.f32 %v3662_v63, %v3287_v0 }
 0xe43   : > { %v3869_v16 = vpop.f32.mrf.mxu0 }
 0xe44   : > { %v4658_v17 = vadd.f32 %v3288_v15, %v4420_v10  ;;  %v3934_v10 = vld [vmem:[%s4726_s21] sm:$0xff]  }
 0xe45   : > { %v3290_v18 = vpop.f32.mrf.mxu0  ;;  %3874 = vmatpush3.bf16.msra.mxu1 %v3934_v10 }
 0xe46   : > { %v3296_v7 = vsel %vm833_vm0, %v4658_v17, 0.0 }
 0xe47   : > { %3297 = vadd.xlane.f32.xlu0 %v3296_v7  ;;  %v3870_v19 = vpop.f32.mrf.mxu0 }
 0xed0   : > { %v3298_v9 = vpop.xlane.xlu0 %3297 }
 0xed1   : > { %v3299_v20 = vmul.f32 0.03125, %v3298_v9 }
 0xed3   : > { %v3300_v21 = vsub.f32 %v4658_v17, %v3299_v20 }
 0xed5   : > { %v3301_v23 = vmul.f32 %v3300_v21, %v3300_v21 }
 0xed7   : > { %v3302_v24 = vsel %vm833_vm0, %v3301_v23, 0.0 }
 0xed8   : > { %3303 = vadd.xlane.f32.xlu1 %v3302_v24 }
 0xf61   : > { %v3304_v30 = vpop.xlane.xlu1 %3303 }
 0xf62   : > { %v3305_v31 = vmul.f32 0.03125, %v3304_v30 }
 0xf64   : > { %v3306_v32 = vadd.f32 1e-05, %v3305_v31 }
 0xf66   : > { %3975 = vrsqrt.f32 %v3306_v32 }
 0xf73   : > { %v3976_v33 = vpop.eup %3975 }
 0xf74   : > { %v3308_v35 = vmul.f32 %v3976_v33, %v3300_v21 }
 0xf76   : > { %v3315_v37 = vmul.f32 %v3666_v34, %v3308_v35 }
 0xf78   : > { %v3322_v38 = vadd.f32 %v3667_v36, %v3315_v37 }
 0xf7a   : > { %v3337_v40 = vpack.c.bf16 %v3322_v38, %v3322_v38 }
 0xf7c   : > { %3876 = vmatmul.mubr.msk.bf16.vlgmr.msra.gmra.mxu1 %vm833_vm0, %v3337_v40 }
0x103c   : > { %v3393_v50 = vpop.f32.mrf.mxu1 }
0x103d   : > { %v3394_v51 = vadd.f32 %v3668_v48, %v3393_v50 }
0x103e   : > { %v3877_v54 = vpop.f32.mrf.mxu1 }
0x103f   : > { %v3400_v55 = vmul.f32 0.70710677, %v3394_v51  ;;  %v3399_v45 = vmul.f32 0.5, %v3394_v51 }
0x1040   : > { %v3396_v22 = vpop.f32.mrf.mxu1 }
0x1041   : > { %v3403_v56 = vand.u32 2147483647, %v3400_v55  ;;  %vm3401_vm6 = vcmp.ge.f32.partialorder %v3400_v55, 0.0 }
0x1042   : > { %v3878_v57 = vpop.f32.mrf.mxu1  ;;  %v3402_v39 = vsel %vm3401_vm6, 1.0, %v4032_v61 }
0x1043   : > { %v3404_v58 = vmul.f32 0.3275911, %v3403_v56  ;;  %v3417_v8 = vsub.f32 0.0, %v3403_v56 }
0x1045   : > { %v3405_v59 = vadd.f32 1.0, %v3404_v58  ;;  %v3418_v60 = vmul.f32 %v3417_v8, %v3403_v56 }
0x1047   : > { %3977 = vrcp.f32 %v3405_v59  ;;  %v3419_v62 = vmul.f32 1.442695, %v3418_v60 }
0x1049   : > { %3979 = vpow2.f32 %v3419_v62 }
0x1054   : > { %v3978_v52 = vpop.eup %3977 }
0x1055   : > { %v3408_v53 = vmul.f32 1.0614054, %v3978_v52 }
0x1056   : > { %v3980_v6 = vpop.eup %3979 }
0x1057   : > { %v3409_v27 = vadd.f32 -1.4531521, %v3408_v53 }
0x1059   : > { %v3410_v1 = vmul.f32 %v3978_v52, %v3409_v27 }
0x105b   : > { %v3411_v46 = vadd.f32 1.4214138, %v3410_v1 }
0x105d   : > { %v3412_v29 = vmul.f32 %v3978_v52, %v3411_v46 }
0x105f   : > { %v3413_v2 = vadd.f32 -0.28449672, %v3412_v29 }
0x1061   : > { %v3414_v3 = vmul.f32 %v3978_v52, %v3413_v2 }
0x1063   : > { %v3415_v4 = vadd.f32 0.2548296, %v3414_v3 }
0x1065   : > { %v3416_v5 = vmul.f32 %v3978_v52, %v3415_v4 }
0x1067   : > { %v3421_v26 = vmul.f32 %v3980_v6, %v3416_v5 }
0x1069   : > { %v3422_v28 = vsub.f32 1.0, %v3421_v26 }
0x106b   : > { %v3423_v44 = vmul.f32 %v3422_v28, %v3402_v39 }
0x106d   : > { %v3424_v11 = vadd.f32 1.0, %v3423_v44 }
0x106f   : > { %v3425_v12 = vmul.f32 %v3424_v11, %v3399_v45 }
0x1071   : > { %v3426_v13 = vpack.c.bf16 %v3425_v12, %v3425_v12 }
0x1073   : > { %3888 = vmatmul.mubr.msk.bf16.vlgmr.msra.gmra.mxu0 %vm3457_vm7, %v3426_v13 }
0x1133   : > { %v3495_v49 = vpop.f32.mrf.mxu0 }
0x1134   : > { %v3496_v63 = vadd.f32 %v3672_v14, %v3495_v49 }
0x1135   : > { %v3889_v0 = vpop.f32.mrf.mxu0 }
0x1136   : > { %v3501_v15 = vadd.f32 %v3496_v63, %v4658_v17 }
0x1137   : > { %v3498_v16 = vpop.f32.mrf.mxu0 }
0x1138   : > { %3502 = vst.msk [vmem:[%s817_s26] sm:$0xff] %vm833_vm0, %v3501_v15 }
0x1139   : > { %v3890_v18 = vpop.f32.mrf.mxu0 }
0x113a PF: > { %s36_s29 = sadd.s32 1, %s4017_s29  }
0x113b   : > { %p33_p1 = scmp.ge.s32.totalorder %s36_s29, 4  }
0x113d   :  { %35 = sbr.rel (!%p33_p1) target bundleno = 12 (0xc), region = 164 }
0x1142   :  { %3522 = vsyncpa [#allocation3], 1 }
0x1143   :  { %3524 = vsyncpa [#allocation3 + $0x1], 1 }

// kernel: seq2seq_forward.10
= control target key start
LH: loop header
LB: loop body
LE: loop exit
PB: predicated region body
PF: predicated region fallthrough
CT: control target
= control target key end

     0   :  { %s4872_s0 = inlined_call_operand.vmem [shape: f32[2,8,32], index: 0, kind: input, shape index: {}]   ;;  %s4873_s1 = inlined_call_operand.vmem [shape: f32[2,8,32], index: 1, kind: input, shape index: {}]   ;;  %s4874_s2 = inlined_call_operand.vmem [shape: f32[8,8], index: 2, kind: input, shape index: {}]   ;;  %s4875_s3 = inlined_call_operand.vmem [shape: f32[2,1,8], index: 3, kind: input, shape index: {}]   ;;  %s4876_s4 = inlined_call_operand.vmem [shape: f32[2,1,8], index: 4, kind: input, shape index: {}]   ;;  %s4877_s5 = inlined_call_operand.vmem [shape: f32[1,32], index: 5, kind: input, shape index: {}]   ;;  %s4878_s6 = inlined_call_operand.vmem [shape: f32[1,32], index: 6, kind: input, shape index: {}]   ;;  %s4879_s7 = inlined_call_operand.vmem [shape: bf16[32,96], index: 7, kind: input, shape index: {}]   ;;  %s4880_s8 = inlined_call_operand.vmem [shape: f32[1,96], index: 8, kind: input, shape index: {}]   ;;  %s4881_s9 = inlined_call_operand.vmem [shape: bf16[32,32], index: 9, kind: input, shape index: {}]   ;;  %s4882_s10 = inlined_call_operand.vmem [shape: f32[1,32], index: 10, kind: input, shape index: {}]   ;;  %s4883_s11 = inlined_call_operand.vmem [shape: f32[1,32], index: 11, kind: input, shape index: {}]   ;;  %s4884_s12 = inlined_call_operand.vmem [shape: f32[1,32], index: 12, kind: input, shape index: {}]   ;;  %s4885_s13 = inlined_call_operand.vmem [shape: bf16[32,32], index: 13, kind: input, shape index: {}]   ;;  %s4886_s14 = inlined_call_operand.vmem [shape: f32[1,32], index: 14, kind: input, shape index: {}]   ;;  %s4887_s15 = inlined_call_operand.vmem [shape: bf16[32,64], index: 15, kind: input, shape index: {}]   ;;  %s4888_s16 = inlined_call_operand.vmem [shape: f32[1,64], index: 16, kind: input, shape index: {}]   ;;  %s4889_s17 = inlined_call_operand.vmem [shape: bf16[32,32], index: 17, kind: input, shape index: {}]   ;;  %s4890_s18 = inlined_call_operand.vmem [shape: f32[1,32], index: 18, kind: input, shape index: {}]   ;;  %s4891_s19 = inlined_call_operand.vmem [shape: f32[1,32], index: 19, kind: input, shape index: {}]   ;;  %s4892_s20 = inlined_call_operand.hbm [shape: f32[1,32], index: 20, kind: input, shape index: {}]   ;;  %s4893_s21 = inlined_call_operand.vmem [shape: bf16[32,64], index: 21, kind: input, shape index: {}]   ;;  %s4894_s22 = inlined_call_operand.hbm [shape: f32[1,64], index: 22, kind: input, shape index: {}]   ;;  %s4895_s23 = inlined_call_operand.vmem [shape: bf16[64,32], index: 23, kind: input, shape index: {}]   ;;  %s4896_s24 = inlined_call_operand.hbm [shape: f32[1,32], index: 24, kind: input, shape index: {}]   ;;  %s4897_s25 = inlined_call_operand.vmem [shape: f32[2,8,32], index: 25, kind: output, shape index: {}]  }
   0x1   :  { %4908 = sst [smem:[#allocation9_spill]] %s4872_s0 }
   0x2   :  { %4909 = sst [smem:[#allocation10_spill]] %s4873_s1 }
   0x3   :  { %4910 = sst [smem:[#allocation11_spill]] %s4874_s2 }
   0x4   :  { %4911 = sst [smem:[#allocation12_spill]] %s4875_s3 }
   0x5   :  { %4912 = sst [smem:[#allocation13_spill]] %s4876_s4 }
   0x6   :  { %4913 = sst [smem:[#allocation14_spill]] %s4877_s5 }
   0x7   :  { %4914 = sst [smem:[#allocation15_spill]] %s4878_s6 }
   0x8   :  { %4915 = sst [smem:[#allocation16_spill]] %s4879_s7 }
   0x9   :  { %4916 = sst [smem:[#allocation17_spill]] %s4880_s8 }
   0xa   :  { %4917 = sst [smem:[#allocation18_spill]] %s4881_s9 }
   0xb   :  { %30 = vsyncpa [#allocation3], 0 }
   0xc   :  { %31 = vsyncpa [#allocation5], 0  ;;  %s4289_s29 = smov 0  }
   0xd LB: > { %s4295_s2 = sadd.s32 4294967295, %s4141_s29   ;;  %p3644_p0 = scmp.ge.s32.totalorder %s4141_s29, 1  ;;  %s4141_s29 = sphi %s4289_s29, %s37_s29  }
   0xe   : > { %p613_p1 = scmp.lt.s32.totalorder %s4141_s29, 3  ;;  %p4900_p2 = scmp.eq.s32.totalorder %s4295_s2, 0 }
   0xf   : > { %s4143_s30 = smov [#allocation4]   ;;  %s4144_s3 = smov [#allocation2]  }
  0x10   : > { %p4300_p3 = pnand %p3644_p0, %p613_p1  ;;  %s688_s7 = sshll.u32 %s4143_s30, 4  ;;  %s689_s7 = int_to_ptr.vmem [resolvable:$true] %s688_s7 }
  0x11   : > { %s674_s26 = sshll.u32 %s4144_s3, 4  ;;  %s4145_s1 = smov [#allocation6]   ;;  %s675_s26 = int_to_ptr.vmem [resolvable:$true] %s674_s26 }
  0x12   : > { %p3951_p4 = pneg %p4300_p3  ;;  %s702_s8 = sshll.u32 %s4145_s1, 4  ;;  %s4312_s8 = int_to_ptr.vmem [resolvable:$true] %s702_s8 }
  0x13   : > { %s4060_s4 = scalar_lea.vmem %s689_s7, 16  ;;  %s4067_s28 = scalar_lea.vmem %s689_s7, 32 }
  0x14   : > { %p4308_p5 = pnand %p4900_p2, %p3951_p4  ;;  %p4061_p7 = scmp.ne.s32.totalorder %s689_s7, %s4060_s4 }
  0x15   : > { %p4068_p10 = scmp.lt.s32.totalorder %s689_s7, %s689_s7  ;;  %p4069_p11 = scmp.lt.s32.totalorder %s4067_s28, %s4060_s4 }
  0x16   : > { %p4051_p6 = pneg %p4308_p5 }
  0x17   : > { %p4070_p12 = por %p4069_p11, %p4068_p10 }
  0x18   : > { %p4063_p8 = pnand %p4061_p7, %p4051_p6 }
  0x1a   : > { %p4064_p9 = pneg %p4063_p8 }
  0x1c   : > { %p4071_p13 = pnand %p4070_p12, %p4064_p9 }
  0x1e   : > { %4074 = shalt.err (!%p4071_p13)
}
  0x1f   : > { %3957 = dma.hbm_to_vmem [thread:$0]  (!%p4308_p5), %s4894_s22, 16, %s689_s7, [#allocation5]  }
  0x20   : > { %s4086_s0 = scalar_lea.vmem %s675_s26, 16  ;;  %s4093_s30 = scalar_lea.vmem %s675_s26, 32 }
  0x21   : > { %p4087_p0 = scmp.ne.s32.totalorder %s675_s26, %s4086_s0  ;;  %p4094_p7 = scmp.lt.s32.totalorder %s675_s26, %s675_s26 }
  0x22   : > { %p4095_p8 = scmp.lt.s32.totalorder %s4093_s30, %s4086_s0 }
  0x23   : > { %p4089_p1 = pnand %p4087_p0, %p4051_p6 }
  0x24   : > { %p4096_p2 = por %p4095_p8, %p4094_p7 }
  0x25   : > { %p4090_p4 = pneg %p4089_p1 }
  0x27   : > { %p4097_p10 = pnand %p4096_p2, %p4090_p4 }
  0x29   : > { %4100 = shalt.err (!%p4097_p10)
}
  0x2a   : > { %3954 = dma.hbm_to_vmem [thread:$0]  (!%p4308_p5), %s4892_s20, 16, %s675_s26, [#allocation3]  }
  0x2b   : > { %s4112_s7 = scalar_lea.vmem %s4312_s8, 16  ;;  %s4119_s4 = scalar_lea.vmem %s4312_s8, 32 }
  0x2c   : > { %p4113_p9 = scmp.ne.s32.totalorder %s4312_s8, %s4112_s7  ;;  %p4120_p2 = scmp.lt.s32.totalorder %s4312_s8, %s4312_s8 }
  0x2d   : > { %p4121_p13 = scmp.lt.s32.totalorder %s4119_s4, %s4112_s7 }
  0x2e   : > { %p4115_p11 = pnand %p4113_p9, %p4051_p6 }
  0x2f   : > { %p4122_p0 = por %p4121_p13, %p4120_p2 }
  0x30   : > { %p4116_p12 = pneg %p4115_p11 }
  0x32   : > { %p4123_p1 = pnand %p4122_p0, %p4116_p12 }
  0x34   : > { %4126 = shalt.err (!%p4123_p1)
}
  0x35   : > { %3960 = dma.hbm_to_vmem [thread:$0]  (!%p4308_p5), %s4896_s24, 16, %s4312_s8, [#allocation5]  }
  0x36   : > { %741 = sbr.rel (%p4300_p3) target bundleno = 4437 (0x1155), region = 120  ;;  %p4920_p6 = scmp.eq.s32.totalorder (!%p4300_p3), %s4295_s2, 0 }
  0x3b   : > { %4132 = dma.done.wait (%p4920_p6), [#allocation3], 16   ;;  %p4921_p4 = pmov %p4920_p6 }
  0x3d   : > { %4134 = vsyncadd (%p4921_p4), [#allocation3], 4294967280  ;;  %p4922_p7 = pmov %p4921_p4 }
  0x3e   : > { %p4923_p8 = pmov %p4921_p4 }
  0x3f   : > { %4136 = dma.done.wait (%p4922_p7), [#allocation5], 32  }
  0x40   : > { %4138 = vsyncadd (%p4923_p8), [#allocation5], 4294967264  ;;  %p825_p10 = scmp.lt.s32.totalorder %s4295_s2, 1  ;;  %s4924_s27 = sld [smem:[#allocation9_spill]]  ;;  %vm858_vm0 = vcmask 261120   ;;  %v4146_v8 = vmov 0.0   ;;  %v974_v31 = vlaneseq }
  0x41   : > { %s4925_s3 = sld [smem:[#allocation16_spill]]  ;;  %3783 = vmatprep.subr.bf16.mxu1 %v4146_v8  ;;  %vm4147_vm1 = vmmov 0   ;;  %3797 = vmatprep.subr.bf16.mxu0 %v4146_v8  ;;  %s4906_s1 = smov 104   ;;  %v4152_v29 = vmov 1983009808   ;;  %vm1413_vm2 = vcmask 64512  }
  0x42   : > { %s4940_s2 = smov (!%p825_p10, %s4295_s2), 1  ;;  %3787 = vmatprep.mubr.msk.bf16.mxu1 %vm4147_vm1, %v4146_v8  ;;  %3799 = vmatprep.mubr.msk.bf16.mxu0 %vm4147_vm1, %v4146_v8  ;;  %s4926_s9 = sld [smem:[#allocation14_spill]]  ;;  %v972_v30 = vunpack.c.l.s4 %v4152_v29  ;;  %v975_v33 = vshrl.u32 %v974_v31, 7  ;;  %v4153_v35 = vmov 1934713408   ;;  %vm1657_vm3 = vcmask 1043456  }
  0x43   : > { %s4361_s6 = sshll.u32 %s4940_s2, 3  ;;  %s4928_s30 = sld [smem:[#allocation17_spill]]  ;;  %v1004_v36 = vunpack.c.l.s4 %v4153_v35  ;;  %vm1988_vm4 = vcmask 130048   ;;  %vm1990_vm5 = vcmask 195584   ;;  %vm3482_vm7 = vcmask 523264  }
  0x44   : > { %s4149_s7 = smov 120   ;;  %s4150_s4 = smov 112   ;;  %v973_v32 = vunpack.c.0.s8 %v972_v30 }
  0x45   : > { %s4904_s28 = smov 96   ;;  %v1005_v43 = vunpack.c.0.s8 %v1004_v36  ;;  %s4929_s8 = sld [smem:[#allocation12_spill]] }
  0x46   : > { %s828_s5 = scalar_lea.vmem %s4924_s27, %s4361_s6  ;;  %s4927_s27 = sld [smem:[#allocation15_spill]]  ;;  %v4425_v39 = vsub.s32 %v973_v32, %v975_v33 }
  0x47   : > { %v4367_v0 = vld [vmem:[%s828_s5] sm:$0xff]  ;;  %v3991_v7 = vld [vmem:[%s4925_s3 + $0x8] sm:$0xff]   ;;  %v4435_v49 = vsub.s32 %v1005_v43, %v975_v33  ;;  %s4901_s26 = smov 24   ;;  %s4934_s0 = sld [smem:[#allocation13_spill]] }
  0x48   : > { %v859_v1 = vsel %vm858_vm0, %v4367_v0, 0.0  ;;  %3784 = vmatpush3.bf16.msra.mxu1 %v3991_v7  ;;  %v3992_v9 = vld [vmem:[%s4925_s3] sm:$0xff]  }
  0x49   : > { %860 = vadd.xlane.f32.xlu0 %v859_v1  ;;  %3785 = vmatprep.subr.bf16.mxu1 %v4146_v8  ;;  %v3657_v14 = vld [vmem:[%s4926_s9] ss:$0 sm:$0xff]  ;;  %s4154_s9 = smov 64  }
  0x4a   : > { %v3659_v20 = vld [vmem:[%s4928_s30] ss:$0 sm:$0xff]  ;;  %s4930_s30 = sld [smem:[#allocation11_spill]] }
  0x4c   : > { %3786 = vmatpush3.bf16.msra.mxu1 %v3992_v9  ;;  %v3658_v16 = vld [vmem:[%s4927_s27] ss:$0 sm:$0xff]  ;;  %s835_s27 = scalar_lea.vmem %s4929_s8, %s4940_s2  ;;  %s4933_s8 = smov 104  }
  0x4d   : > { %3791 = vmatprep.subr.bf16.mxu1 %v4146_v8 }
  0xd2   : > { %v861_v2 = vpop.xlane.xlu0 %860 }
  0xd3   : > { %v863_v3 = vmul.f32 0.03125, %v861_v2 }
  0xd5   : > { %v864_v4 = vsub.f32 %v4367_v0, %v863_v3 }
  0xd7   : > { %v865_v5 = vmul.f32 %v864_v4, %v864_v4 }
  0xd9   : > { %v866_v6 = vsel %vm858_vm0, %v865_v5, 0.0 }
  0xda   : > { %867 = vadd.xlane.f32.xlu0 %v866_v6 }
 0x163   : > { %v868_v10 = vpop.xlane.xlu0 %867 }
 0x164   : > { %v869_v11 = vmul.f32 0.03125, %v868_v10 }
 0x166   : > { %v870_v12 = vadd.f32 1e-05, %v869_v11 }
 0x168   : > { %4007 = vrsqrt.f32 %v870_v12 }
 0x175   : > { %v4008_v13 = vpop.eup %4007 }
 0x176   : > { %v872_v15 = vmul.f32 %v4008_v13, %v864_v4 }
 0x178   : > { %v879_v17 = vmul.f32 %v3657_v14, %v872_v15 }
 0x17a   : > { %v886_v18 = vadd.f32 %v3658_v16, %v879_v17 }
 0x17c   : > { %v897_v19 = vpack.c.bf16 %v886_v18, %v886_v18 }
 0x17e   : > { %3788 = vmatmul.mubr.msk.bf16.vlgmr.msra.gmra.mxu1 %vm858_vm0, %v897_v19 }
 0x17f   : > { %3793 = vmatprep.mubr.msk.bf16.mxu1 %vm4147_vm1, %v4146_v8 }
 0x23e   : > { %v953_v21 = vpop.f32.mrf.mxu1 }
 0x23f   : > { %v4399_v22 = vadd.f32 %v3659_v20, %v953_v21 }
 0x240   : > { %v3789_v23 = vpop.f32.mrf.mxu1 }
 0x241   : > { %966 = vrot.lane.b32.xlu0 %v4399_v22, %s4906_s1  ;;  %960 = vrot.lane.b32.xlu1 %v4399_v22, %s4149_s7 }
 0x242   : > { %v956_v24 = vpop.f32.mrf.mxu1 }
 0x244   : > { %v3790_v25 = vpop.f32.mrf.mxu1 }
 0x245   : > { %963 = vrot.lane.b32.xlu1 %v4399_v22, %s4150_s4 }
 0x249   : > { %1109 = vrot.lane.b32.xlu1 %v4399_v22, %s4904_s28 }
 0x2b3   : > { %v4409_v26 = vpop.permute.xlu1 %960  ;;  %v4417_v28 = vpop.permute.xlu0 %966 }
 0x2b4   : > { %1111 = vrot.lane.b32.xlu1 %v4409_v26, %s4904_s28  ;;  %v985_v40 = vcombine.low %v4409_v26, %v4417_v28  ;;  %v986_v41 = vcombine.high %v4409_v26, %v4417_v28 }
 0x2b6   : > { %v993_v46 = vrot.slane %v985_v40, %v4425_v39  ;;  %v1000_v47 = vrot.slane %v986_v41, %v4425_v39 }
 0x2b7   : > { %v4413_v27 = vpop.permute.xlu1 %963 }
 0x2b8   : > { %1113 = vrot.lane.b32.xlu1 %v4413_v27, %s4904_s28  ;;  %v969_v37 = vcombine.low %v4399_v22, %v4413_v27  ;;  %v970_v38 = vcombine.high %v4399_v22, %v4413_v27 }
 0x2ba   : > { %v977_v44 = vrot.slane %v969_v37, %v4425_v39  ;;  %v984_v45 = vrot.slane %v970_v38, %v4425_v39 }
 0x2bb   : > { %v1110_v34 = vpop.permute.xlu1 %1109 }
 0x2bc   : > { %1115 = vrot.lane.b32.xlu1 %v4417_v28, %s4904_s28  ;;  %v1001_v50 = vcombine.low %v977_v44, %v993_v46  ;;  %v1002_v51 = vcombine.high %v977_v44, %v993_v46  ;;  %v1017_v52 = vcombine.low %v984_v45, %v1000_v47  ;;  %v1018_v53 = vcombine.high %v984_v45, %v1000_v47 }
 0x2be   : > { %v1009_v59 = vrot.slane %v1001_v50, %v4435_v49  ;;  %v1016_v60 = vrot.slane %v1002_v51, %v4435_v49  ;;  %v1025_v61 = vrot.slane %v1017_v52, %v4435_v49  ;;  %v1032_v62 = vrot.slane %v1018_v53, %v4435_v49 }
 0x2c0   : > { %v1037_v9 = vcombine.low %v1009_v59, %v1016_v60  ;;  %v3663_v10 = vcombine.high %v1009_v59, %v1016_v60  ;;  %v1053_v11 = vcombine.low %v1025_v61, %v1032_v62  ;;  %v3664_v12 = vcombine.high %v1025_v61, %v1032_v62 }
 0x2c2   : > { %v1044_v21 = vrot.slane %v1037_v9, %v4425_v39  ;;  %v1052_v23 = vrot.slane %v3663_v10, %v4425_v39  ;;  %v1060_v24 = vrot.slane %v1053_v11, %v4425_v39  ;;  %v1068_v25 = vrot.slane %v3664_v12, %v4425_v39  ;;  %v846_v9 = vld [vmem:[%s4930_s30] sm:$0xff]  ;;  %s4903_s30 = smov 16  }
 0x2c3   : > { %v3656_v10 = vld [vmem:[%s835_s27] ss:$0 sm:$0xff]  ;;  %s4931_s27 = sld [smem:[#allocation18_spill]] }
 0x2c4   : > { %v1069_v40 = vcombine.low %v1044_v21, %v1052_v23  ;;  %v1085_v41 = vcombine.low %v1060_v24, %v1068_v25  ;;  %v854_v11 = vadd.f32 %v3656_v10, %v846_v9 }
 0x2c6   : > { %v1093_v50 = vrot.slane %v1085_v41, %v4435_v49 }
 0x326   : > { %v1112_v42 = vpop.permute.xlu1 %1111 }
 0x32a   : > { %v1114_v48 = vpop.permute.xlu1 %1113 }
 0x32b   : > { %v1121_v54 = vcombine.low %v1110_v34, %v1114_v48  ;;  %v1122_v55 = vcombine.high %v1110_v34, %v1114_v48  ;;  %v1077_v48 = vrot.slane %v1069_v40, %v4435_v49 }
 0x32d   : > { %v1129_v63 = vrot.slane %v1121_v54, %v4425_v39  ;;  %v1136_v1 = vrot.slane %v1122_v55, %v4425_v39  ;;  %v1070_v55 = vcombine.high %v1044_v21, %v1052_v23 }
 0x32e   : > { %v1116_v56 = vpop.permute.xlu1 %1115 }
 0x32f   : > { %v1137_v57 = vcombine.low %v1112_v42, %v1116_v56  ;;  %v1138_v58 = vcombine.high %v1112_v42, %v1116_v56  ;;  %v1101_v56 = vcombine.low %v1077_v48, %v1093_v50 }
 0x331   : > { %v1145_v2 = vrot.slane %v1137_v57, %v4425_v39  ;;  %v1152_v3 = vrot.slane %v1138_v58, %v4425_v39  ;;  %v1102_v57 = vcombine.high %v1077_v48, %v1093_v50  ;;  %v1086_v58 = vcombine.high %v1060_v24, %v1068_v25 }
 0x332   : > { %v1105_v61 = vpack.c.bf16 %v1101_v56, %v1101_v56 }
 0x333   : > { %v1153_v4 = vcombine.low %v1129_v63, %v1145_v2  ;;  %v1154_v5 = vcombine.high %v1129_v63, %v1145_v2  ;;  %v1169_v6 = vcombine.low %v1136_v1, %v1152_v3  ;;  %v1170_v7 = vcombine.high %v1136_v1, %v1152_v3 }
 0x334   : > { %v1106_v62 = vpack.c.bf16 %v1102_v57, %v1102_v57  ;;  %v1084_v63 = vrot.slane %v1070_v55, %v4435_v49  ;;  %v1100_v1 = vrot.slane %v1086_v58, %v4435_v49 }
 0x335   : > { %v1161_v13 = vrot.slane %v1153_v4, %v4435_v49  ;;  %v1168_v14 = vrot.slane %v1154_v5, %v4435_v49  ;;  %v1177_v15 = vrot.slane %v1169_v6, %v4435_v49  ;;  %v1184_v16 = vrot.slane %v1170_v7, %v4435_v49 }
 0x336   : > { %v1103_v4 = vcombine.low %v1084_v63, %v1100_v1  ;;  %v1104_v5 = vcombine.high %v1084_v63, %v1100_v1 }
 0x337   : > { %v1189_v17 = vcombine.low %v1161_v13, %v1168_v14  ;;  %v3665_v18 = vcombine.high %v1161_v13, %v1168_v14  ;;  %v1205_v19 = vcombine.low %v1177_v15, %v1184_v16  ;;  %v3666_v20 = vcombine.high %v1177_v15, %v1184_v16 }
 0x338   : > { %v1107_v6 = vpack.c.bf16 %v1103_v4, %v1103_v4  ;;  %v1108_v7 = vpack.c.bf16 %v1104_v5, %v1104_v5 }
 0x339   : > { %v1196_v29 = vrot.slane %v1189_v17, %v4425_v39  ;;  %v1204_v30 = vrot.slane %v3665_v18, %v4425_v39  ;;  %v1212_v31 = vrot.slane %v1205_v19, %v4425_v39  ;;  %v1220_v32 = vrot.slane %v3666_v20, %v4425_v39 }
 0x33b   : > { %v1221_v33 = vcombine.low %v1196_v29, %v1204_v30  ;;  %v1237_v34 = vcombine.low %v1212_v31, %v1220_v32  ;;  %v1222_v35 = vcombine.high %v1196_v29, %v1204_v30  ;;  %v1238_v36 = vcombine.high %v1212_v31, %v1220_v32 }
 0x33d   : > { %v1229_v37 = vrot.slane %v1221_v33, %v4435_v49  ;;  %v1245_v38 = vrot.slane %v1237_v34, %v4435_v49  ;;  %v1236_v44 = vrot.slane %v1222_v35, %v4435_v49  ;;  %v1252_v45 = vrot.slane %v1238_v36, %v4435_v49 }
 0x33f   : > { %v1253_v42 = vcombine.low %v1229_v37, %v1245_v38  ;;  %v1254_v43 = vcombine.high %v1229_v37, %v1245_v38  ;;  %v1255_v53 = vcombine.low %v1236_v44, %v1252_v45  ;;  %v1256_v54 = vcombine.high %v1236_v44, %v1252_v45 }
 0x341   : > { %v1257_v46 = vpack.c.bf16 %v1253_v42, %v1253_v42  ;;  %v1258_v47 = vpack.c.bf16 %v1254_v43, %v1254_v43  ;;  %v1259_v59 = vpack.c.bf16 %v1255_v53, %v1255_v53  ;;  %v1260_v60 = vpack.c.bf16 %v1256_v54, %v1256_v54 }
 0x343   : > { %v1418_v51 = vsel %vm1413_vm2, %v1257_v46, 0  ;;  %v1464_v52 = vsel %vm1413_vm2, %v1258_v47, 0  ;;  %v1510_v2 = vsel %vm1413_vm2, %v1259_v59, 0  ;;  %v1556_v3 = vsel %vm1413_vm2, %v1260_v60, 0 }
 0x344   : > { %3792 = vmatpush3.bf16.xpose.msra.mxu1 %v1418_v51  ;;  %3798 = vmatpush3.bf16.xpose.msra.mxu0 %v1464_v52 }
 0x345   : > { %3803 = vmatprep.subr.bf16.mxu1 %v4146_v8  ;;  %3809 = vmatprep.subr.bf16.mxu0 %v4146_v8 }
 0x34b   : > { %3794 = vmatmul.mubr.msk.bf16.vlgmr.msra.gmra.mxu1 %vm1413_vm2, %v1105_v61  ;;  %3800 = vmatmul.mubr.msk.bf16.vlgmr.msra.gmra.mxu0 %vm1413_vm2, %v1106_v62 }
 0x34c   : > { %3804 = vmatpush3.bf16.xpose.msra.mxu1 %v1510_v2  ;;  %3810 = vmatpush3.bf16.xpose.msra.mxu0 %v1556_v3 }
 0x34d   : > { %3805 = vmatprep.mubr.msk.bf16.mxu1 %vm4147_vm1, %v4146_v8  ;;  %3811 = vmatprep.mubr.msk.bf16.mxu0 %vm4147_vm1, %v4146_v8 }
 0x34e   : > { %3815 = vmatprep.subr.bf16.mxu1 %v4146_v8  ;;  %3821 = vmatprep.subr.bf16.mxu0 %v4146_v8 }
 0x353   : > { %3806 = vmatmul.mubr.msk.bf16.vlgmr.msra.gmra.mxu1 %vm1413_vm2, %v1107_v6  ;;  %3812 = vmatmul.mubr.msk.bf16.vlgmr.msra.gmra.mxu0 %vm1413_vm2, %v1108_v7 }
 0x354   : > { %3817 = vmatprep.mubr.msk.bf16.mxu1 %vm4147_vm1, %v4146_v8  ;;  %3823 = vmatprep.mubr.msk.bf16.mxu0 %vm4147_vm1, %v4146_v8 }
 0x40b   : > { %v1454_v12 = vpop.f32.mrf.mxu1  ;;  %v1500_v13 = vpop.f32.mrf.mxu0 }
 0x40c   : > { %v1598_v14 = vmul.f32 0.35355338, %v1454_v12  ;;  %v1599_v15 = vmul.f32 0.35355338, %v1500_v13 }
 0x40d   : > { %v3795_v16 = vpop.f32.mrf.mxu1  ;;  %v3801_v17 = vpop.f32.mrf.mxu0 }
 0x40e   : > { %v1603_v18 = vadd.f32 %v1599_v15, %v854_v11  ;;  %v1602_v19 = vadd.f32 %v1598_v14, %v854_v11 }
 0x40f   : > { %v1457_v20 = vpop.f32.mrf.mxu1  ;;  %v1503_v21 = vpop.f32.mrf.mxu0 }
 0x410   : > { %v1609_v23 = vsel %vm1413_vm2, %v1603_v18, -inf  ;;  %v1606_v24 = vsel %vm1413_vm2, %v1602_v19, -inf }
 0x411   : > { %1610 = vmax.xlane.f32.xlu0 %v1609_v23  ;;  %v3802_v25 = vpop.f32.mrf.mxu0  ;;  %1607 = vmax.xlane.f32.xlu1 %v1606_v24  ;;  %v3796_v29 = vpop.f32.mrf.mxu1 }
 0x413   : > { %v1546_v30 = vpop.f32.mrf.mxu1  ;;  %v1592_v31 = vpop.f32.mrf.mxu0 }
 0x414   : > { %v1600_v32 = vmul.f32 0.35355338, %v1546_v30  ;;  %v1601_v33 = vmul.f32 0.35355338, %v1592_v31 }
 0x415   : > { %v3807_v34 = vpop.f32.mrf.mxu1  ;;  %v3813_v35 = vpop.f32.mrf.mxu0 }
 0x416   : > { %v1605_v36 = vadd.f32 %v1601_v33, %v854_v11  ;;  %v1604_v37 = vadd.f32 %v1600_v32, %v854_v11 }
 0x417   : > { %v1549_v38 = vpop.f32.mrf.mxu1  ;;  %v1595_v40 = vpop.f32.mrf.mxu0 }
 0x418   : > { %v1615_v41 = vsel %vm1413_vm2, %v1605_v36, -inf  ;;  %v1612_v42 = vsel %vm1413_vm2, %v1604_v37, -inf }
 0x419   : > { %1616 = vmax.xlane.f32.xlu0 %v1615_v41  ;;  %v3814_v43 = vpop.f32.mrf.mxu0  ;;  %1613 = vmax.xlane.f32.xlu1 %v1612_v42  ;;  %v3808_v44 = vpop.f32.mrf.mxu1 }
 0x42a   : > { %1261 = vrot.lane.b32.xlu1 %v4399_v22, %s4154_s9 }
 0x49a   : > { %v1611_v45 = vpop.xlane.xlu0 %1610  ;;  %v1608_v46 = vpop.xlane.xlu1 %1607 }
 0x49b   : > { %v1619_v47 = vsub.f32 %v1603_v18, %v1611_v45  ;;  %v1618_v48 = vsub.f32 %v1602_v19, %v1608_v46 }
 0x49d   : > { %v1624_v50 = vmul.f32 1.442695, %v1619_v47  ;;  %v1622_v51 = vmul.f32 1.442695, %v1618_v48 }
 0x49f   : > { %4009 = vpow2.f32 %v1624_v50 }
 0x4a0   : > { %4011 = vpow2.f32 %v1622_v51 }
 0x4a2   : > { %v1614_v22 = vpop.xlane.xlu1 %1613  ;;  %v1617_v57 = vpop.xlane.xlu0 %1616 }
 0x4a3   : > { %v1620_v56 = vsub.f32 %v1604_v37, %v1614_v22  ;;  %v1621_v59 = vsub.f32 %v1605_v36, %v1617_v57 }
 0x4a5   : > { %v1626_v58 = vmul.f32 1.442695, %v1620_v56  ;;  %v1628_v60 = vmul.f32 1.442695, %v1621_v59 }
 0x4a7   : > { %4013 = vpow2.f32 %v1626_v58 }
 0x4a8   : > { %4015 = vpow2.f32 %v1628_v60 }
 0x4ac   : > { %v4497_v52 = vpop.eup %4009 }
 0x4ad   : > { %v4499_v53 = vpop.eup %4011  ;;  %v1633_v54 = vsel %vm1413_vm2, %v4497_v52, 0.0 }
 0x4ae   : > { %1634 = vadd.xlane.f32.xlu0 %v1633_v54  ;;  %v1630_v55 = vsel %vm1413_vm2, %v4499_v53, 0.0 }
 0x4af   : > { %1631 = vadd.xlane.f32.xlu1 %v1630_v55 }
 0x4b4   : > { %v4508_v61 = vpop.eup %4013 }
 0x4b5   : > { %v1636_v62 = vsel %vm1413_vm2, %v4508_v61, 0.0  ;;  %v4512_v63 = vpop.eup %4015 }
 0x4c0   : > { %1265 = vrot.lane.b32.xlu1 %v4413_v27, %s4154_s9  ;;  %v1639_v27 = vsel %vm1413_vm2, %v4512_v63, 0.0 }
 0x4c4   : > { %1267 = vrot.lane.b32.xlu1 %v4417_v28, %s4154_s9  ;;  %1263 = vrot.lane.b32.xlu0 %v4409_v26, %s4154_s9  ;;  %v1262_v26 = vpop.permute.xlu1 %1261  ;;  %s4902_s9 = smov 8  }
 0x4e3   : > { %1637 = vadd.xlane.f32.xlu0 %v1636_v62 }
 0x4e8   : > { %1640 = vadd.xlane.f32.xlu1 %v1639_v27 }
 0x537   : > { %v1635_v1 = vpop.xlane.xlu0 %1634 }
 0x538   : > { %v1632_v28 = vpop.xlane.xlu1 %1631  ;;  %4017 = vrcp.f32 %v1635_v1 }
 0x539   : > { %4019 = vrcp.f32 %v1632_v28 }
 0x53b   : > { %v1264_v5 = vpop.permute.xlu0 %1263 }
 0x53c   : > { %v1266_v2 = vpop.permute.xlu1 %1265 }
 0x53d   : > { %v1273_v3 = vcombine.low %v1262_v26, %v1266_v2  ;;  %v1274_v4 = vcombine.high %v1262_v26, %v1266_v2 }
 0x53f   : > { %v1281_v10 = vrot.slane %v1273_v3, %v4425_v39  ;;  %v1288_v11 = vrot.slane %v1274_v4, %v4425_v39 }
 0x540   : > { %v1268_v6 = vpop.permute.xlu1 %1267 }
 0x541   : > { %v1289_v7 = vcombine.low %v1264_v5, %v1268_v6  ;;  %v1290_v9 = vcombine.high %v1264_v5, %v1268_v6 }
 0x543   : > { %v1297_v12 = vrot.slane %v1289_v7, %v4425_v39  ;;  %v1304_v13 = vrot.slane %v1290_v9, %v4425_v39 }
 0x545   : > { %v1305_v14 = vcombine.low %v1281_v10, %v1297_v12  ;;  %v1306_v15 = vcombine.high %v1281_v10, %v1297_v12  ;;  %v1321_v16 = vcombine.low %v1288_v11, %v1304_v13  ;;  %v1322_v17 = vcombine.high %v1288_v11, %v1304_v13  ;;  %v4018_v38 = vpop.eup %4017 }
 0x546   : > { %v4020_v40 = vpop.eup %4019  ;;  %v1647_v55 = vmul.f32 %v4018_v38, %v4497_v52 }
 0x547   : > { %v1313_v18 = vrot.slane %v1305_v14, %v4435_v49  ;;  %v1320_v19 = vrot.slane %v1306_v15, %v4435_v49  ;;  %v1329_v20 = vrot.slane %v1321_v16, %v4435_v49  ;;  %v1336_v21 = vrot.slane %v1322_v17, %v4435_v49 }
 0x548   : > { %v1646_v54 = vmul.f32 %v4020_v40, %v4499_v53  ;;  %v1651_v60 = vpack.c.bf16 %v1647_v55, %v1647_v55 }
 0x549   : > { %v1341_v23 = vcombine.low %v1313_v18, %v1320_v19  ;;  %v3667_v24 = vcombine.high %v1313_v18, %v1320_v19  ;;  %v1357_v25 = vcombine.low %v1329_v20, %v1336_v21  ;;  %v3668_v29 = vcombine.high %v1329_v20, %v1336_v21 }
 0x54a   : > { %v1650_v59 = vpack.c.bf16 %v1646_v54, %v1646_v54 }
 0x54b   : > { %v1348_v30 = vrot.slane %v1341_v23, %v4425_v39  ;;  %v1356_v31 = vrot.slane %v3667_v24, %v4425_v39  ;;  %v1364_v32 = vrot.slane %v1357_v25, %v4425_v39  ;;  %v1372_v33 = vrot.slane %v3668_v29, %v4425_v39 }
 0x54d   : > { %v1373_v34 = vcombine.low %v1348_v30, %v1356_v31  ;;  %v1389_v35 = vcombine.low %v1364_v32, %v1372_v33  ;;  %v1374_v36 = vcombine.high %v1348_v30, %v1356_v31  ;;  %v1390_v37 = vcombine.high %v1364_v32, %v1372_v33 }
 0x54f   : > { %v1381_v41 = vrot.slane %v1373_v34, %v4435_v49  ;;  %v1397_v42 = vrot.slane %v1389_v35, %v4435_v49  ;;  %v1388_v43 = vrot.slane %v1374_v36, %v4435_v49  ;;  %v1404_v44 = vrot.slane %v1390_v37, %v4435_v49  ;;  %v3993_v35 = vld [vmem:[%s4931_s27 + $0x8] sm:$0xff]  }
 0x551   : > { %v1405_v45 = vcombine.low %v1381_v41, %v1397_v42  ;;  %v1406_v46 = vcombine.high %v1381_v41, %v1397_v42  ;;  %v1407_v47 = vcombine.low %v1388_v43, %v1404_v44  ;;  %v1408_v48 = vcombine.high %v1388_v43, %v1404_v44 }
 0x553   : > { %v1409_v50 = vpack.c.bf16 %v1405_v45, %v1405_v45  ;;  %v1410_v51 = vpack.c.bf16 %v1406_v46, %v1406_v46  ;;  %v1411_v57 = vpack.c.bf16 %v1407_v47, %v1407_v47  ;;  %v1412_v58 = vpack.c.bf16 %v1408_v48, %v1408_v48  ;;  %v3994_v46 = vld [vmem:[%s4931_s27] sm:$0xff]  }
 0x555   : > { %v1659_v22 = vsel %vm1657_vm3, %v1409_v50, 0  ;;  %v1705_v56 = vsel %vm1657_vm3, %v1410_v51, 0  ;;  %v1751_v52 = vsel %vm1657_vm3, %v1411_v57, 0  ;;  %v1797_v53 = vsel %vm1657_vm3, %v1412_v58, 0 }
 0x556   : > { %3816 = vmatpush3.bf16.msra.mxu1 %v1659_v22  ;;  %3822 = vmatpush3.bf16.msra.mxu0 %v1705_v56 }
 0x557   : > { %3827 = vmatprep.subr.bf16.mxu1 %v4146_v8  ;;  %3833 = vmatprep.subr.bf16.mxu0 %v4146_v8 }
 0x559   : > { %3818 = vmatmul.mubr.msk.bf16.vlgmr.msra.gmra.mxu1 %vm1413_vm2, %v1650_v59  ;;  %3824 = vmatmul.mubr.msk.bf16.vlgmr.msra.gmra.mxu0 %vm1413_vm2, %v1651_v60 }
 0x55a   : > { %3828 = vmatpush3.bf16.msra.mxu1 %v1751_v52  ;;  %3834 = vmatpush3.bf16.msra.mxu0 %v1797_v53 }
 0x55b   : > { %3829 = vmatprep.mubr.msk.bf16.mxu1 %vm4147_vm1, %v4146_v8  ;;  %3835 = vmatprep.mubr.msk.bf16.mxu0 %vm4147_vm1, %v4146_v8 }
 0x55c   : > { %3839 = vmatprep.subr.bf16.mxu1 %v4146_v8  ;;  %3847 = vmatprep.subr.bf16.mxu0 %v4146_v8 }
 0x56c   : > { %v1638_v62 = vpop.xlane.xlu0 %1637 }
 0x56d   : > { %4021 = vrcp.f32 %v1638_v62 }
 0x571   : > { %v1641_v27 = vpop.xlane.xlu1 %1640 }
 0x572   : > { %4023 = vrcp.f32 %v1641_v27 }
 0x57a   : > { %v4022_v26 = vpop.eup %4021 }
 0x57b   : > { %v1648_v28 = vmul.f32 %v4022_v26, %v4508_v61 }
 0x57d   : > { %v1652_v1 = vpack.c.bf16 %v1648_v28, %v1648_v28 }
 0x57f   : > { %v4024_v2 = vpop.eup %4023  ;;  %3830 = vmatmul.mubr.msk.bf16.vlgmr.msra.gmra.mxu1 %vm1413_vm2, %v1652_v1 }
 0x580   : > { %v1649_v3 = vmul.f32 %v4024_v2, %v4512_v63  ;;  %3843 = vmatprep.mubr.msk.bf16.mxu1 %vm4147_vm1, %v4146_v8  ;;  %3840 = vmatpush3.bf16.msra.mxu1 %v3993_v35 }
 0x581   : > { %3841 = vmatprep.subr.bf16.mxu1 %v4146_v8 }
 0x582   : > { %v1653_v4 = vpack.c.bf16 %v1649_v3, %v1649_v3 }
 0x584   : > { %3836 = vmatmul.mubr.msk.bf16.vlgmr.msra.gmra.mxu0 %vm1413_vm2, %v1653_v4  ;;  %3842 = vmatpush3.bf16.msra.mxu1 %v3994_v46 }
 0x585   : > { %3851 = vmatprep.mubr.msk.bf16.mxu0 %vm4147_vm1, %v4146_v8  ;;  %3855 = vmatprep.subr.bf16.mxu1 %v4146_v8 }
 0x619   : > { %v1695_v5 = vpop.f32.mrf.mxu1  ;;  %v1741_v6 = vpop.f32.mrf.mxu0 }
 0x61b   : > { %v3819_v7 = vpop.f32.mrf.mxu1  ;;  %v3825_v9 = vpop.f32.mrf.mxu0 }
 0x61d   : > { %v1698_v61 = vpop.f32.mrf.mxu1  ;;  %v1744_v10 = vpop.f32.mrf.mxu0 }
 0x61f   : > { %v3820_v11 = vpop.f32.mrf.mxu1  ;;  %v3826_v12 = vpop.f32.mrf.mxu0 }
 0x63f   : > { %v1787_v13 = vpop.f32.mrf.mxu1 }
 0x640   : > { %v1839_v63 = vcombine.low %v1695_v5, %v1787_v13  ;;  %v1840_v15 = vcombine.high %v1695_v5, %v1787_v13 }
 0x641   : > { %v3831_v14 = vpop.f32.mrf.mxu1 }
 0x642   : > { %v1847_v23 = vrot.slane %v1839_v63, %v4425_v39  ;;  %v1854_v24 = vrot.slane %v1840_v15, %v4425_v39  ;;  %v3995_v14 = vld [vmem:[%s4887_s15 + $0x8] sm:$0xff]  }
 0x643   : > { %v1790_v16 = vpop.f32.mrf.mxu1 }
 0x644   : > { %v1833_v17 = vpop.f32.mrf.mxu0 }
 0x645   : > { %v1855_v18 = vcombine.low %v1741_v6, %v1833_v17  ;;  %v1856_v19 = vcombine.high %v1741_v6, %v1833_v17  ;;  %v3832_v20 = vpop.f32.mrf.mxu1  ;;  %v3679_v6 = vld [vmem:[%s4882_s10] ss:$0 sm:$0xff] }
 0x646   : > { %v3837_v21 = vpop.f32.mrf.mxu0 }
 0x647   : > { %v1863_v25 = vrot.slane %v1855_v18, %v4425_v39  ;;  %v1870_v29 = vrot.slane %v1856_v19, %v4425_v39  ;;  %v3997_v21 = vld [vmem:[%s4885_s13 + $0x8] sm:$0xff]  }
 0x648   : > { %v1836_v30 = vpop.f32.mrf.mxu0  ;;  %3848 = vmatpush3.bf16.msra.mxu0 %v3997_v21 }
 0x649   : > { %v1871_v31 = vcombine.low %v1847_v23, %v1863_v25  ;;  %v1872_v32 = vcombine.high %v1847_v23, %v1863_v25  ;;  %v1887_v33 = vcombine.low %v1854_v24, %v1870_v29  ;;  %v1888_v34 = vcombine.high %v1854_v24, %v1870_v29  ;;  %v3998_v23 = vld [vmem:[%s4885_s13] sm:$0xff]   ;;  %3849 = vmatprep.subr.bf16.mxu0 %v4146_v8 }
 0x64a   : > { %v3838_v36 = vpop.f32.mrf.mxu0  ;;  %v3689_v24 = vld [vmem:[%s4888_s16] ss:$0 sm:$0xff] }
 0x64b   : > { %v1879_v37 = vrot.slane %v1871_v31, %v4435_v49  ;;  %v1886_v38 = vrot.slane %v1872_v32, %v4435_v49  ;;  %v1895_v40 = vrot.slane %v1887_v33, %v4435_v49  ;;  %v1902_v41 = vrot.slane %v1888_v34, %v4435_v49 }
 0x64c   : > { %3850 = vmatpush3.bf16.msra.mxu0 %v3998_v23  ;;  %v3685_v23 = vld [vmem:[%s4886_s14] ss:$0 sm:$0xff] }
 0x64d   : > { %v1907_v42 = vcombine.low %v1879_v37, %v1886_v38  ;;  %v3677_v43 = vcombine.high %v1879_v37, %v1886_v38  ;;  %v1923_v44 = vcombine.low %v1895_v40, %v1902_v41  ;;  %v3678_v45 = vcombine.high %v1895_v40, %v1902_v41  ;;  %3863 = vmatprep.subr.bf16.mxu0 %v4146_v8  ;;  %v3683_v37 = vld [vmem:[%s4883_s11] ss:$0 sm:$0xff] }
 0x64e   : > { %v3684_v40 = vld [vmem:[%s4884_s12] ss:$0 sm:$0xff] }
 0x64f   : > { %v1914_v47 = vrot.slane %v1907_v42, %v4425_v39  ;;  %v1922_v48 = vrot.slane %v3677_v43, %v4425_v39  ;;  %v1930_v50 = vrot.slane %v1923_v44, %v4425_v39  ;;  %v1938_v51 = vrot.slane %v3678_v45, %v4425_v39 }
 0x651   : > { %v1940_v54 = vcombine.high %v1914_v47, %v1922_v48  ;;  %v1956_v55 = vcombine.high %v1930_v50, %v1938_v51  ;;  %v1939_v22 = vcombine.low %v1914_v47, %v1922_v48  ;;  %v1955_v56 = vcombine.low %v1930_v50, %v1938_v51 }
 0x653   : > { %v1954_v57 = vrot.slane %v1940_v54, %v4435_v49  ;;  %v1970_v58 = vrot.slane %v1956_v55, %v4435_v49  ;;  %v1947_v59 = vrot.slane %v1939_v22, %v4435_v49  ;;  %v1963_v60 = vrot.slane %v1955_v56, %v4435_v49 }
 0x655   : > { %v1973_v52 = vcombine.low %v1954_v57, %v1970_v58  ;;  %v1972_v53 = vcombine.high %v1947_v59, %v1963_v60  ;;  %v1971_v62 = vcombine.low %v1947_v59, %v1963_v60  ;;  %v1974_v27 = vcombine.high %v1954_v57, %v1970_v58 }
 0x657   : > { %1980 = vrot.lane.b32.xlu1 %v1973_v52, %s4903_s30  ;;  %1976 = vrot.lane.b32.xlu0 %v1972_v53, %s4902_s9  ;;  %s4932_s9 = sld [smem:[#allocation10_spill]] }
 0x65b   : > { %1984 = vrot.lane.b32.xlu0 %v1974_v27, %s4901_s26  ;;  %s4937_s26 = smov 8  }
 0x65d   : > { %s832_s30 = scalar_lea.vmem %s4932_s9, %s4361_s6  ;;  %s4936_s9 = smov 16  }
 0x65e   : > { %v845_v63 = vld [vmem:[%s832_s30] sm:$0xff]  ;;  %s842_s30 = scalar_lea.vmem %s4897_s25, %s4361_s6 }
 0x65f   : > { %v2161_v15 = vpack.c.bf16 %v845_v63, %v845_v63 }
 0x6c9   : > { %v1977_v26 = vpop.permute.xlu0 %1976  ;;  %v1981_v28 = vpop.permute.xlu1 %1980 }
 0x6ca   : > { %v1987_v1 = vsel %vm1413_vm2, %v1971_v62, %v1977_v26 }
 0x6cb   : > { %v1989_v3 = vsel %vm1988_vm4, %v1987_v1, %v1981_v28 }
 0x6cd   : > { %v1985_v2 = vpop.permute.xlu0 %1984 }
 0x6ce   : > { %v1991_v4 = vsel %vm1990_vm5, %v1989_v3, %v1985_v2 }
 0x6cf   : > { %v1992_v5 = vpack.c.bf16 %v1991_v4, %v1991_v4 }
 0x6d1   : > { %3844 = vmatmul.mubr.msk.bf16.vlgmr.msra.gmra.mxu1 %vm858_vm0, %v1992_v5 }
 0x6d2   : > { %3859 = vmatprep.mubr.msk.bf16.mxu1 %vm4147_vm1, %v4146_v8  ;;  %3856 = vmatpush3.bf16.msra.mxu1 %v3995_v14 }
 0x6d3   : > { %3857 = vmatprep.subr.bf16.mxu1 %v4146_v8 }
 0x791   : > { %v2048_v7 = vpop.f32.mrf.mxu1 }
 0x792   : > { %v2049_v9 = vadd.f32 %v3679_v6, %v2048_v7 }
 0x793   : > { %v3845_v61 = vpop.f32.mrf.mxu1 }
 0x794   : > { %v4593_v10 = vadd.f32 %v2049_v9, %v4367_v0  ;;  %v3996_v0 = vld [vmem:[%s4887_s15] sm:$0xff]  }
 0x795   : > { %v2051_v11 = vpop.f32.mrf.mxu1  ;;  %3858 = vmatpush3.bf16.msra.mxu1 %v3996_v0 }
 0x796   : > { %v2057_v12 = vsel %vm858_vm0, %v4593_v10, 0.0  ;;  %3869 = vmatprep.subr.bf16.mxu1 %v4146_v8 }
 0x797   : > { %2058 = vadd.xlane.f32.xlu1 %v2057_v12  ;;  %v3846_v13 = vpop.f32.mrf.mxu1 }
 0x798   : > { %3860 = vmatmul.mubr.msk.bf16.vlgmr.msra.gmra.mxu1 %vm858_vm0, %v2161_v15 }
 0x799   : > { %3871 = vmatprep.mubr.msk.bf16.mxu1 %vm4147_vm1, %v4146_v8 }
 0x820   : > { %v2059_v16 = vpop.xlane.xlu1 %2058 }
 0x821   : > { %v2060_v17 = vmul.f32 0.03125, %v2059_v16 }
 0x823   : > { %v2061_v18 = vsub.f32 %v4593_v10, %v2060_v17 }
 0x825   : > { %v2062_v19 = vmul.f32 %v2061_v18, %v2061_v18 }
 0x827   : > { %v2063_v20 = vsel %vm858_vm0, %v2062_v19, 0.0 }
 0x828   : > { %2064 = vadd.xlane.f32.xlu0 %v2063_v20 }
 0x858   : > { %v2217_v25 = vpop.f32.mrf.mxu1 }
 0x859   : > { %v4625_v29 = vadd.f32 %v3689_v24, %v2217_v25 }
 0x85a   : > { %v3861_v30 = vpop.f32.mrf.mxu1 }
 0x85b   : > { %2377 = vrot.lane.b32.xlu1 %v4625_v29, %s4150_s4  ;;  %2374 = vrot.lane.b32.xlu0 %v4625_v29, %s4149_s7 }
 0x85c   : > { %v2220_v31 = vpop.f32.mrf.mxu1 }
 0x85e   : > { %v3862_v32 = vpop.f32.mrf.mxu1 }
 0x85f   : > { %2380 = vrot.lane.b32.xlu1 %v4625_v29, %s4933_s8 }
 0x8b1   : > { %v2065_v33 = vpop.xlane.xlu0 %2064 }
 0x8b2   : > { %v2066_v34 = vmul.f32 0.03125, %v2065_v33 }
 0x8b4   : > { %v2067_v35 = vadd.f32 1e-05, %v2066_v34 }
 0x8b6   : > { %4025 = vrsqrt.f32 %v2067_v35 }
 0x8c3   : > { %v4026_v36 = vpop.eup %4025 }
 0x8c4   : > { %v2069_v38 = vmul.f32 %v4026_v36, %v2061_v18 }
 0x8c6   : > { %v2076_v41 = vmul.f32 %v3683_v37, %v2069_v38 }
 0x8c8   : > { %v2083_v42 = vadd.f32 %v3684_v40, %v2076_v41 }
 0x8ca   : > { %v2099_v43 = vpack.c.bf16 %v2083_v42, %v2083_v42 }
 0x8cc   : > { %3852 = vmatmul.mubr.msk.bf16.vlgmr.msra.gmra.mxu0 %vm858_vm0, %v2099_v43 }
 0x8cd   : > { %3865 = vmatprep.mubr.msk.bf16.mxu0 %vm4147_vm1, %v4146_v8  ;;  %v4642_v44 = vpop.permute.xlu1 %2377  ;;  %v4646_v46 = vpop.permute.xlu0 %2374 }
 0x8ce   : > { %v2383_v47 = vcombine.low %v4625_v29, %v4642_v44  ;;  %v2384_v48 = vcombine.high %v4625_v29, %v4642_v44 }
 0x8d0   : > { %v2391_v54 = vrot.slane %v2383_v47, %v4425_v39  ;;  %v2398_v55 = vrot.slane %v2384_v48, %v4425_v39 }
 0x8d1   : > { %v4644_v45 = vpop.permute.xlu1 %2380 }
 0x8d2   : > { %v2399_v50 = vcombine.low %v4646_v46, %v4644_v45  ;;  %v2400_v51 = vcombine.high %v4646_v46, %v4644_v45 }
 0x8d4   : > { %v2407_v22 = vrot.slane %v2399_v50, %v4425_v39  ;;  %v2414_v56 = vrot.slane %v2400_v51, %v4425_v39 }
 0x8d6   : > { %v2415_v57 = vcombine.low %v2391_v54, %v2407_v22  ;;  %v2416_v58 = vcombine.high %v2391_v54, %v2407_v22  ;;  %v2431_v59 = vcombine.low %v2398_v55, %v2414_v56  ;;  %v2432_v60 = vcombine.high %v2398_v55, %v2414_v56 }
 0x8d8   : > { %v2423_v52 = vrot.slane %v2415_v57, %v4435_v49  ;;  %v2430_v53 = vrot.slane %v2416_v58, %v4435_v49  ;;  %v2439_v62 = vrot.slane %v2431_v59, %v4435_v49  ;;  %v2446_v27 = vrot.slane %v2432_v60, %v4435_v49 }
 0x8da   : > { %v2451_v26 = vcombine.low %v2423_v52, %v2430_v53  ;;  %v3695_v28 = vcombine.high %v2423_v52, %v2430_v53  ;;  %v2467_v1 = vcombine.low %v2439_v62, %v2446_v27  ;;  %v3696_v2 = vcombine.high %v2439_v62, %v2446_v27 }
 0x8dc   : > { %v2458_v3 = vrot.slane %v2451_v26, %v4425_v39  ;;  %v2466_v4 = vrot.slane %v3695_v28, %v4425_v39  ;;  %v2474_v5 = vrot.slane %v2467_v1, %v4425_v39  ;;  %v2482_v6 = vrot.slane %v3696_v2, %v4425_v39 }
 0x8de   : > { %v2483_v7 = vcombine.low %v2458_v3, %v2466_v4  ;;  %v2499_v9 = vcombine.low %v2474_v5, %v2482_v6  ;;  %v2484_v61 = vcombine.high %v2458_v3, %v2466_v4  ;;  %v2500_v11 = vcombine.high %v2474_v5, %v2482_v6 }
 0x8e0   : > { %v2491_v12 = vrot.slane %v2483_v7, %v4435_v49  ;;  %v2507_v13 = vrot.slane %v2499_v9, %v4435_v49  ;;  %v2498_v14 = vrot.slane %v2484_v61, %v4435_v49  ;;  %v2514_v63 = vrot.slane %v2500_v11, %v4435_v49 }
 0x8e2   : > { %v2515_v0 = vcombine.low %v2491_v12, %v2507_v13  ;;  %v2516_v15 = vcombine.high %v2491_v12, %v2507_v13  ;;  %v4672_v16 = vcombine.low %v2498_v14, %v2514_v63  ;;  %v4674_v17 = vcombine.high %v2498_v14, %v2514_v63 }
 0x8e4   : > { %v2519_v18 = vpack.c.bf16 %v2515_v0, %v2515_v0  ;;  %v2520_v19 = vpack.c.bf16 %v2516_v15, %v2516_v15  ;;  %v2521_v9 = vpack.c.bf16 %v4672_v16, %v4672_v16  ;;  %v2522_v61 = vpack.c.bf16 %v4674_v17, %v4674_v17 }
 0x8e6   : > { %v2679_v20 = vsel %vm1413_vm2, %v2519_v18, 0  ;;  %v2725_v21 = vsel %vm1413_vm2, %v2520_v19, 0  ;;  %v2771_v63 = vsel %vm1413_vm2, %v2521_v9, 0  ;;  %v2817_v0 = vsel %vm1413_vm2, %v2522_v61, 0 }
 0x8e7   : > { %3864 = vmatpush3.bf16.xpose.msra.mxu0 %v2679_v20  ;;  %3870 = vmatpush3.bf16.xpose.msra.mxu1 %v2725_v21 }
 0x8e8   : > { %3875 = vmatprep.subr.bf16.mxu0 %v4146_v8  ;;  %3881 = vmatprep.subr.bf16.mxu1 %v4146_v8 }
 0x98c   : > { %v2155_v24 = vpop.f32.mrf.mxu0 }
 0x98d   : > { %v2156_v25 = vadd.f32 %v3685_v23, %v2155_v24 }
 0x98e   : > { %v3853_v30 = vpop.f32.mrf.mxu0 }
 0x98f   : > { %2227 = vrot.lane.b32.xlu1 %v2156_v25, %s4150_s4  ;;  %2224 = vrot.lane.b32.xlu0 %v2156_v25, %s4149_s7  ;;  %s4938_s7 = smov 24  }
 0x990   : > { %v2158_v31 = vpop.f32.mrf.mxu0 }
 0x992   : > { %v3854_v32 = vpop.f32.mrf.mxu0 }
 0x993   : > { %2230 = vrot.lane.b32.xlu0 %v2156_v25, %s4933_s8  ;;  %s838_s8 = scalar_lea.vmem %s4934_s0, %s4940_s2  ;;  %s4935_s2 = smov 96  }
 0x994   : > { %v3703_v21 = vld [vmem:[%s838_s8] ss:$0 sm:$0xff] }
 0xa01   : > { %v2228_v33 = vpop.permute.xlu1 %2227  ;;  %v2225_v34 = vpop.permute.xlu0 %2224 }
 0xa02   : > { %v2233_v35 = vcombine.low %v2156_v25, %v2228_v33  ;;  %v2234_v36 = vcombine.high %v2156_v25, %v2228_v33 }
 0xa04   : > { %v2241_v41 = vrot.slane %v2233_v35, %v4425_v39  ;;  %v2248_v42 = vrot.slane %v2234_v36, %v4425_v39 }
 0xa05   : > { %v2231_v37 = vpop.permute.xlu0 %2230 }
 0xa06   : > { %v2249_v38 = vcombine.low %v2225_v34, %v2231_v37  ;;  %v2250_v40 = vcombine.high %v2225_v34, %v2231_v37 }
 0xa08   : > { %v2257_v43 = vrot.slane %v2249_v38, %v4425_v39  ;;  %v2264_v47 = vrot.slane %v2250_v40, %v4425_v39 }
 0xa0a   : > { %v2265_v48 = vcombine.low %v2241_v41, %v2257_v43  ;;  %v2266_v50 = vcombine.high %v2241_v41, %v2257_v43  ;;  %v2281_v51 = vcombine.low %v2248_v42, %v2264_v47  ;;  %v2282_v54 = vcombine.high %v2248_v42, %v2264_v47 }
 0xa0c   : > { %v2273_v55 = vrot.slane %v2265_v48, %v4435_v49  ;;  %v2280_v22 = vrot.slane %v2266_v50, %v4435_v49  ;;  %v2289_v56 = vrot.slane %v2281_v51, %v4435_v49  ;;  %v2296_v57 = vrot.slane %v2282_v54, %v4435_v49 }
 0xa0e   : > { %v2301_v58 = vcombine.low %v2273_v55, %v2280_v22  ;;  %v3693_v59 = vcombine.high %v2273_v55, %v2280_v22  ;;  %v2317_v60 = vcombine.low %v2289_v56, %v2296_v57  ;;  %v3694_v52 = vcombine.high %v2289_v56, %v2296_v57 }
 0xa10   : > { %v2308_v53 = vrot.slane %v2301_v58, %v4425_v39  ;;  %v2316_v62 = vrot.slane %v3693_v59, %v4425_v39  ;;  %v2324_v27 = vrot.slane %v2317_v60, %v4425_v39  ;;  %v2332_v26 = vrot.slane %v3694_v52, %v4425_v39 }
 0xa12   : > { %v2333_v28 = vcombine.low %v2308_v53, %v2316_v62  ;;  %v2349_v1 = vcombine.low %v2324_v27, %v2332_v26  ;;  %v2334_v2 = vcombine.high %v2308_v53, %v2316_v62  ;;  %v2350_v3 = vcombine.high %v2324_v27, %v2332_v26 }
 0xa14   : > { %v2341_v4 = vrot.slane %v2333_v28, %v4435_v49  ;;  %v2357_v5 = vrot.slane %v2349_v1, %v4435_v49  ;;  %v2348_v13 = vrot.slane %v2334_v2, %v4435_v49  ;;  %v2364_v14 = vrot.slane %v2350_v3, %v4435_v49 }
 0xa16   : > { %v2365_v6 = vcombine.low %v2341_v4, %v2357_v5  ;;  %v2366_v7 = vcombine.high %v2341_v4, %v2357_v5  ;;  %v2367_v15 = vcombine.low %v2348_v13, %v2364_v14  ;;  %v2368_v16 = vcombine.high %v2348_v13, %v2364_v14 }
 0xa18   : > { %v2369_v11 = vpack.c.bf16 %v2365_v6, %v2365_v6  ;;  %v2370_v12 = vpack.c.bf16 %v2366_v7, %v2366_v7  ;;  %v2371_v17 = vpack.c.bf16 %v2367_v15, %v2367_v15  ;;  %v2372_v18 = vpack.c.bf16 %v2368_v16, %v2368_v16 }
 0xa1a   : > { %3866 = vmatmul.mubr.msk.bf16.vlgmr.msra.gmra.mxu0 %vm1413_vm2, %v2369_v11  ;;  %3872 = vmatmul.mubr.msk.bf16.vlgmr.msra.gmra.mxu1 %vm1413_vm2, %v2370_v12 }
 0xa1b   : > { %3876 = vmatpush3.bf16.xpose.msra.mxu0 %v2771_v63  ;;  %3882 = vmatpush3.bf16.xpose.msra.mxu1 %v2817_v0 }
 0xa1c   : > { %3877 = vmatprep.mubr.msk.bf16.mxu0 %vm4147_vm1, %v4146_v8  ;;  %3883 = vmatprep.mubr.msk.bf16.mxu1 %vm4147_vm1, %v4146_v8 }
 0xa1d   : > { %3887 = vmatprep.subr.bf16.mxu0 %v4146_v8  ;;  %3893 = vmatprep.subr.bf16.mxu1 %v4146_v8 }
 0xa22   : > { %3878 = vmatmul.mubr.msk.bf16.vlgmr.msra.gmra.mxu0 %vm1413_vm2, %v2371_v17  ;;  %3884 = vmatmul.mubr.msk.bf16.vlgmr.msra.gmra.mxu1 %vm1413_vm2, %v2372_v18 }
 0xa23   : > { %3889 = vmatprep.mubr.msk.bf16.mxu0 %vm4147_vm1, %v4146_v8  ;;  %3895 = vmatprep.mubr.msk.bf16.mxu1 %vm4147_vm1, %v4146_v8 }
 0xada   : > { %v2715_v19 = vpop.f32.mrf.mxu0  ;;  %v2761_v20 = vpop.f32.mrf.mxu1 }
 0xadb   : > { %v2859_v23 = vmul.f32 0.35355338, %v2715_v19  ;;  %v2860_v24 = vmul.f32 0.35355338, %v2761_v20 }
 0xadc   : > { %v3867_v25 = vpop.f32.mrf.mxu0  ;;  %v3873_v30 = vpop.f32.mrf.mxu1 }
 0xadd   : > { %v2869_v31 = vadd.f32 %v3703_v21, %v2859_v23  ;;  %v2870_v32 = vadd.f32 %v3703_v21, %v2860_v24 }
 0xade   : > { %v2718_v33 = vpop.f32.mrf.mxu0  ;;  %v2764_v34 = vpop.f32.mrf.mxu1 }
 0xadf   : > { %v2873_v35 = vsel %vm1413_vm2, %v2869_v31, -inf  ;;  %v2876_v36 = vsel %vm1413_vm2, %v2870_v32, -inf }
 0xae0   : > { %2874 = vmax.xlane.f32.xlu1 %v2873_v35  ;;  %v3868_v37 = vpop.f32.mrf.mxu0  ;;  %2877 = vmax.xlane.f32.xlu0 %v2876_v36  ;;  %v3874_v38 = vpop.f32.mrf.mxu1 }
 0xae2   : > { %v2807_v40 = vpop.f32.mrf.mxu0  ;;  %v2853_v41 = vpop.f32.mrf.mxu1 }
 0xae3   : > { %v2861_v42 = vmul.f32 0.35355338, %v2807_v40  ;;  %v2862_v43 = vmul.f32 0.35355338, %v2853_v41 }
 0xae4   : > { %v3879_v47 = vpop.f32.mrf.mxu0  ;;  %v3885_v48 = vpop.f32.mrf.mxu1 }
 0xae5   : > { %v2871_v50 = vadd.f32 %v3703_v21, %v2861_v42  ;;  %v2872_v51 = vadd.f32 %v3703_v21, %v2862_v43 }
 0xae6   : > { %v2810_v54 = vpop.f32.mrf.mxu0  ;;  %v2856_v55 = vpop.f32.mrf.mxu1 }
 0xae7   : > { %v2879_v22 = vsel %vm1413_vm2, %v2871_v50, -inf  ;;  %v2882_v56 = vsel %vm1413_vm2, %v2872_v51, -inf }
 0xae8   : > { %v3880_v57 = vpop.f32.mrf.mxu0  ;;  %2880 = vmax.xlane.f32.xlu0 %v2879_v22  ;;  %2883 = vmax.xlane.f32.xlu1 %v2882_v56  ;;  %v3886_v58 = vpop.f32.mrf.mxu1 }
 0xaf9   : > { %2525 = vrot.lane.b32.xlu1 %v4646_v46, %s4935_s2 }
 0xafe   : > { %2523 = vrot.lane.b32.xlu0 %v4625_v29, %s4935_s2 }
 0xb69   : > { %v2875_v59 = vpop.xlane.xlu1 %2874  ;;  %v2878_v60 = vpop.xlane.xlu0 %2877 }
 0xb6a   : > { %v2885_v52 = vsub.f32 %v2869_v31, %v2875_v59  ;;  %v2886_v53 = vsub.f32 %v2870_v32, %v2878_v60 }
 0xb6c   : > { %v2889_v62 = vmul.f32 1.442695, %v2885_v52  ;;  %v2891_v27 = vmul.f32 1.442695, %v2886_v53 }
 0xb6e   : > { %4027 = vpow2.f32 %v2889_v62 }
 0xb6f   : > { %4029 = vpow2.f32 %v2891_v27 }
 0xb71   : > { %v2884_v29 = vpop.xlane.xlu1 %2883  ;;  %v2881_v2 = vpop.xlane.xlu0 %2880 }
 0xb72   : > { %v2888_v3 = vsub.f32 %v2872_v51, %v2884_v29  ;;  %v2887_v4 = vsub.f32 %v2871_v50, %v2881_v2 }
 0xb74   : > { %v2895_v5 = vmul.f32 1.442695, %v2888_v3  ;;  %v2893_v6 = vmul.f32 1.442695, %v2887_v4 }
 0xb75   : > { %v2526_v11 = vpop.permute.xlu1 %2525 }
 0xb76   : > { %4031 = vpow2.f32 %v2895_v5 }
 0xb77   : > { %4033 = vpow2.f32 %v2893_v6 }
 0xb7b   : > { %v4734_v26 = vpop.eup %4027 }
 0xb7c   : > { %v4736_v28 = vpop.eup %4029  ;;  %v2897_v1 = vsel %vm1413_vm2, %v4734_v26, 0.0 }
 0xb7d   : > { %2898 = vadd.xlane.f32.xlu0 %v2897_v1  ;;  %v2900_v46 = vsel %vm1413_vm2, %v4736_v28, 0.0 }
 0xb7e   : > { %2901 = vadd.xlane.f32.xlu1 %v2900_v46 }
 0xb83   : > { %v4746_v7 = vpop.eup %4031 }
 0xb84   : > { %v4748_v9 = vpop.eup %4033  ;;  %v2906_v61 = vsel %vm1413_vm2, %v4746_v7, 0.0 }
 0xb8f   : > { %2527 = vrot.lane.b32.xlu1 %v4642_v44, %s4935_s2  ;;  %v2903_v44 = vsel %vm1413_vm2, %v4748_v9, 0.0 }
 0xb93   : > { %2529 = vrot.lane.b32.xlu0 %v4644_v45, %s4935_s2  ;;  %v2524_v45 = vpop.permute.xlu0 %2523 }
 0xbb2   : > { %2907 = vadd.xlane.f32.xlu0 %v2906_v61 }
 0xbb3   : > { %2904 = vadd.xlane.f32.xlu1 %v2903_v44 }
 0xc06   : > { %v2899_v12 = vpop.xlane.xlu0 %2898 }
 0xc07   : > { %v2902_v13 = vpop.xlane.xlu1 %2901  ;;  %4035 = vrcp.f32 %v2899_v12 }
 0xc08   : > { %4037 = vrcp.f32 %v2902_v13 }
 0xc0a   : > { %v2530_v14 = vpop.permute.xlu0 %2529 }
 0xc0b   : > { %v2551_v63 = vcombine.low %v2526_v11, %v2530_v14  ;;  %v2552_v0 = vcombine.high %v2526_v11, %v2530_v14  ;;  %v2528_v15 = vpop.permute.xlu1 %2527 }
 0xc0c   : > { %v2535_v16 = vcombine.low %v2524_v45, %v2528_v15  ;;  %v2536_v17 = vcombine.high %v2524_v45, %v2528_v15 }
 0xc0d   : > { %v2559_v18 = vrot.slane %v2551_v63, %v4425_v39  ;;  %v2566_v19 = vrot.slane %v2552_v0, %v4425_v39 }
 0xc0e   : > { %v2543_v20 = vrot.slane %v2535_v16, %v4425_v39  ;;  %v2550_v21 = vrot.slane %v2536_v17, %v4425_v39 }
 0xc10   : > { %v2567_v23 = vcombine.low %v2543_v20, %v2559_v18  ;;  %v2568_v24 = vcombine.high %v2543_v20, %v2559_v18  ;;  %v2583_v25 = vcombine.low %v2550_v21, %v2566_v19  ;;  %v2584_v30 = vcombine.high %v2550_v21, %v2566_v19 }
 0xc12   : > { %v2575_v31 = vrot.slane %v2567_v23, %v4435_v49  ;;  %v2582_v32 = vrot.slane %v2568_v24, %v4435_v49  ;;  %v2591_v33 = vrot.slane %v2583_v25, %v4435_v49  ;;  %v2598_v34 = vrot.slane %v2584_v30, %v4435_v49 }
 0xc14   : > { %v2603_v35 = vcombine.low %v2575_v31, %v2582_v32  ;;  %v3697_v36 = vcombine.high %v2575_v31, %v2582_v32  ;;  %v2619_v37 = vcombine.low %v2591_v33, %v2598_v34  ;;  %v3698_v38 = vcombine.high %v2591_v33, %v2598_v34  ;;  %v4036_v54 = vpop.eup %4035 }
 0xc15   : > { %v4038_v58 = vpop.eup %4037  ;;  %v2913_v1 = vmul.f32 %v4036_v54, %v4734_v26 }
 0xc16   : > { %v2610_v40 = vrot.slane %v2603_v35, %v4425_v39  ;;  %v2618_v41 = vrot.slane %v3697_v36, %v4425_v39  ;;  %v2626_v42 = vrot.slane %v2619_v37, %v4425_v39  ;;  %v2634_v43 = vrot.slane %v3698_v38, %v4425_v39 }
 0xc17   : > { %v2914_v46 = vmul.f32 %v4038_v58, %v4736_v28  ;;  %v2917_v5 = vpack.c.bf16 %v2913_v1, %v2913_v1 }
 0xc18   : > { %v2635_v47 = vcombine.low %v2610_v40, %v2618_v41  ;;  %v2651_v48 = vcombine.low %v2626_v42, %v2634_v43  ;;  %v2636_v50 = vcombine.high %v2610_v40, %v2618_v41  ;;  %v2652_v51 = vcombine.high %v2626_v42, %v2634_v43 }
 0xc19   : > { %v2918_v6 = vpack.c.bf16 %v2914_v46, %v2914_v46 }
 0xc1a   : > { %v2643_v55 = vrot.slane %v2635_v47, %v4435_v49  ;;  %v2659_v22 = vrot.slane %v2651_v48, %v4435_v49  ;;  %v2650_v56 = vrot.slane %v2636_v50, %v4435_v49  ;;  %v2666_v57 = vrot.slane %v2652_v51, %v4435_v49  ;;  %v3999_v48 = vld [vmem:[%s4889_s17 + $0x8] sm:$0xff]  }
 0xc1c   : > { %v2667_v59 = vcombine.low %v2643_v55, %v2659_v22  ;;  %v2668_v60 = vcombine.high %v2643_v55, %v2659_v22  ;;  %v2669_v52 = vcombine.low %v2650_v56, %v2666_v57  ;;  %v2670_v53 = vcombine.high %v2650_v56, %v2666_v57 }
 0xc1e   : > { %v2671_v62 = vpack.c.bf16 %v2667_v59, %v2667_v59  ;;  %v2672_v27 = vpack.c.bf16 %v2668_v60, %v2668_v60  ;;  %v2673_v3 = vpack.c.bf16 %v2669_v52, %v2669_v52  ;;  %v2674_v4 = vpack.c.bf16 %v2670_v53, %v2670_v53  ;;  %v4000_v60 = vld [vmem:[%s4889_s17] sm:$0xff]  }
 0xc20   : > { %v2925_v29 = vsel %vm1657_vm3, %v2671_v62, 0  ;;  %v2971_v2 = vsel %vm1657_vm3, %v2672_v27, 0  ;;  %v3017_v26 = vsel %vm1657_vm3, %v2673_v3, 0  ;;  %v3063_v28 = vsel %vm1657_vm3, %v2674_v4, 0 }
 0xc21   : > { %3888 = vmatpush3.bf16.msra.mxu0 %v2925_v29  ;;  %3894 = vmatpush3.bf16.msra.mxu1 %v2971_v2 }
 0xc22   : > { %3899 = vmatprep.subr.bf16.mxu0 %v4146_v8  ;;  %3905 = vmatprep.subr.bf16.mxu1 %v4146_v8 }
 0xc24   : > { %3890 = vmatmul.mubr.msk.bf16.vlgmr.msra.gmra.mxu0 %vm1413_vm2, %v2917_v5  ;;  %3896 = vmatmul.mubr.msk.bf16.vlgmr.msra.gmra.mxu1 %vm1413_vm2, %v2918_v6 }
 0xc25   : > { %3900 = vmatpush3.bf16.msra.mxu0 %v3017_v26  ;;  %3906 = vmatpush3.bf16.msra.mxu1 %v3063_v28 }
 0xc26   : > { %3901 = vmatprep.mubr.msk.bf16.mxu0 %vm4147_vm1, %v4146_v8  ;;  %3907 = vmatprep.mubr.msk.bf16.mxu1 %vm4147_vm1, %v4146_v8 }
 0xc27   : > { %3911 = vmatprep.subr.bf16.mxu0 %v4146_v8  ;;  %3919 = vmatprep.subr.bf16.mxu1 %v4146_v8 }
 0xc3b   : > { %v2908_v61 = vpop.xlane.xlu0 %2907 }
 0xc3c   : > { %4039 = vrcp.f32 %v2908_v61  ;;  %v2905_v44 = vpop.xlane.xlu1 %2904 }
 0xc3d   : > { %4041 = vrcp.f32 %v2905_v44 }
 0xc49   : > { %v4040_v45 = vpop.eup %4039 }
 0xc4a   : > { %v4042_v11 = vpop.eup %4041  ;;  %v2916_v12 = vmul.f32 %v4040_v45, %v4746_v7 }
 0xc4b   : > { %v2915_v13 = vmul.f32 %v4042_v11, %v4748_v9 }
 0xc4c   : > { %v2920_v14 = vpack.c.bf16 %v2916_v12, %v2916_v12 }
 0xc4d   : > { %v2919_v63 = vpack.c.bf16 %v2915_v13, %v2915_v13 }
 0xc4e   : > { %3908 = vmatmul.mubr.msk.bf16.vlgmr.msra.gmra.mxu1 %vm1413_vm2, %v2920_v14 }
 0xc4f   : > { %3902 = vmatmul.mubr.msk.bf16.vlgmr.msra.gmra.mxu0 %vm1413_vm2, %v2919_v63  ;;  %3923 = vmatprep.mubr.msk.bf16.mxu1 %vm4147_vm1, %v4146_v8  ;;  %v3710_v63 = vld [vmem:[%s4890_s18] ss:$0 sm:$0xff] }
 0xc50   : > { %3915 = vmatprep.mubr.msk.bf16.mxu0 %vm4147_vm1, %v4146_v8  ;;  %3912 = vmatpush3.bf16.msra.mxu0 %v3999_v48  ;;  %v3716_v48 = vld [vmem:[#allocation4] ss:$0 sm:$0xff] }
 0xc51   : > { %3913 = vmatprep.subr.bf16.mxu0 %v4146_v8 }
 0xc54   : > { %3914 = vmatpush3.bf16.msra.mxu0 %v4000_v60 }
 0xc55   : > { %3927 = vmatprep.subr.bf16.mxu0 %v4146_v8 }
 0xce4   : > { %v2961_v0 = vpop.f32.mrf.mxu0  ;;  %v3007_v15 = vpop.f32.mrf.mxu1 }
 0xce6   : > { %v3891_v16 = vpop.f32.mrf.mxu0  ;;  %v3897_v17 = vpop.f32.mrf.mxu1 }
 0xce8   : > { %v2964_v18 = vpop.f32.mrf.mxu0  ;;  %v3010_v7 = vpop.f32.mrf.mxu1 }
 0xcea   : > { %v3892_v19 = vpop.f32.mrf.mxu0  ;;  %v3898_v9 = vpop.f32.mrf.mxu1 }
 0xd0e   : > { %v3099_v20 = vpop.f32.mrf.mxu1 }
 0xd0f   : > { %v3053_v21 = vpop.f32.mrf.mxu0  ;;  %v3121_v23 = vcombine.low %v3007_v15, %v3099_v20  ;;  %v3122_v24 = vcombine.high %v3007_v15, %v3099_v20 }
 0xd10   : > { %v3105_v25 = vcombine.low %v2961_v0, %v3053_v21  ;;  %v3106_v30 = vcombine.high %v2961_v0, %v3053_v21  ;;  %v3909_v31 = vpop.f32.mrf.mxu1 }
 0xd11   : > { %v3129_v32 = vrot.slane %v3121_v23, %v4425_v39  ;;  %v3136_v33 = vrot.slane %v3122_v24, %v4425_v39  ;;  %v3903_v34 = vpop.f32.mrf.mxu0 }
 0xd12   : > { %v3113_v35 = vrot.slane %v3105_v25, %v4425_v39  ;;  %v3120_v36 = vrot.slane %v3106_v30, %v4425_v39  ;;  %v3102_v37 = vpop.f32.mrf.mxu1  ;;  %v4001_v25 = vld [vmem:[%s4893_s21 + $0x8] sm:$0xff]   ;;  %v3714_v34 = vld [vmem:[%s4891_s19] ss:$0 sm:$0xff] }
 0xd13   : > { %v3056_v38 = vpop.f32.mrf.mxu0  ;;  %3920 = vmatpush3.bf16.msra.mxu1 %v4001_v25 }
 0xd14   : > { %v3137_v40 = vcombine.low %v3113_v35, %v3129_v32  ;;  %v3138_v41 = vcombine.high %v3113_v35, %v3129_v32  ;;  %v3153_v42 = vcombine.low %v3120_v36, %v3136_v33  ;;  %v3154_v43 = vcombine.high %v3120_v36, %v3136_v33  ;;  %v3910_v47 = vpop.f32.mrf.mxu1  ;;  %3921 = vmatprep.subr.bf16.mxu1 %v4146_v8  ;;  %v3715_v36 = vld [vmem:[#allocation2] ss:$0 sm:$0xff] }
 0xd15   : > { %v3904_v50 = vpop.f32.mrf.mxu0  ;;  %v4006_v47 = vld [vmem:[%s4895_s23] sm:$0xff]  }
 0xd16   : > { %v3145_v51 = vrot.slane %v3137_v40, %v4435_v49  ;;  %v3152_v54 = vrot.slane %v3138_v41, %v4435_v49  ;;  %v3161_v55 = vrot.slane %v3153_v42, %v4435_v49  ;;  %v3168_v22 = vrot.slane %v3154_v43, %v4435_v49  ;;  %v4003_v41 = vld [vmem:[%s4895_s23 + $0x18] sm:$0xff]   ;;  %v4004_v42 = vld [vmem:[%s4895_s23 + $0x10] sm:$0xff]   ;;  %v4005_v43 = vld [vmem:[%s4895_s23 + $0x8] sm:$0xff]  }
 0xd18   : > { %v3173_v56 = vcombine.low %v3145_v51, %v3152_v54  ;;  %v3708_v57 = vcombine.high %v3145_v51, %v3152_v54  ;;  %v3189_v58 = vcombine.low %v3161_v55, %v3168_v22  ;;  %v3709_v59 = vcombine.high %v3161_v55, %v3168_v22 }
 0xd1a   : > { %v3180_v52 = vrot.slane %v3173_v56, %v4425_v39  ;;  %v3188_v53 = vrot.slane %v3708_v57, %v4425_v39  ;;  %v3196_v62 = vrot.slane %v3189_v58, %v4425_v39  ;;  %v3204_v27 = vrot.slane %v3709_v59, %v4425_v39 }
 0xd1c   : > { %v3206_v1 = vcombine.high %v3180_v52, %v3188_v53  ;;  %v3222_v46 = vcombine.high %v3196_v62, %v3204_v27  ;;  %v3205_v29 = vcombine.low %v3180_v52, %v3188_v53  ;;  %v3221_v2 = vcombine.low %v3196_v62, %v3204_v27 }
 0xd1e   : > { %v3220_v3 = vrot.slane %v3206_v1, %v4435_v49  ;;  %v3236_v4 = vrot.slane %v3222_v46, %v4435_v49  ;;  %v3213_v5 = vrot.slane %v3205_v29, %v4435_v49  ;;  %v3229_v6 = vrot.slane %v3221_v2, %v4435_v49 }
 0xd20   : > { %v3239_v26 = vcombine.low %v3220_v3, %v3236_v4  ;;  %v3238_v28 = vcombine.high %v3213_v5, %v3229_v6  ;;  %v3237_v61 = vcombine.low %v3213_v5, %v3229_v6  ;;  %v3240_v39 = vcombine.high %v3220_v3, %v3236_v4 }
 0xd22   : > { %3246 = vrot.lane.b32.xlu1 %v3239_v26, %s4936_s9  ;;  %3242 = vrot.lane.b32.xlu0 %v3238_v28, %s4937_s26 }
 0xd26   : > { %3250 = vrot.lane.b32.xlu1 %v3240_v39, %s4938_s7 }
 0xd94   : > { %v3247_v44 = vpop.permute.xlu1 %3246  ;;  %v3243_v45 = vpop.permute.xlu0 %3242 }
 0xd95   : > { %v3253_v11 = vsel %vm1413_vm2, %v3237_v61, %v3243_v45  ;;  %v4158_v61 = vmov -1.0  }
 0xd96   : > { %v3254_v13 = vsel %vm1988_vm4, %v3253_v11, %v3247_v44 }
 0xd98   : > { %v3251_v12 = vpop.permute.xlu1 %3250 }
 0xd99   : > { %v3255_v14 = vsel %vm1990_vm5, %v3254_v13, %v3251_v12 }
 0xd9a   : > { %v3256_v49 = vpack.c.bf16 %v3255_v14, %v3255_v14  ;;  %v3720_v14 = vld [vmem:[#allocation6] ss:$0 sm:$0xff] }
 0xd9c   : > { %3916 = vmatmul.mubr.msk.bf16.vlgmr.msra.gmra.mxu0 %vm858_vm0, %v3256_v49 }
 0xd9d   : > { %3935 = vmatprep.mubr.msk.bf16.mxu0 %vm4147_vm1, %v4146_v8  ;;  %3928 = vmatpush3.bf16.msra.mxu0 %v4003_v41 }
 0xd9e   : > { %3929 = vmatprep.subr.bf16.mxu0 %v4146_v8 }
 0xda1   : > { %3930 = vmatpush3.bf16.msra.mxu0 %v4004_v42 }
 0xda2   : > { %3931 = vmatprep.subr.bf16.mxu0 %v4146_v8 }
 0xda5   : > { %3932 = vmatpush3.bf16.msra.mxu0 %v4005_v43 }
 0xda6   : > { %3933 = vmatprep.subr.bf16.mxu0 %v4146_v8 }
 0xda9   : > { %3934 = vmatpush3.bf16.msra.mxu0 %v4006_v47 }
 0xe5c   : > { %v3312_v0 = vpop.f32.mrf.mxu0 }
 0xe5d   : > { %v3313_v15 = vadd.f32 %v3710_v63, %v3312_v0 }
 0xe5e   : > { %v3917_v16 = vpop.f32.mrf.mxu0 }
 0xe5f   : > { %v4831_v17 = vadd.f32 %v3313_v15, %v4593_v10  ;;  %v4002_v10 = vld [vmem:[%s4893_s21] sm:$0xff]  }
 0xe60   : > { %v3315_v18 = vpop.f32.mrf.mxu0  ;;  %3922 = vmatpush3.bf16.msra.mxu1 %v4002_v10 }
 0xe61   : > { %v3321_v7 = vsel %vm858_vm0, %v4831_v17, 0.0 }
 0xe62   : > { %3322 = vadd.xlane.f32.xlu0 %v3321_v7  ;;  %v3918_v19 = vpop.f32.mrf.mxu0 }
 0xeeb   : > { %v3323_v9 = vpop.xlane.xlu0 %3322 }
 0xeec   : > { %v3324_v20 = vmul.f32 0.03125, %v3323_v9 }
 0xeee   : > { %v3325_v21 = vsub.f32 %v4831_v17, %v3324_v20 }
 0xef0   : > { %v3326_v23 = vmul.f32 %v3325_v21, %v3325_v21 }
 0xef2   : > { %v3327_v24 = vsel %vm858_vm0, %v3326_v23, 0.0 }
 0xef3   : > { %3328 = vadd.xlane.f32.xlu1 %v3327_v24 }
 0xf7c   : > { %v3329_v30 = vpop.xlane.xlu1 %3328 }
 0xf7d   : > { %v3330_v31 = vmul.f32 0.03125, %v3329_v30 }
 0xf7f   : > { %v3331_v32 = vadd.f32 1e-05, %v3330_v31 }
 0xf81   : > { %4043 = vrsqrt.f32 %v3331_v32 }
 0xf8e   : > { %v4044_v33 = vpop.eup %4043 }
 0xf8f   : > { %v3333_v35 = vmul.f32 %v4044_v33, %v3325_v21 }
 0xf91   : > { %v3340_v37 = vmul.f32 %v3714_v34, %v3333_v35 }
 0xf93   : > { %v3347_v38 = vadd.f32 %v3715_v36, %v3340_v37 }
 0xf95   : > { %v3362_v40 = vpack.c.bf16 %v3347_v38, %v3347_v38 }
 0xf97   : > { %3924 = vmatmul.mubr.msk.bf16.vlgmr.msra.gmra.mxu1 %vm858_vm0, %v3362_v40 }
0x1057   : > { %v3418_v50 = vpop.f32.mrf.mxu1 }
0x1058   : > { %v3419_v51 = vadd.f32 %v3716_v48, %v3418_v50 }
0x1059   : > { %v3925_v54 = vpop.f32.mrf.mxu1 }
0x105a   : > { %v3425_v55 = vmul.f32 0.70710677, %v3419_v51  ;;  %v3424_v45 = vmul.f32 0.5, %v3419_v51 }
0x105b   : > { %v3421_v22 = vpop.f32.mrf.mxu1 }
0x105c   : > { %v3428_v56 = vand.u32 2147483647, %v3425_v55  ;;  %vm3426_vm6 = vcmp.ge.f32.partialorder %v3425_v55, 0.0 }
0x105d   : > { %v3926_v57 = vpop.f32.mrf.mxu1  ;;  %v3427_v39 = vsel %vm3426_vm6, 1.0, %v4158_v61 }
0x105e   : > { %v3429_v58 = vmul.f32 0.3275911, %v3428_v56  ;;  %v3442_v60 = vsub.f32 0.0, %v3428_v56 }
0x1060   : > { %v3430_v59 = vadd.f32 1.0, %v3429_v58  ;;  %v3443_v52 = vmul.f32 %v3442_v60, %v3428_v56 }
0x1062   : > { %4045 = vrcp.f32 %v3430_v59  ;;  %v3444_v62 = vmul.f32 1.442695, %v3443_v52 }
0x1064   : > { %4047 = vpow2.f32 %v3444_v62 }
0x106f   : > { %v4046_v53 = vpop.eup %4045 }
0x1070   : > { %v3433_v8 = vmul.f32 1.0614054, %v4046_v53 }
0x1071   : > { %v4048_v6 = vpop.eup %4047 }
0x1072   : > { %v3434_v27 = vadd.f32 -1.4531521, %v3433_v8 }
0x1074   : > { %v3435_v1 = vmul.f32 %v4046_v53, %v3434_v27 }
0x1076   : > { %v3436_v46 = vadd.f32 1.4214138, %v3435_v1 }
0x1078   : > { %v3437_v29 = vmul.f32 %v4046_v53, %v3436_v46 }
0x107a   : > { %v3438_v2 = vadd.f32 -0.28449672, %v3437_v29 }
0x107c   : > { %v3439_v3 = vmul.f32 %v4046_v53, %v3438_v2 }
0x107e   : > { %v3440_v4 = vadd.f32 0.2548296, %v3439_v3 }
0x1080   : > { %v3441_v5 = vmul.f32 %v4046_v53, %v3440_v4 }
0x1082   : > { %v3446_v26 = vmul.f32 %v4048_v6, %v3441_v5 }
0x1084   : > { %v3447_v28 = vsub.f32 1.0, %v3446_v26 }
0x1086   : > { %v3448_v44 = vmul.f32 %v3447_v28, %v3427_v39 }
0x1088   : > { %v3449_v11 = vadd.f32 1.0, %v3448_v44 }
0x108a   : > { %v3450_v12 = vmul.f32 %v3449_v11, %v3424_v45 }
0x108c   : > { %v3451_v13 = vpack.c.bf16 %v3450_v12, %v3450_v12 }
0x108e   : > { %3936 = vmatmul.mubr.msk.bf16.vlgmr.msra.gmra.mxu0 %vm3482_vm7, %v3451_v13 }
0x114e   : > { %v3520_v49 = vpop.f32.mrf.mxu0 }
0x114f   : > { %v3521_v63 = vadd.f32 %v3720_v14, %v3520_v49 }
0x1150   : > { %v3937_v0 = vpop.f32.mrf.mxu0 }
0x1151   : > { %v3526_v15 = vadd.f32 %v3521_v63, %v4831_v17 }
0x1152   : > { %v3523_v16 = vpop.f32.mrf.mxu0 }
0x1153   : > { %3527 = vst.msk [vmem:[%s842_s30] sm:$0xff] %vm858_vm0, %v3526_v15 }
0x1154   : > { %v3938_v18 = vpop.f32.mrf.mxu0 }
0x1155 PF: > { %s37_s29 = sadd.s32 1, %s4141_s29  }
0x1156   : > { %p34_p3 = scmp.ge.s32.totalorder %s37_s29, 4  }
0x1158   :  { %36 = sbr.rel (!%p34_p3) target bundleno = 13 (0xd), region = 172 }
0x115d   :  { %3547 = vsyncpa [#allocation3], 1 }
0x115e   :  { %3549 = vsyncpa [#allocation3 + $0x1], 1 }
0x115f   :  { %3550 = vsyncpa [#allocation5], 1 }

</bundles_post_ra>
